<compile_context>
chip_gen: v7x
topology: tpu7x:2x2x1
jax: 0.10.0
libtpu: 0.0.40
codegen_flags: <defaults>
</compile_context>

<pallas_src>
import functools

import jax
import jax.numpy as jnp
from jax import lax
from jax.experimental import pallas as pl
from jax.experimental.pallas import tpu as pltpu

BN_EPS = 1e-5
LEAKY_SLOPE = 0.01            # torch.nn.LeakyReLU default
LANE = 128                    # TPU lane width; channel padding target
COMPUTE_DTYPE = jnp.bfloat16  # MXU inputs + stored activations (f32 accum/BN)
VMEM_LIMIT_BYTES = 48 * 1024 * 1024   # < v7x 64 MiB/TC physical; fine on v5e/v6e
MAX_PATCH_BYTES = 4 * 1024 * 1024     # cap on the per-tile im2col patch


def _round_up(x, m):
    return (x + m - 1) // m * m


def _pick_row_tile(h_out, w_out, cp_in, target=32):
    """Largest divisor of h_out that is <= target and keeps the per-tile im2col
    patch under MAX_PATCH_BYTES (divisor tiles keep BN partials exact)."""
    patch_row_bytes = w_out * 9 * cp_in * 2  # bf16 patch row
    cap = max(1, min(target, MAX_PATCH_BYTES // max(patch_row_bytes, 1)))
    for t in range(min(cap, h_out), 0, -1):
        if h_out % t == 0:
            return t
    return 1


# ----------------------------------------------------------------------------
# Kernel 1: 3x3 conv as ONE K=9*Cpad MXU matmul (+ optional fused input-side
#           BN + LeakyReLU) + bias + BN partial statistics
# ----------------------------------------------------------------------------
def _conv_stats_kernel(x_ref, w_ref, aff_ref, b_ref, y_ref, stats_ref, *,
                       stride, t_ho, w_out, cp_in, in_h, in_w, fuse_input_bn):
    """One row-tile of the convolution.

    x_ref     : (1, HG, stride, WG, stride*cp_in)  whole padded image (bf16),
                grouped by `stride` so every 3x3 tap is a unit-stride slice.
                Resident across the row-tile grid axis.  Interior = RAW values
                of the previous layer (or the true input); halo = zeros.
    w_ref     : (9*cp_in, cp_out) packed weights, bf16.
    aff_ref   : (2, cp_in) f32 [scale, shift] of the PREVIOUS layer's BN;
                applied per tap (with LeakyReLU) when fuse_input_bn is True so
                the activated intermediate never round-trips through HBM.
    b_ref     : (1, cp_out) f32 conv bias (added to the f32 accumulator).
    y_ref     : (1, t_ho, w_out, cp_out) raw (pre-BN) conv output tile, bf16.
    stats_ref : (1, 1, 2, cp_out) f32 per-tile [sum, sum of squares], computed
                from the f32 accumulator so BN stats stay exact.
    """
    t = pl.program_id(1)
    if fuse_input_bn:
        scale = aff_ref[0:1, :].reshape(1, 1, cp_in)
        shift = aff_ref[1:2, :].reshape(1, 1, cp_in)
        h_out_total = (in_h - 1) // stride + 1

    taps = []
    for dh in range(3):
        for dw in range(3):
            rg0 = t * t_ho + dh // stride        # row-group start (dynamic)
            cg0 = dw // stride                   # col-group start (static)
            lo = (dw % stride) * cp_in           # lane offset of col parity
            sl = x_ref[0, pl.ds(rg0, t_ho), dh % stride,
                       cg0:cg0 + w_out, lo:lo + cp_in]   # (t_ho, w_out, cp_in)
            if fuse_input_bn:
                z = sl.astype(jnp.float32) * scale + shift
                z = jnp.where(z >= 0.0, z, LEAKY_SLOPE * z)
                # x_ref's halo holds *raw* zeros; after the affine they would
                # become `shift`, so force the activated padding back to
                # exactly zero (matches Conv2d zero padding of the activation).
                need_row = (dh == 0) or (stride * (h_out_total - 1) + dh > in_h)
                need_col = (dw == 0) or (stride * (w_out - 1) + dw > in_w)
                if need_row or need_col:
                    inside = None
                    if need_row:
                        prow = stride * (t * t_ho + lax.broadcasted_iota(
                            jnp.int32, z.shape, 0)) + dh
                        inside = (prow >= 1) & (prow <= in_h)
                    if need_col:
                        pcol = stride * lax.broadcasted_iota(
                            jnp.int32, z.shape, 1) + dw
                        cmask = (pcol >= 1) & (pcol <= in_w)
                        inside = cmask if inside is None else (inside & cmask)
                    z = jnp.where(inside, z, 0.0)
                sl = z.astype(COMPUTE_DTYPE)
            taps.append(sl.reshape(t_ho * w_out, cp_in))

    patch = jnp.concatenate(taps, axis=-1)                  # (M, 9*cp_in) bf16
    acc = jnp.dot(patch, w_ref[...], preferred_element_type=jnp.float32)
    acc = acc + b_ref[...]                                   # conv bias (f32)

    cp_out = y_ref.shape[-1]
    y_ref[...] = acc.reshape(1, t_ho, w_out, cp_out).astype(y_ref.dtype)
    # Single combined store of the per-tile BN partials [sum; sum of squares].
    sums = jnp.concatenate([jnp.sum(acc, axis=0, keepdims=True),
                            jnp.sum(acc * acc, axis=0, keepdims=True)], axis=0)
    stats_ref[...] = sums.reshape(1, 1, 2, cp_out)


def _conv_pallas(xg, w_packed, affine, bias, *, stride, in_h, in_w, h_out,
                 w_out, t_ho, fuse_input_bn, batch_parallel):
    n, hg, _, wg, lanes = xg.shape
    cp_in = lanes // stride
    cp_out = w_packed.shape[-1]
    n_tiles = h_out // t_ho
    kernel = functools.partial(
        _conv_stats_kernel, stride=stride, t_ho=t_ho, w_out=w_out,
        cp_in=cp_in, in_h=in_h, in_w=in_w, fuse_input_bn=fuse_input_bn)
    # Keep the batch axis as the core-parallel one (v7x megacore): each core
    # then only fetches/holds the resident copies of its own images.
    dims = (("parallel", "arbitrary") if batch_parallel
            else ("arbitrary", "parallel"))
    return pl.pallas_call(
        kernel,
        out_shape=(
            jax.ShapeDtypeStruct((n, h_out, w_out, cp_out), COMPUTE_DTYPE),
            jax.ShapeDtypeStruct((n, n_tiles, 2, cp_out), jnp.float32),
        ),
        grid_spec=pltpu.PrefetchScalarGridSpec(
            num_scalar_prefetch=0,
            grid=(n, n_tiles),
            in_specs=[
                # Whole padded image, index ignores the tile axis -> fetched
                # once per image and kept resident (auto-pipelined), bf16.
                pl.BlockSpec((1, hg, stride, wg, lanes),
                             lambda i, t: (i, 0, 0, 0, 0)),
                pl.BlockSpec((9 * cp_in, cp_out), lambda i, t: (0, 0)),
                pl.BlockSpec((2, cp_in), lambda i, t: (0, 0)),
                pl.BlockSpec((1, cp_out), lambda i, t: (0, 0)),
            ],
            out_specs=(
                pl.BlockSpec((1, t_ho, w_out, cp_out),
                             lambda i, t: (i, t, 0, 0)),
                pl.BlockSpec((1, 1, 2, cp_out), lambda i, t: (i, t, 0, 0)),
            ),
        ),
        compiler_params=pltpu.CompilerParams(
            dimension_semantics=dims,
            vmem_limit_bytes=VMEM_LIMIT_BYTES),
    )(xg, w_packed, affine, bias)


# ----------------------------------------------------------------------------
# Kernel 2: final BatchNorm normalise (precomputed scale/shift) + LeakyReLU
# ----------------------------------------------------------------------------
def _bn_lrelu_kernel(y_ref, scale_ref, shift_ref, o_ref):
    z = y_ref[...].astype(jnp.float32) * scale_ref[...] + shift_ref[...]
    o_ref[...] = jnp.where(z >= 0.0, z, LEAKY_SLOPE * z)


def _bn_lrelu_pallas(y_flat, scale, shift, *, tile_rows=1024):
    p, cp = y_flat.shape
    tp = min(tile_rows, p)
    return pl.pallas_call(
        _bn_lrelu_kernel,
        out_shape=jax.ShapeDtypeStruct((p, cp), jnp.float32),
        grid_spec=pltpu.PrefetchScalarGridSpec(
            num_scalar_prefetch=0,
            grid=(pl.cdiv(p, tp),),
            in_specs=[
                pl.BlockSpec((tp, cp), lambda i: (i, 0)),
                pl.BlockSpec((1, cp), lambda i: (0, 0)),
                pl.BlockSpec((1, cp), lambda i: (0, 0)),
            ],
            out_specs=pl.BlockSpec((tp, cp), lambda i: (i, 0)),
        ),
        compiler_params=pltpu.CompilerParams(
            dimension_semantics=("parallel",),
            vmem_limit_bytes=VMEM_LIMIT_BYTES),
    )(y_flat, scale.reshape(1, cp), shift.reshape(1, cp))


# ----------------------------------------------------------------------------
# Host-side helpers (tiny ops between the pallas calls)
# ----------------------------------------------------------------------------
def _pad_group_cast(x, cp, stride):
    """Channel-pad to `cp` lanes, spatially zero-pad by 1 (plus bottom/right
    filler so the padded extents are multiples of `stride`), cast to bf16, and
    reshape (free, row-major) into the stride-grouped layout the conv kernel
    slices with unit stride."""
    n, h, w, c = x.shape
    if c != cp:
        x = jnp.pad(x, ((0, 0), (0, 0), (0, 0), (0, cp - c)))
    hp = _round_up(h + 2, stride)
    wp = _round_up(w + 2, stride)
    xp = jnp.pad(x, ((0, 0), (1, hp - h - 1), (1, wp - w - 1), (0, 0)))
    xp = xp.astype(COMPUTE_DTYPE)
    return xp.reshape(n, hp // stride, stride, wp // stride, stride * cp)


def _bn_scale_shift(stats, gamma, beta, count):
    """Assemble training-mode BN scale/shift from per-tile [sum, sum_sq]."""
    total = jnp.sum(stats, axis=(0, 1))            # (2, cp)
    cnt = jnp.float32(count)
    mean = total[0] / cnt
    var = jnp.maximum(total[1] / cnt - mean * mean, 0.0)
    scale = gamma * jax.lax.rsqrt(var + BN_EPS)
    shift = beta - mean * scale
    return scale, shift


def _pack_weight(w_hwio, cp_in, cp_out):
    kh, kw, ci, co = w_hwio.shape
    wp = jnp.pad(w_hwio, ((0, 0), (0, 0), (0, cp_in - ci), (0, cp_out - co)))
    return wp.reshape(kh * kw * cp_in, cp_out).astype(COMPUTE_DTYPE)


def _pad_vec(v, cp):
    return jnp.pad(v, (0, cp - v.shape[0]))


# ----------------------------------------------------------------------------
# ConvBlock forward
# ----------------------------------------------------------------------------
def conv_block_forward_nhwc(x_nhwc, params):
    """ConvBlock forward, NHWC in / NHWC out (layout-conversion-free path)."""
    n, h, w, cin = x_nhwc.shape
    cout = params["w1"].shape[-1]
    cp_in = _round_up(cin, LANE)
    cp_out = _round_up(cout, LANE)
    batch_parallel = n >= 2

    w1p = _pack_weight(params["w1"], cp_in, cp_out)
    w2p = _pack_weight(params["w2"], cp_out, cp_out)
    b1p = _pad_vec(params["b1"], cp_out).reshape(1, cp_out)
    b2p = _pad_vec(params["b2"], cp_out).reshape(1, cp_out)
    g1 = _pad_vec(params["g1"], cp_out)
    be1 = _pad_vec(params["be1"], cp_out)
    g2 = _pad_vec(params["g2"], cp_out)
    be2 = _pad_vec(params["be2"], cp_out)

    # ---- layer 1: Conv3x3/s1 (raw bf16 output) + BN partial stats ----------
    h1, w1o = h, w
    xg1 = _pad_group_cast(x_nhwc, cp_in, stride=1)
    ident = jnp.stack([jnp.ones((cp_in,), jnp.float32),
                       jnp.zeros((cp_in,), jnp.float32)])
    t1 = _pick_row_tile(h1, w1o, cp_in)
    y1, stats1 = _conv_pallas(xg1, w1p, ident, b1p, stride=1, in_h=h, in_w=w,
                              h_out=h1, w_out=w1o, t_ho=t1,
                              fuse_input_bn=False,
                              batch_parallel=batch_parallel)
    scale1, shift1 = _bn_scale_shift(stats1, g1, be1, n * h1 * w1o)

    # ---- layer 2: BN1 + LeakyReLU fused into the tap path, Conv3x3/s2 ------
    h2 = (h1 - 1) // 2 + 1
    w2o = (w1o - 1) // 2 + 1
    xg2 = _pad_group_cast(y1, cp_out, stride=2)     # raw bf16 y1, zero halo
    aff1 = jnp.stack([scale1, shift1])
    t2 = _pick_row_tile(h2, w2o, cp_out)
    y2, stats2 = _conv_pallas(xg2, w2p, aff1, b2p, stride=2, in_h=h1, in_w=w1o,
                              h_out=h2, w_out=w2o, t_ho=t2,
                              fuse_input_bn=True,
                              batch_parallel=batch_parallel)
    scale2, shift2 = _bn_scale_shift(stats2, g2, be2, n * h2 * w2o)

    # ---- final BN2 + LeakyReLU (module output; f32 for interface parity) ---
    out = _bn_lrelu_pallas(y2.reshape(n * h2 * w2o, cp_out), scale2, shift2)
    return out.reshape(n, h2, w2o, cp_out)[..., :cout]


def conv_block_forward(x_nchw, params):
    # NCHW wrapper for PyTorch-interface parity only; do this conversion once
    # per model, not per block.
    x = jnp.transpose(x_nchw, (0, 2, 3, 1))
    y = conv_block_forward_nhwc(x, params)
    return jnp.transpose(y, (0, 3, 1, 2))


# ----------------------------------------------------------------------------
# Pure-JAX reference (lax.conv) for validation.  Mirrors the kernel's precision
# choices: bf16 MXU inputs (f32 accumulation) and bf16 storage of the raw conv
# output before BN is applied (BN stats themselves stay f32).
# ----------------------------------------------------------------------------
def _ref_forward(x_nchw, params):
    x = jnp.transpose(x_nchw, (0, 2, 3, 1))

    def conv(h, w, b, stride):
        y = jax.lax.conv_general_dilated(
            h.astype(COMPUTE_DTYPE), w.astype(COMPUTE_DTYPE),
            (stride, stride), [(1, 1), (1, 1)],
            dimension_numbers=("NHWC", "HWIO", "NHWC"),
            preferred_element_type=jnp.float32)
        return y + b.reshape(1, 1, 1, -1)

    def bn_lrelu(y, g, be):
        mean = jnp.mean(y, axis=(0, 1, 2))
        var = jnp.mean((y - mean) ** 2, axis=(0, 1, 2))
        scale = g * jax.lax.rsqrt(var + BN_EPS)
        shift = be - mean * scale
        z = y.astype(COMPUTE_DTYPE).astype(jnp.float32) * scale + shift
        return jnp.where(z >= 0.0, z, LEAKY_SLOPE * z)

    a1 = bn_lrelu(conv(x, params["w1"], params["b1"], 1),
                  params["g1"], params["be1"])
    a2 = bn_lrelu(conv(a1, params["w2"], params["b2"], 2),
                  params["g2"], params["be2"])
    return jnp.transpose(a2, (0, 3, 1, 2))


def init_params(key, in_channels, out_channels):
    k1, k2, k3, k4, k5, k6 = jax.random.split(key, 6)
    fan1, fan2 = 9 * in_channels, 9 * out_channels
    return {
        # conv weights stored in HWIO: (3, 3, Cin, Cout)
        "w1": jax.random.normal(k1, (3, 3, in_channels, out_channels),
                                jnp.float32) * (2.0 / fan1) ** 0.5,
        "b1": jax.random.normal(k2, (out_channels,), jnp.float32) * 0.1,
        "g1": 1.0 + 0.1 * jax.random.normal(k5, (out_channels,), jnp.float32),
        "be1": 0.1 * jax.random.normal(k6, (out_channels,), jnp.float32),
        "w2": jax.random.normal(k3, (3, 3, out_channels, out_channels),
                                jnp.float32) * (2.0 / fan2) ** 0.5,
        "b2": jax.random.normal(k4, (out_channels,), jnp.float32) * 0.1,
        "g2": jnp.ones((out_channels,), jnp.float32),    # torch default
        "be2": jnp.zeros((out_channels,), jnp.float32),  # torch default
    }


if __name__ == "__main__":
    N, Cin, Cout, H, W = 2, 4, 8, 16, 16

    key = jax.random.PRNGKey(0)
    kx, kp = jax.random.split(key)
    x = jax.random.normal(kx, (N, Cin, H, W), jnp.float32)
    params = init_params(kp, Cin, Cout)

    fwd = jax.jit(functools.partial(conv_block_forward, params=params))
    out = jax.block_until_ready(fwd(x))
    assert out.shape == (N, Cout, H // 2, W // 2), out.shape

    ref = jax.block_until_ready(
        jax.jit(functools.partial(_ref_forward, params=params))(x))
    max_err = float(jnp.max(jnp.abs(out - ref)))
    assert max_err < 5e-3, f"max abs err vs reference = {max_err}"

    print("KERNEL_OK")
</pallas_src>

<mosaic_0001>
module attributes {stable_mosaic.version = 11 : i64} {
  func.func @_conv_stats_kernel(%arg0: i32, %arg1: i32, %arg2: memref<1x18x1x18x128xbf16, #tpu.memory_space<vmem>>, %arg3: memref<1152x128xbf16, #tpu.memory_space<vmem>>, %arg4: memref<2x128xf32, #tpu.memory_space<vmem>>, %arg5: memref<1x128xf32, #tpu.memory_space<vmem>>, %arg6: memref<1x16x16x128xbf16, #tpu.memory_space<vmem>>, %arg7: memref<1x1x2x128xf32, #tpu.memory_space<vmem>>) attributes {dimension_semantics = [#tpu.dimension_semantics<parallel>, #tpu.dimension_semantics<arbitrary>], iteration_bounds = array<i64: 2, 1>, scalar_prefetch = 0 : i64, scratch_operands = 0 : i64, tpu.core_type = #tpu.core_type<tc>, window_params = [{transform_indices = @transform_0, window_bounds = array<i64: 1, 18, 1, 18, 128>}, {pipeline_mode = #tpu.pipeline_mode<synchronous>, transform_indices = @transform_1, window_bounds = array<i64: 1152, 128>}, {pipeline_mode = #tpu.pipeline_mode<synchronous>, transform_indices = @transform_2, window_bounds = array<i64: 2, 128>}, {pipeline_mode = #tpu.pipeline_mode<synchronous>, transform_indices = @transform_3, window_bounds = array<i64: 1, 128>}, {transform_indices = @transform_4, window_bounds = array<i64: 1, 16, 16, 128>}, {transform_indices = @transform_5, window_bounds = array<i64: 1, 1, 2, 128>}]} {
    %c16_i32 = arith.constant 16 : i32
    %0 = arith.muli %arg1, %c16_i32 : i32
    %c0_i32 = arith.constant 0 : i32
    %1 = arith.addi %0, %c0_i32 : i32
    %c0 = arith.constant 0 : index
    %2 = arith.index_cast %1 : i32 to index
    %c0_0 = arith.constant 0 : index
    %c0_1 = arith.constant 0 : index
    %c0_2 = arith.constant 0 : index
    %3 = vector.load %arg2[%c0, %2, %c0_0, %c0_1, %c0_2] : memref<1x18x1x18x128xbf16, #tpu.memory_space<vmem>>, vector<1x16x1x16x128xbf16>
    %4 = vector.shape_cast %3 : vector<1x16x1x16x128xbf16> to vector<16x16x128xbf16>
    %5 = vector.shape_cast %4 : vector<16x16x128xbf16> to vector<256x128xbf16>
    %c16_i32_3 = arith.constant 16 : i32
    %6 = arith.muli %arg1, %c16_i32_3 : i32
    %c0_i32_4 = arith.constant 0 : i32
    %7 = arith.addi %6, %c0_i32_4 : i32
    %c0_5 = arith.constant 0 : index
    %8 = arith.index_cast %7 : i32 to index
    %c0_6 = arith.constant 0 : index
    %c1 = arith.constant 1 : index
    %c0_7 = arith.constant 0 : index
    %9 = vector.load %arg2[%c0_5, %8, %c0_6, %c1, %c0_7] : memref<1x18x1x18x128xbf16, #tpu.memory_space<vmem>>, vector<1x16x1x16x128xbf16>
    %10 = vector.shape_cast %9 : vector<1x16x1x16x128xbf16> to vector<16x16x128xbf16>
    %11 = vector.shape_cast %10 : vector<16x16x128xbf16> to vector<256x128xbf16>
    %c16_i32_8 = arith.constant 16 : i32
    %12 = arith.muli %arg1, %c16_i32_8 : i32
    %c0_i32_9 = arith.constant 0 : i32
    %13 = arith.addi %12, %c0_i32_9 : i32
    %c0_10 = arith.constant 0 : index
    %14 = arith.index_cast %13 : i32 to index
    %c0_11 = arith.constant 0 : index
    %c2 = arith.constant 2 : index
    %c0_12 = arith.constant 0 : index
    %15 = vector.load %arg2[%c0_10, %14, %c0_11, %c2, %c0_12] : memref<1x18x1x18x128xbf16, #tpu.memory_space<vmem>>, vector<1x16x1x16x128xbf16>
    %16 = vector.shape_cast %15 : vector<1x16x1x16x128xbf16> to vector<16x16x128xbf16>
    %17 = vector.shape_cast %16 : vector<16x16x128xbf16> to vector<256x128xbf16>
    %c16_i32_13 = arith.constant 16 : i32
    %18 = arith.muli %arg1, %c16_i32_13 : i32
    %c1_i32 = arith.constant 1 : i32
    %19 = arith.addi %18, %c1_i32 : i32
    %c0_14 = arith.constant 0 : index
    %20 = arith.index_cast %19 : i32 to index
    %c0_15 = arith.constant 0 : index
    %c0_16 = arith.constant 0 : index
    %c0_17 = arith.constant 0 : index
    %21 = vector.load %arg2[%c0_14, %20, %c0_15, %c0_16, %c0_17] : memref<1x18x1x18x128xbf16, #tpu.memory_space<vmem>>, vector<1x16x1x16x128xbf16>
    %22 = vector.shape_cast %21 : vector<1x16x1x16x128xbf16> to vector<16x16x128xbf16>
    %23 = vector.shape_cast %22 : vector<16x16x128xbf16> to vector<256x128xbf16>
    %c16_i32_18 = arith.constant 16 : i32
    %24 = arith.muli %arg1, %c16_i32_18 : i32
    %c1_i32_19 = arith.constant 1 : i32
    %25 = arith.addi %24, %c1_i32_19 : i32
    %c0_20 = arith.constant 0 : index
    %26 = arith.index_cast %25 : i32 to index
    %c0_21 = arith.constant 0 : index
    %c1_22 = arith.constant 1 : index
    %c0_23 = arith.constant 0 : index
    %27 = vector.load %arg2[%c0_20, %26, %c0_21, %c1_22, %c0_23] : memref<1x18x1x18x128xbf16, #tpu.memory_space<vmem>>, vector<1x16x1x16x128xbf16>
    %28 = vector.shape_cast %27 : vector<1x16x1x16x128xbf16> to vector<16x16x128xbf16>
    %29 = vector.shape_cast %28 : vector<16x16x128xbf16> to vector<256x128xbf16>
    %c16_i32_24 = arith.constant 16 : i32
    %30 = arith.muli %arg1, %c16_i32_24 : i32
    %c1_i32_25 = arith.constant 1 : i32
    %31 = arith.addi %30, %c1_i32_25 : i32
    %c0_26 = arith.constant 0 : index
    %32 = arith.index_cast %31 : i32 to index
    %c0_27 = arith.constant 0 : index
    %c2_28 = arith.constant 2 : index
    %c0_29 = arith.constant 0 : index
    %33 = vector.load %arg2[%c0_26, %32, %c0_27, %c2_28, %c0_29] : memref<1x18x1x18x128xbf16, #tpu.memory_space<vmem>>, vector<1x16x1x16x128xbf16>
    %34 = vector.shape_cast %33 : vector<1x16x1x16x128xbf16> to vector<16x16x128xbf16>
    %35 = vector.shape_cast %34 : vector<16x16x128xbf16> to vector<256x128xbf16>
    %c16_i32_30 = arith.constant 16 : i32
    %36 = arith.muli %arg1, %c16_i32_30 : i32
    %c2_i32 = arith.constant 2 : i32
    %37 = arith.addi %36, %c2_i32 : i32
    %c0_31 = arith.constant 0 : index
    %38 = arith.index_cast %37 : i32 to index
    %c0_32 = arith.constant 0 : index
    %c0_33 = arith.constant 0 : index
    %c0_34 = arith.constant 0 : index
    %39 = vector.load %arg2[%c0_31, %38, %c0_32, %c0_33, %c0_34] : memref<1x18x1x18x128xbf16, #tpu.memory_space<vmem>>, vector<1x16x1x16x128xbf16>
    %40 = vector.shape_cast %39 : vector<1x16x1x16x128xbf16> to vector<16x16x128xbf16>
    %41 = vector.shape_cast %40 : vector<16x16x128xbf16> to vector<256x128xbf16>
    %c16_i32_35 = arith.constant 16 : i32
    %42 = arith.muli %arg1, %c16_i32_35 : i32
    %c2_i32_36 = arith.constant 2 : i32
    %43 = arith.addi %42, %c2_i32_36 : i32
    %c0_37 = arith.constant 0 : index
    %44 = arith.index_cast %43 : i32 to index
    %c0_38 = arith.constant 0 : index
    %c1_39 = arith.constant 1 : index
    %c0_40 = arith.constant 0 : index
    %45 = vector.load %arg2[%c0_37, %44, %c0_38, %c1_39, %c0_40] : memref<1x18x1x18x128xbf16, #tpu.memory_space<vmem>>, vector<1x16x1x16x128xbf16>
    %46 = vector.shape_cast %45 : vector<1x16x1x16x128xbf16> to vector<16x16x128xbf16>
    %47 = vector.shape_cast %46 : vector<16x16x128xbf16> to vector<256x128xbf16>
    %c16_i32_41 = arith.constant 16 : i32
    %48 = arith.muli %arg1, %c16_i32_41 : i32
    %c2_i32_42 = arith.constant 2 : i32
    %49 = arith.addi %48, %c2_i32_42 : i32
    %c0_43 = arith.constant 0 : index
    %50 = arith.index_cast %49 : i32 to index
    %c0_44 = arith.constant 0 : index
    %c2_45 = arith.constant 2 : index
    %c0_46 = arith.constant 0 : index
    %51 = vector.load %arg2[%c0_43, %50, %c0_44, %c2_45, %c0_46] : memref<1x18x1x18x128xbf16, #tpu.memory_space<vmem>>, vector<1x16x1x16x128xbf16>
    %52 = vector.shape_cast %51 : vector<1x16x1x16x128xbf16> to vector<16x16x128xbf16>
    %53 = vector.shape_cast %52 : vector<16x16x128xbf16> to vector<256x128xbf16>
    %54 = tpu.concatenate %5, %11, %17, %23, %29, %35, %41, %47, %53 in 1 : vector<256x128xbf16>, vector<256x128xbf16>, vector<256x128xbf16>, vector<256x128xbf16>, vector<256x128xbf16>, vector<256x128xbf16>, vector<256x128xbf16>, vector<256x128xbf16>, vector<256x128xbf16> -> vector<256x1152xbf16>
    %c0_47 = arith.constant 0 : index
    %c0_48 = arith.constant 0 : index
    %55 = vector.load %arg3[%c0_47, %c0_48] : memref<1152x128xbf16, #tpu.memory_space<vmem>>, vector<1152x128xbf16>
    %cst = arith.constant dense<0.000000e+00> : vector<256x128xf32>
    %56 = tpu.matmul %54, %55, %cst {dimension_numbers = #tpu.dot_dimension_numbers<[1], [0], [0], [1], [0, 0, 1, 1], [], []>} : vector<256x1152xbf16>, vector<1152x128xbf16>, vector<256x128xf32> -> vector<256x128xf32>
    %c0_49 = arith.constant 0 : index
    %c0_50 = arith.constant 0 : index
    %57 = vector.load %arg5[%c0_49, %c0_50] : memref<1x128xf32, #tpu.memory_space<vmem>>, vector<1x128xf32>
    %58 = vector.broadcast %57 : vector<1x128xf32> to vector<256x128xf32>
    %59 = arith.addf %56, %58 : vector<256x128xf32>
    %60 = vector.shape_cast %59 : vector<256x128xf32> to vector<1x16x16x128xf32>
    %61 = arith.truncf %60 : vector<1x16x16x128xf32> to vector<1x16x16x128xbf16>
    %c0_51 = arith.constant 0 : index
    %c0_52 = arith.constant 0 : index
    %c0_53 = arith.constant 0 : index
    %c0_54 = arith.constant 0 : index
    %62 = vector.load %arg6[%c0_51, %c0_52, %c0_53, %c0_54] : memref<1x16x16x128xbf16, #tpu.memory_space<vmem>>, vector<1x16x16x128xbf16>
    tpu.vector_store %arg6[%c0_51, %c0_52, %c0_53, %c0_54], %61 {strides = array<i32>} : memref<1x16x16x128xbf16, #tpu.memory_space<vmem>>, vector<1x16x16x128xbf16>,
    %cst_55 = arith.constant dense<0.000000e+00> : vector<128xf32>
    %63 = vector.multi_reduction <add>, %59, %cst_55 [0] : vector<256x128xf32> to vector<128xf32>
    %64 = vector.shape_cast %63 : vector<128xf32> to vector<1x128xf32>
    %65 = arith.mulf %59, %59 : vector<256x128xf32>
    %cst_56 = arith.constant dense<0.000000e+00> : vector<128xf32>
    %66 = vector.multi_reduction <add>, %65, %cst_56 [0] : vector<256x128xf32> to vector<128xf32>
    %67 = vector.shape_cast %66 : vector<128xf32> to vector<1x128xf32>
    %68 = tpu.concatenate %64, %67 in 0 : vector<1x128xf32>, vector<1x128xf32> -> vector<2x128xf32>
    %69 = vector.shape_cast %68 : vector<2x128xf32> to vector<1x1x2x128xf32>
    %c0_57 = arith.constant 0 : index
    %c0_58 = arith.constant 0 : index
    %c0_59 = arith.constant 0 : index
    %c0_60 = arith.constant 0 : index
    %70 = vector.load %arg7[%c0_57, %c0_58, %c0_59, %c0_60] : memref<1x1x2x128xf32, #tpu.memory_space<vmem>>, vector<1x1x2x128xf32>
    tpu.vector_store %arg7[%c0_57, %c0_58, %c0_59, %c0_60], %69 {strides = array<i32>} : memref<1x1x2x128xf32, #tpu.memory_space<vmem>>, vector<1x1x2x128xf32>,
    return
  }
  func.func @transform_0(%arg0: i32, %arg1: i32) -> (i32, i32, i32, i32, i32) {
    %c0_i32 = arith.constant 0 : i32
    %c0_i32_0 = arith.constant 0 : i32
    %c0_i32_1 = arith.constant 0 : i32
    %c0_i32_2 = arith.constant 0 : i32
    %c0_i32_3 = arith.constant 0 : i32
    return %arg0, %c0_i32, %c0_i32_0, %c0_i32_1, %c0_i32_2 : i32, i32, i32, i32, i32
  }
  func.func @transform_1(%arg0: i32, %arg1: i32) -> (i32, i32) {
    %c0_i32 = arith.constant 0 : i32
    %c0_i32_0 = arith.constant 0 : i32
    %c0_i32_1 = arith.constant 0 : i32
    return %c0_i32, %c0_i32_0 : i32, i32
  }
  func.func @transform_2(%arg0: i32, %arg1: i32) -> (i32, i32) {
    %c0_i32 = arith.constant 0 : i32
    %c0_i32_0 = arith.constant 0 : i32
    %c0_i32_1 = arith.constant 0 : i32
    return %c0_i32, %c0_i32_0 : i32, i32
  }
  func.func @transform_3(%arg0: i32, %arg1: i32) -> (i32, i32) {
    %c0_i32 = arith.constant 0 : i32
    %c0_i32_0 = arith.constant 0 : i32
    %c0_i32_1 = arith.constant 0 : i32
    return %c0_i32, %c0_i32_0 : i32, i32
  }
  func.func @transform_4(%arg0: i32, %arg1: i32) -> (i32, i32, i32, i32) {
    %c0_i32 = arith.constant 0 : i32
    %c0_i32_0 = arith.constant 0 : i32
    %c0_i32_1 = arith.constant 0 : i32
    return %arg0, %arg1, %c0_i32, %c0_i32_0 : i32, i32, i32, i32
  }
  func.func @transform_5(%arg0: i32, %arg1: i32) -> (i32, i32, i32, i32) {
    %c0_i32 = arith.constant 0 : i32
    %c0_i32_0 = arith.constant 0 : i32
    %c0_i32_1 = arith.constant 0 : i32
    return %arg0, %arg1, %c0_i32, %c0_i32_0 : i32, i32, i32, i32
  }
}

module attributes {stable_mosaic.version = 11 : i64} {
  func.func @_conv_stats_kernel(%arg0: i32, %arg1: i32, %arg2: memref<1x9x2x9x256xbf16, #tpu.memory_space<vmem>>, %arg3: memref<1152x128xbf16, #tpu.memory_space<vmem>>, %arg4: memref<2x128xf32, #tpu.memory_space<vmem>>, %arg5: memref<1x128xf32, #tpu.memory_space<vmem>>, %arg6: memref<1x8x8x128xbf16, #tpu.memory_space<vmem>>, %arg7: memref<1x1x2x128xf32, #tpu.memory_space<vmem>>) attributes {dimension_semantics = [#tpu.dimension_semantics<parallel>, #tpu.dimension_semantics<arbitrary>], iteration_bounds = array<i64: 2, 1>, scalar_prefetch = 0 : i64, scratch_operands = 0 : i64, tpu.core_type = #tpu.core_type<tc>, window_params = [{transform_indices = @transform_0, window_bounds = array<i64: 1, 9, 2, 9, 256>}, {pipeline_mode = #tpu.pipeline_mode<synchronous>, transform_indices = @transform_1, window_bounds = array<i64: 1152, 128>}, {pipeline_mode = #tpu.pipeline_mode<synchronous>, transform_indices = @transform_2, window_bounds = array<i64: 2, 128>}, {pipeline_mode = #tpu.pipeline_mode<synchronous>, transform_indices = @transform_3, window_bounds = array<i64: 1, 128>}, {transform_indices = @transform_4, window_bounds = array<i64: 1, 8, 8, 128>}, {transform_indices = @transform_5, window_bounds = array<i64: 1, 1, 2, 128>}]} {
    %c0 = arith.constant 0 : index
    %c0_0 = arith.constant 0 : index
    %0 = vector.load %arg4[%c0, %c0_0] : memref<2x128xf32, #tpu.memory_space<vmem>>, vector<1x128xf32>
    %1 = vector.shape_cast %0 : vector<1x128xf32> to vector<1x1x128xf32>
    %c1 = arith.constant 1 : index
    %c0_1 = arith.constant 0 : index
    %2 = vector.load %arg4[%c1, %c0_1] : memref<2x128xf32, #tpu.memory_space<vmem>>, vector<1x128xf32>
    %3 = vector.shape_cast %2 : vector<1x128xf32> to vector<1x1x128xf32>
    %c8_i32 = arith.constant 8 : i32
    %4 = arith.muli %arg1, %c8_i32 : i32
    %c0_i32 = arith.constant 0 : i32
    %5 = arith.addi %4, %c0_i32 : i32
    %c0_2 = arith.constant 0 : index
    %6 = arith.index_cast %5 : i32 to index
    %c0_3 = arith.constant 0 : index
    %c0_4 = arith.constant 0 : index
    %c0_5 = arith.constant 0 : index
    %7 = vector.load %arg2[%c0_2, %6, %c0_3, %c0_4, %c0_5] : memref<1x9x2x9x256xbf16, #tpu.memory_space<vmem>>, vector<1x8x1x8x128xbf16>
    %8 = vector.shape_cast %7 : vector<1x8x1x8x128xbf16> to vector<8x8x128xbf16>
    %9 = arith.extf %8 : vector<8x8x128xbf16> to vector<8x8x128xf32>
    %10 = vector.broadcast %1 : vector<1x1x128xf32> to vector<8x8x128xf32>
    %11 = arith.mulf %9, %10 : vector<8x8x128xf32>
    %12 = vector.broadcast %3 : vector<1x1x128xf32> to vector<8x8x128xf32>
    %13 = arith.addf %11, %12 : vector<8x8x128xf32>
    %cst = arith.constant 0.000000e+00 : f32
    %14 = vector.broadcast %cst : f32 to vector<8x8x128xf32>
    %15 = arith.cmpf oge, %13, %14 : vector<8x8x128xf32>
    %cst_6 = arith.constant 0.00999999977 : f32
    %16 = vector.broadcast %cst_6 : f32 to vector<8x8x128xf32>
    %17 = arith.mulf %16, %13 : vector<8x8x128xf32>
    %18 = arith.select %15, %13, %17 : vector<8x8x128xi1>, vector<8x8x128xf32>
    %c8_i32_7 = arith.constant 8 : i32
    %19 = arith.muli %arg1, %c8_i32_7 : i32
    %20 = tpu.iota {dimensions = array<i32: 0>} : vector<8x8x128xi32>
    %21 = vector.broadcast %19 : i32 to vector<8x8x128xi32>
    %22 = arith.addi %21, %20 : vector<8x8x128xi32>
    %c2_i32 = arith.constant 2 : i32
    %23 = vector.broadcast %c2_i32 : i32 to vector<8x8x128xi32>
    %24 = arith.muli %23, %22 : vector<8x8x128xi32>
    %c0_i32_8 = arith.constant 0 : i32
    %25 = vector.broadcast %c0_i32_8 : i32 to vector<8x8x128xi32>
    %26 = arith.addi %24, %25 : vector<8x8x128xi32>
    %c1_i32 = arith.constant 1 : i32
    %27 = vector.broadcast %c1_i32 : i32 to vector<8x8x128xi32>
    %28 = arith.cmpi sge, %26, %27 : vector<8x8x128xi32>
    %c16_i32 = arith.constant 16 : i32
    %29 = vector.broadcast %c16_i32 : i32 to vector<8x8x128xi32>
    %30 = arith.cmpi sle, %26, %29 : vector<8x8x128xi32>
    %31 = arith.andi %28, %30 : vector<8x8x128xi1>
    %32 = tpu.iota {dimensions = array<i32: 1>} : vector<8x8x128xi32>
    %c2_i32_9 = arith.constant 2 : i32
    %33 = vector.broadcast %c2_i32_9 : i32 to vector<8x8x128xi32>
    %34 = arith.muli %33, %32 : vector<8x8x128xi32>
    %c0_i32_10 = arith.constant 0 : i32
    %35 = vector.broadcast %c0_i32_10 : i32 to vector<8x8x128xi32>
    %36 = arith.addi %34, %35 : vector<8x8x128xi32>
    %c1_i32_11 = arith.constant 1 : i32
    %37 = vector.broadcast %c1_i32_11 : i32 to vector<8x8x128xi32>
    %38 = arith.cmpi sge, %36, %37 : vector<8x8x128xi32>
    %c16_i32_12 = arith.constant 16 : i32
    %39 = vector.broadcast %c16_i32_12 : i32 to vector<8x8x128xi32>
    %40 = arith.cmpi sle, %36, %39 : vector<8x8x128xi32>
    %41 = arith.andi %38, %40 : vector<8x8x128xi1>
    %42 = arith.andi %31, %41 : vector<8x8x128xi1>
    %cst_13 = arith.constant 0.000000e+00 : f32
    %43 = vector.broadcast %cst_13 : f32 to vector<8x8x128xf32>
    %44 = arith.select %42, %18, %43 : vector<8x8x128xi1>, vector<8x8x128xf32>
    %45 = arith.truncf %44 : vector<8x8x128xf32> to vector<8x8x128xbf16>
    %46 = vector.shape_cast %45 : vector<8x8x128xbf16> to vector<64x128xbf16>
    %c8_i32_14 = arith.constant 8 : i32
    %47 = arith.muli %arg1, %c8_i32_14 : i32
    %c0_i32_15 = arith.constant 0 : i32
    %48 = arith.addi %47, %c0_i32_15 : i32
    %c0_16 = arith.constant 0 : index
    %49 = arith.index_cast %48 : i32 to index
    %c0_17 = arith.constant 0 : index
    %c0_18 = arith.constant 0 : index
    %c128 = arith.constant 128 : index
    %50 = vector.load %arg2[%c0_16, %49, %c0_17, %c0_18, %c128] : memref<1x9x2x9x256xbf16, #tpu.memory_space<vmem>>, vector<1x8x1x8x128xbf16>
    %51 = vector.shape_cast %50 : vector<1x8x1x8x128xbf16> to vector<8x8x128xbf16>
    %52 = arith.extf %51 : vector<8x8x128xbf16> to vector<8x8x128xf32>
    %53 = vector.broadcast %1 : vector<1x1x128xf32> to vector<8x8x128xf32>
    %54 = arith.mulf %52, %53 : vector<8x8x128xf32>
    %55 = vector.broadcast %3 : vector<1x1x128xf32> to vector<8x8x128xf32>
    %56 = arith.addf %54, %55 : vector<8x8x128xf32>
    %cst_19 = arith.constant 0.000000e+00 : f32
    %57 = vector.broadcast %cst_19 : f32 to vector<8x8x128xf32>
    %58 = arith.cmpf oge, %56, %57 : vector<8x8x128xf32>
    %cst_20 = arith.constant 0.00999999977 : f32
    %59 = vector.broadcast %cst_20 : f32 to vector<8x8x128xf32>
    %60 = arith.mulf %59, %56 : vector<8x8x128xf32>
    %61 = arith.select %58, %56, %60 : vector<8x8x128xi1>, vector<8x8x128xf32>
    %c8_i32_21 = arith.constant 8 : i32
    %62 = arith.muli %arg1, %c8_i32_21 : i32
    %63 = tpu.iota {dimensions = array<i32: 0>} : vector<8x8x128xi32>
    %64 = vector.broadcast %62 : i32 to vector<8x8x128xi32>
    %65 = arith.addi %64, %63 : vector<8x8x128xi32>
    %c2_i32_22 = arith.constant 2 : i32
    %66 = vector.broadcast %c2_i32_22 : i32 to vector<8x8x128xi32>
    %67 = arith.muli %66, %65 : vector<8x8x128xi32>
    %c0_i32_23 = arith.constant 0 : i32
    %68 = vector.broadcast %c0_i32_23 : i32 to vector<8x8x128xi32>
    %69 = arith.addi %67, %68 : vector<8x8x128xi32>
    %c1_i32_24 = arith.constant 1 : i32
    %70 = vector.broadcast %c1_i32_24 : i32 to vector<8x8x128xi32>
    %71 = arith.cmpi sge, %69, %70 : vector<8x8x128xi32>
    %c16_i32_25 = arith.constant 16 : i32
    %72 = vector.broadcast %c16_i32_25 : i32 to vector<8x8x128xi32>
    %73 = arith.cmpi sle, %69, %72 : vector<8x8x128xi32>
    %74 = arith.andi %71, %73 : vector<8x8x128xi1>
    %cst_26 = arith.constant 0.000000e+00 : f32
    %75 = vector.broadcast %cst_26 : f32 to vector<8x8x128xf32>
    %76 = arith.select %74, %61, %75 : vector<8x8x128xi1>, vector<8x8x128xf32>
    %77 = arith.truncf %76 : vector<8x8x128xf32> to vector<8x8x128xbf16>
    %78 = vector.shape_cast %77 : vector<8x8x128xbf16> to vector<64x128xbf16>
    %c8_i32_27 = arith.constant 8 : i32
    %79 = arith.muli %arg1, %c8_i32_27 : i32
    %c0_i32_28 = arith.constant 0 : i32
    %80 = arith.addi %79, %c0_i32_28 : i32
    %c0_29 = arith.constant 0 : index
    %81 = arith.index_cast %80 : i32 to index
    %c0_30 = arith.constant 0 : index
    %c1_31 = arith.constant 1 : index
    %c0_32 = arith.constant 0 : index
    %82 = vector.load %arg2[%c0_29, %81, %c0_30, %c1_31, %c0_32] : memref<1x9x2x9x256xbf16, #tpu.memory_space<vmem>>, vector<1x8x1x8x128xbf16>
    %83 = vector.shape_cast %82 : vector<1x8x1x8x128xbf16> to vector<8x8x128xbf16>
    %84 = arith.extf %83 : vector<8x8x128xbf16> to vector<8x8x128xf32>
    %85 = vector.broadcast %1 : vector<1x1x128xf32> to vector<8x8x128xf32>
    %86 = arith.mulf %84, %85 : vector<8x8x128xf32>
    %87 = vector.broadcast %3 : vector<1x1x128xf32> to vector<8x8x128xf32>
    %88 = arith.addf %86, %87 : vector<8x8x128xf32>
    %cst_33 = arith.constant 0.000000e+00 : f32
    %89 = vector.broadcast %cst_33 : f32 to vector<8x8x128xf32>
    %90 = arith.cmpf oge, %88, %89 : vector<8x8x128xf32>
    %cst_34 = arith.constant 0.00999999977 : f32
    %91 = vector.broadcast %cst_34 : f32 to vector<8x8x128xf32>
    %92 = arith.mulf %91, %88 : vector<8x8x128xf32>
    %93 = arith.select %90, %88, %92 : vector<8x8x128xi1>, vector<8x8x128xf32>
    %c8_i32_35 = arith.constant 8 : i32
    %94 = arith.muli %arg1, %c8_i32_35 : i32
    %95 = tpu.iota {dimensions = array<i32: 0>} : vector<8x8x128xi32>
    %96 = vector.broadcast %94 : i32 to vector<8x8x128xi32>
    %97 = arith.addi %96, %95 : vector<8x8x128xi32>
    %c2_i32_36 = arith.constant 2 : i32
    %98 = vector.broadcast %c2_i32_36 : i32 to vector<8x8x128xi32>
    %99 = arith.muli %98, %97 : vector<8x8x128xi32>
    %c0_i32_37 = arith.constant 0 : i32
    %100 = vector.broadcast %c0_i32_37 : i32 to vector<8x8x128xi32>
    %101 = arith.addi %99, %100 : vector<8x8x128xi32>
    %c1_i32_38 = arith.constant 1 : i32
    %102 = vector.broadcast %c1_i32_38 : i32 to vector<8x8x128xi32>
    %103 = arith.cmpi sge, %101, %102 : vector<8x8x128xi32>
    %c16_i32_39 = arith.constant 16 : i32
    %104 = vector.broadcast %c16_i32_39 : i32 to vector<8x8x128xi32>
    %105 = arith.cmpi sle, %101, %104 : vector<8x8x128xi32>
    %106 = arith.andi %103, %105 : vector<8x8x128xi1>
    %cst_40 = arith.constant 0.000000e+00 : f32
    %107 = vector.broadcast %cst_40 : f32 to vector<8x8x128xf32>
    %108 = arith.select %106, %93, %107 : vector<8x8x128xi1>, vector<8x8x128xf32>
    %109 = arith.truncf %108 : vector<8x8x128xf32> to vector<8x8x128xbf16>
    %110 = vector.shape_cast %109 : vector<8x8x128xbf16> to vector<64x128xbf16>
    %c8_i32_41 = arith.constant 8 : i32
    %111 = arith.muli %arg1, %c8_i32_41 : i32
    %c0_i32_42 = arith.constant 0 : i32
    %112 = arith.addi %111, %c0_i32_42 : i32
    %c0_43 = arith.constant 0 : index
    %113 = arith.index_cast %112 : i32 to index
    %c1_44 = arith.constant 1 : index
    %c0_45 = arith.constant 0 : index
    %c0_46 = arith.constant 0 : index
    %114 = vector.load %arg2[%c0_43, %113, %c1_44, %c0_45, %c0_46] : memref<1x9x2x9x256xbf16, #tpu.memory_space<vmem>>, vector<1x8x1x8x128xbf16>
    %115 = vector.shape_cast %114 : vector<1x8x1x8x128xbf16> to vector<8x8x128xbf16>
    %116 = arith.extf %115 : vector<8x8x128xbf16> to vector<8x8x128xf32>
    %117 = vector.broadcast %1 : vector<1x1x128xf32> to vector<8x8x128xf32>
    %118 = arith.mulf %116, %117 : vector<8x8x128xf32>
    %119 = vector.broadcast %3 : vector<1x1x128xf32> to vector<8x8x128xf32>
    %120 = arith.addf %118, %119 : vector<8x8x128xf32>
    %cst_47 = arith.constant 0.000000e+00 : f32
    %121 = vector.broadcast %cst_47 : f32 to vector<8x8x128xf32>
    %122 = arith.cmpf oge, %120, %121 : vector<8x8x128xf32>
    %cst_48 = arith.constant 0.00999999977 : f32
    %123 = vector.broadcast %cst_48 : f32 to vector<8x8x128xf32>
    %124 = arith.mulf %123, %120 : vector<8x8x128xf32>
    %125 = arith.select %122, %120, %124 : vector<8x8x128xi1>, vector<8x8x128xf32>
    %126 = tpu.iota {dimensions = array<i32: 1>} : vector<8x8x128xi32>
    %c2_i32_49 = arith.constant 2 : i32
    %127 = vector.broadcast %c2_i32_49 : i32 to vector<8x8x128xi32>
    %128 = arith.muli %127, %126 : vector<8x8x128xi32>
    %c0_i32_50 = arith.constant 0 : i32
    %129 = vector.broadcast %c0_i32_50 : i32 to vector<8x8x128xi32>
    %130 = arith.addi %128, %129 : vector<8x8x128xi32>
    %c1_i32_51 = arith.constant 1 : i32
    %131 = vector.broadcast %c1_i32_51 : i32 to vector<8x8x128xi32>
    %132 = arith.cmpi sge, %130, %131 : vector<8x8x128xi32>
    %c16_i32_52 = arith.constant 16 : i32
    %133 = vector.broadcast %c16_i32_52 : i32 to vector<8x8x128xi32>
    %134 = arith.cmpi sle, %130, %133 : vector<8x8x128xi32>
    %135 = arith.andi %132, %134 : vector<8x8x128xi1>
    %cst_53 = arith.constant 0.000000e+00 : f32
    %136 = vector.broadcast %cst_53 : f32 to vector<8x8x128xf32>
    %137 = arith.select %135, %125, %136 : vector<8x8x128xi1>, vector<8x8x128xf32>
    %138 = arith.truncf %137 : vector<8x8x128xf32> to vector<8x8x128xbf16>
    %139 = vector.shape_cast %138 : vector<8x8x128xbf16> to vector<64x128xbf16>
    %c8_i32_54 = arith.constant 8 : i32
    %140 = arith.muli %arg1, %c8_i32_54 : i32
    %c0_i32_55 = arith.constant 0 : i32
    %141 = arith.addi %140, %c0_i32_55 : i32
    %c0_56 = arith.constant 0 : index
    %142 = arith.index_cast %141 : i32 to index
    %c1_57 = arith.constant 1 : index
    %c0_58 = arith.constant 0 : index
    %c128_59 = arith.constant 128 : index
    %143 = vector.load %arg2[%c0_56, %142, %c1_57, %c0_58, %c128_59] : memref<1x9x2x9x256xbf16, #tpu.memory_space<vmem>>, vector<1x8x1x8x128xbf16>
    %144 = vector.shape_cast %143 : vector<1x8x1x8x128xbf16> to vector<8x8x128xbf16>
    %145 = arith.extf %144 : vector<8x8x128xbf16> to vector<8x8x128xf32>
    %146 = vector.broadcast %1 : vector<1x1x128xf32> to vector<8x8x128xf32>
    %147 = arith.mulf %145, %146 : vector<8x8x128xf32>
    %148 = vector.broadcast %3 : vector<1x1x128xf32> to vector<8x8x128xf32>
    %149 = arith.addf %147, %148 : vector<8x8x128xf32>
    %cst_60 = arith.constant 0.000000e+00 : f32
    %150 = vector.broadcast %cst_60 : f32 to vector<8x8x128xf32>
    %151 = arith.cmpf oge, %149, %150 : vector<8x8x128xf32>
    %cst_61 = arith.constant 0.00999999977 : f32
    %152 = vector.broadcast %cst_61 : f32 to vector<8x8x128xf32>
    %153 = arith.mulf %152, %149 : vector<8x8x128xf32>
    %154 = arith.select %151, %149, %153 : vector<8x8x128xi1>, vector<8x8x128xf32>
    %155 = arith.truncf %154 : vector<8x8x128xf32> to vector<8x8x128xbf16>
    %156 = vector.shape_cast %155 : vector<8x8x128xbf16> to vector<64x128xbf16>
    %c8_i32_62 = arith.constant 8 : i32
    %157 = arith.muli %arg1, %c8_i32_62 : i32
    %c0_i32_63 = arith.constant 0 : i32
    %158 = arith.addi %157, %c0_i32_63 : i32
    %c0_64 = arith.constant 0 : index
    %159 = arith.index_cast %158 : i32 to index
    %c1_65 = arith.constant 1 : index
    %c1_66 = arith.constant 1 : index
    %c0_67 = arith.constant 0 : index
    %160 = vector.load %arg2[%c0_64, %159, %c1_65, %c1_66, %c0_67] : memref<1x9x2x9x256xbf16, #tpu.memory_space<vmem>>, vector<1x8x1x8x128xbf16>
    %161 = vector.shape_cast %160 : vector<1x8x1x8x128xbf16> to vector<8x8x128xbf16>
    %162 = arith.extf %161 : vector<8x8x128xbf16> to vector<8x8x128xf32>
    %163 = vector.broadcast %1 : vector<1x1x128xf32> to vector<8x8x128xf32>
    %164 = arith.mulf %162, %163 : vector<8x8x128xf32>
    %165 = vector.broadcast %3 : vector<1x1x128xf32> to vector<8x8x128xf32>
    %166 = arith.addf %164, %165 : vector<8x8x128xf32>
    %cst_68 = arith.constant 0.000000e+00 : f32
    %167 = vector.broadcast %cst_68 : f32 to vector<8x8x128xf32>
    %168 = arith.cmpf oge, %166, %167 : vector<8x8x128xf32>
    %cst_69 = arith.constant 0.00999999977 : f32
    %169 = vector.broadcast %cst_69 : f32 to vector<8x8x128xf32>
    %170 = arith.mulf %169, %166 : vector<8x8x128xf32>
    %171 = arith.select %168, %166, %170 : vector<8x8x128xi1>, vector<8x8x128xf32>
    %172 = arith.truncf %171 : vector<8x8x128xf32> to vector<8x8x128xbf16>
    %173 = vector.shape_cast %172 : vector<8x8x128xbf16> to vector<64x128xbf16>
    %c8_i32_70 = arith.constant 8 : i32
    %174 = arith.muli %arg1, %c8_i32_70 : i32
    %c1_i32_71 = arith.constant 1 : i32
    %175 = arith.addi %174, %c1_i32_71 : i32
    %c0_72 = arith.constant 0 : index
    %176 = arith.index_cast %175 : i32 to index
    %c0_73 = arith.constant 0 : index
    %c0_74 = arith.constant 0 : index
    %c0_75 = arith.constant 0 : index
    %177 = vector.load %arg2[%c0_72, %176, %c0_73, %c0_74, %c0_75] : memref<1x9x2x9x256xbf16, #tpu.memory_space<vmem>>, vector<1x8x1x8x128xbf16>
    %178 = vector.shape_cast %177 : vector<1x8x1x8x128xbf16> to vector<8x8x128xbf16>
    %179 = arith.extf %178 : vector<8x8x128xbf16> to vector<8x8x128xf32>
    %180 = vector.broadcast %1 : vector<1x1x128xf32> to vector<8x8x128xf32>
    %181 = arith.mulf %179, %180 : vector<8x8x128xf32>
    %182 = vector.broadcast %3 : vector<1x1x128xf32> to vector<8x8x128xf32>
    %183 = arith.addf %181, %182 : vector<8x8x128xf32>
    %cst_76 = arith.constant 0.000000e+00 : f32
    %184 = vector.broadcast %cst_76 : f32 to vector<8x8x128xf32>
    %185 = arith.cmpf oge, %183, %184 : vector<8x8x128xf32>
    %cst_77 = arith.constant 0.00999999977 : f32
    %186 = vector.broadcast %cst_77 : f32 to vector<8x8x128xf32>
    %187 = arith.mulf %186, %183 : vector<8x8x128xf32>
    %188 = arith.select %185, %183, %187 : vector<8x8x128xi1>, vector<8x8x128xf32>
    %189 = tpu.iota {dimensions = array<i32: 1>} : vector<8x8x128xi32>
    %c2_i32_78 = arith.constant 2 : i32
    %190 = vector.broadcast %c2_i32_78 : i32 to vector<8x8x128xi32>
    %191 = arith.muli %190, %189 : vector<8x8x128xi32>
    %c0_i32_79 = arith.constant 0 : i32
    %192 = vector.broadcast %c0_i32_79 : i32 to vector<8x8x128xi32>
    %193 = arith.addi %191, %192 : vector<8x8x128xi32>
    %c1_i32_80 = arith.constant 1 : i32
    %194 = vector.broadcast %c1_i32_80 : i32 to vector<8x8x128xi32>
    %195 = arith.cmpi sge, %193, %194 : vector<8x8x128xi32>
    %c16_i32_81 = arith.constant 16 : i32
    %196 = vector.broadcast %c16_i32_81 : i32 to vector<8x8x128xi32>
    %197 = arith.cmpi sle, %193, %196 : vector<8x8x128xi32>
    %198 = arith.andi %195, %197 : vector<8x8x128xi1>
    %cst_82 = arith.constant 0.000000e+00 : f32
    %199 = vector.broadcast %cst_82 : f32 to vector<8x8x128xf32>
    %200 = arith.select %198, %188, %199 : vector<8x8x128xi1>, vector<8x8x128xf32>
    %201 = arith.truncf %200 : vector<8x8x128xf32> to vector<8x8x128xbf16>
    %202 = vector.shape_cast %201 : vector<8x8x128xbf16> to vector<64x128xbf16>
    %c8_i32_83 = arith.constant 8 : i32
    %203 = arith.muli %arg1, %c8_i32_83 : i32
    %c1_i32_84 = arith.constant 1 : i32
    %204 = arith.addi %203, %c1_i32_84 : i32
    %c0_85 = arith.constant 0 : index
    %205 = arith.index_cast %204 : i32 to index
    %c0_86 = arith.constant 0 : index
    %c0_87 = arith.constant 0 : index
    %c128_88 = arith.constant 128 : index
    %206 = vector.load %arg2[%c0_85, %205, %c0_86, %c0_87, %c128_88] : memref<1x9x2x9x256xbf16, #tpu.memory_space<vmem>>, vector<1x8x1x8x128xbf16>
    %207 = vector.shape_cast %206 : vector<1x8x1x8x128xbf16> to vector<8x8x128xbf16>
    %208 = arith.extf %207 : vector<8x8x128xbf16> to vector<8x8x128xf32>
    %209 = vector.broadcast %1 : vector<1x1x128xf32> to vector<8x8x128xf32>
    %210 = arith.mulf %208, %209 : vector<8x8x128xf32>
    %211 = vector.broadcast %3 : vector<1x1x128xf32> to vector<8x8x128xf32>
    %212 = arith.addf %210, %211 : vector<8x8x128xf32>
    %cst_89 = arith.constant 0.000000e+00 : f32
    %213 = vector.broadcast %cst_89 : f32 to vector<8x8x128xf32>
    %214 = arith.cmpf oge, %212, %213 : vector<8x8x128xf32>
    %cst_90 = arith.constant 0.00999999977 : f32
    %215 = vector.broadcast %cst_90 : f32 to vector<8x8x128xf32>
    %216 = arith.mulf %215, %212 : vector<8x8x128xf32>
    %217 = arith.select %214, %212, %216 : vector<8x8x128xi1>, vector<8x8x128xf32>
    %218 = arith.truncf %217 : vector<8x8x128xf32> to vector<8x8x128xbf16>
    %219 = vector.shape_cast %218 : vector<8x8x128xbf16> to vector<64x128xbf16>
    %c8_i32_91 = arith.constant 8 : i32
    %220 = arith.muli %arg1, %c8_i32_91 : i32
    %c1_i32_92 = arith.constant 1 : i32
    %221 = arith.addi %220, %c1_i32_92 : i32
    %c0_93 = arith.constant 0 : index
    %222 = arith.index_cast %221 : i32 to index
    %c0_94 = arith.constant 0 : index
    %c1_95 = arith.constant 1 : index
    %c0_96 = arith.constant 0 : index
    %223 = vector.load %arg2[%c0_93, %222, %c0_94, %c1_95, %c0_96] : memref<1x9x2x9x256xbf16, #tpu.memory_space<vmem>>, vector<1x8x1x8x128xbf16>
    %224 = vector.shape_cast %223 : vector<1x8x1x8x128xbf16> to vector<8x8x128xbf16>
    %225 = arith.extf %224 : vector<8x8x128xbf16> to vector<8x8x128xf32>
    %226 = vector.broadcast %1 : vector<1x1x128xf32> to vector<8x8x128xf32>
    %227 = arith.mulf %225, %226 : vector<8x8x128xf32>
    %228 = vector.broadcast %3 : vector<1x1x128xf32> to vector<8x8x128xf32>
    %229 = arith.addf %227, %228 : vector<8x8x128xf32>
    %cst_97 = arith.constant 0.000000e+00 : f32
    %230 = vector.broadcast %cst_97 : f32 to vector<8x8x128xf32>
    %231 = arith.cmpf oge, %229, %230 : vector<8x8x128xf32>
    %cst_98 = arith.constant 0.00999999977 : f32
    %232 = vector.broadcast %cst_98 : f32 to vector<8x8x128xf32>
    %233 = arith.mulf %232, %229 : vector<8x8x128xf32>
    %234 = arith.select %231, %229, %233 : vector<8x8x128xi1>, vector<8x8x128xf32>
    %235 = arith.truncf %234 : vector<8x8x128xf32> to vector<8x8x128xbf16>
    %236 = vector.shape_cast %235 : vector<8x8x128xbf16> to vector<64x128xbf16>
    %237 = tpu.concatenate %46, %78, %110, %139, %156, %173, %202, %219, %236 in 1 : vector<64x128xbf16>, vector<64x128xbf16>, vector<64x128xbf16>, vector<64x128xbf16>, vector<64x128xbf16>, vector<64x128xbf16>, vector<64x128xbf16>, vector<64x128xbf16>, vector<64x128xbf16> -> vector<64x1152xbf16>
    %c0_99 = arith.constant 0 : index
    %c0_100 = arith.constant 0 : index
    %238 = vector.load %arg3[%c0_99, %c0_100] : memref<1152x128xbf16, #tpu.memory_space<vmem>>, vector<1152x128xbf16>
    %cst_101 = arith.constant dense<0.000000e+00> : vector<64x128xf32>
    %239 = tpu.matmul %237, %238, %cst_101 {dimension_numbers = #tpu.dot_dimension_numbers<[1], [0], [0], [1], [0, 0, 1, 1], [], []>} : vector<64x1152xbf16>, vector<1152x128xbf16>, vector<64x128xf32> -> vector<64x128xf32>
    %c0_102 = arith.constant 0 : index
    %c0_103 = arith.constant 0 : index
    %240 = vector.load %arg5[%c0_102, %c0_103] : memref<1x128xf32, #tpu.memory_space<vmem>>, vector<1x128xf32>
    %241 = vector.broadcast %240 : vector<1x128xf32> to vector<64x128xf32>
    %242 = arith.addf %239, %241 : vector<64x128xf32>
    %243 = vector.shape_cast %242 : vector<64x128xf32> to vector<1x8x8x128xf32>
    %244 = arith.truncf %243 : vector<1x8x8x128xf32> to vector<1x8x8x128xbf16>
    %c0_104 = arith.constant 0 : index
    %c0_105 = arith.constant 0 : index
    %c0_106 = arith.constant 0 : index
    %c0_107 = arith.constant 0 : index
    %245 = vector.load %arg6[%c0_104, %c0_105, %c0_106, %c0_107] : memref<1x8x8x128xbf16, #tpu.memory_space<vmem>>, vector<1x8x8x128xbf16>
    tpu.vector_store %arg6[%c0_104, %c0_105, %c0_106, %c0_107], %244 {strides = array<i32>} : memref<1x8x8x128xbf16, #tpu.memory_space<vmem>>, vector<1x8x8x128xbf16>,
    %cst_108 = arith.constant dense<0.000000e+00> : vector<128xf32>
    %246 = vector.multi_reduction <add>, %242, %cst_108 [0] : vector<64x128xf32> to vector<128xf32>
    %247 = vector.shape_cast %246 : vector<128xf32> to vector<1x128xf32>
    %248 = arith.mulf %242, %242 : vector<64x128xf32>
    %cst_109 = arith.constant dense<0.000000e+00> : vector<128xf32>
    %249 = vector.multi_reduction <add>, %248, %cst_109 [0] : vector<64x128xf32> to vector<128xf32>
    %250 = vector.shape_cast %249 : vector<128xf32> to vector<1x128xf32>
    %251 = tpu.concatenate %247, %250 in 0 : vector<1x128xf32>, vector<1x128xf32> -> vector<2x128xf32>
    %252 = vector.shape_cast %251 : vector<2x128xf32> to vector<1x1x2x128xf32>
    %c0_110 = arith.constant 0 : index
    %c0_111 = arith.constant 0 : index
    %c0_112 = arith.constant 0 : index
    %c0_113 = arith.constant 0 : index
    %253 = vector.load %arg7[%c0_110, %c0_111, %c0_112, %c0_113] : memref<1x1x2x128xf32, #tpu.memory_space<vmem>>, vector<1x1x2x128xf32>
    tpu.vector_store %arg7[%c0_110, %c0_111, %c0_112, %c0_113], %252 {strides = array<i32>} : memref<1x1x2x128xf32, #tpu.memory_space<vmem>>, vector<1x1x2x128xf32>,
    return
  }
  func.func @transform_0(%arg0: i32, %arg1: i32) -> (i32, i32, i32, i32, i32) {
    %c0_i32 = arith.constant 0 : i32
    %c0_i32_0 = arith.constant 0 : i32
    %c0_i32_1 = arith.constant 0 : i32
    %c0_i32_2 = arith.constant 0 : i32
    %c0_i32_3 = arith.constant 0 : i32
    return %arg0, %c0_i32, %c0_i32_0, %c0_i32_1, %c0_i32_2 : i32, i32, i32, i32, i32
  }
  func.func @transform_1(%arg0: i32, %arg1: i32) -> (i32, i32) {
    %c0_i32 = arith.constant 0 : i32
    %c0_i32_0 = arith.constant 0 : i32
    %c0_i32_1 = arith.constant 0 : i32
    return %c0_i32, %c0_i32_0 : i32, i32
  }
  func.func @transform_2(%arg0: i32, %arg1: i32) -> (i32, i32) {
    %c0_i32 = arith.constant 0 : i32
    %c0_i32_0 = arith.constant 0 : i32
    %c0_i32_1 = arith.constant 0 : i32
    return %c0_i32, %c0_i32_0 : i32, i32
  }
  func.func @transform_3(%arg0: i32, %arg1: i32) -> (i32, i32) {
    %c0_i32 = arith.constant 0 : i32
    %c0_i32_0 = arith.constant 0 : i32
    %c0_i32_1 = arith.constant 0 : i32
    return %c0_i32, %c0_i32_0 : i32, i32
  }
  func.func @transform_4(%arg0: i32, %arg1: i32) -> (i32, i32, i32, i32) {
    %c0_i32 = arith.constant 0 : i32
    %c0_i32_0 = arith.constant 0 : i32
    %c0_i32_1 = arith.constant 0 : i32
    return %arg0, %arg1, %c0_i32, %c0_i32_0 : i32, i32, i32, i32
  }
  func.func @transform_5(%arg0: i32, %arg1: i32) -> (i32, i32, i32, i32) {
    %c0_i32 = arith.constant 0 : i32
    %c0_i32_0 = arith.constant 0 : i32
    %c0_i32_1 = arith.constant 0 : i32
    return %arg0, %arg1, %c0_i32, %c0_i32_0 : i32, i32, i32, i32
  }
}

module attributes {stable_mosaic.version = 11 : i64} {
  func.func @_bn_lrelu_kernel(%arg0: i32, %arg1: memref<128x128xbf16, #tpu.memory_space<vmem>>, %arg2: memref<1x128xf32, #tpu.memory_space<vmem>>, %arg3: memref<1x128xf32, #tpu.memory_space<vmem>>, %arg4: memref<128x128xf32, #tpu.memory_space<vmem>>) attributes {dimension_semantics = [#tpu.dimension_semantics<parallel>], iteration_bounds = array<i64: 1>, scalar_prefetch = 0 : i64, scratch_operands = 0 : i64, tpu.core_type = #tpu.core_type<tc>, window_params = [{transform_indices = @transform_0, window_bounds = array<i64: 128, 128>}, {pipeline_mode = #tpu.pipeline_mode<synchronous>, transform_indices = @transform_1, window_bounds = array<i64: 1, 128>}, {pipeline_mode = #tpu.pipeline_mode<synchronous>, transform_indices = @transform_2, window_bounds = array<i64: 1, 128>}, {transform_indices = @transform_3, window_bounds = array<i64: 128, 128>}]} {
    %c0 = arith.constant 0 : index
    %c0_0 = arith.constant 0 : index
    %0 = vector.load %arg1[%c0, %c0_0] : memref<128x128xbf16, #tpu.memory_space<vmem>>, vector<128x128xbf16>
    %1 = arith.extf %0 : vector<128x128xbf16> to vector<128x128xf32>
    %c0_1 = arith.constant 0 : index
    %c0_2 = arith.constant 0 : index
    %2 = vector.load %arg2[%c0_1, %c0_2] : memref<1x128xf32, #tpu.memory_space<vmem>>, vector<1x128xf32>
    %3 = vector.broadcast %2 : vector<1x128xf32> to vector<128x128xf32>
    %4 = arith.mulf %1, %3 : vector<128x128xf32>
    %c0_3 = arith.constant 0 : index
    %c0_4 = arith.constant 0 : index
    %5 = vector.load %arg3[%c0_3, %c0_4] : memref<1x128xf32, #tpu.memory_space<vmem>>, vector<1x128xf32>
    %6 = vector.broadcast %5 : vector<1x128xf32> to vector<128x128xf32>
    %7 = arith.addf %4, %6 : vector<128x128xf32>
    %cst = arith.constant 0.000000e+00 : f32
    %8 = vector.broadcast %cst : f32 to vector<128x128xf32>
    %9 = arith.cmpf oge, %7, %8 : vector<128x128xf32>
    %cst_5 = arith.constant 0.00999999977 : f32
    %10 = vector.broadcast %cst_5 : f32 to vector<128x128xf32>
    %11 = arith.mulf %10, %7 : vector<128x128xf32>
    %12 = arith.select %9, %7, %11 : vector<128x128xi1>, vector<128x128xf32>
    %c0_6 = arith.constant 0 : index
    %c0_7 = arith.constant 0 : index
    %13 = vector.load %arg4[%c0_6, %c0_7] : memref<128x128xf32, #tpu.memory_space<vmem>>, vector<128x128xf32>
    tpu.vector_store %arg4[%c0_6, %c0_7], %12 {strides = array<i32>} : memref<128x128xf32, #tpu.memory_space<vmem>>, vector<128x128xf32>,
    return
  }
  func.func @transform_0(%arg0: i32) -> (i32, i32) {
    %c0_i32 = arith.constant 0 : i32
    %c0_i32_0 = arith.constant 0 : i32
    return %arg0, %c0_i32 : i32, i32
  }
  func.func @transform_1(%arg0: i32) -> (i32, i32) {
    %c0_i32 = arith.constant 0 : i32
    %c0_i32_0 = arith.constant 0 : i32
    %c0_i32_1 = arith.constant 0 : i32
    return %c0_i32, %c0_i32_0 : i32, i32
  }
  func.func @transform_2(%arg0: i32) -> (i32, i32) {
    %c0_i32 = arith.constant 0 : i32
    %c0_i32_0 = arith.constant 0 : i32
    %c0_i32_1 = arith.constant 0 : i32
    return %c0_i32, %c0_i32_0 : i32, i32
  }
  func.func @transform_3(%arg0: i32) -> (i32, i32) {
    %c0_i32 = arith.constant 0 : i32
    %c0_i32_0 = arith.constant 0 : i32
    return %arg0, %c0_i32 : i32, i32
  }
}

</mosaic_0001>

<bundles_post_ra>
// kernel: conv_block_forward.5
= control target key start
LH: loop header
LB: loop body
LE: loop exit
PB: predicated region body
PF: predicated region fallthrough
CT: control target
= control target key end

     0   :  { %s335_s0 = inlined_call_operand.vmem [shape: bf16[128,128], index: 0, kind: input, shape index: {}]   ;;  %s336_s1 = inlined_call_operand.vmem [shape: f32[1,128], index: 1, kind: input, shape index: {}]   ;;  %s337_s2 = inlined_call_operand.vmem [shape: f32[1,128], index: 2, kind: input, shape index: {}]   ;;  %s338_s3 = inlined_call_operand.vmem [shape: f32[128,128], index: 3, kind: output, shape index: {}]  }
   0x1   :  { %v163_v0 = vld [vmem:[%s335_s0] sm:$0xff]   ;;  %v194_v4 = vld [vmem:[%s335_s0 + $0x8] sm:$0xff]   ;;  %v195_v5 = vld [vmem:[%s335_s0 + $0x10] sm:$0xff]  }
   0x2   :  { %v227_v1 = vld [vmem:[%s336_s1] ss:$0 sm:$0xff]  ;;  %v164_v2 = vunpack.c.l.bf16 %v163_v0  ;;  %v165_v3 = vunpack.c.h.bf16 %v163_v0  ;;  %v196_v6 = vld [vmem:[%s335_s0 + $0x18] sm:$0xff]   ;;  %v168_v8 = vunpack.c.l.bf16 %v194_v4  ;;  %v169_v9 = vunpack.c.h.bf16 %v194_v4  ;;  %v198_v36 = vld [vmem:[%s335_s0 + $0x28] sm:$0xff]  }
   0x3   :  { %v241_v7 = vld [vmem:[%s337_s2] ss:$0 sm:$0xff]  ;;  %v172_v10 = vunpack.c.l.bf16 %v195_v5  ;;  %v173_v11 = vunpack.c.h.bf16 %v195_v5  ;;  %v176_v14 = vunpack.c.l.bf16 %v196_v6  ;;  %v177_v15 = vunpack.c.h.bf16 %v196_v6  ;;  %v199_v48 = vld [vmem:[%s335_s0 + $0x30] sm:$0xff]   ;;  %v200_v55 = vld [vmem:[%s335_s0 + $0x38] sm:$0xff]  }
   0x4   :  { %v53_v12 = vmul.f32 %v164_v2, %v227_v1  ;;  %v54_v13 = vmul.f32 %v165_v3, %v227_v1  ;;  %v55_v16 = vmul.f32 %v168_v8, %v227_v1  ;;  %v56_v17 = vmul.f32 %v169_v9, %v227_v1  ;;  %v197_v28 = vld [vmem:[%s335_s0 + $0x20] sm:$0xff]  }
   0x5   :  { %v57_v18 = vmul.f32 %v172_v10, %v227_v1  ;;  %v58_v19 = vmul.f32 %v173_v11, %v227_v1  ;;  %v59_v22 = vmul.f32 %v176_v14, %v227_v1  ;;  %v60_v23 = vmul.f32 %v177_v15, %v227_v1 }
   0x6   :  { %v76_v20 = vadd.f32 %v241_v7, %v53_v12  ;;  %v77_v21 = vadd.f32 %v241_v7, %v54_v13  ;;  %v78_v24 = vadd.f32 %v241_v7, %v55_v16  ;;  %v79_v25 = vadd.f32 %v241_v7, %v56_v17 }
   0x7   :  { %v80_v26 = vadd.f32 %v241_v7, %v57_v18  ;;  %v81_v27 = vadd.f32 %v241_v7, %v58_v19  ;;  %v82_v41 = vadd.f32 %v241_v7, %v59_v22  ;;  %v83_v42 = vadd.f32 %v241_v7, %v60_v23 }
   0x8   :  { %vm92_vm0 = vcmp.ge.f32.partialorder %v76_v20, 0.0  ;;  %v108_v29 = vmul.f32 0.01, %v76_v20  ;;  %vm93_vm1 = vcmp.ge.f32.partialorder %v77_v21, 0.0  ;;  %v109_v30 = vmul.f32 0.01, %v77_v21 }
   0x9   :  { %vm94_vm2 = vcmp.ge.f32.partialorder %v78_v24, 0.0  ;;  %v110_v31 = vmul.f32 0.01, %v78_v24  ;;  %vm95_vm3 = vcmp.ge.f32.partialorder %v79_v25, 0.0  ;;  %v111_v32 = vmul.f32 0.01, %v79_v25 }
   0xa   :  { %v124_v33 = vsel %vm92_vm0, %v76_v20, %v108_v29  ;;  %v125_v34 = vsel %vm93_vm1, %v77_v21, %v109_v30  ;;  %vm96_vm4 = vcmp.ge.f32.partialorder %v80_v26, 0.0  ;;  %v112_v35 = vmul.f32 0.01, %v80_v26 }
   0xb   :  { %140 = vst [vmem:[%s338_s3] sm:$0xff] %v124_v33  ;;  %141 = vst [vmem:[%s338_s3 + $0x8] sm:$0xff] %v125_v34  ;;  %v126_v37 = vsel %vm94_vm2, %v78_v24, %v110_v31  ;;  %v127_v38 = vsel %vm95_vm3, %v79_v25, %v111_v32  ;;  %vm97_vm5 = vcmp.ge.f32.partialorder %v81_v27, 0.0  ;;  %v113_v39 = vmul.f32 0.01, %v81_v27 }
   0xc   :  { %142 = vst [vmem:[%s338_s3 + $0x10] sm:$0xff] %v126_v37  ;;  %143 = vst [vmem:[%s338_s3 + $0x18] sm:$0xff] %v127_v38  ;;  %v128_v40 = vsel %vm96_vm4, %v80_v26, %v112_v35  ;;  %v180_v43 = vunpack.c.l.bf16 %v197_v28  ;;  %v181_v45 = vunpack.c.h.bf16 %v197_v28  ;;  %v184_v46 = vunpack.c.l.bf16 %v198_v36 }
   0xd   :  { %144 = vst [vmem:[%s338_s3 + $0x20] sm:$0xff] %v128_v40  ;;  %v129_v44 = vsel %vm97_vm5, %v81_v27, %v113_v39  ;;  %v185_v47 = vunpack.c.h.bf16 %v198_v36  ;;  %vm98_vm6 = vcmp.ge.f32.partialorder %v82_v41, 0.0  ;;  %v114_v49 = vmul.f32 0.01, %v82_v41 }
   0xe   :  { %145 = vst [vmem:[%s338_s3 + $0x28] sm:$0xff] %v129_v44  ;;  %vm99_vm7 = vcmp.ge.f32.partialorder %v83_v42, 0.0  ;;  %v115_v50 = vmul.f32 0.01, %v83_v42  ;;  %v61_v51 = vmul.f32 %v180_v43, %v227_v1  ;;  %v62_v52 = vmul.f32 %v181_v45, %v227_v1 }
   0xf   :  { %v63_v53 = vmul.f32 %v184_v46, %v227_v1  ;;  %v64_v54 = vmul.f32 %v185_v47, %v227_v1  ;;  %v130_v56 = vsel %vm98_vm6, %v82_v41, %v114_v49  ;;  %v188_v58 = vunpack.c.l.bf16 %v199_v48 }
  0x10   :  { %v131_v57 = vsel %vm99_vm7, %v83_v42, %v115_v50  ;;  %v189_v59 = vunpack.c.h.bf16 %v199_v48  ;;  %146 = vst [vmem:[%s338_s3 + $0x30] sm:$0xff] %v130_v56  ;;  %v84_v60 = vadd.f32 %v241_v7, %v61_v51  ;;  %v85_v61 = vadd.f32 %v241_v7, %v62_v52 }
  0x11   :  { %147 = vst [vmem:[%s338_s3 + $0x38] sm:$0xff] %v131_v57  ;;  %v86_v62 = vadd.f32 %v241_v7, %v63_v53  ;;  %v87_v63 = vadd.f32 %v241_v7, %v64_v54  ;;  %v65_v0 = vmul.f32 %v188_v58, %v227_v1  ;;  %v192_v3 = vunpack.c.l.bf16 %v200_v55 }
  0x12   :  { %v66_v2 = vmul.f32 %v189_v59, %v227_v1  ;;  %v193_v4 = vunpack.c.h.bf16 %v200_v55  ;;  %vm100_vm8 = vcmp.ge.f32.partialorder %v84_v60, 0.0  ;;  %v116_v5 = vmul.f32 0.01, %v84_v60 }
  0x13   :  { %vm101_vm9 = vcmp.ge.f32.partialorder %v85_v61, 0.0  ;;  %v117_v6 = vmul.f32 0.01, %v85_v61  ;;  %vm102_vm10 = vcmp.ge.f32.partialorder %v86_v62, 0.0  ;;  %v118_v8 = vmul.f32 0.01, %v86_v62 }
  0x14   :  { %vm103_vm11 = vcmp.ge.f32.partialorder %v87_v63, 0.0  ;;  %v119_v9 = vmul.f32 0.01, %v87_v63  ;;  %v132_v10 = vsel %vm100_vm8, %v84_v60, %v116_v5  ;;  %v88_v12 = vadd.f32 %v241_v7, %v65_v0 }
  0x15   :  { %v133_v11 = vsel %vm101_vm9, %v85_v61, %v117_v6  ;;  %v89_v13 = vadd.f32 %v241_v7, %v66_v2  ;;  %148 = vst [vmem:[%s338_s3 + $0x40] sm:$0xff] %v132_v10  ;;  %v134_v14 = vsel %vm102_vm10, %v86_v62, %v118_v8  ;;  %v67_v16 = vmul.f32 %v192_v3, %v227_v1 }
  0x16   :  { %149 = vst [vmem:[%s338_s3 + $0x48] sm:$0xff] %v133_v11  ;;  %v135_v15 = vsel %vm103_vm11, %v87_v63, %v119_v9  ;;  %v68_v17 = vmul.f32 %v193_v4, %v227_v1  ;;  %150 = vst [vmem:[%s338_s3 + $0x50] sm:$0xff] %v134_v14  ;;  %vm104_vm12 = vcmp.ge.f32.partialorder %v88_v12, 0.0  ;;  %v120_v18 = vmul.f32 0.01, %v88_v12 }
  0x17   :  { %151 = vst [vmem:[%s338_s3 + $0x58] sm:$0xff] %v135_v15  ;;  %vm105_vm13 = vcmp.ge.f32.partialorder %v89_v13, 0.0  ;;  %v121_v19 = vmul.f32 0.01, %v89_v13  ;;  %v90_v20 = vadd.f32 %v241_v7, %v67_v16 }
  0x18   :  { %v91_v21 = vadd.f32 %v241_v7, %v68_v17  ;;  %v136_v22 = vsel %vm104_vm12, %v88_v12, %v120_v18 }
  0x19   :  { %v137_v23 = vsel %vm105_vm13, %v89_v13, %v121_v19  ;;  %152 = vst [vmem:[%s338_s3 + $0x60] sm:$0xff] %v136_v22  ;;  %vm106_vm14 = vcmp.ge.f32.partialorder %v90_v20, 0.0  ;;  %v122_v1 = vmul.f32 0.01, %v90_v20 }
  0x1a   :  { %153 = vst [vmem:[%s338_s3 + $0x68] sm:$0xff] %v137_v23  ;;  %vm107_vm15 = vcmp.ge.f32.partialorder %v91_v21, 0.0  ;;  %v123_v24 = vmul.f32 0.01, %v91_v21 }
  0x1b   :  { %v138_v25 = vsel %vm106_vm14, %v90_v20, %v122_v1 }
  0x1c   :  { %v139_v26 = vsel %vm107_vm15, %v91_v21, %v123_v24  ;;  %154 = vst [vmem:[%s338_s3 + $0x70] sm:$0xff] %v138_v25 }
  0x1d   :  { %155 = vst [vmem:[%s338_s3 + $0x78] sm:$0xff] %v139_v26 }

// kernel: conv_block_forward.4
= control target key start
LH: loop header
LB: loop body
LE: loop exit
PB: predicated region body
PF: predicated region fallthrough
CT: control target
= control target key end

     0   :  { %s3477_s18 = smov 0   ;;  %s3479_s19 = smov 0   ;;  %s4325_s0 = inlined_call_operand.vmem [shape: bf16[2,9,2,9,256], index: 0, kind: input, shape index: {}]   ;;  %s4326_s1 = inlined_call_operand.vmem [shape: bf16[1152,128], index: 1, kind: input, shape index: {}]   ;;  %s4327_s2 = inlined_call_operand.vmem [shape: f32[2,128], index: 2, kind: input, shape index: {}]   ;;  %s4328_s3 = inlined_call_operand.vmem [shape: f32[1,128], index: 3, kind: input, shape index: {}]   ;;  %s4329_s4 = inlined_call_operand.vmem [shape: bf16[2,8,8,128], index: 4, kind: output, shape index: {0}]   ;;  %s4330_s5 = inlined_call_operand.vmem [shape: f32[2,1,2,128], index: 5, kind: output, shape index: {1}]  }
   0x1   :  { %s3481_s20 = smov 0  }
   0x2 LB: > { %s28_s21 = sadd.s32 1, %s3440_s19  ;;  %p2771_p0 = scmp.ge.s32.totalorder %s3444_s20, 1  ;;  %s3444_s20 = sphi %s3481_s20, %s16_s20   ;;  %s3440_s19 = sphi %s3479_s19, %s4340_s19   ;;  %s3436_s18 = sphi %s3477_s18, %s4339_s18  }
   0x3   : > { %p30_p1 = scmp.ge.s32.totalorder %s28_s21, 2  ;;  %p206_p2 = scmp.lt.s32.totalorder %s3444_s20, 3 }
   0x5   : > { %s4342_s21 = smov (%p30_p1, %s28_s21), 0  ;;  %p207_p3 = pnand %p2771_p0, %p206_p2 }
   0x6   : > { %v3348_v0 = vld [vmem:[%s4326_s1 + $0x40] sm:$0xff] (!%p207_p3)   ;;  %v3352_v4 = vld [vmem:[%s4326_s1 + $0x48] sm:$0xff] (!%p207_p3)   ;;  %v3356_v8 = vld [vmem:[%s4326_s1 + $0x50] sm:$0xff] (!%p207_p3)   ;;  %p245_p4 = scmp.lt.s32.totalorder (!%p207_p3), %s3436_s18, 1  ;;  %v3446_v18 = vmov (!%p207_p3), 0.0|0.0   ;;  %v378_v22 = vlaneseq (!%p207_p3) }
   0x7   : > { %210 = sbr.rel (%p207_p3) target bundleno = 458 (0x1ca), region = 36  ;;  %v3349_v1 = vld [vmem:[%s4326_s1 + $0xc0] sm:$0xff] (!%p207_p3)   ;;  %3110 = vmatprep.subr.bf16.mxu0 (!%p207_p3), %v3348_v0  ;;  %v3353_v5 = vld [vmem:[%s4326_s1 + $0xc8] sm:$0xff] (!%p207_p3)   ;;  %v3357_v9 = vld [vmem:[%s4326_s1 + $0xd0] sm:$0xff] (!%p207_p3)   ;;  %v2778_v19 = vcombine.low (!%p207_p3), %v3446_v18, %v3446_v18  ;;  %v2779_v29 = vcombine.high (!%p207_p3), %v3446_v18, %v3446_v18  ;;  %vm656_vm2 = vsmask.f32 (!%p207_p3), 3328 }
   0x8   : > { %v3350_v2 = vld [vmem:[%s4326_s1] sm:$0xff] (!%p207_p3)   ;;  %3150 = vmatprep.subr.bf16.mxu1 (!%p207_p3), %v3349_v1  ;;  %v3354_v6 = vld [vmem:[%s4326_s1 + $0x8] sm:$0xff] (!%p207_p3)   ;;  %v3358_v10 = vld [vmem:[%s4326_s1 + $0x10] sm:$0xff] (!%p207_p3)   ;;  %v379_v30 = vshrl.u32 (!%p207_p3), %v378_v22, 7  ;;  %vm657_vm3 = vsmask.f32 (!%p207_p3), 7440 }
   0x9   : > { %v3351_v3 = vld [vmem:[%s4326_s1 + $0x80] sm:$0xff] (!%p207_p3)   ;;  %3111 = vmatpush3.bf16.msra.mxu0 (!%p207_p3), %v3350_v2  ;;  %v3355_v7 = vld [vmem:[%s4326_s1 + $0x88] sm:$0xff] (!%p207_p3)   ;;  %v3359_v11 = vld [vmem:[%s4326_s1 + $0x90] sm:$0xff] (!%p207_p3)   ;;  %v660_v25 = vshrl.u32 (!%p207_p3), %v2778_v19, 16  ;;  %v663_v27 = vshll.u32 (!%p207_p3), %v2778_v19, 16  ;;  %v669_v37 = vshll.u32 (!%p207_p3), %v2779_v29, 16 }
   0xa   : > { %3151 = vmatpush3.bf16.msra.mxu1 (!%p207_p3), %v3351_v3  ;;  %3112 = vmatprep.subr.bf16.mxu0 (!%p207_p3), %v3352_v4  ;;  %v3360_v12 = vld [vmem:[%s4326_s1 + $0x58] sm:$0xff] (!%p207_p3)   ;;  %v3364_v16 = vld [vmem:[%s4326_s1 + $0x60] sm:$0xff] (!%p207_p3)   ;;  %v3368_v23 = vld [vmem:[%s4326_s1 + $0x68] sm:$0xff] (!%p207_p3)   ;;  %v380_v39 = vmul.u32 (!%p207_p3), 2, %v379_v30 }
   0xb   : > { %3152 = vmatprep.subr.bf16.mxu1 (!%p207_p3), %v3353_v5  ;;  %v3361_v13 = vld [vmem:[%s4326_s1 + $0xd8] sm:$0xff] (!%p207_p3)   ;;  %v3365_v17 = vld [vmem:[%s4326_s1 + $0xe0] sm:$0xff] (!%p207_p3)   ;;  %v3369_v24 = vld [vmem:[%s4326_s1 + $0xe8] sm:$0xff] (!%p207_p3)   ;;  %v662_v33 = vrot.slane (!%p207_p3), %v660_v25, 4  ;;  %v665_v35 = vrot.slane (!%p207_p3), %v663_v27, 5  ;;  %v3608_v44 = vrot.slane (!%p207_p3), %v669_v37, 5 }
   0xc   : > { %v3362_v14 = vld [vmem:[%s4326_s1 + $0x18] sm:$0xff] (!%p207_p3)   ;;  %v3366_v20 = vld [vmem:[%s4326_s1 + $0x20] sm:$0xff] (!%p207_p3)   ;;  %v3370_v26 = vld [vmem:[%s4326_s1 + $0x28] sm:$0xff] (!%p207_p3)   ;;  %vm3610_vm0 = vcmp.ge.s32.totalorder (!%p207_p3), %v380_v39, 1  ;;  %vm3614_vm1 = vcmp.le.s32.totalorder (!%p207_p3), %v380_v39, 16 }
   0xd   : > { %3113 = vmatpush3.bf16.msra.mxu0 (!%p207_p3), %v3354_v6  ;;  %v3363_v15 = vld [vmem:[%s4326_s1 + $0x98] sm:$0xff] (!%p207_p3)   ;;  %v3367_v21 = vld [vmem:[%s4326_s1 + $0xa0] sm:$0xff] (!%p207_p3)   ;;  %v3371_v28 = vld [vmem:[%s4326_s1 + $0xa8] sm:$0xff] (!%p207_p3)   ;;  %v666_v47 = vor.u32 (!%p207_p3), %v665_v35, %v662_v33 }
   0xe   : > { %3153 = vmatpush3.bf16.msra.mxu1 %v3355_v7  ;;  %3114 = vmatprep.subr.bf16.mxu0 %v3356_v8  ;;  %s4344_s18 = smov (!%p245_p4, %s3436_s18), 1  ;;  %v3372_v31 = vld [vmem:[%s4326_s1 + $0x70] sm:$0xff]   ;;  %v3376_v38 = vld [vmem:[%s4326_s1 + $0x78] sm:$0xff]   ;;  %v3621_v48 = vld [vmem:[%s4327_s2] ss:$0 sm:$0xff] }
   0xf   : > { %3154 = vmatprep.subr.bf16.mxu1 %v3357_v9  ;;  %s3322_s30 = smul.u32 288, %s4344_s18  ;;  %v3373_v32 = vld [vmem:[%s4326_s1 + $0xf0] sm:$0xff]   ;;  %v3377_v40 = vld [vmem:[%s4326_s1 + $0xf8] sm:$0xff]   ;;  %v3630_v53 = vld [vmem:[%s4327_s2 + $0x1] ss:$0 sm:$0xff]  ;;  %v3642_v1 = vrot.slane %v666_v47, 4 }
  0x10   : > { %v3374_v34 = vld [vmem:[%s4326_s1 + $0x30] sm:$0xff]   ;;  %v3378_v41 = vld [vmem:[%s4326_s1 + $0x38] sm:$0xff]   ;;  %v3380_v61 = vld [vmem:[%s4326_s1 + $0x140] sm:$0xff]   ;;  %s2985_s11 = sshll.u32 %s4344_s18, 5  ;;  %s2775_s15 = sshll.u32 %s4344_s18, 1 }
  0x11   : > { %3115 = vmatpush3.bf16.msra.mxu0 %v3358_v10  ;;  %v3375_v36 = vld [vmem:[%s4326_s1 + $0xb0] sm:$0xff]   ;;  %s3602_s24 = scalar_lea.vmem %s4325_s0, %s3322_s30  ;;  %v3379_v42 = vld [vmem:[%s4326_s1 + $0xb8] sm:$0xff]   ;;  %v3381_v2 = vld [vmem:[%s4326_s1 + $0x1c0] sm:$0xff]   ;;  %s258_s14 = scalar_lea.vmem %s4329_s4, %s2985_s11 }
  0x12   : > { %3155 = vmatpush3.bf16.msra.mxu1 %v3359_v11  ;;  %3116 = vmatprep.subr.bf16.mxu0 %v3360_v12  ;;  %v409_v43 = vld [vmem:[%s3602_s24 + $0x20] sm:$0xff]   ;;  %v483_v56 = vld [vmem:[%s3602_s24 + $0x28] sm:$0x1]  ;;  %vm383_vm5 = vmand %vm3610_vm0, %vm3614_vm1  ;;  %s266_s22 = scalar_lea.vmem %s4330_s5, %s2775_s15 }
  0x13   : > { %3156 = vmatprep.subr.bf16.mxu1 %v3361_v13  ;;  %v417_v49 = vunpack.c.h.bf16 %v409_v43  ;;  %v2794_v50 = vld [vmem:[%s3602_s24 + $0x10] ss:$16 sps:$4 sm:$0xff]   ;;  %v283_v52 = vunpack.c.l.bf16 %v409_v43  ;;  %v499_v60 = vunpack.c.l.bf16 %v483_v56  ;;  %vm3659_vm10 = vmpackc.low %vm383_vm5, %vm383_vm5 }
  0x14   : > { %v3625_v51 = vld [vmem:[%s3602_s24 + $0x30] ss:$16 sps:$4 sm:$0xff]   ;;  %v782_v54 = vunpack.c.l.bf16 %v2794_v50  ;;  %v498_v57 = vunpack.c.h.bf16 %v2794_v50  ;;  %vm3674_vm12 = vmor %vm656_vm2, %vm657_vm3 }
  0x15   : > { %3117 = vmatpush3.bf16.msra.mxu0 %v3362_v14  ;;  %v783_v55 = vunpack.c.l.bf16 %v3625_v51  ;;  %v425_v58 = vmul.f32 %v3621_v48, %v417_v49  ;;  %v295_v59 = vmul.f32 %v3621_v48, %v283_v52  ;;  %v515_v5 = vmul.f32 %v3621_v48, %v499_v60  ;;  %v3382_v27 = vld [vmem:[%s4326_s1 + $0x100] sm:$0xff]  }
  0x16   : > { %3157 = vmatpush3.bf16.msra.mxu1 %v3363_v15  ;;  %3118 = vmatprep.subr.bf16.mxu0 %v3364_v16  ;;  %v790_v62 = vmul.f32 %v3621_v48, %v782_v54  ;;  %v514_v0 = vmul.f32 %v3621_v48, %v498_v57  ;;  %v500_v9 = vunpack.c.h.bf16 %v3625_v51  ;;  %v3691_v52 = vld [vmem:[%s3602_s24 + $0x50] ss:$16 sps:$4 sm:$0xff]   ;;  %v672_v54 = vsel %vm3674_vm12, %v3642_v1, %v3608_v44 }
  0x17   : > { %3158 = vmatprep.subr.bf16.mxu1 %v3365_v17  ;;  %v791_v63 = vmul.f32 %v3621_v48, %v783_v55  ;;  %v433_v3 = vadd.f32 %v3630_v53, %v425_v58  ;;  %v307_v4 = vadd.f32 %v3630_v53, %v295_v59  ;;  %v531_v16 = vadd.f32 %v3630_v53, %v515_v5  ;;  %v3386_v55 = vld [vmem:[%s4326_s1 + $0x108] sm:$0xff]   ;;  %v3388_v44 = vld [vmem:[%s4326_s1 + $0x150] sm:$0xff]  }
  0x18   : > { %v798_v6 = vadd.f32 %v3630_v53, %v790_v62  ;;  %v530_v8 = vadd.f32 %v3630_v53, %v514_v0  ;;  %v784_v56 = vunpack.c.l.bf16 %v3691_v52  ;;  %v516_v58 = vmul.f32 %v3621_v48, %v500_v9 }
  0x19   : > { %3119 = vmatpush3.bf16.msra.mxu0 %v3366_v20  ;;  %v799_v7 = vadd.f32 %v3630_v53, %v791_v63  ;;  %vm441_vm4 = vcmp.ge.f32.partialorder %v433_v3, 0.0  ;;  %v449_v10 = vmul.f32 0.01, %v433_v3  ;;  %vm315_vm6 = vcmp.ge.f32.partialorder %v307_v4, 0.0 }
  0x1a   : > { %3159 = vmatpush3.bf16.msra.mxu1 %v3367_v21  ;;  %3120 = vmatprep.subr.bf16.mxu0 %v3368_v23  ;;  %v323_v11 = vmul.f32 0.01, %v307_v4  ;;  %vm806_vm7 = vcmp.ge.f32.partialorder %v798_v6, 0.0  ;;  %v814_v12 = vmul.f32 0.01, %v798_v6  ;;  %vm546_vm9 = vcmp.ge.f32.partialorder %v530_v8, 0.0 }
  0x1b   : > { %3160 = vmatprep.subr.bf16.mxu1 %v3369_v24  ;;  %vm807_vm8 = vcmp.ge.f32.partialorder %v799_v7, 0.0  ;;  %v815_v13 = vmul.f32 0.01, %v799_v7  ;;  %v457_v14 = vsel %vm441_vm4, %v433_v3, %v449_v10  ;;  %vm547_vm11 = vcmp.ge.f32.partialorder %v531_v16, 0.0 }
  0x1c   : > { %v331_v15 = vsel %vm315_vm6, %v307_v4, %v323_v11  ;;  %v473_v17 = vpack.c.bf16 %v457_v14, %v457_v14  ;;  %v822_v19 = vsel %vm806_vm7, %v798_v6, %v814_v12  ;;  %v562_v29 = vmul.f32 0.01, %v530_v8  ;;  %v3390_v11 = vld [vmem:[%s4326_s1 + $0x110] sm:$0xff]  }
  0x1d   : > { %3121 = vmatpush3.bf16.msra.mxu0 %v3370_v26  ;;  %v823_v20 = vsel %vm807_vm8, %v799_v7, %v815_v13  ;;  %v393_v22 = vsel %vm383_vm5, %v331_v15, 0.0  ;;  %v3000_v23 = vpack.c.bf16 %v822_v19, %v822_v19  ;;  %v563_v30 = vmul.f32 0.01, %v531_v16  ;;  %v3392_v15 = vld [vmem:[%s4326_s1 + $0x158] sm:$0xff]  }
  0x1e   : > { %3161 = vmatpush3.bf16.msra.mxu1 %v3371_v28  ;;  %3122 = vmatprep.subr.bf16.mxu0 %v3372_v31  ;;  %v3002_v24 = vpack.c.bf16 %v823_v20, %v823_v20  ;;  %v3064_v25 = vpack.c.bf16 %v823_v20, %v822_v19  ;;  %v401_v26 = vpack.c.bf16 %v393_v22, %v393_v22  ;;  %v3384_v31 = vld [vmem:[%s4326_s1 + $0x148] sm:$0xff]   ;;  %v3383_v20 = vld [vmem:[%s4326_s1 + $0x180] sm:$0xff]  }
  0x1f   : > { %3162 = vmatprep.subr.bf16.mxu1 %v3373_v32  ;;  %v2878_v28 = vcombine.low %v3446_v18, %v473_v17  ;;  %v1015_v32 = vshrl.u32 %v3000_v23, 16  ;;  %v1018_v33 = vshll.u32 %v3000_v23, 16  ;;  %v579_v39 = vsel %vm547_vm11, %v531_v16, %v563_v30 }
  0x20   : > { %v1032_v35 = vshll.u32 %v3002_v24, 16  ;;  %3065 = vmatprep.mubr.msk.bf16.mxu1 %vm3659_vm10, %v3064_v25  ;;  %v2874_v37 = vcombine.low %v3446_v18, %v401_v26  ;;  %v2987_v49 = vpack.c.bf16 %v579_v39, %v579_v39  ;;  %v3694_v18 = vld [vmem:[%s3602_s24 + $0x70] ss:$16 sps:$4 sm:$0xff]   ;;  %v532_v39 = vadd.f32 %v3630_v53, %v516_v58 }
  0x21   : > { %3123 = vmatpush3.bf16.msra.mxu0 %v3374_v34  ;;  %v1029_v34 = vshrl.u32 %v3002_v24, 16  ;;  %2289 = vmatprep.mubr.bf16.mxu0 %v2878_v28  ;;  %v3684_v43 = vrot.slane %v1018_v33, 5  ;;  %v785_v57 = vunpack.c.l.bf16 %v3694_v18  ;;  %v3394_v28 = vld [vmem:[%s4326_s1 + $0x118] sm:$0xff]  }
  0x22   : > { %3163 = vmatpush3.bf16.msra.mxu1 %v3375_v36  ;;  %3124 = vmatprep.subr.bf16.mxu0 %v3376_v38  ;;  %v578_v38 = vsel %vm546_vm9, %v530_v8, %v562_v29  ;;  %v3688_v46 = vrot.slane %v1032_v35, 5  ;;  %vm548_vm3 = vcmp.ge.f32.partialorder %v532_v39, 0.0 }
  0x23   : > { %3164 = vmatprep.subr.bf16.mxu1 %v3377_v40  ;;  %v410_v40 = vld [vmem:[%s3602_s24 + $0x40] sm:$0xff]   ;;  %v3686_v45 = vrot.slane %v1029_v34, 4  ;;  %v2986_v47 = vpack.c.bf16 %v578_v38, %v578_v38  ;;  %v793_v8 = vmul.f32 %v3621_v48, %v785_v57  ;;  %v3385_v34 = vld [vmem:[%s4326_s1 + $0x1c8] sm:$0xff]  }
  0x24   : > { %v418_v50 = vunpack.c.h.bf16 %v410_v40  ;;  %v284_v10 = vunpack.c.l.bf16 %v410_v40  ;;  %v485_v38 = vld [vmem:[%s3602_s24 + $0x48] sm:$0x1]  ;;  %v3769_v57 = vld [vmem:[%s3602_s24 + $0x90] ss:$16 sps:$4 sm:$0xff]  }
  0x25   : > { %3125 = vmatpush3.bf16.msra.mxu0 %v3378_v41  ;;  %v411_v41 = vld [vmem:[%s3602_s24 + $0x60] sm:$0xff]   ;;  %v674_v59 = vshrl.u32 %v2986_v47, 16  ;;  %v677_v60 = vshll.u32 %v2986_v47, 16  ;;  %v1035_v0 = vor.u32 %v3688_v46, %v3686_v45  ;;  %v801_v17 = vadd.f32 %v3630_v53, %v793_v8 }
  0x26   : > { %3165 = vmatpush3.bf16.msra.mxu1 %v3379_v42  ;;  %3190 = vmatprep.subr.bf16.mxu0 %v3380_v61  ;;  %v3682_v42 = vrot.slane %v1015_v32, 4  ;;  %v419_v51 = vunpack.c.h.bf16 %v411_v41  ;;  %v683_v61 = vshll.u32 %v2987_v49, 16  ;;  %v426_v62 = vmul.f32 %v3621_v48, %v418_v50  ;;  %v3751_v46 = vld [vmem:[%s3602_s24 + $0x80] sm:$0xff]   ;;  %v3387_v50 = vld [vmem:[%s4326_s1 + $0x188] sm:$0xff]  }
  0x27   : > { %3230 = vmatprep.subr.bf16.mxu1 %v3381_v2  ;;  %v792_v2 = vmul.f32 %v3621_v48, %v784_v56  ;;  %v676_v3 = vrot.slane %v674_v59, 4  ;;  %v679_v4 = vrot.slane %v677_v60, 5  ;;  %v285_v14 = vunpack.c.l.bf16 %v411_v41  ;;  %v3396_v47 = vld [vmem:[%s4326_s1 + $0x160] sm:$0xff]  }
  0x28   : > { %2290 = vmatmul.mubr.bf16.vlgmr.msra.gmra.mrb[0].mxu0 %v2874_v37  ;;  %v1021_v63 = vor.u32 %v3684_v43, %v3682_v42  ;;  %v427_v1 = vmul.f32 %v3621_v48, %v419_v51  ;;  %v685_v5 = vrot.slane %v683_v61, 5  ;;  %v434_v6 = vadd.f32 %v3630_v53, %v426_v62  ;;  %v487_v42 = vld [vmem:[%s3602_s24 + $0x68] sm:$0x1]  ;;  %v3766_v56 = vld [vmem:[%s3602_s24 + $0xa0] sm:$0xff]   ;;  %v3389_v61 = vld [vmem:[%s4326_s1 + $0x1d0] sm:$0xff]  }
  0x29   : > { %3191 = vmatpush3.bf16.msra.mxu0 %v3382_v27  ;;  %v800_v9 = vadd.f32 %v3630_v53, %v792_v2  ;;  %v680_v12 = vor.u32 %v679_v4, %v676_v3  ;;  %v296_v24 = vmul.f32 %v3621_v48, %v284_v10  ;;  %vm809_vm0 = vcmp.ge.f32.partialorder %v801_v17, 0.0  ;;  %v3776_v62 = vld [vmem:[%s3602_s24 + $0xb0] ss:$16 sps:$4 sm:$0xff]  }
  0x2a   : > { %3192 = vmatprep.subr.bf16.mxu0 %v3384_v31  ;;  %v435_v7 = vadd.f32 %v3630_v53, %v427_v1  ;;  %vm442_vm13 = vcmp.ge.f32.partialorder %v434_v6, 0.0  ;;  %v450_v13 = vmul.f32 0.01, %v434_v6  ;;  %v817_v26 = vmul.f32 0.01, %v801_v17  ;;  %v3391_v1 = vld [vmem:[%s4326_s1 + $0x190] sm:$0xff]  }
  0x2b   : > { %vm808_vm15 = vcmp.ge.f32.partialorder %v800_v9, 0.0  ;;  %v681_v19 = vrot.slane %v680_v12, 4  ;;  %v816_v23 = vmul.f32 0.01, %v800_v9  ;;  %v297_v27 = vmul.f32 %v3621_v48, %v285_v14  ;;  %v3398_v10 = vld [vmem:[%s4326_s1 + $0x120] sm:$0xff]   ;;  %v3393_v14 = vld [vmem:[%s4326_s1 + $0x1d8] sm:$0xff]  }
  0x2c   : > { %vm443_vm14 = vcmp.ge.f32.partialorder %v435_v7, 0.0  ;;  %v451_v16 = vmul.f32 0.01, %v435_v7  ;;  %v458_v22 = vsel %vm442_vm13, %v434_v6, %v450_v13  ;;  %v308_v32 = vadd.f32 %v3630_v53, %v296_v24 }
  0x2d   : > { %3193 = vmatpush3.bf16.msra.mxu0 %v3386_v55  ;;  %v686_v29 = vsel %vm3674_vm12, %v681_v19, %v685_v5  ;;  %v824_v31 = vsel %vm808_vm15, %v800_v9, %v816_v23  ;;  %v3741_v35 = vsel %vm809_vm0, %v801_v17, %v817_v26  ;;  %v309_v37 = vadd.f32 %v3630_v53, %v297_v27  ;;  %v3395_v27 = vld [vmem:[%s4326_s1 + $0x198] sm:$0xff]  }
  0x2e   : > { %3194 = vmatprep.subr.bf16.mxu0 %v3388_v44  ;;  %v459_v25 = vsel %vm443_vm14, %v435_v7, %v451_v16  ;;  %v2882_v33 = vcombine.low %v672_v54, %v686_v29  ;;  %v3067_v40 = vpack.c.bf16 %v3741_v35, %v824_v31  ;;  %vm316_vm1 = vcmp.ge.f32.partialorder %v308_v32, 0.0  ;;  %v3402_v29 = vld [vmem:[%s4326_s1 + $0x128] sm:$0xff]  }
  0x2f   : > { %v3035_v30 = vpack.c.bf16 %v459_v25, %v458_v22  ;;  %v324_v41 = vmul.f32 0.01, %v308_v32  ;;  %v3748_v43 = vrot.slane %v1021_v63, 4  ;;  %vm317_vm2 = vcmp.ge.f32.partialorder %v309_v37, 0.0 }
  0x30   : > { %2355 = vmatmul.mubr.bf16.vlgmr.msra.gmra.mrb[0].mxu1 %v2882_v33  ;;  %v325_v45 = vmul.f32 0.01, %v309_v37  ;;  %v3756_v49 = vrot.slane %v1035_v0, 4  ;;  %v3761_v51 = vpack.c.bf16 %v824_v31, %v824_v31  ;;  %v501_v55 = vunpack.c.l.bf16 %v485_v38  ;;  %v3397_v33 = vld [vmem:[%s4326_s1 + $0x1e0] sm:$0xff]  }
  0x31   : > { %3195 = vmatpush3.bf16.msra.mxu0 %v3390_v11  ;;  %2297 = vmatprep.mubr.bf16.mxu0 %v3035_v30  ;;  %v332_v54 = vsel %vm316_vm1, %v308_v32, %v324_v41  ;;  %v502_v59 = vunpack.c.h.bf16 %v3691_v52  ;;  %v503_v60 = vunpack.c.l.bf16 %v487_v42  ;;  %v564_v0 = vmul.f32 0.01, %v532_v39 }
  0x32   : > { %3196 = vmatprep.subr.bf16.mxu0 %v3392_v15  ;;  %3231 = vmatpush3.bf16.msra.mxu1 %v3383_v20  ;;  %v333_v58 = vsel %vm317_vm2, %v309_v37, %v325_v45  ;;  %v517_v63 = vmul.f32 %v3621_v48, %v501_v55  ;;  %v420_v2 = vunpack.c.h.bf16 %v3751_v46  ;;  %v421_v4 = vunpack.c.h.bf16 %v3766_v56  ;;  %v3400_v20 = vld [vmem:[%s4326_s1 + $0x168] sm:$0xff]   ;;  %v3399_v55 = vld [vmem:[%s4326_s1 + $0x1a0] sm:$0xff]  }
  0x33   : > { %3068 = vmatprep.mubr.msk.bf16.mxu1 %vm3659_vm10, %v3067_v40  ;;  %3232 = vmatprep.subr.bf16.mxu1 %v3385_v34  ;;  %v3055_v44 = vpack.c.bf16 %v333_v58, %v332_v54  ;;  %v518_v52 = vmul.f32 %v3621_v48, %v502_v59  ;;  %v519_v3 = vmul.f32 %v3621_v48, %v503_v60  ;;  %v786_v5 = vunpack.c.l.bf16 %v3769_v57  ;;  %v3404_v58 = vld [vmem:[%s4326_s1 + $0x170] sm:$0xff]  }
  0x34   : > { %v533_v6 = vadd.f32 %v3630_v53, %v517_v63  ;;  %v580_v7 = vsel %vm548_vm3, %v532_v39, %v564_v0  ;;  %v428_v8 = vmul.f32 %v3621_v48, %v420_v2  ;;  %v787_v9 = vunpack.c.l.bf16 %v3776_v62  ;;  %v3401_v63 = vld [vmem:[%s4326_s1 + $0x1e8] sm:$0xff]  }
  0x35   : > { %3197 = vmatpush3.bf16.msra.mxu0 %v3394_v28  ;;  %v534_v11 = vadd.f32 %v3630_v53, %v518_v52  ;;  %v535_v12 = vadd.f32 %v3630_v53, %v519_v3  ;;  %v2988_v13 = vpack.c.bf16 %v580_v7, %v580_v7  ;;  %v429_v15 = vmul.f32 %v3621_v48, %v421_v4  ;;  %v489_v3 = vld [vmem:[%s3602_s24 + $0x88] sm:$0x1] }
  0x36   : > { %3198 = vmatprep.subr.bf16.mxu0 %v3396_v47  ;;  %3233 = vmatpush3.bf16.msra.mxu1 %v3387_v50  ;;  %vm549_vm4 = vcmp.ge.f32.partialorder %v533_v6, 0.0  ;;  %v565_v16 = vmul.f32 0.01, %v533_v6  ;;  %v436_v17 = vadd.f32 %v3630_v53, %v428_v8  ;;  %v794_v19 = vmul.f32 %v3621_v48, %v786_v5  ;;  %v3403_v4 = vld [vmem:[%s4326_s1 + $0x1a8] sm:$0xff]  }
  0x37   : > { %3056 = vmatmul.mubr.msk.bf16.gmra.mrb[4].mxu0 %vm3659_vm10, %v3055_v44  ;;  %3234 = vmatprep.subr.bf16.mxu1 %v3389_v61  ;;  %vm550_vm5 = vcmp.ge.f32.partialorder %v534_v11, 0.0  ;;  %vm551_vm6 = vcmp.ge.f32.partialorder %v535_v12, 0.0  ;;  %v566_v22 = vmul.f32 0.01, %v534_v11  ;;  %v567_v23 = vmul.f32 0.01, %v535_v12 }
  0x38   : > { %v581_v24 = vsel %vm549_vm4, %v533_v6, %v565_v16  ;;  %v688_v25 = vshrl.u32 %v2988_v13, 16  ;;  %v691_v26 = vshll.u32 %v2988_v13, 16  ;;  %v437_v28 = vadd.f32 %v3630_v53, %v429_v15 }
  0x39   : > { %3199 = vmatpush3.bf16.msra.mxu0 %v3398_v10  ;;  %v582_v30 = vsel %vm550_vm5, %v534_v11, %v566_v22  ;;  %v583_v31 = vsel %vm551_vm6, %v535_v12, %v567_v23  ;;  %v2989_v32 = vpack.c.bf16 %v581_v24, %v581_v24  ;;  %vm444_vm7 = vcmp.ge.f32.partialorder %v436_v17, 0.0  ;;  %v3405_v10 = vld [vmem:[%s4326_s1 + $0x1f0] sm:$0xff]  }
  0x3a   : > { %3235 = vmatpush3.bf16.msra.mxu1 %v3391_v1  ;;  %3200 = vmatprep.subr.bf16.mxu0 %v3400_v20  ;;  %v2990_v34 = vpack.c.bf16 %v582_v30, %v582_v30  ;;  %v2991_v37 = vpack.c.bf16 %v583_v31, %v583_v31  ;;  %v690_v38 = vrot.slane %v688_v25, 4  ;;  %v693_v39 = vrot.slane %v691_v26, 5 }
  0x3b   : > { %3236 = vmatprep.subr.bf16.mxu1 %v3393_v14  ;;  %v697_v40 = vshll.u32 %v2989_v32, 16  ;;  %vm445_vm8 = vcmp.ge.f32.partialorder %v437_v28, 0.0  ;;  %v452_v41 = vmul.f32 0.01, %v436_v17  ;;  %v453_v42 = vmul.f32 0.01, %v437_v28 }
  0x3c   : > { %v694_v45 = vor.u32 %v693_v39, %v690_v38  ;;  %v702_v47 = vshrl.u32 %v2990_v34, 16  ;;  %v705_v50 = vshll.u32 %v2990_v34, 16  ;;  %v711_v54 = vshll.u32 %v2991_v37, 16  ;;  %v3876_v39 = vld [vmem:[%s3602_s24 + $0xe0] sm:$0xff]  }
  0x3d   : > { %3201 = vmatpush3.bf16.msra.mxu0 %v3402_v29  ;;  %v699_v59 = vrot.slane %v697_v40, 5  ;;  %v460_v60 = vsel %vm444_vm7, %v436_v17, %v452_v41  ;;  %v461_v61 = vsel %vm445_vm8, %v437_v28, %v453_v42  ;;  %v795_v44 = vmul.f32 %v3621_v48, %v787_v9  ;;  %v491_v9 = vld [vmem:[%s3602_s24 + $0xa8] sm:$0x1]  ;;  %v3860_v28 = vld [vmem:[%s3602_s24 + $0xc0] sm:$0xff]   ;;  %v3408_v29 = vld [vmem:[%s4326_s1 + $0x178] sm:$0xff]  }
  0x3e   : > { %3237 = vmatpush3.bf16.msra.mxu1 %v3395_v27  ;;  %v695_v0 = vrot.slane %v694_v45, 4  ;;  %v704_v1 = vrot.slane %v702_v47, 4  ;;  %v707_v2 = vrot.slane %v705_v50, 5  ;;  %v713_v52 = vrot.slane %v711_v54, 5  ;;  %3202 = vmatprep.subr.bf16.mxu0 %v3404_v58  ;;  %v3409_v40 = vld [vmem:[%s4326_s1 + $0x1f8] sm:$0xff]  }
  0x3f   : > { %3238 = vmatprep.subr.bf16.mxu1 %v3397_v33  ;;  %v3036_v5 = vpack.c.bf16 %v461_v61, %v460_v60  ;;  %v802_v6 = vadd.f32 %v3630_v53, %v794_v19  ;;  %v803_v7 = vadd.f32 %v3630_v53, %v795_v44  ;;  %v286_v8 = vunpack.c.l.bf16 %v3751_v46  ;;  %v3411_v44 = vld [vmem:[%s4326_s1 + $0x1b8] sm:$0xff]  }
  0x40   : > { %v3841_v11 = vpack.c.bf16 %v3741_v35, %v3741_v35  ;;  %v708_v12 = vor.u32 %v707_v2, %v704_v1  ;;  %v287_v13 = vunpack.c.l.bf16 %v3766_v56  ;;  %v504_v14 = vunpack.c.h.bf16 %v3694_v18  ;;  %v3406_v18 = vld [vmem:[%s4326_s1 + $0x130] sm:$0xff]  }
  0x41   : > { %2305 = vmatprep.mubr.bf16.mxu0 %v3036_v5  ;;  %vm810_vm9 = vcmp.ge.f32.partialorder %v802_v6, 0.0  ;;  %vm811_vm11 = vcmp.ge.f32.partialorder %v803_v7, 0.0  ;;  %v818_v15 = vmul.f32 0.01, %v802_v6  ;;  %v819_v46 = vmul.f32 0.01, %v803_v7  ;;  %3203 = vmatpush3.bf16.msra.mxu0 %v3406_v18 }
  0x42   : > { %3239 = vmatpush3.bf16.msra.mxu1 %v3399_v55  ;;  %v700_v16 = vsel %vm3674_vm12, %v695_v0, %v699_v59  ;;  %v709_v17 = vrot.slane %v708_v12, 4  ;;  %v298_v35 = vmul.f32 %v3621_v48, %v286_v8  ;;  %v299_v19 = vmul.f32 %v3621_v48, %v287_v13  ;;  %3204 = vmatprep.subr.bf16.mxu0 %v3408_v29  ;;  %v3410_v55 = vld [vmem:[%s4326_s1 + $0x138] sm:$0xff]   ;;  %v3901_v5 = vld [vmem:[%s3602_s24 + $0xd0] ss:$16 sps:$4 sm:$0xff]  }
  0x43   : > { %3240 = vmatprep.subr.bf16.mxu1 %v3401_v63  ;;  %v1043_v56 = vshrl.u32 %v3761_v51, 16  ;;  %v826_v20 = vsel %vm810_vm9, %v802_v6, %v818_v15  ;;  %v3853_v22 = vsel %vm811_vm11, %v803_v7, %v819_v46  ;;  %v505_v23 = vunpack.c.l.bf16 %v489_v3  ;;  %v3906_v6 = vld [vmem:[%s4326_s1 + $0x200] sm:$0xff]  }
  0x44   : > { %v714_v24 = vsel %vm3674_vm12, %v709_v17, %v713_v52  ;;  %v3070_v25 = vpack.c.bf16 %v3853_v22, %v826_v20  ;;  %v506_v26 = vunpack.c.h.bf16 %v3769_v57  ;;  %v507_v27 = vunpack.c.l.bf16 %v491_v9  ;;  %v3407_v57 = vld [vmem:[%s4326_s1 + $0x1b0] sm:$0xff]  }
  0x45   : > { %v2883_v30 = vcombine.low %v700_v16, %v714_v24  ;;  %v310_v31 = vadd.f32 %v3630_v53, %v298_v35  ;;  %v311_v32 = vadd.f32 %v3630_v53, %v299_v19  ;;  %v520_v33 = vmul.f32 %v3621_v48, %v504_v14  ;;  %3205 = vmatpush3.bf16.msra.mxu0 %v3410_v55  ;;  %v3916_v24 = vld [vmem:[%s3602_s24 + $0x14] ss:$220 sps:$4 sm:$0xff]  }
  0x46   : > { %3241 = vmatpush3.bf16.msra.mxu1 %v3403_v4  ;;  %v1046_v34 = vshll.u32 %v3761_v51, 16  ;;  %v1057_v37 = vshrl.u32 %v3841_v11, 16  ;;  %v3873_v38 = vpack.c.bf16 %v826_v20, %v826_v20  ;;  %v521_v45 = vmul.f32 %v3621_v48, %v505_v23  ;;  %3282 = vmatprep.subr.bf16.mxu0 %v3906_v6 }
  0x47   : > { %3242 = vmatprep.subr.bf16.mxu1 %v3405_v10  ;;  %2363 = vmatmul.mubr.bf16.gmra.mrb[4].mxu1 %v2883_v30  ;;  %vm318_vm13 = vcmp.ge.f32.partialorder %v310_v31, 0.0  ;;  %vm319_vm14 = vcmp.ge.f32.partialorder %v311_v32, 0.0  ;;  %v326_v41 = vmul.f32 0.01, %v310_v31  ;;  %v327_v42 = vmul.f32 0.01, %v311_v32 }
  0x48   : > { %3071 = vmatprep.mubr.msk.bf16.mxu1 %vm3659_vm10, %v3070_v25  ;;  %v522_v47 = vmul.f32 %v3621_v48, %v506_v26  ;;  %v523_v50 = vmul.f32 %v3621_v48, %v507_v27  ;;  %v536_v54 = vadd.f32 %v3630_v53, %v520_v33  ;;  %v422_v60 = vunpack.c.h.bf16 %v3860_v28 }
  0x49   : > { %v334_v58 = vsel %vm318_vm13, %v310_v31, %v326_v41  ;;  %v335_v59 = vsel %vm319_vm14, %v311_v32, %v327_v42  ;;  %v423_v61 = vunpack.c.h.bf16 %v3876_v39  ;;  %v537_v0 = vadd.f32 %v3630_v53, %v521_v45  ;;  %v493_v42 = vld [vmem:[%s3602_s24 + $0xc8] sm:$0x1] }
  0x4a   : > { %3243 = vmatpush3.bf16.msra.mxu1 %v3407_v57  ;;  %v3058_v63 = vpack.c.bf16 %v335_v59, %v334_v58  ;;  %v538_v1 = vadd.f32 %v3630_v53, %v522_v47  ;;  %v539_v2 = vadd.f32 %v3630_v53, %v523_v50  ;;  %vm552_vm15 = vcmp.ge.f32.partialorder %v536_v54, 0.0 }
  0x4b   : > { %3244 = vmatprep.subr.bf16.mxu1 %v3409_v40  ;;  %v568_v52 = vmul.f32 0.01, %v536_v54  ;;  %v430_v3 = vmul.f32 %v3621_v48, %v422_v60  ;;  %v431_v4 = vmul.f32 %v3621_v48, %v423_v61  ;;  %vm553_vm0 = vcmp.ge.f32.partialorder %v537_v0, 0.0 }
  0x4c   : > { %3059 = vmatmul.mubr.msk.bf16.gmra.mrb[8].mxu0 %vm3659_vm10, %v3058_v63  ;;  %vm554_vm1 = vcmp.ge.f32.partialorder %v538_v1, 0.0  ;;  %vm555_vm2 = vcmp.ge.f32.partialorder %v539_v2, 0.0  ;;  %v569_v7 = vmul.f32 0.01, %v537_v0  ;;  %v570_v8 = vmul.f32 0.01, %v538_v1 }
  0x4d   : > { %v571_v9 = vmul.f32 0.01, %v539_v2  ;;  %v584_v10 = vsel %vm552_vm15, %v536_v54, %v568_v52  ;;  %v438_v12 = vadd.f32 %v3630_v53, %v430_v3  ;;  %v439_v15 = vadd.f32 %v3630_v53, %v431_v4  ;;  %v495_v3 = vld [vmem:[%s3602_s24 + $0xe8] sm:$0x1] }
  0x4e   : > { %3245 = vmatpush3.bf16.msra.mxu1 %v3411_v44  ;;  %v585_v13 = vsel %vm553_vm0, %v537_v0, %v569_v7  ;;  %v2992_v14 = vpack.c.bf16 %v584_v10, %v584_v10  ;;  %v788_v46 = vunpack.c.l.bf16 %v3901_v5  ;;  %v586_v16 = vsel %vm554_vm1, %v538_v1, %v570_v8 }
  0x4f   : > { %3306 = vmatprep.subr.bf16.mxu1 %v3906_v6  ;;  %v587_v17 = vsel %vm555_vm2, %v539_v2, %v571_v9  ;;  %v2993_v35 = vpack.c.bf16 %v585_v13, %v585_v13  ;;  %vm446_vm3 = vcmp.ge.f32.partialorder %v438_v12, 0.0  ;;  %v2994_v19 = vpack.c.bf16 %v586_v16, %v586_v16 }
  0x50   : > { %v2995_v18 = vpack.c.bf16 %v587_v17, %v587_v17  ;;  %v716_v20 = vshrl.u32 %v2992_v14, 16  ;;  %v719_v23 = vshll.u32 %v2992_v14, 16  ;;  %vm447_vm4 = vcmp.ge.f32.partialorder %v439_v15, 0.0 }
  0x51   : > { %v725_v25 = vshll.u32 %v2993_v35, 16  ;;  %v454_v26 = vmul.f32 0.01, %v438_v12  ;;  %v455_v27 = vmul.f32 0.01, %v439_v15  ;;  %v730_v31 = vshrl.u32 %v2994_v19, 16 }
  0x52   : > { %v718_v29 = vrot.slane %v716_v20, 4  ;;  %v721_v30 = vrot.slane %v719_v23, 5  ;;  %v733_v32 = vshll.u32 %v2994_v19, 16  ;;  %v739_v57 = vshll.u32 %v2995_v18, 16 }
  0x53   : > { %v727_v33 = vrot.slane %v725_v25, 5  ;;  %v462_v40 = vsel %vm446_vm3, %v438_v12, %v454_v26  ;;  %v463_v41 = vsel %vm447_vm4, %v439_v15, %v455_v27  ;;  %v732_v47 = vrot.slane %v730_v31, 4 }
  0x54   : > { %v722_v45 = vor.u32 %v721_v30, %v718_v29  ;;  %v735_v50 = vrot.slane %v733_v32, 5  ;;  %v3037_v54 = vpack.c.bf16 %v463_v41, %v462_v40  ;;  %v741_v55 = vrot.slane %v739_v57, 5  ;;  %v2811_v57 = vld [vmem:[%s3602_s24 + $0x38] sm:$0x1] }
  0x55   : > { %v789_v58 = vunpack.c.h.bf16 %v3916_v24  ;;  %v796_v59 = vmul.f32 %v3621_v48, %v788_v46  ;;  %v288_v60 = vunpack.c.l.bf16 %v3860_v28  ;;  %v289_v63 = vunpack.c.l.bf16 %v3876_v39 }
  0x56   : > { %v723_v61 = vrot.slane %v722_v45, 4  ;;  %v736_v44 = vor.u32 %v735_v50, %v732_v47  ;;  %2313 = vmatprep.mubr.bf16.mxu0 %v3037_v54  ;;  %v508_v0 = vunpack.c.h.bf16 %v3776_v62  ;;  %v509_v4 = vunpack.c.l.bf16 %v493_v42 }
  0x57   : > { %v797_v1 = vmul.f32 %v3621_v48, %v789_v58  ;;  %v804_v2 = vadd.f32 %v3630_v53, %v796_v59  ;;  %v300_v52 = vmul.f32 %v3621_v48, %v288_v60  ;;  %v301_v28 = vmul.f32 %v3621_v48, %v289_v63 }
  0x58   : > { %v728_v7 = vsel %vm3674_vm12, %v723_v61, %v727_v33  ;;  %v737_v8 = vrot.slane %v736_v44, 4  ;;  %v510_v9 = vunpack.c.h.bf16 %v3901_v5  ;;  %v511_v14 = vunpack.c.l.bf16 %v495_v3  ;;  %v2810_v33 = vld [vmem:[%s3602_s24 + $0x18] sm:$0x1] }
  0x59   : > { %v805_v39 = vadd.f32 %v3630_v53, %v797_v1  ;;  %vm812_vm5 = vcmp.ge.f32.partialorder %v804_v2, 0.0  ;;  %v820_v62 = vmul.f32 0.01, %v804_v2  ;;  %v312_v10 = vadd.f32 %v3630_v53, %v300_v52  ;;  %v3970_v1 = vld [vmem:[%s3602_s24 + $0x20] sm:$0xff]  }
  0x5a   : > { %v742_v12 = vsel %vm3674_vm12, %v737_v8, %v741_v55  ;;  %v313_v13 = vadd.f32 %v3630_v53, %v301_v28  ;;  %v524_v15 = vmul.f32 %v3621_v48, %v508_v0  ;;  %v3943_v5 = vpack.c.bf16 %v3853_v22, %v3853_v22  ;;  %v3975_v28 = vld [vmem:[%s4327_s2 + $0x1] ss:$0 sm:$0xff] }
  0x5b   : > { %v2884_v46 = vcombine.low %v728_v7, %v742_v12  ;;  %vm813_vm6 = vcmp.ge.f32.partialorder %v805_v39, 0.0  ;;  %v821_v16 = vmul.f32 0.01, %v805_v39  ;;  %v3939_v17 = vsel %vm812_vm5, %v804_v2, %v820_v62 }
  0x5c   : > { %vm320_vm7 = vcmp.ge.f32.partialorder %v312_v10, 0.0  ;;  %vm321_vm8 = vcmp.ge.f32.partialorder %v313_v13, 0.0  ;;  %v328_v35 = vmul.f32 0.01, %v312_v10  ;;  %v329_v18 = vmul.f32 0.01, %v313_v13 }
  0x5d   : > { %2371 = vmatmul.mubr.bf16.gmra.mrb[8].mxu1 %v2884_v46  ;;  %v3945_v19 = vsel %vm813_vm6, %v805_v39, %v821_v16  ;;  %v525_v20 = vmul.f32 %v3621_v48, %v509_v4  ;;  %v526_v23 = vmul.f32 %v3621_v48, %v510_v9  ;;  %v1060_v25 = vshll.u32 %v3841_v11, 16  ;;  %v2843_v46 = vld [vmem:[%s3602_s24 + $0x40] sm:$0xff]   ;;  %v3414_v11 = vld [vmem:[%s4326_s1 + $0x210] sm:$0xff]  }
  0x5e   : > { %v1071_v26 = vshrl.u32 %v3873_v38, 16  ;;  %v1074_v22 = vshll.u32 %v3873_v38, 16  ;;  %v3073_v27 = vpack.c.bf16 %v3945_v19, %v3939_v17  ;;  %v336_v29 = vsel %vm320_vm7, %v312_v10, %v328_v35 }
  0x5f   : > { %v337_v30 = vsel %vm321_vm8, %v313_v13, %v329_v18  ;;  %v527_v31 = vmul.f32 %v3621_v48, %v511_v14  ;;  %v540_v32 = vadd.f32 %v3630_v53, %v524_v15  ;;  %v1085_v40 = vshrl.u32 %v3943_v5, 16 }
  0x60   : > { %v1088_v41 = vshll.u32 %v3943_v5, 16  ;;  %3074 = vmatprep.mubr.msk.bf16.mxu1 %vm3659_vm10, %v3073_v27  ;;  %v3061_v42 = vpack.c.bf16 %v337_v30, %v336_v29  ;;  %v541_v45 = vadd.f32 %v3630_v53, %v525_v20  ;;  %v542_v47 = vadd.f32 %v3630_v53, %v526_v23  ;;  %v2803_v20 = vld [vmem:[%s3602_s24 + $0x34] sm:$0xf] }
  0x61   : > { %v543_v50 = vadd.f32 %v3630_v53, %v527_v31  ;;  %vm556_vm9 = vcmp.ge.f32.partialorder %v540_v32, 0.0  ;;  %v572_v54 = vmul.f32 0.01, %v540_v32  ;;  %v918_v58 = vunpack.c.l.bf16 %v2810_v33  ;;  %v4121_v5 = vld [vmem:[%s4326_s1 + $0x230] sm:$0xff]  }
  0x62   : > { %3062 = vmatmul.mubr.msk.bf16.gmra.mrb[12].mxu0 %vm3659_vm10, %v3061_v42  ;;  %vm557_vm11 = vcmp.ge.f32.partialorder %v541_v45, 0.0  ;;  %v573_v55 = vmul.f32 0.01, %v541_v45  ;;  %v919_v59 = vunpack.c.l.bf16 %v2811_v57  ;;  %vm558_vm13 = vcmp.ge.f32.partialorder %v542_v47, 0.0  ;;  %v3985_v57 = vld [vmem:[%s4327_s2] ss:$0 sm:$0xff] }
  0x63   : > { %vm559_vm14 = vcmp.ge.f32.partialorder %v543_v50, 0.0  ;;  %v574_v60 = vmul.f32 0.01, %v542_v47  ;;  %v575_v61 = vmul.f32 0.01, %v543_v50  ;;  %v588_v44 = vsel %vm556_vm9, %v540_v32, %v572_v54 }
  0x64   : > { %v589_v63 = vsel %vm557_vm11, %v541_v45, %v573_v55  ;;  %v926_v0 = vmul.f32 %v3621_v48, %v918_v58  ;;  %v927_v53 = vmul.f32 %v3621_v48, %v919_v59  ;;  %v2996_v3 = vpack.c.bf16 %v588_v44, %v588_v44 }
  0x65   : > { %v590_v2 = vsel %vm558_vm13, %v542_v47, %v574_v60  ;;  %v591_v52 = vsel %vm559_vm14, %v543_v50, %v575_v61  ;;  %v2997_v4 = vpack.c.bf16 %v589_v63, %v589_v63  ;;  %v1210_v12 = vunpack.c.h.bf16 %v3970_v1 }
  0x66   : > { %v2998_v7 = vpack.c.bf16 %v590_v2, %v590_v2  ;;  %v2999_v8 = vpack.c.bf16 %v591_v52, %v591_v52  ;;  %v934_v9 = vadd.f32 %v3975_v28, %v926_v0  ;;  %v935_v39 = vadd.f32 %v3975_v28, %v927_v53 }
  0x67   : > { %v744_v48 = vshrl.u32 %v2996_v3, 16  ;;  %v747_v62 = vshll.u32 %v2996_v3, 16  ;;  %v753_v10 = vshll.u32 %v2997_v4, 16  ;;  %v1211_v33 = vunpack.c.h.bf16 %v2843_v46 }
  0x68   : > { %v758_v13 = vshrl.u32 %v2998_v7, 16  ;;  %v761_v14 = vshll.u32 %v2998_v7, 16  ;;  %v767_v15 = vshll.u32 %v2999_v8, 16  ;;  %vm942_vm15 = vcmp.ge.f32.partialorder %v934_v9, 0.0 }
  0x69   : > { %v746_v16 = vrot.slane %v744_v48, 4  ;;  %v749_v35 = vrot.slane %v747_v62, 5  ;;  %v755_v18 = vrot.slane %v753_v10, 5  ;;  %vm943_vm0 = vcmp.ge.f32.partialorder %v935_v39, 0.0 }
  0x6a   : > { %v760_v23 = vrot.slane %v758_v13, 4  ;;  %v763_v27 = vrot.slane %v761_v14, 5  ;;  %v769_v29 = vrot.slane %v767_v15, 5  ;;  %v950_v30 = vmul.f32 0.01, %v934_v9 }
  0x6b   : > { %v750_v31 = vor.u32 %v749_v35, %v746_v16  ;;  %v951_v32 = vmul.f32 0.01, %v935_v39  ;;  %v1218_v42 = vmul.f32 %v3985_v57, %v1210_v12  ;;  %v854_v50 = vunpack.c.l.bf16 %v3916_v24  ;;  %v2812_v35 = vld [vmem:[%s3602_s24 + $0x58] sm:$0x1] }
  0x6c   : > { %v764_v45 = vor.u32 %v763_v27, %v760_v23  ;;  %v958_v47 = vsel %vm942_vm15, %v934_v9, %v950_v30  ;;  %v855_v54 = vunpack.c.l.bf16 %v2803_v20  ;;  %v1219_v60 = vmul.f32 %v3985_v57, %v1211_v33 }
  0x6d   : > { %v751_v55 = vrot.slane %v750_v31, 4  ;;  %v959_v58 = vsel %vm943_vm0, %v935_v39, %v951_v32  ;;  %v3001_v59 = vpack.c.bf16 %v958_v47, %v958_v47  ;;  %v1226_v63 = vadd.f32 %v3975_v28, %v1218_v42 }
  0x6e   : > { %v765_v61 = vrot.slane %v764_v45, 4  ;;  %v3003_v44 = vpack.c.bf16 %v959_v58, %v959_v58  ;;  %v862_v0 = vmul.f32 %v3985_v57, %v854_v50  ;;  %v1227_v52 = vadd.f32 %v3975_v28, %v1219_v60  ;;  %v4025_v58 = vld [vmem:[%s3602_s24 + $0x60] sm:$0xff]  }
  0x6f   : > { %v756_v53 = vsel %vm3674_vm12, %v751_v55, %v755_v18  ;;  %v1024_v2 = vshll.u32 %v3001_v59, 16  ;;  %v863_v24 = vmul.f32 %v3985_v57, %v855_v54  ;;  %vm1234_vm1 = vcmp.ge.f32.partialorder %v1226_v63, 0.0  ;;  %v2813_v18 = vld [vmem:[%s3602_s24 + $0x78] sm:$0x1]  ;;  %v3413_v54 = vld [vmem:[%s4326_s1 + $0x208] sm:$0xff]  }
  0x70   : > { %v770_v3 = vsel %vm3674_vm12, %v765_v61, %v769_v29  ;;  %v1038_v4 = vshll.u32 %v3003_v44, 16  ;;  %v1242_v7 = vmul.f32 0.01, %v1226_v63  ;;  %vm1235_vm2 = vcmp.ge.f32.partialorder %v1227_v52, 0.0 }
  0x71   : > { %v2885_v8 = vcombine.low %v756_v53, %v770_v3  ;;  %v1026_v9 = vrot.slane %v1024_v2, 5  ;;  %v1243_v39 = vmul.f32 0.01, %v1227_v52  ;;  %v870_v10 = vadd.f32 %v3975_v28, %v862_v0 }
  0x72   : > { %v1040_v48 = vrot.slane %v1038_v4, 5  ;;  %v1250_v62 = vsel %vm1234_vm1, %v1226_v63, %v1242_v7  ;;  %v871_v12 = vadd.f32 %v3975_v28, %v863_v24  ;;  %v1138_v15 = vunpack.c.l.bf16 %v3970_v1  ;;  %v4032_v63 = vld [vmem:[%s3602_s24 + $0x80] sm:$0xff]   ;;  %v2805_v24 = vld [vmem:[%s3602_s24 + $0x74] sm:$0xf] }
  0x73   : > { %2379 = vmatmul.mubr.bf16.gmra.mrb[12].mxu1 %v2885_v8  ;;  %v1027_v13 = vsel %vm3674_vm12, %v3748_v43, %v1026_v9  ;;  %v1251_v14 = vsel %vm1235_vm2, %v1227_v52, %v1243_v39  ;;  %v1139_v16 = vunpack.c.l.bf16 %v2843_v46  ;;  %vm878_vm3 = vcmp.ge.f32.partialorder %v870_v10, 0.0 }
  0x74   : > { %v1041_v20 = vsel %vm3674_vm12, %v3756_v49, %v1040_v48  ;;  %v3050_v23 = vpack.c.bf16 %v1251_v14, %v1250_v62  ;;  %vm879_vm4 = vcmp.ge.f32.partialorder %v871_v12, 0.0  ;;  %v886_v29 = vmul.f32 0.01, %v870_v10 }
  0x75   : > { %v2894_v27 = vcombine.low %v1027_v13, %v1041_v20  ;;  %v887_v30 = vmul.f32 0.01, %v871_v12  ;;  %v1146_v31 = vmul.f32 %v3985_v57, %v1138_v15  ;;  %v1147_v43 = vmul.f32 %v3985_v57, %v1139_v16 }
  0x76   : > { %2484 = vmatprep.mubr.bf16.mxu1 %v3050_v23  ;;  %v920_v1 = vunpack.c.l.bf16 %v2812_v35  ;;  %v921_v46 = vunpack.c.l.bf16 %v2813_v18  ;;  %v1045_v32 = vrot.slane %v1043_v56, 4  ;;  %v894_v33 = vsel %vm878_vm3, %v870_v10, %v886_v29  ;;  %v4061_v23 = vld [vmem:[%s4326_s1 + $0x218] sm:$0xff]  }
  0x77   : > { %2419 = vmatprep.mubr.bf16.mxu0 %v2894_v27  ;;  %v895_v49 = vsel %vm879_vm4, %v871_v12, %v887_v30  ;;  %v1154_v42 = vadd.f32 %v3975_v28, %v1146_v31  ;;  %v1048_v45 = vrot.slane %v1046_v34, 5  ;;  %v1155_v50 = vadd.f32 %v3975_v28, %v1147_v43 }
  0x78   : > { %v3042_v47 = vpack.c.bf16 %v895_v49, %v894_v33  ;;  %v928_v55 = vmul.f32 %v3985_v57, %v920_v1  ;;  %v929_v56 = vmul.f32 %v3985_v57, %v921_v46  ;;  %v1059_v34 = vrot.slane %v1057_v37, 4  ;;  %v2804_v37 = vld [vmem:[%s3602_s24 + $0x54] sm:$0xf] }
  0x79   : > { %vm1162_vm5 = vcmp.ge.f32.partialorder %v1154_v42, 0.0  ;;  %v1170_v59 = vmul.f32 0.01, %v1154_v42  ;;  %v1049_v51 = vor.u32 %v1048_v45, %v1045_v32  ;;  %vm1163_vm6 = vcmp.ge.f32.partialorder %v1155_v50, 0.0 }
  0x7a   : > { %2420 = vmatmul.mubr.bf16.vlgmr.msra.gmra.mrb[16].mxu0 %v3042_v47  ;;  %v1171_v60 = vmul.f32 0.01, %v1155_v50  ;;  %v936_v61 = vadd.f32 %v3975_v28, %v928_v55  ;;  %v937_v44 = vadd.f32 %v3975_v28, %v929_v56  ;;  %v1062_v2 = vrot.slane %v1060_v25, 5  ;;  %v2814_v47 = vld [vmem:[%s3602_s24 + $0x98] sm:$0x1] }
  0x7b   : > { %v4034_v0 = vsel %vm1162_vm5, %v1154_v42, %v1170_v59  ;;  %3283 = vmatpush3.bf16.msra.mxu0 %v3906_v6  ;;  %v1050_v53 = vrot.slane %v1049_v51, 4  ;;  %v1212_v52 = vunpack.c.h.bf16 %v4025_v58  ;;  %v1213_v39 = vunpack.c.h.bf16 %v4032_v63 }
  0x7c   : > { %v4042_v3 = vsel %vm1163_vm6, %v1155_v50, %v1171_v60  ;;  %3284 = vmatprep.subr.bf16.mxu0 %v3413_v54  ;;  %vm944_vm7 = vcmp.ge.f32.partialorder %v936_v61, 0.0  ;;  %vm945_vm8 = vcmp.ge.f32.partialorder %v937_v44, 0.0  ;;  %v952_v4 = vmul.f32 0.01, %v936_v61  ;;  %v4079_v60 = vld [vmem:[%s4326_s1 + $0x220] sm:$0xff]  }
  0x7d   : > { %v3076_v7 = vpack.c.bf16 %v4042_v3, %v4034_v0  ;;  %v953_v8 = vmul.f32 0.01, %v937_v44  ;;  %v1063_v9 = vor.u32 %v1062_v2, %v1059_v34  ;;  %v1220_v48 = vmul.f32 %v3985_v57, %v1212_v52 }
  0x7e   : > { %v960_v25 = vsel %vm944_vm7, %v936_v61, %v952_v4  ;;  %v856_v62 = vunpack.c.l.bf16 %v2804_v37  ;;  %v857_v10 = vunpack.c.l.bf16 %v2805_v24  ;;  %v1221_v15 = vmul.f32 %v3985_v57, %v1213_v39  ;;  %v4091_v4 = vld [vmem:[%s4326_s1 + $0x228] sm:$0xff]  }
  0x7f   : > { %3077 = vmatmul.mubr.msk.bf16.vlgmr.msra.gmra.mrb[16].mxu1 %vm3659_vm10, %v3076_v7  ;;  %3285 = vmatpush3.bf16.msra.mxu0 %v3413_v54  ;;  %v961_v12 = vsel %vm945_vm8, %v937_v44, %v953_v8  ;;  %v3005_v13 = vpack.c.bf16 %v960_v25, %v960_v25  ;;  %v1064_v14 = vrot.slane %v1063_v9, 4  ;;  %v1228_v35 = vadd.f32 %v3975_v28, %v1220_v48 }
  0x80   : > { %3314 = vmatpush3.bf16.msra.mxu1 %v3906_v6  ;;  %v3007_v16 = vpack.c.bf16 %v961_v12, %v961_v12  ;;  %v864_v18 = vmul.f32 %v3985_v57, %v856_v62  ;;  %v865_v20 = vmul.f32 %v3985_v57, %v857_v10  ;;  %v1229_v29 = vadd.f32 %v3975_v28, %v1221_v15  ;;  %v4115_v10 = vld [vmem:[%s3602_s24 + $0xa0] sm:$0xff]  }
  0x81   : > { %3307 = vmatprep.subr.bf16.mxu1 %v3413_v54  ;;  %v1052_v27 = vshll.u32 %v3005_v13, 16  ;;  %v1140_v30 = vunpack.c.l.bf16 %v4025_v58  ;;  %v1141_v6 = vunpack.c.l.bf16 %v4032_v63  ;;  %3286 = vmatprep.subr.bf16.mxu0 %v3414_v11  ;;  %vm1236_vm9 = vcmp.ge.f32.partialorder %v1228_v35, 0.0  ;;  %v2815_v58 = vld [vmem:[%s3602_s24 + $0xb8] sm:$0x1] }
  0x82   : > { %v1066_v31 = vshll.u32 %v3007_v16, 16  ;;  %v1244_v43 = vmul.f32 0.01, %v1228_v35  ;;  %v872_v1 = vadd.f32 %v3975_v28, %v864_v18  ;;  %vm1237_vm11 = vcmp.ge.f32.partialorder %v1229_v29, 0.0  ;;  %v4127_v18 = vld [vmem:[%s3602_s24 + $0xc0] sm:$0xff]  }
  0x83   : > { %v1054_v46 = vrot.slane %v1052_v27, 5  ;;  %v1245_v32 = vmul.f32 0.01, %v1229_v29  ;;  %v873_v33 = vadd.f32 %v3975_v28, %v865_v20  ;;  %3287 = vmatpush3.bf16.msra.mxu0 %v3414_v11  ;;  %v1148_v34 = vmul.f32 %v3985_v57, %v1140_v30 }
  0x84   : > { %3315 = vmatpush3.bf16.msra.mxu1 %v3413_v54  ;;  %v1068_v49 = vrot.slane %v1066_v31, 5  ;;  %v1252_v42 = vsel %vm1236_vm9, %v1228_v35, %v1244_v43  ;;  %vm880_vm13 = vcmp.ge.f32.partialorder %v872_v1, 0.0  ;;  %v888_v45 = vmul.f32 0.01, %v872_v1  ;;  %3288 = vmatprep.subr.bf16.mxu0 %v4061_v23  ;;  %v4140_v31 = vld [vmem:[%s4326_s1 + $0x238] sm:$0xff]  }
  0x85   : > { %v1055_v50 = vsel %vm3674_vm12, %v1050_v53, %v1054_v46  ;;  %v1253_v55 = vsel %vm1237_vm11, %v1229_v29, %v1245_v32  ;;  %vm881_vm14 = vcmp.ge.f32.partialorder %v873_v33, 0.0  ;;  %v889_v56 = vmul.f32 0.01, %v873_v33  ;;  %3308 = vmatprep.subr.bf16.mxu1 %v3414_v11 }
  0x86   : > { %v1069_v59 = vsel %vm3674_vm12, %v1064_v14, %v1068_v49  ;;  %v3051_v51 = vpack.c.bf16 %v1253_v55, %v1252_v42  ;;  %v896_v54 = vsel %vm880_vm13, %v872_v1, %v888_v45  ;;  %v1149_v63 = vmul.f32 %v3985_v57, %v1141_v6  ;;  %v2806_v6 = vld [vmem:[%s3602_s24 + $0x94] sm:$0xf] }
  0x87   : > { %v2895_v61 = vcombine.low %v1055_v50, %v1069_v59  ;;  %v897_v44 = vsel %vm881_vm14, %v873_v33, %v889_v56  ;;  %3289 = vmatpush3.bf16.msra.mxu0 %v4061_v23  ;;  %v922_v53 = vunpack.c.l.bf16 %v2814_v47  ;;  %v4085_v2 = vpack.c.bf16 %v3939_v17, %v3939_v17  ;;  %v2807_v33 = vld [vmem:[%s3602_s24 + $0xb4] sm:$0xf] }
  0x88   : > { %2492 = vmatprep.mubr.bf16.mxu1 %v3051_v51  ;;  %v3043_v52 = vpack.c.bf16 %v897_v44, %v896_v54  ;;  %v1156_v37 = vadd.f32 %v3975_v28, %v1148_v34  ;;  %3316 = vmatpush3.bf16.msra.mxu1 %v3414_v11  ;;  %v923_v24 = vunpack.c.l.bf16 %v2815_v58  ;;  %v1157_v7 = vadd.f32 %v3975_v28, %v1149_v63 }
  0x89   : > { %2427 = vmatprep.mubr.bf16.mxu0 %v2895_v61  ;;  %3309 = vmatprep.subr.bf16.mxu1 %v4061_v23  ;;  %v930_v8 = vmul.f32 %v3985_v57, %v922_v53  ;;  %v1073_v17 = vrot.slane %v1071_v26, 4  ;;  %v1076_v9 = vrot.slane %v1074_v22, 5  ;;  %v1087_v25 = vrot.slane %v1085_v40, 4 }
  0x8a   : > { %2428 = vmatmul.mubr.bf16.gmra.mrb[20].mxu0 %v3043_v52  ;;  %vm1164_vm15 = vcmp.ge.f32.partialorder %v1156_v37, 0.0  ;;  %v1172_v39 = vmul.f32 0.01, %v1156_v37  ;;  %v931_v11 = vmul.f32 %v3985_v57, %v923_v24  ;;  %3290 = vmatprep.subr.bf16.mxu0 %v4079_v60  ;;  %vm1165_vm0 = vcmp.ge.f32.partialorder %v1157_v7, 0.0 }
  0x8b   : > { %v1173_v48 = vmul.f32 0.01, %v1157_v7  ;;  %v938_v62 = vadd.f32 %v3975_v28, %v930_v8  ;;  %v1090_v26 = vrot.slane %v1088_v41, 5  ;;  %3291 = vmatpush3.bf16.msra.mxu0 %v4079_v60  ;;  %v4110_v38 = vpack.c.bf16 %v3945_v19, %v3945_v19 }
  0x8c   : > { %v1180_v22 = vsel %vm1164_vm15, %v1156_v37, %v1172_v39  ;;  %3317 = vmatpush3.bf16.msra.mxu1 %v4061_v23  ;;  %v939_v40 = vadd.f32 %v3975_v28, %v931_v11  ;;  %3292 = vmatprep.subr.bf16.mxu0 %v4091_v4  ;;  %v1077_v19 = vor.u32 %v1076_v9, %v1073_v17  ;;  %v1214_v20 = vunpack.c.h.bf16 %v4115_v10  ;;  %v2816_v11 = vld [vmem:[%s3602_s24 + $0xd8] sm:$0x1] }
  0x8d   : > { %v1181_v41 = vsel %vm1165_vm0, %v1157_v7, %v1173_v48  ;;  %vm946_vm1 = vcmp.ge.f32.partialorder %v938_v62, 0.0  ;;  %v954_v12 = vmul.f32 0.01, %v938_v62  ;;  %3310 = vmatprep.subr.bf16.mxu1 %v4079_v60  ;;  %v4124_v13 = vpack.c.bf16 %v1180_v22, %v1180_v22 }
  0x8e   : > { %v3079_v14 = vpack.c.bf16 %v1181_v41, %v1180_v22  ;;  %vm947_vm2 = vcmp.ge.f32.partialorder %v939_v40, 0.0  ;;  %v955_v15 = vmul.f32 0.01, %v939_v40  ;;  %v1091_v35 = vor.u32 %v1090_v26, %v1087_v25  ;;  %v2817_v26 = vld [vmem:[%s3602_s24 + $0xf8] sm:$0x1] }
  0x8f   : > { %v962_v16 = vsel %vm946_vm1, %v938_v62, %v954_v12  ;;  %3293 = vmatpush3.bf16.msra.mxu0 %v4091_v4  ;;  %v1099_v23 = vshrl.u32 %v4085_v2, 16  ;;  %v1102_v27 = vshll.u32 %v4085_v2, 16  ;;  %v1113_v43 = vshrl.u32 %v4110_v38, 16 }
  0x90   : > { %3080 = vmatmul.mubr.msk.bf16.gmra.mrb[20].mxu1 %vm3659_vm10, %v3079_v14  ;;  %v963_v29 = vsel %vm947_vm2, %v939_v40, %v955_v15  ;;  %v3009_v30 = vpack.c.bf16 %v962_v16, %v962_v16  ;;  %3294 = vmatprep.subr.bf16.mxu0 %v4121_v5  ;;  %v1116_v1 = vshll.u32 %v4110_v38, 16  ;;  %v4144_v46 = vpack.c.bf16 %v1181_v41, %v1181_v41 }
  0x91   : > { %v3011_v32 = vpack.c.bf16 %v963_v29, %v963_v29  ;;  %3318 = vmatpush3.bf16.msra.mxu1 %v4079_v60  ;;  %v1399_v49 = vshrl.u32 %v4124_v13, 16  ;;  %v1078_v42 = vrot.slane %v1077_v19, 4  ;;  %v1215_v47 = vunpack.c.h.bf16 %v4127_v18 }
  0x92   : > { %v1080_v45 = vshll.u32 %v3009_v30, 16  ;;  %3311 = vmatprep.subr.bf16.mxu1 %v4091_v4  ;;  %v1092_v50 = vrot.slane %v1091_v35, 4  ;;  %v1222_v56 = vmul.f32 %v3985_v57, %v1214_v20  ;;  %v858_v58 = vunpack.c.l.bf16 %v2806_v6 }
  0x93   : > { %v1094_v55 = vshll.u32 %v3011_v32, 16  ;;  %3295 = vmatpush3.bf16.msra.mxu0 %v4121_v5  ;;  %v1402_v59 = vshll.u32 %v4124_v13, 16  ;;  %v1223_v54 = vmul.f32 %v3985_v57, %v1215_v47  ;;  %v859_v34 = vunpack.c.l.bf16 %v2807_v33 }
  0x94   : > { %v1082_v51 = vrot.slane %v1080_v45, 5  ;;  %3296 = vmatprep.subr.bf16.mxu0 %v4140_v31  ;;  %v1413_v60 = vshrl.u32 %v4144_v46, 16  ;;  %v1230_v44 = vadd.f32 %v3975_v28, %v1222_v56  ;;  %v866_v63 = vmul.f32 %v3985_v57, %v858_v58 }
  0x95   : > { %v1096_v61 = vrot.slane %v1094_v55, 5  ;;  %3319 = vmatpush3.bf16.msra.mxu1 %v4091_v4  ;;  %v1416_v53 = vshll.u32 %v4144_v46, 16  ;;  %v1231_v37 = vadd.f32 %v3975_v28, %v1223_v54  ;;  %v867_v24 = vmul.f32 %v3985_v57, %v859_v34  ;;  %v2808_v34 = vld [vmem:[%s3602_s24 + $0xd4] sm:$0xf] }
  0x96   : > { %v1083_v52 = vsel %vm3674_vm12, %v1078_v42, %v1082_v51  ;;  %3312 = vmatprep.subr.bf16.mxu1 %v4121_v5  ;;  %vm1238_vm3 = vcmp.ge.f32.partialorder %v1230_v44, 0.0  ;;  %v1246_v8 = vmul.f32 0.01, %v1230_v44  ;;  %v874_v17 = vadd.f32 %v3975_v28, %v866_v63 }
  0x97   : > { %v1097_v7 = vsel %vm3674_vm12, %v1092_v50, %v1096_v61  ;;  %3297 = vmatpush3.bf16.msra.mxu0 %v4140_v31  ;;  %vm1239_vm4 = vcmp.ge.f32.partialorder %v1231_v37, 0.0  ;;  %v1247_v9 = vmul.f32 0.01, %v1231_v37  ;;  %v875_v39 = vadd.f32 %v3975_v28, %v867_v24  ;;  %v2809_v61 = vld [vmem:[%s3602_s24 + $0xf4] sm:$0xf] }
  0x98   : > { %v2896_v4 = vcombine.low %v1083_v52, %v1097_v7  ;;  %v1254_v25 = vsel %vm1238_vm3, %v1230_v44, %v1246_v8  ;;  %vm882_vm5 = vcmp.ge.f32.partialorder %v874_v17, 0.0  ;;  %v890_v48 = vmul.f32 0.01, %v874_v17 }
  0x99   : > { %v1142_v62 = vunpack.c.l.bf16 %v4115_v10  ;;  %3320 = vmatpush3.bf16.msra.mxu1 %v4121_v5  ;;  %v1255_v22 = vsel %vm1239_vm4, %v1231_v37, %v1247_v9  ;;  %vm883_vm6 = vcmp.ge.f32.partialorder %v875_v39, 0.0  ;;  %v891_v40 = vmul.f32 0.01, %v875_v39  ;;  %v2849_v37 = vld [vmem:[%s3602_s24 + $0x100] sm:$0xff]  }
  0x9a   : > { %2435 = vmatprep.mubr.bf16.mxu0 %v2896_v4  ;;  %v1143_v41 = vunpack.c.l.bf16 %v4127_v18  ;;  %3313 = vmatprep.subr.bf16.mxu1 %v4140_v31  ;;  %v3052_v12 = vpack.c.bf16 %v1255_v22, %v1254_v25  ;;  %v898_v19 = vsel %vm882_vm5, %v874_v17, %v890_v48  ;;  %v924_v15 = vunpack.c.l.bf16 %v2816_v11 }
  0x9b   : > { %v1150_v14 = vmul.f32 %v3985_v57, %v1142_v62  ;;  %v899_v16 = vsel %vm883_vm6, %v875_v39, %v891_v40  ;;  %v925_v10 = vunpack.c.l.bf16 %v2817_v26  ;;  %v1101_v5 = vrot.slane %v1099_v23, 4 }
  0x9c   : > { %v1151_v35 = vmul.f32 %v3985_v57, %v1143_v41  ;;  %2500 = vmatprep.mubr.bf16.mxu1 %v3052_v12  ;;  %v3044_v20 = vpack.c.bf16 %v899_v16, %v898_v19  ;;  %v932_v18 = vmul.f32 %v3985_v57, %v924_v15  ;;  %v1104_v30 = vrot.slane %v1102_v27, 5 }
  0x9d   : > { %v1158_v29 = vadd.f32 %v3975_v28, %v1150_v14  ;;  %3321 = vmatpush3.bf16.msra.mxu1 %v4140_v31  ;;  %v933_v32 = vmul.f32 %v3985_v57, %v925_v10  ;;  %v1115_v33 = vrot.slane %v1113_v43, 4  ;;  %v1118_v23 = vrot.slane %v1116_v1, 5 }
  0x9e   : > { %v1159_v6 = vadd.f32 %v3975_v28, %v1151_v35  ;;  %v4194_v42 = vrot.slane %v1399_v49, 4  ;;  %2436 = vmatmul.mubr.bf16.gmra.mrb[24].mxu0 %v3044_v20  ;;  %v940_v27 = vadd.f32 %v3975_v28, %v932_v18  ;;  %v1105_v47 = vor.u32 %v1104_v30, %v1101_v5  ;;  %v2850_v30 = vld [vmem:[%s3602_s24 + $0x28] sm:$0x1] }
  0x9f   : > { %vm1166_vm7 = vcmp.ge.f32.partialorder %v1158_v29, 0.0  ;;  %v1174_v2 = vmul.f32 0.01, %v1158_v29  ;;  %v941_v45 = vadd.f32 %v3975_v28, %v933_v32  ;;  %v1119_v1 = vor.u32 %v1118_v23, %v1115_v33 }
  0xa0   : > { %vm1167_vm8 = vcmp.ge.f32.partialorder %v1159_v6, 0.0  ;;  %v1175_v31 = vmul.f32 0.01, %v1159_v6  ;;  %vm948_vm9 = vcmp.ge.f32.partialorder %v940_v27, 0.0  ;;  %v956_v38 = vmul.f32 0.01, %v940_v27 }
  0xa1   : > { %v1182_v43 = vsel %vm1166_vm7, %v1158_v29, %v1174_v2  ;;  %v4200_v49 = vrot.slane %v1402_v59, 5  ;;  %vm949_vm11 = vcmp.ge.f32.partialorder %v941_v45, 0.0  ;;  %v957_v55 = vmul.f32 0.01, %v941_v45  ;;  %v2848_v59 = vld [vmem:[%s3602_s24 + $0xe0] sm:$0xff]  }
  0xa2   : > { %v1183_v50 = vsel %vm1167_vm8, %v1159_v6, %v1175_v31  ;;  %v4204_v56 = vrot.slane %v1413_v60, 4  ;;  %v4206_v58 = vrot.slane %v1416_v53, 5  ;;  %v964_v54 = vsel %vm948_vm9, %v940_v27, %v956_v38  ;;  %v2851_v31 = vld [vmem:[%s3602_s24 + $0x48] sm:$0x1] }
  0xa3   : > { %v3082_v51 = vpack.c.bf16 %v1183_v50, %v1182_v43  ;;  %v4210_v44 = vpack.c.bf16 %v1182_v43, %v1182_v43  ;;  %v965_v63 = vsel %vm949_vm11, %v941_v45, %v957_v55  ;;  %v3013_v13 = vpack.c.bf16 %v964_v54, %v964_v54 }
  0xa4   : > { %v1106_v52 = vrot.slane %v1105_v47, 4  ;;  %v4214_v24 = vpack.c.bf16 %v1183_v50, %v1183_v50  ;;  %v3015_v46 = vpack.c.bf16 %v965_v63, %v965_v63  ;;  %v1120_v60 = vrot.slane %v1119_v1, 4 }
  0xa5   : > { %3083 = vmatmul.mubr.msk.bf16.gmra.mrb[24].mxu1 %vm3659_vm10, %v3082_v51  ;;  %v1216_v53 = vunpack.c.h.bf16 %v2848_v59  ;;  %v1108_v7 = vshll.u32 %v3013_v13, 16  ;;  %v1217_v8 = vunpack.c.h.bf16 %v2849_v37  ;;  %v860_v17 = vunpack.c.l.bf16 %v2808_v34 }
  0xa6   : > { %v861_v4 = vunpack.c.l.bf16 %v2809_v61  ;;  %v1122_v9 = vshll.u32 %v3015_v46, 16  ;;  %v1144_v11 = vunpack.c.l.bf16 %v2848_v59  ;;  %v1145_v25 = vunpack.c.l.bf16 %v2849_v37 }
  0xa7   : > { %v1224_v39 = vmul.f32 %v3985_v57, %v1216_v53  ;;  %v1110_v48 = vrot.slane %v1108_v7, 5  ;;  %v1225_v62 = vmul.f32 %v3985_v57, %v1217_v8  ;;  %v868_v26 = vmul.f32 %v3985_v57, %v860_v17  ;;  %v2855_v17 = vld [vmem:[%s3602_s24 + $0xc8] sm:$0x1] }
  0xa8   : > { %v869_v22 = vmul.f32 %v3985_v57, %v861_v4  ;;  %v1124_v40 = vrot.slane %v1122_v9, 5  ;;  %v1152_v12 = vmul.f32 %v3985_v57, %v1144_v11  ;;  %v1153_v19 = vmul.f32 %v3985_v57, %v1145_v25 }
  0xa9   : > { %v1232_v41 = vadd.f32 %v3975_v28, %v1224_v39  ;;  %v1111_v14 = vsel %vm3674_vm12, %v1106_v52, %v1110_v48  ;;  %v1233_v15 = vadd.f32 %v3975_v28, %v1225_v62  ;;  %v876_v16 = vadd.f32 %v3975_v28, %v868_v26  ;;  %v2854_v52 = vld [vmem:[%s3602_s24 + $0xa8] sm:$0x1] }
  0xaa   : > { %v877_v35 = vadd.f32 %v3975_v28, %v869_v22  ;;  %v1125_v10 = vsel %vm3674_vm12, %v1120_v60, %v1124_v40  ;;  %v1160_v20 = vadd.f32 %v3975_v28, %v1152_v12  ;;  %v1161_v2 = vadd.f32 %v3975_v28, %v1153_v19 }
  0xab   : > { %vm1240_vm13 = vcmp.ge.f32.partialorder %v1232_v41, 0.0  ;;  %v1248_v5 = vmul.f32 0.01, %v1232_v41  ;;  %v2897_v29 = vcombine.low %v1111_v14, %v1125_v10  ;;  %vm1241_vm14 = vcmp.ge.f32.partialorder %v1233_v15, 0.0 }
  0xac   : > { %v1249_v18 = vmul.f32 0.01, %v1233_v15  ;;  %vm884_vm15 = vcmp.ge.f32.partialorder %v876_v16, 0.0  ;;  %vm885_vm0 = vcmp.ge.f32.partialorder %v877_v35, 0.0  ;;  %v892_v32 = vmul.f32 0.01, %v876_v16 }
  0xad   : > { %v1256_v6 = vsel %vm1240_vm13, %v1232_v41, %v1248_v5  ;;  %v893_v33 = vmul.f32 0.01, %v877_v35  ;;  %2443 = vmatprep.mubr.bf16.mxu0 %v2897_v29  ;;  %vm1168_vm1 = vcmp.ge.f32.partialorder %v1160_v20, 0.0  ;;  %v1176_v27 = vmul.f32 0.01, %v1160_v20 }
  0xae   : > { %v1257_v23 = vsel %vm1241_vm14, %v1233_v15, %v1249_v18  ;;  %v900_v47 = vsel %vm884_vm15, %v876_v16, %v892_v32  ;;  %v1274_v38 = vunpack.c.l.bf16 %v2850_v30  ;;  %vm1169_vm2 = vcmp.ge.f32.partialorder %v1161_v2, 0.0 }
  0xaf   : > { %v3053_v45 = vpack.c.bf16 %v1257_v23, %v1256_v6  ;;  %v901_v43 = vsel %vm885_vm0, %v877_v35, %v893_v33  ;;  %v1177_v50 = vmul.f32 0.01, %v1161_v2  ;;  %v1184_v55 = vsel %vm1168_vm1, %v1160_v20, %v1176_v27 }
  0xb0   : > { %v3045_v1 = vpack.c.bf16 %v901_v43, %v900_v47  ;;  %v4236_v51 = vpack.c.bf16 %v1184_v55, %v1184_v55  ;;  %v1275_v54 = vunpack.c.l.bf16 %v2851_v31  ;;  %v1282_v34 = vmul.f32 %v3985_v57, %v1274_v38  ;;  %v2852_v38 = vld [vmem:[%s3602_s24 + $0x68] sm:$0x1] }
  0xb1   : > { %2508 = vmatprep.mubr.bf16.mxu1 %v3053_v45  ;;  %v3016_v61 = vpack.c.bf16 %v4034_v0, %v4034_v0  ;;  %v1405_v63 = vor.u32 %v4200_v49, %v4194_v42  ;;  %v1185_v13 = vsel %vm1169_vm2, %v1161_v2, %v1177_v50  ;;  %v1419_v59 = vor.u32 %v4206_v58, %v4204_v56 }
  0xb2   : > { %2444 = vmatmul.mubr.bf16.gmra.mrb[28].mxu0 %v3045_v1  ;;  %v1427_v37 = vshrl.u32 %v4210_v44, 16  ;;  %v3085_v46 = vpack.c.bf16 %v1185_v13, %v1184_v55  ;;  %v3018_v60 = vpack.c.bf16 %v4042_v3, %v4042_v3  ;;  %v1283_v53 = vmul.f32 %v3985_v57, %v1275_v54  ;;  %v2853_v54 = vld [vmem:[%s3602_s24 + $0x88] sm:$0x1] }
  0xb3   : > { %v1290_v7 = vadd.f32 %v3975_v28, %v1282_v34  ;;  %v1371_v0 = vshrl.u32 %v3016_v61, 16  ;;  %v1374_v8 = vshll.u32 %v3016_v61, 16  ;;  %v1430_v4 = vshll.u32 %v4210_v44, 16  ;;  %v2856_v34 = vld [vmem:[%s3602_s24 + $0xe8] sm:$0x1] }
  0xb4   : > { %v1441_v9 = vshrl.u32 %v4214_v24, 16  ;;  %v1455_v39 = vshrl.u32 %v4236_v51, 16  ;;  %3086 = vmatmul.mubr.msk.bf16.gmra.mrb[28].mxu1 %vm3659_vm10, %v3085_v46  ;;  %v1278_v11 = vunpack.c.l.bf16 %v2854_v52  ;;  %v1291_v25 = vadd.f32 %v3975_v28, %v1283_v53 }
  0xb5   : > { %vm1298_vm3 = vcmp.ge.f32.partialorder %v1290_v7, 0.0  ;;  %v1306_v3 = vmul.f32 0.01, %v1290_v7  ;;  %v1373_v48 = vrot.slane %v1371_v0, 4  ;;  %v1444_v62 = vshll.u32 %v4214_v24, 16 }
  0xb6   : > { %v4259_v26 = vpack.c.bf16 %v1185_v13, %v1185_v13  ;;  %v1376_v22 = vrot.slane %v1374_v8, 5  ;;  %v1279_v40 = vunpack.c.l.bf16 %v2855_v17  ;;  %vm1299_vm4 = vcmp.ge.f32.partialorder %v1291_v25, 0.0 }
  0xb7   : > { %v1307_v44 = vmul.f32 0.01, %v1291_v25  ;;  %v1314_v41 = vsel %vm1298_vm3, %v1290_v7, %v1306_v3  ;;  %v1385_v12 = vshrl.u32 %v3018_v60, 16  ;;  %v4261_v19 = vrot.slane %v1455_v39, 4  ;;  %v2857_v7 = vld [vmem:[%s3602_s24 + $0x108] sm:$0x1] }
  0xb8   : > { %v1458_v21 = vshll.u32 %v4236_v51, 16  ;;  %v3017_v14 = vpack.c.bf16 %v1314_v41, %v1314_v41  ;;  %v1377_v15 = vor.u32 %v1376_v22, %v1373_v48  ;;  %v1388_v10 = vshll.u32 %v3018_v60, 16 }
  0xb9   : > { %v1315_v16 = vsel %vm1299_vm4, %v1291_v25, %v1307_v44  ;;  %v1387_v35 = vrot.slane %v1385_v12, 4  ;;  %v1286_v5 = vmul.f32 %v3985_v57, %v1278_v11  ;;  %v1469_v24 = vshrl.u32 %v4259_v26, 16 }
  0xba   : > { %v3019_v20 = vpack.c.bf16 %v1315_v16, %v1315_v16  ;;  %v1378_v29 = vrot.slane %v1377_v15, 4  ;;  %v1380_v18 = vshll.u32 %v3017_v14, 16  ;;  %v1390_v30 = vrot.slane %v1388_v10, 5 }
  0xbb   : > { %v1287_v6 = vmul.f32 %v3985_v57, %v1279_v40  ;;  %v1294_v32 = vadd.f32 %v3975_v28, %v1286_v5  ;;  %v1429_v33 = vrot.slane %v1427_v37, 4  ;;  %v1432_v27 = vrot.slane %v1430_v4, 5 }
  0xbc   : > { %v1382_v23 = vrot.slane %v1380_v18, 5  ;;  %v1394_v2 = vshll.u32 %v3019_v20, 16  ;;  %v1443_v31 = vrot.slane %v1441_v9, 4  ;;  %v1391_v45 = vor.u32 %v1390_v30, %v1387_v35 }
  0xbd   : > { %v1295_v47 = vadd.f32 %v3975_v28, %v1287_v6  ;;  %vm1302_vm10 = vcmp.ge.f32.partialorder %v1294_v32, 0.0  ;;  %v1310_v43 = vmul.f32 0.01, %v1294_v32  ;;  %v1433_v55 = vor.u32 %v1432_v27, %v1429_v33 }
  0xbe   : > { %v1383_v1 = vsel %vm3674_vm12, %v1378_v29, %v1382_v23  ;;  %v1396_v50 = vrot.slane %v1394_v2, 5  ;;  %v1446_v51 = vrot.slane %v1444_v62, 5  ;;  %v1392_v61 = vrot.slane %v1391_v45, 4 }
  0xbf   : > { %vm1303_vm5 = vcmp.ge.f32.partialorder %v1295_v47, 0.0  ;;  %v1311_v13 = vmul.f32 0.01, %v1295_v47  ;;  %v1318_v52 = vsel %vm1302_vm10, %v1294_v32, %v1310_v43  ;;  %v1472_v37 = vshll.u32 %v4259_v26, 16 }
  0xc0   : > { %v3025_v46 = vpack.c.bf16 %v1318_v52, %v1318_v52  ;;  %v1447_v60 = vor.u32 %v1446_v51, %v1443_v31  ;;  %v1276_v53 = vunpack.c.l.bf16 %v2852_v38  ;;  %v1397_v0 = vsel %vm3674_vm12, %v1392_v61, %v1396_v50 }
  0xc1   : > { %v1319_v8 = vsel %vm1303_vm5, %v1295_v47, %v1311_v13  ;;  %v1277_v17 = vunpack.c.l.bf16 %v2853_v54  ;;  %v1280_v4 = vunpack.c.l.bf16 %v2856_v34  ;;  %v2906_v9 = vcombine.low %v1383_v1, %v1397_v0 }
  0xc2   : > { %v3027_v39 = vpack.c.bf16 %v1319_v8, %v1319_v8  ;;  %v1434_v11 = vrot.slane %v1433_v55, 4  ;;  %v1436_v25 = vshll.u32 %v3025_v46, 16  ;;  %v1284_v3 = vmul.f32 %v3985_v57, %v1276_v53 }
  0xc3   : > { %v1285_v48 = vmul.f32 %v3985_v57, %v1277_v17  ;;  %v1281_v62 = vunpack.c.l.bf16 %v2857_v7  ;;  %v1288_v26 = vmul.f32 %v3985_v57, %v1280_v4  ;;  %v1460_v22 = vrot.slane %v1458_v21, 5  ;;  %3298 = vmatprep.mubr.bf16.mxu0 %v2906_v9  ;;  %v2910_v17 = vld [vmem:[%s4328_s3] ss:$0 sm:$0xff] }
  0xc4   : > { %v1438_v40 = vrot.slane %v1436_v25, 5  ;;  %v1448_v44 = vrot.slane %v1447_v60, 4  ;;  %v1450_v41 = vshll.u32 %v3027_v39, 16  ;;  %v1292_v12 = vadd.f32 %v3975_v28, %v1284_v3 }
  0xc5   : > { %v1293_v14 = vadd.f32 %v3975_v28, %v1285_v48  ;;  %v1289_v15 = vmul.f32 %v3985_v57, %v1281_v62  ;;  %v1296_v16 = vadd.f32 %v3975_v28, %v1288_v26  ;;  %v1471_v35 = vrot.slane %v1469_v24, 4 }
  0xc6   : > { %v1474_v10 = vrot.slane %v1472_v37, 5  ;;  %v1439_v5 = vsel %vm3674_vm12, %v1434_v11, %v1438_v40  ;;  %v1452_v20 = vrot.slane %v1450_v41, 5  ;;  %vm1300_vm6 = vcmp.ge.f32.partialorder %v1292_v12, 0.0 }
  0xc7   : > { %vm1301_vm7 = vcmp.ge.f32.partialorder %v1293_v14, 0.0  ;;  %v1308_v21 = vmul.f32 0.01, %v1292_v12  ;;  %v1309_v29 = vmul.f32 0.01, %v1293_v14  ;;  %v1297_v30 = vadd.f32 %v3975_v28, %v1289_v15 }
  0xc8   : > { %v1453_v18 = vsel %vm3674_vm12, %v1448_v44, %v1452_v20  ;;  %vm1304_vm8 = vcmp.ge.f32.partialorder %v1296_v16, 0.0  ;;  %v1312_v6 = vmul.f32 0.01, %v1296_v16  ;;  %v1461_v57 = vor.u32 %v1460_v22, %v4261_v19 }
  0xc9   : > { %v2908_v32 = vcombine.low %v1439_v5, %v1453_v18  ;;  %v1316_v24 = vsel %vm1300_vm6, %v1292_v12, %v1308_v21  ;;  %v1317_v33 = vsel %vm1301_vm7, %v1293_v14, %v1309_v29  ;;  %vm1305_vm9 = vcmp.ge.f32.partialorder %v1297_v30, 0.0 }
  0xca   : > { %v3021_v23 = vpack.c.bf16 %v1316_v24, %v1316_v24  ;;  %v3023_v2 = vpack.c.bf16 %v1317_v33, %v1317_v33  ;;  %v1313_v27 = vmul.f32 0.01, %v1297_v30  ;;  %v1406_v31 = vrot.slane %v1405_v63, 4 }
  0xcb   : > { %v1420_v45 = vrot.slane %v1419_v59, 4  ;;  %v1475_v28 = vor.u32 %v1474_v10, %v1471_v35  ;;  %3302 = vmatprep.mubr.bf16.mxu1 %v2908_v32  ;;  %v1320_v47 = vsel %vm1304_vm8, %v1296_v16, %v1312_v6  ;;  %v1462_v55 = vrot.slane %v1461_v57, 4 }
  0xcc   : > { %v1408_v43 = vshll.u32 %v3021_v23, 16  ;;  %v1422_v19 = vshll.u32 %v3023_v2, 16  ;;  %v1321_v38 = vsel %vm1305_vm9, %v1297_v30, %v1313_v27  ;;  %v3029_v1 = vpack.c.bf16 %v1320_v47, %v1320_v47 }
  0xcd   : > { %v3031_v50 = vpack.c.bf16 %v1321_v38, %v1321_v38  ;;  %v1476_v61 = vrot.slane %v1475_v28, 4 }
  0xce   : > { %v1410_v51 = vrot.slane %v1408_v43, 5  ;;  %v1424_v54 = vrot.slane %v1422_v19, 5  ;;  %v1464_v34 = vshll.u32 %v3029_v1, 16 }
  0xcf   : > { %v1478_v13 = vshll.u32 %v3031_v50, 16 }
  0xd0   : > { %v1411_v42 = vsel %vm3674_vm12, %v1406_v31, %v1410_v51  ;;  %v1425_v49 = vsel %vm3674_vm12, %v1420_v45, %v1424_v54  ;;  %v1466_v56 = vrot.slane %v1464_v34, 5 }
  0xd1   : > { %v2907_v58 = vcombine.low %v1411_v42, %v1425_v49  ;;  %v1480_v63 = vrot.slane %v1478_v13, 5 }
  0xd2   : > { %v1467_v59 = vsel %vm3674_vm12, %v1462_v55, %v1466_v56 }
  0xd3   : > { %3299 = vmatmul.mubr.bf16.vlgmr.msra.gmra.mrb[32].mxu0 %v2907_v58  ;;  %v1481_v52 = vsel %vm3674_vm12, %v1476_v61, %v1480_v63  ;;  %vm2632_vm12 = vcmask 1040384  }
  0xd4   : > { %v2909_v37 = vcombine.low %v1467_v59, %v1481_v52 }
  0xd6   : > { %3303 = vmatmul.mubr.bf16.vlgmr.msra.gmra.mrb[32].mxu1 %v2909_v37 }
  0xfb   : > { %v3126_v46 = vpop.f32.mrb[0].mxu0 }
  0xfc   : > { %v3127_v60 = vpop.f32.mrb[1].mxu0 }
  0xfd   : > { %v3128_v53 = vadd.f32 %v3127_v60, %v3126_v46  ;;  %v3129_v7 = vpop.f32.mrb[2].mxu0 }
  0xfe   : > { %v3130_v0 = vpop.f32.mrb[3].mxu0 }
  0xff   : > { %v3131_v8 = vadd.f32 %v3130_v0, %v3129_v7  ;;  %v2292_v4 = vadd.f32 %v3128_v53, %v2910_v17 }
 0x101   : > { %v2295_v11 = vadd.f32 %v3131_v8, %v2910_v17 }
 0x103   : > { %v3166_v9 = vpop.f32.mrb[0].mxu1 }
 0x104   : > { %v3167_v39 = vpop.f32.mrb[1].mxu1 }
 0x105   : > { %v3168_v25 = vadd.f32 %v3167_v39, %v3166_v9  ;;  %v3169_v3 = vpop.f32.mrb[2].mxu1 }
 0x106   : > { %v3170_v36 = vpop.f32.mrb[3].mxu1 }
 0x107   : > { %v2357_v48 = vadd.f32 %v3168_v25, %v2292_v4  ;;  %v3171_v62 = vadd.f32 %v3170_v36, %v3169_v3 }
 0x109   : > { %v2360_v22 = vadd.f32 %v3171_v62, %v2295_v11 }
 0x10a   : > { %v3132_v26 = vpop.f32.mrb[4].mxu0 }
 0x10b   : > { %v3133_v40 = vpop.f32.mrb[5].mxu0 }
 0x10c   : > { %v3134_v44 = vadd.f32 %v3133_v40, %v3132_v26  ;;  %v3135_v41 = vpop.f32.mrb[6].mxu0 }
 0x10d   : > { %v3136_v12 = vpop.f32.mrb[7].mxu0 }
 0x10e   : > { %v3137_v14 = vadd.f32 %v3136_v12, %v3135_v41  ;;  %v2300_v15 = vadd.f32 %v3134_v44, %v2910_v17 }
 0x110   : > { %v2303_v10 = vadd.f32 %v3137_v14, %v2910_v17 }
 0x11a   : > { %v3172_v16 = vpop.f32.mrb[4].mxu1 }
 0x11b   : > { %v3173_v35 = vpop.f32.mrb[5].mxu1 }
 0x11c   : > { %v3174_v5 = vadd.f32 %v3173_v35, %v3172_v16  ;;  %v3175_v20 = vpop.f32.mrb[6].mxu1 }
 0x11d   : > { %v3176_v21 = vpop.f32.mrb[7].mxu1 }
 0x11e   : > { %v2365_v29 = vadd.f32 %v3174_v5, %v2300_v15  ;;  %v3177_v18 = vadd.f32 %v3176_v21, %v3175_v20 }
 0x11f   : > { %v3138_v30 = vpop.f32.mrb[8].mxu0 }
 0x120   : > { %v2368_v6 = vadd.f32 %v3177_v18, %v2303_v10  ;;  %v3139_v57 = vpop.f32.mrb[9].mxu0 }
 0x121   : > { %v3140_v32 = vadd.f32 %v3139_v57, %v3138_v30  ;;  %v3141_v24 = vpop.f32.mrb[10].mxu0 }
 0x122   : > { %v3142_v33 = vpop.f32.mrb[11].mxu0 }
 0x123   : > { %v3143_v23 = vadd.f32 %v3142_v33, %v3141_v24  ;;  %v2308_v2 = vadd.f32 %v3140_v32, %v2910_v17 }
 0x125   : > { %v2311_v45 = vadd.f32 %v3143_v23, %v2910_v17 }
 0x130   : > { %v3178_v27 = vpop.f32.mrb[8].mxu1 }
 0x131   : > { %v3179_v31 = vpop.f32.mrb[9].mxu1 }
 0x132   : > { %v3180_v28 = vadd.f32 %v3179_v31, %v3178_v27  ;;  %v3181_v47 = vpop.f32.mrb[10].mxu1 }
 0x133   : > { %v3182_v43 = vpop.f32.mrb[11].mxu1 }
 0x134   : > { %v2373_v19 = vadd.f32 %v3180_v28, %v2308_v2  ;;  %v3183_v38 = vadd.f32 %v3182_v43, %v3181_v47 }
 0x135   : > { %v3144_v1 = vpop.f32.mrb[12].mxu0 }
 0x136   : > { %v2376_v50 = vadd.f32 %v3183_v38, %v2311_v45  ;;  %v3145_v55 = vpop.f32.mrb[13].mxu0 }
 0x137   : > { %v3146_v51 = vadd.f32 %v3145_v55, %v3144_v1  ;;  %v3147_v54 = vpop.f32.mrb[14].mxu0 }
 0x138   : > { %v3148_v34 = vpop.f32.mrb[15].mxu0 }
 0x139   : > { %v3149_v61 = vadd.f32 %v3148_v34, %v3147_v54  ;;  %v2316_v13 = vadd.f32 %v3146_v51, %v2910_v17 }
 0x13b   : > { %v2319_v56 = vadd.f32 %v3149_v61, %v2910_v17 }
 0x146   : > { %v3184_v42 = vpop.f32.mrb[12].mxu1 }
 0x147   : > { %v3185_v49 = vpop.f32.mrb[13].mxu1 }
 0x148   : > { %v3186_v58 = vadd.f32 %v3185_v49, %v3184_v42  ;;  %v3187_v63 = vpop.f32.mrb[14].mxu1 }
 0x149   : > { %v3188_v59 = vpop.f32.mrb[15].mxu1 }
 0x14a   : > { %v2381_v52 = vadd.f32 %v3186_v58, %v2316_v13  ;;  %v3189_v37 = vadd.f32 %v3188_v59, %v3187_v63 }
 0x14c   : > { %v2384_v46 = vadd.f32 %v3189_v37, %v2319_v56 }
 0x14d   : > { %v3206_v60 = vpop.f32.mrb[16].mxu0 }
 0x14e   : > { %v3207_v53 = vpop.f32.mrb[17].mxu0 }
 0x14f   : > { %v3208_v7 = vadd.f32 %v3207_v53, %v3206_v60  ;;  %v3209_v0 = vpop.f32.mrb[18].mxu0 }
 0x150   : > { %v3210_v8 = vpop.f32.mrb[19].mxu0 }
 0x151   : > { %v2422_v4 = vadd.f32 %v3208_v7, %v2357_v48  ;;  %v3211_v9 = vadd.f32 %v3210_v8, %v3209_v0 }
 0x152   : > { %v3246_v39 = vpop.f32.mrb[16].mxu1 }
 0x153   : > { %v2425_v11 = vadd.f32 %v3211_v9, %v2360_v22  ;;  %v3247_v25 = vpop.f32.mrb[17].mxu1 }
 0x154   : > { %v3248_v3 = vadd.f32 %v3247_v25, %v3246_v39  ;;  %v3249_v36 = vpop.f32.mrb[18].mxu1 }
 0x155   : > { %v3250_v62 = vpop.f32.mrb[19].mxu1 }
 0x156   : > { %v3251_v17 = vadd.f32 %v3250_v62, %v3249_v36  ;;  %v2487_v26 = vadd.f32 %v3248_v3, %v2422_v4 }
 0x158   : > { %v2490_v40 = vadd.f32 %v3251_v17, %v2425_v11 }
 0x15d   : > { %v3212_v44 = vpop.f32.mrb[20].mxu0 }
 0x15e   : > { %v3213_v41 = vpop.f32.mrb[21].mxu0 }
 0x15f   : > { %v3214_v12 = vadd.f32 %v3213_v41, %v3212_v44  ;;  %v3215_v14 = vpop.f32.mrb[22].mxu0 }
 0x160   : > { %v3216_v15 = vpop.f32.mrb[23].mxu0 }
 0x161   : > { %v2430_v16 = vadd.f32 %v3214_v12, %v2365_v29  ;;  %v3217_v35 = vadd.f32 %v3216_v15, %v3215_v14 }
 0x163   : > { %v3252_v10 = vpop.f32.mrb[20].mxu1  ;;  %v2433_v5 = vadd.f32 %v3217_v35, %v2368_v6 }
 0x164   : > { %v3253_v48 = vpop.f32.mrb[21].mxu1 }
 0x165   : > { %v3254_v20 = vadd.f32 %v3253_v48, %v3252_v10  ;;  %v3255_v21 = vpop.f32.mrb[22].mxu1 }
 0x166   : > { %v3256_v22 = vpop.f32.mrb[23].mxu1 }
 0x167   : > { %v3257_v18 = vadd.f32 %v3256_v22, %v3255_v21  ;;  %v2495_v30 = vadd.f32 %v3254_v20, %v2430_v16 }
 0x169   : > { %v2498_v57 = vadd.f32 %v3257_v18, %v2433_v5 }
 0x171   : > { %v3218_v32 = vpop.f32.mrb[24].mxu0 }
 0x172   : > { %v3219_v24 = vpop.f32.mrb[25].mxu0 }
 0x173   : > { %v3220_v33 = vadd.f32 %v3219_v24, %v3218_v32  ;;  %v3221_v23 = vpop.f32.mrb[26].mxu0 }
 0x174   : > { %v3222_v2 = vpop.f32.mrb[27].mxu0 }
 0x175   : > { %v2438_v27 = vadd.f32 %v3220_v33, %v2373_v19  ;;  %v3223_v31 = vadd.f32 %v3222_v2, %v3221_v23 }
 0x177   : > { %v2441_v28 = vadd.f32 %v3223_v31, %v2376_v50 }
 0x178   : > { %v3258_v45 = vpop.f32.mrb[24].mxu1 }
 0x179   : > { %v3259_v29 = vpop.f32.mrb[25].mxu1 }
 0x17a   : > { %v3260_v47 = vadd.f32 %v3259_v29, %v3258_v45  ;;  %v3261_v43 = vpop.f32.mrb[26].mxu1 }
 0x17b   : > { %v3262_v6 = vpop.f32.mrb[27].mxu1 }
 0x17c   : > { %v3263_v38 = vadd.f32 %v3262_v6, %v3261_v43  ;;  %v2503_v1 = vadd.f32 %v3260_v47, %v2438_v27 }
 0x17e   : > { %v2506_v55 = vadd.f32 %v3263_v38, %v2441_v28 }
 0x185   : > { %v3224_v51 = vpop.f32.mrb[28].mxu0 }
 0x186   : > { %v3225_v54 = vpop.f32.mrb[29].mxu0 }
 0x187   : > { %v3226_v34 = vadd.f32 %v3225_v54, %v3224_v51  ;;  %v3227_v61 = vpop.f32.mrb[30].mxu0  ;;  %v3264_v13 = vpop.f32.mrb[28].mxu1 }
 0x188   : > { %v3228_v42 = vpop.f32.mrb[31].mxu0  ;;  %v3265_v19 = vpop.f32.mrb[29].mxu1 }
 0x189   : > { %v2446_v49 = vadd.f32 %v3226_v34, %v2381_v52  ;;  %v3229_v56 = vadd.f32 %v3228_v42, %v3227_v61  ;;  %v3266_v58 = vadd.f32 %v3265_v19, %v3264_v13  ;;  %v3267_v63 = vpop.f32.mrb[30].mxu1 }
 0x18a   : > { %v3268_v59 = vpop.f32.mrb[31].mxu1 }
 0x18b   : > { %v2449_v50 = vadd.f32 %v3229_v56, %v2384_v46  ;;  %v3269_v37 = vadd.f32 %v3268_v59, %v3267_v63  ;;  %v2511_v60 = vadd.f32 %v3266_v58, %v2446_v49 }
 0x18d   : > { %v2514_v53 = vadd.f32 %v3269_v37, %v2449_v50 }
 0x1a6   : > { %v3300_v7 = vpop.f32.mrb[32].mxu0 }
 0x1a7   : > { %v2560_v0 = vadd.f32 %v3300_v7, %v2495_v30  ;;  %v2551_v8 = vpop.f32.mrb[33].mxu0 }
 0x1a8   : > { %v2552_v4 = vadd.f32 %v2551_v8, %v2487_v26  ;;  %v3301_v9 = vpop.f32.mrb[34].mxu0 }
 0x1a9   : > { %v3304_v39 = vpop.f32.mrb[32].mxu1  ;;  %v2563_v11 = vadd.f32 %v3301_v9, %v2498_v57  ;;  %v2554_v25 = vpop.f32.mrb[35].mxu0  ;;  %v2613_v5 = vmul.f32 %v2560_v0, %v2560_v0 }
 0x1aa   : > { %v2576_v3 = vadd.f32 %v3304_v39, %v2511_v60  ;;  %v2567_v52 = vpop.f32.mrb[33].mxu1  ;;  %v2555_v46 = vadd.f32 %v2554_v25, %v2490_v40  ;;  %v2611_v15 = vmul.f32 %v2552_v4, %v2552_v4 }
 0x1ab   : > { %v2568_v36 = vadd.f32 %v2567_v52, %v2503_v1  ;;  %v3095_v62 = vpack.c.bf16 %v2563_v11, %v2560_v0  ;;  %v3305_v17 = vpop.f32.mrb[34].mxu1  ;;  %v2614_v40 = vmul.f32 %v2563_v11, %v2563_v11 }
 0x1ac   : > { %v2579_v44 = vadd.f32 %v3305_v17, %v2514_v53  ;;  %v3090_v41 = vpack.c.bf16 %v2555_v46, %v2552_v4  ;;  %v2598_v12 = vadd.f32 %v2555_v46, %v2552_v4  ;;  %v2570_v14 = vpop.f32.mrb[35].mxu1  ;;  %v2612_v26 = vmul.f32 %v2555_v46, %v2555_v46 }
 0x1ad   : > { %3107 = vst [vmem:[%s258_s14 + $0x8] sm:$0xff] %v3095_v62   ;;  %v2571_v16 = vadd.f32 %v2570_v14, %v2506_v55  ;;  %v2615_v30 = vmul.f32 %v2568_v36, %v2568_v36  ;;  %v2617_v2 = vmul.f32 %v2576_v3, %v2576_v3 }
 0x1ae   : > { %v3105_v35 = vpack.c.bf16 %v2579_v44, %v2576_v3  ;;  %3091 = vst [vmem:[%s258_s14] sm:$0xff] %v3090_v41   ;;  %v2599_v10 = vadd.f32 %v2598_v12, %v2560_v0  ;;  %v2619_v48 = vadd.f32 %v2612_v26, %v2611_v15  ;;  %v2618_v45 = vmul.f32 %v2579_v44, %v2579_v44 }
 0x1af   : > { %v3100_v20 = vpack.c.bf16 %v2571_v16, %v2568_v36  ;;  %v2616_v24 = vmul.f32 %v2571_v16, %v2571_v16 }
 0x1b0   : > { %3109 = vst [vmem:[%s258_s14 + $0x18] sm:$0xff] %v3105_v35   ;;  %v2600_v21 = vadd.f32 %v2599_v10, %v2563_v11  ;;  %v2620_v22 = vadd.f32 %v2619_v48, %v2613_v5 }
 0x1b1   : > { %3108 = vst [vmem:[%s258_s14 + $0x10] sm:$0xff] %v3100_v20  }
 0x1b2   : > { %v2601_v18 = vadd.f32 %v2600_v21, %v2568_v36  ;;  %v2621_v57 = vadd.f32 %v2620_v22, %v2614_v40 }
 0x1b4   : > { %v2602_v32 = vadd.f32 %v2601_v18, %v2571_v16  ;;  %v2622_v33 = vadd.f32 %v2621_v57, %v2615_v30 }
 0x1b6   : > { %v2603_v23 = vadd.f32 %v2602_v32, %v2576_v3  ;;  %v2623_v27 = vadd.f32 %v2622_v33, %v2616_v24 }
 0x1b8   : > { %v2604_v31 = vadd.f32 %v2603_v23, %v2579_v44  ;;  %v2624_v28 = vadd.f32 %v2623_v27, %v2617_v2 }
 0x1ba   : > { %v2605_v29 = vrot.slane %v2604_v31, 4  ;;  %v2625_v47 = vadd.f32 %v2624_v28, %v2618_v45 }
 0x1bc   : > { %v2606_v43 = vadd.f32 %v2605_v29, %v2604_v31  ;;  %v2626_v6 = vrot.slane %v2625_v47, 4 }
 0x1be   : > { %v2607_v38 = vrot.slane %v2606_v43, 2  ;;  %v2627_v1 = vadd.f32 %v2626_v6, %v2625_v47 }
 0x1c0   : > { %v2608_v55 = vadd.f32 %v2607_v38, %v2606_v43  ;;  %v2628_v51 = vrot.slane %v2627_v1, 2 }
 0x1c2   : > { %v2609_v54 = vrot.slane %v2608_v55, 1  ;;  %v2629_v34 = vadd.f32 %v2628_v51, %v2627_v1 }
 0x1c4   : > { %v2630_v61 = vrot.slane %v2629_v34, 1  ;;  %v2610_v13 = vadd.f32 %v2609_v54, %v2608_v55 }
 0x1c6   : > { %v2631_v42 = vadd.f32 %v2630_v61, %v2629_v34 }
 0x1c8   : > { %v2633_v49 = vsel %vm2632_vm12, %v2610_v13, %v2631_v42 }
 0x1c9   : > { %2634 = vst [vmem:[%s266_s22] sm:$0x3] %v2633_v49 }
 0x1ca PF: > { %s16_s20 = sadd.s32 1, %s3444_s20   ;;  %s4339_s18 = smov %s3440_s19 }
 0x1cb   : > { %p13_p5 = scmp.ge.s32.totalorder %s16_s20, 4   ;;  %s4340_s19 = smov %s4342_s21 }
 0x1cd   :  { %15 = sbr.rel (!%p13_p5) target bundleno = 2 (0x2), region = 81 }

// kernel: conv_block_forward.3
= control target key start
LH: loop header
LB: loop body
LE: loop exit
PB: predicated region body
PF: predicated region fallthrough
CT: control target
= control target key end

     0   :  { %s5838_s18 = smov 0   ;;  %s5840_s19 = smov 0   ;;  %s7972_s0 = inlined_call_operand.vmem [shape: bf16[2,18,1,18,128], index: 0, kind: input, shape index: {}]   ;;  %s7973_s1 = inlined_call_operand.vmem [shape: bf16[1152,128], index: 1, kind: input, shape index: {}]   ;;  %s7974_s2 = inlined_call_operand.vmem [shape: f32[2,128], index: 2, kind: input, shape index: {}]   ;;  %s7975_s3 = inlined_call_operand.vmem [shape: f32[1,128], index: 3, kind: input, shape index: {}]   ;;  %s7976_s4 = inlined_call_operand.vmem [shape: bf16[2,16,16,128], index: 4, kind: output, shape index: {0}]   ;;  %s7977_s5 = inlined_call_operand.vmem [shape: f32[2,1,2,128], index: 5, kind: output, shape index: {1}]  }
   0x1   :  { %s5842_s20 = smov 0  }
   0x2 LB: > { %s28_s2 = sadd.s32 1, %s5802_s19  ;;  %p4535_p0 = scmp.ge.s32.totalorder %s5806_s20, 1  ;;  %s5806_s20 = sphi %s5842_s20, %s16_s20   ;;  %s5802_s19 = sphi %s5840_s19, %s8003_s19   ;;  %s5798_s18 = sphi %s5838_s18, %s8002_s18  }
   0x3   : > { %p30_p1 = scmp.ge.s32.totalorder %s28_s2, 2  ;;  %p206_p2 = scmp.lt.s32.totalorder %s5806_s20, 3 }
   0x5   : > { %s8005_s2 = smov (%p30_p1, %s28_s2), 0  ;;  %p207_p3 = pnand %p4535_p0, %p206_p2 }
   0x7   : > { %210 = sbr.rel (%p207_p3) target bundleno = 589 (0x24d), region = 36 }
   0xe   : > { %v5656_v0 = vld [vmem:[%s7973_s1 + $0x40] sm:$0xff]   ;;  %p246_p4 = scmp.lt.s32.totalorder %s5798_s18, 1  ;;  %v5658_v2 = vld [vmem:[%s7973_s1 + $0x48] sm:$0xff]   ;;  %v5660_v4 = vld [vmem:[%s7973_s1 + $0x50] sm:$0xff]   ;;  %vm322_vm0 = vsmask.f32 3328 }
   0xf   : > { %v5657_v1 = vld [vmem:[%s7973_s1] sm:$0xff]   ;;  %5095 = vmatprep.subr.bf16.mxu0 %v5656_v0  ;;  %5615 = vmatprep.subr.bf16.mxu1 %v5656_v0  ;;  %v5659_v3 = vld [vmem:[%s7973_s1 + $0x8] sm:$0xff]   ;;  %v5661_v5 = vld [vmem:[%s7973_s1 + $0x10] sm:$0xff]   ;;  %vm323_vm1 = vsmask.f32 7440  ;;  %vm773_vm3 = vcmask 1042432  }
  0x10   : > { %5096 = vmatpush3.bf16.msra.mxu0 %v5657_v1  ;;  %5623 = vmatpush3.bf16.msra.mxu1 %v5657_v1  ;;  %s8007_s18 = smov (!%p246_p4, %s5798_s18), 1  ;;  %v5662_v6 = vld [vmem:[%s7973_s1 + $0x58] sm:$0xff]   ;;  %v5664_v8 = vld [vmem:[%s7973_s1 + $0x60] sm:$0xff]   ;;  %v5666_v10 = vld [vmem:[%s7973_s1 + $0x68] sm:$0xff]   ;;  %vm774_vm4 = vcmask 1046532   ;;  %vm4390_vm6 = vcmask 1040384  }
  0x11   : > { %5097 = vmatprep.subr.bf16.mxu0 %v5658_v2  ;;  %5616 = vmatprep.subr.bf16.mxu1 %v5658_v2  ;;  %s5631_s10 = smul.u32 216, %s8007_s18  ;;  %v5663_v7 = vld [vmem:[%s7973_s1 + $0x18] sm:$0xff]   ;;  %v5665_v9 = vld [vmem:[%s7973_s1 + $0x20] sm:$0xff]   ;;  %v5667_v16 = vld [vmem:[%s7973_s1 + $0x28] sm:$0xff]   ;;  %s4967_s24 = sshll.u32 %s8007_s18, 7 }
  0x12   : > { %v5668_v21 = vld [vmem:[%s7973_s1 + $0x70] sm:$0xff]   ;;  %vm5932_vm2 = vmor %vm322_vm0, %vm323_vm1  ;;  %v5670_v43 = vld [vmem:[%s7973_s1 + $0x78] sm:$0xff]   ;;  %s7894_s27 = scalar_lea.vmem %s7976_s4, %s4967_s24  ;;  %s4539_s28 = sshll.u32 %s8007_s18, 1 }
  0x13   : > { %s5889_s17 = scalar_lea.vmem %s7972_s0, %s5631_s10  ;;  %v5669_v39 = vld [vmem:[%s7973_s1 + $0x30] sm:$0xff]   ;;  %v5671_v46 = vld [vmem:[%s7973_s1 + $0x38] sm:$0xff]   ;;  %v5674_v56 = vld [vmem:[%s7973_s1 + $0xc0] sm:$0xff]   ;;  %s268_s6 = scalar_lea.vmem %s7977_s5, %s4539_s28 }
  0x14   : > { %5098 = vmatpush3.bf16.msra.mxu0 %v5659_v3  ;;  %5624 = vmatpush3.bf16.msra.mxu1 %v5659_v3  ;;  %v5898_v11 = vld [vmem:[%s5889_s17] sm:$0xf]  ;;  %v5901_v12 = vld [vmem:[%s5889_s17 + $0x4] sm:$0xf]  ;;  %v5904_v13 = vld [vmem:[%s5889_s17 + $0x8] sm:$0x1] }
  0x15   : > { %5099 = vmatprep.subr.bf16.mxu0 %v5660_v4  ;;  %5617 = vmatprep.subr.bf16.mxu1 %v5660_v4  ;;  %v326_v14 = vshrl.u32 %v5898_v11, 16  ;;  %v329_v15 = vshll.u32 %v5898_v11, 16  ;;  %v335_v17 = vshll.u32 %v5901_v12, 16  ;;  %v339_v18 = vshrl.u32 %v5901_v12, 16  ;;  %v5915_v20 = vld [vmem:[%s5889_s17 + $0x90] sm:$0xf]  ;;  %vm6130_vm5 = vmor %vm773_vm3, %vm774_vm4 }
  0x16   : > { %v345_v19 = vshll.u32 %v5904_v13, 16  ;;  %v5921_v24 = vld [vmem:[%s5889_s17 + $0x94] sm:$0xf]  ;;  %v614_v25 = vshrl.u32 %v5915_v20, 16  ;;  %v778_v29 = vrot.slane %v5901_v12, 5  ;;  %v617_v33 = vshll.u32 %v5915_v20, 16 }
  0x17   : > { %v328_v22 = vrot.slane %v326_v14, 4  ;;  %v331_v23 = vrot.slane %v329_v15, 5  ;;  %v337_v26 = vrot.slane %v335_v17, 5  ;;  %v341_v27 = vrot.slane %v339_v18, 4  ;;  %v5926_v30 = vld [vmem:[%s5889_s17 + $0x98] sm:$0x1] }
  0x18   : > { %5100 = vmatpush3.bf16.msra.mxu0 %v5661_v5  ;;  %5625 = vmatpush3.bf16.msra.mxu1 %v5661_v5  ;;  %v347_v28 = vrot.slane %v345_v19, 5  ;;  %v616_v32 = vrot.slane %v614_v25, 4  ;;  %v623_v34 = vshll.u32 %v5921_v24, 16  ;;  %v627_v37 = vshrl.u32 %v5921_v24, 16  ;;  %v5675_v59 = vld [vmem:[%s7973_s1 + $0x140] sm:$0xff]  }
  0x19   : > { %5101 = vmatprep.subr.bf16.mxu0 %v5662_v6  ;;  %5618 = vmatprep.subr.bf16.mxu1 %v5662_v6  ;;  %v332_v31 = vor.u32 %v331_v23, %v328_v22  ;;  %v342_v36 = vor.u32 %v341_v27, %v337_v26  ;;  %v633_v38 = vshll.u32 %v5926_v30, 16  ;;  %v619_v41 = vrot.slane %v617_v33, 5  ;;  %v5965_v60 = vld [vmem:[%s5889_s17 + $0xc] sm:$0xf]  ;;  %v5676_v63 = vld [vmem:[%s7973_s1 + $0x80] sm:$0xff]  }
  0x1a   : > { %v625_v42 = vrot.slane %v623_v34, 5  ;;  %v629_v45 = vrot.slane %v627_v37, 4  ;;  %v781_v48 = vrot.slane %v5904_v13, 5  ;;  %v5954_v51 = vrot.slane %v778_v29, 4  ;;  %v5677_v0 = vld [vmem:[%s7973_s1 + $0x100] sm:$0xff]   ;;  %v5678_v6 = vld [vmem:[%s7973_s1 + $0xc8] sm:$0xff]  }
  0x1b   : > { %v333_v40 = vrot.slane %v332_v31, 4  ;;  %v343_v44 = vrot.slane %v342_v36, 4  ;;  %v620_v49 = vor.u32 %v619_v41, %v616_v32  ;;  %v635_v53 = vrot.slane %v633_v38, 5  ;;  %v5978_v1 = vld [vmem:[%s5889_s17 + $0x10] sm:$0xf]  ;;  %v5679_v22 = vld [vmem:[%s7973_s1 + $0x88] sm:$0xff]  }
  0x1c   : > { %5102 = vmatpush3.bf16.msra.mxu0 %v5663_v7  ;;  %5626 = vmatpush3.bf16.msra.mxu1 %v5663_v7  ;;  %v630_v52 = vor.u32 %v629_v45, %v625_v42  ;;  %v4716_v58 = vcombine.low %v5898_v11, %v5901_v12  ;;  %v4728_v62 = vcombine.low %v5915_v20, %v5921_v24  ;;  %v5981_v2 = vld [vmem:[%s5889_s17 + $0x14] sm:$0x1]  ;;  %v350_v3 = vshrl.u32 %v5965_v60, 16  ;;  %v319_v17 = vld [vmem:[%s5889_s17 + $0xa4] sm:$0x1] }
  0x1d   : > { %5103 = vmatprep.subr.bf16.mxu0 %v5664_v8  ;;  %5619 = vmatprep.subr.bf16.mxu1 %v5664_v8  ;;  %v338_v47 = vsel %vm5932_vm2, %v333_v40, %v337_v26  ;;  %v348_v50 = vsel %vm5932_vm2, %v343_v44, %v347_v28  ;;  %v621_v55 = vrot.slane %v620_v49, 4  ;;  %v353_v4 = vshll.u32 %v5965_v60, 16  ;;  %v5685_v40 = vld [vmem:[%s7973_s1 + $0x148] sm:$0xff]  }
  0x1e   : > { %v4732_v54 = vcombine.low %v338_v47, %v348_v50  ;;  %v631_v57 = vrot.slane %v630_v52, 4  ;;  %v359_v7 = vshll.u32 %v5978_v1, 16  ;;  %v363_v8 = vshrl.u32 %v5978_v1, 16  ;;  %v5683_v47 = vld [vmem:[%s7973_s1 + $0x90] sm:$0xff]  }
  0x1f   : > { %v626_v61 = vsel %vm5932_vm2, %v621_v55, %v625_v42  ;;  %v352_v14 = vrot.slane %v350_v3, 4  ;;  %v355_v15 = vrot.slane %v353_v4, 5  ;;  %v657_v31 = vshll.u32 %v319_v17, 16  ;;  %v6053_v3 = vld [vmem:[%s5889_s17 + $0xac] sm:$0xf] }
  0x20   : > { %5104 = vmatpush3.bf16.msra.mxu0 %v5665_v9  ;;  %5627 = vmatpush3.bf16.msra.mxu1 %v5665_v9  ;;  %v636_v5 = vsel %vm5932_vm2, %v631_v57, %v635_v53  ;;  %v369_v9 = vshll.u32 %v5981_v2, 16  ;;  %v361_v18 = vrot.slane %v359_v7, 5  ;;  %v365_v19 = vrot.slane %v363_v8, 4  ;;  %v5684_v53 = vld [vmem:[%s7973_s1 + $0xd8] sm:$0xff]   ;;  %v320_v8 = vld [vmem:[%s5889_s17 + $0xb0] sm:$0x1] }
  0x21   : > { %5105 = vmatprep.subr.bf16.mxu0 %v5666_v10  ;;  %5620 = vmatprep.subr.bf16.mxu1 %v5666_v10  ;;  %v5994_v10 = vld [vmem:[%s5889_s17 + $0x9c] sm:$0xf]  ;;  %v4744_v11 = vcombine.low %v626_v61, %v636_v5  ;;  %v356_v23 = vor.u32 %v355_v15, %v352_v14  ;;  %v659_v38 = vrot.slane %v657_v31, 5 }
  0x22   : > { %3351 = vmatprep.mubr.bf16.mxu0 %v4732_v54  ;;  %v371_v20 = vrot.slane %v369_v9, 5  ;;  %v641_v24 = vshll.u32 %v5994_v10, 16  ;;  %v366_v27 = vor.u32 %v365_v19, %v361_v18  ;;  %v5687_v54 = vld [vmem:[%s7973_s1 + $0x108] sm:$0xff]   ;;  %v6035_v57 = vld [vmem:[%s5889_s17 + $0x1c] sm:$0xf]  ;;  %v5690_v9 = vld [vmem:[%s7973_s1 + $0xe0] sm:$0xff]  }
  0x23   : > { %3447 = vmatprep.mubr.bf16.mxu1 %v4744_v11  ;;  %v357_v32 = vrot.slane %v356_v23, 4  ;;  %v5686_v61 = vld [vmem:[%s7973_s1 + $0x98] sm:$0xff]   ;;  %v383_v5 = vshll.u32 %v6035_v57, 16  ;;  %v671_v19 = vshll.u32 %v6053_v3, 16  ;;  %v675_v23 = vshrl.u32 %v6053_v3, 16 }
  0x24   : > { %5106 = vmatpush3.bf16.msra.mxu0 %v5667_v16  ;;  %5628 = vmatpush3.bf16.msra.mxu1 %v5667_v16  ;;  %v5997_v16 = vld [vmem:[%s5889_s17 + $0xa0] sm:$0xf]  ;;  %v643_v33 = vrot.slane %v641_v24, 5  ;;  %v367_v37 = vrot.slane %v366_v27, 4  ;;  %v681_v27 = vshll.u32 %v320_v8, 16 }
  0x25   : > { %5107 = vmatprep.subr.bf16.mxu0 %v5668_v21  ;;  %5621 = vmatprep.subr.bf16.mxu1 %v5668_v21  ;;  %v638_v21 = vshrl.u32 %v5994_v10, 16  ;;  %v647_v25 = vshll.u32 %v5997_v16, 16  ;;  %v651_v26 = vshrl.u32 %v5997_v16, 16  ;;  %v362_v41 = vsel %vm5932_vm2, %v357_v32, %v361_v18  ;;  %v5691_v24 = vld [vmem:[%s7973_s1 + $0xa0] sm:$0xff]  }
  0x26   : > { %v372_v45 = vsel %vm5932_vm2, %v367_v37, %v371_v20  ;;  %v4729_v55 = vcombine.low %v5994_v10, %v5997_v16  ;;  %v385_v16 = vrot.slane %v383_v5, 5  ;;  %v677_v32 = vrot.slane %v675_v23, 4  ;;  %v5692_v37 = vld [vmem:[%s7973_s1 + $0xe8] sm:$0xff]  }
  0x27   : > { %v640_v28 = vrot.slane %v638_v21, 4  ;;  %v649_v34 = vrot.slane %v647_v25, 5  ;;  %v653_v36 = vrot.slane %v651_v26, 4  ;;  %v4733_v49 = vcombine.low %v362_v41, %v372_v45  ;;  %v6083_v45 = vld [vmem:[%s5889_s17 + $0x24] sm:$0xf] }
  0x28   : > { %5108 = vmatpush3.bf16.msra.mxu0 %v5669_v39  ;;  %5629 = vmatpush3.bf16.msra.mxu1 %v5669_v39  ;;  %v5682_v39 = vld [vmem:[%s7973_s1 + $0xd0] sm:$0xff]   ;;  %v673_v26 = vrot.slane %v671_v19, 5 }
  0x29   : > { %5109 = vmatprep.subr.bf16.mxu0 %v5670_v43  ;;  %5622 = vmatprep.subr.bf16.mxu1 %v5670_v43  ;;  %v644_v42 = vor.u32 %v643_v33, %v640_v28  ;;  %v654_v43 = vor.u32 %v653_v36, %v649_v34 }
  0x2a   : > { %v678_v41 = vor.u32 %v677_v32, %v673_v26 }
  0x2b   : > { %v645_v50 = vrot.slane %v644_v42, 4  ;;  %v655_v52 = vrot.slane %v654_v43, 4  ;;  %v5693_v43 = vld [vmem:[%s7973_s1 + $0xa8] sm:$0xff]  }
  0x2c   : > { %5110 = vmatpush3.bf16.msra.mxu0 %v5671_v46  ;;  %5630 = vmatpush3.bf16.msra.mxu1 %v5671_v46  ;;  %v4717_v46 = vcombine.low %v5965_v60, %v5978_v1 }
  0x2d   : > { %5207 = vmatprep.subr.bf16.mxu1 %v5674_v56  ;;  %5319 = vmatprep.subr.bf16.mxu0 %v5675_v59  ;;  %v6032_v56 = vld [vmem:[%s5889_s17 + $0x18] sm:$0xf]  ;;  %v650_v59 = vsel %vm5932_vm2, %v645_v50, %v649_v34  ;;  %v660_v60 = vsel %vm5932_vm2, %v655_v52, %v659_v38  ;;  %v683_v34 = vrot.slane %v681_v27, 5  ;;  %v785_v38 = vrot.slane %v5978_v1, 5  ;;  %v6094_v50 = vld [vmem:[%s5889_s17 + $0x2c] sm:$0x1] }
  0x2e   : > { %v4745_v4 = vcombine.low %v650_v59, %v660_v60  ;;  %v4718_v36 = vcombine.low %v6032_v56, %v6035_v57  ;;  %v398_v52 = vshrl.u32 %v6083_v45, 16  ;;  %v679_v60 = vrot.slane %v678_v41, 4 }
  0x2f   : > { %3352 = vmatmul.mubr.bf16.vlgmr.msra.gmra.mrb[0].mxu0 %v4716_v58  ;;  %3448 = vmatmul.mubr.bf16.vlgmr.msra.gmra.mrb[0].mxu1 %v4728_v62  ;;  %v6038_v58 = vld [vmem:[%s5889_s17 + $0x20] sm:$0x1]  ;;  %v374_v62 = vshrl.u32 %v6032_v56, 16  ;;  %v417_v5 = vshll.u32 %v6094_v50, 16 }
  0x30   : > { %5208 = vmatpush3.bf16.msra.mxu1 %v5676_v63  ;;  %5320 = vmatpush3.bf16.msra.mxu0 %v5677_v0  ;;  %v377_v63 = vshll.u32 %v6032_v56, 16  ;;  %v6050_v0 = vld [vmem:[%s5889_s17 + $0xa8] sm:$0xf]  ;;  %v393_v7 = vshll.u32 %v6038_v58, 16 }
  0x31   : > { %5209 = vmatprep.subr.bf16.mxu1 %v5678_v6  ;;  %5321 = vmatprep.subr.bf16.mxu0 %v5685_v40  ;;  %v387_v6 = vshrl.u32 %v6035_v57, 16  ;;  %v376_v10 = vrot.slane %v374_v62, 4  ;;  %v662_v14 = vshrl.u32 %v6050_v0, 16  ;;  %v665_v15 = vshll.u32 %v6050_v0, 16  ;;  %v6106_v62 = vld [vmem:[%s5889_s17 + $0xb4] sm:$0xf] }
  0x32   : > { %3359 = vmatprep.mubr.bf16.mxu0 %v4733_v49  ;;  %v379_v11 = vrot.slane %v377_v63, 5  ;;  %3455 = vmatprep.mubr.bf16.mxu1 %v4745_v4  ;;  %v395_v18 = vrot.slane %v393_v7, 5  ;;  %v4730_v42 = vcombine.low %v6050_v0, %v6053_v3  ;;  %v6109_v63 = vld [vmem:[%s5889_s17 + $0xb8] sm:$0xf]  ;;  %v400_v0 = vrot.slane %v398_v52, 4 }
  0x33   : > { %v389_v17 = vrot.slane %v387_v6, 4  ;;  %v664_v21 = vrot.slane %v662_v14, 4  ;;  %v321_v6 = vld [vmem:[%s5889_s17 + $0xbc] sm:$0x1]  ;;  %v684_v7 = vsel %vm5932_vm2, %v679_v60, %v683_v34  ;;  %v6157_v52 = vld [vmem:[%s5889_s17 + $0x34] sm:$0xf] }
  0x34   : > { %5210 = vmatpush3.bf16.msra.mxu1 %v5679_v22  ;;  %5322 = vmatpush3.bf16.msra.mxu0 %v5687_v54  ;;  %v380_v20 = vor.u32 %v379_v11, %v376_v10  ;;  %v667_v22 = vrot.slane %v665_v15, 5  ;;  %v689_v10 = vshll.u32 %v6106_v62, 16  ;;  %v5699_v11 = vld [vmem:[%s7973_s1 + $0x110] sm:$0xff]  }
  0x35   : > { %5211 = vmatprep.subr.bf16.mxu1 %v5682_v39  ;;  %v390_v25 = vor.u32 %v389_v17, %v385_v16  ;;  %v695_v17 = vshll.u32 %v6109_v63, 16 }
  0x36   : > { %v381_v28 = vrot.slane %v380_v20, 4  ;;  %v668_v31 = vor.u32 %v667_v22, %v664_v21  ;;  %v691_v20 = vrot.slane %v689_v10, 5  ;;  %v699_v21 = vshrl.u32 %v6109_v63, 16  ;;  %v5698_v22 = vld [vmem:[%s7973_s1 + $0xb0] sm:$0xff]  }
  0x37   : > { %3360 = vmatmul.mubr.bf16.gmra.mrb[4].mxu0 %v4717_v46  ;;  %3456 = vmatmul.mubr.bf16.gmra.mrb[4].mxu1 %v4729_v55  ;;  %v391_v33 = vrot.slane %v390_v25, 4  ;;  %v6086_v46 = vld [vmem:[%s5889_s17 + $0x28] sm:$0xf]  ;;  %v5696_v55 = vld [vmem:[%s7973_s1 + $0xf0] sm:$0xff]   ;;  %v705_v25 = vshll.u32 %v321_v6, 16  ;;  %v5712_v6 = vld [vmem:[%s7973_s1 + $0x160] sm:$0xff]  }
  0x38   : > { %5212 = vmatpush3.bf16.msra.mxu1 %v5683_v47  ;;  %v386_v39 = vsel %vm5932_vm2, %v381_v28, %v385_v16  ;;  %v669_v40 = vrot.slane %v668_v31, 4  ;;  %v5697_v47 = vld [vmem:[%s7973_s1 + $0x150] sm:$0xff]   ;;  %v407_v54 = vshll.u32 %v6086_v46, 16  ;;  %v419_v16 = vrot.slane %v417_v5, 5 }
  0x39   : > { %5213 = vmatprep.subr.bf16.mxu1 %v5684_v53  ;;  %v396_v49 = vsel %vm5932_vm2, %v391_v33, %v395_v18  ;;  %v401_v53 = vshll.u32 %v6083_v45, 16  ;;  %5323 = vmatprep.subr.bf16.mxu0 %v5697_v47  ;;  %v701_v32 = vrot.slane %v699_v21, 4  ;;  %v707_v34 = vrot.slane %v705_v25, 5 }
  0x3a   : > { %v4734_v56 = vcombine.low %v386_v39, %v396_v49  ;;  %v674_v59 = vsel %vm5932_vm2, %v669_v40, %v673_v26  ;;  %v409_v4 = vrot.slane %v407_v54, 5  ;;  %5324 = vmatpush3.bf16.msra.mxu0 %v5699_v11  ;;  %v5700_v26 = vld [vmem:[%s7973_s1 + $0xf8] sm:$0xff]   ;;  %v4719_v41 = vcombine.low %v6083_v45, %v6086_v46  ;;  %v6154_v49 = vld [vmem:[%s5889_s17 + $0x30] sm:$0xf]  ;;  %v709_v11 = vld [vmem:[%s5889_s17] sm:$0xe] }
  0x3b   : > { %v403_v3 = vrot.slane %v401_v53, 5  ;;  %v4746_v14 = vcombine.low %v674_v59, %v684_v7  ;;  %v6162_v54 = vld [vmem:[%s5889_s17 + $0x38] sm:$0x1]  ;;  %v422_v13 = vshrl.u32 %v6154_v49, 16  ;;  %v435_v59 = vshrl.u32 %v6157_v52, 16 }
  0x3c   : > { %5214 = vmatpush3.bf16.msra.mxu1 %v5686_v61  ;;  %v411_v61 = vshrl.u32 %v6086_v46, 16  ;;  %3367 = vmatprep.mubr.bf16.mxu0 %v4734_v56  ;;  %v431_v56 = vshll.u32 %v6157_v52, 16  ;;  %v441_v60 = vshll.u32 %v6162_v54, 16 }
  0x3d   : > { %5215 = vmatprep.subr.bf16.mxu1 %v5690_v9  ;;  %v686_v9 = vshrl.u32 %v6106_v62, 16  ;;  %v404_v15 = vor.u32 %v403_v3, %v400_v0  ;;  %3463 = vmatprep.mubr.bf16.mxu1 %v4746_v14  ;;  %v5707_v0 = vld [vmem:[%s7973_s1 + $0x118] sm:$0xff]  }
  0x3e   : > { %v413_v8 = vrot.slane %v411_v61, 4  ;;  %v4556_v61 = vld [vmem:[%s5889_s17 + $0xc] sm:$0xf]  ;;  %v443_v10 = vrot.slane %v441_v60, 5 }
  0x3f   : > { %3368 = vmatmul.mubr.bf16.gmra.mrb[8].mxu0 %v4718_v36  ;;  %v688_v19 = vrot.slane %v686_v9, 4  ;;  %v405_v23 = vrot.slane %v404_v15, 4  ;;  %3464 = vmatmul.mubr.bf16.gmra.mrb[8].mxu1 %v4730_v42  ;;  %v5701_v36 = vld [vmem:[%s7973_s1 + $0xb8] sm:$0xff]   ;;  %v5704_v42 = vld [vmem:[%s7973_s1 + $0x1c0] sm:$0xff]   ;;  %v437_v9 = vrot.slane %v435_v59, 4 }
  0x40   : > { %5216 = vmatpush3.bf16.msra.mxu1 %v5691_v24  ;;  %v414_v18 = vor.u32 %v413_v8, %v409_v4  ;;  %v697_v24 = vrot.slane %v695_v17, 5  ;;  %v433_v8 = vrot.slane %v431_v56, 5 }
  0x41   : > { %5217 = vmatprep.subr.bf16.mxu1 %v5692_v37  ;;  %v692_v31 = vor.u32 %v691_v20, %v688_v19  ;;  %v410_v33 = vsel %vm5932_vm2, %v405_v23, %v409_v4  ;;  %v424_v4 = vrot.slane %v422_v13, 4 }
  0x42   : > { %v415_v28 = vrot.slane %v414_v18, 4  ;;  %v702_v40 = vor.u32 %v701_v32, %v697_v24  ;;  %v5714_v18 = vld [vmem:[%s7973_s1 + $0x120] sm:$0xff]   ;;  %v438_v19 = vor.u32 %v437_v9, %v433_v8 }
  0x43   : > { %v693_v39 = vrot.slane %v692_v31, 4 }
  0x44   : > { %5218 = vmatpush3.bf16.msra.mxu1 %v5693_v43  ;;  %v420_v37 = vsel %vm5932_vm2, %v415_v28, %v419_v16  ;;  %v6151_v43 = vsel %vm6130_vm5, %v5954_v51, %v781_v48  ;;  %v703_v53 = vrot.slane %v702_v40, 4  ;;  %v5706_v48 = vld [vmem:[%s7973_s1 + $0x158] sm:$0xff]   ;;  %v4731_v51 = vcombine.low %v6106_v62, %v6109_v63  ;;  %v6181_v62 = vld [vmem:[%s5889_s17 + $0x10] sm:$0xf] }
  0x45   : > { %5219 = vmatprep.subr.bf16.mxu1 %v5696_v55  ;;  %v4735_v47 = vcombine.low %v410_v33, %v420_v37  ;;  %v698_v45 = vsel %vm5932_vm2, %v693_v39, %v697_v24  ;;  %v425_v55 = vshll.u32 %v6154_v49, 16  ;;  %v941_v63 = vshrl.u32 %v4556_v61, 16  ;;  %5325 = vmatprep.subr.bf16.mxu0 %v5706_v48  ;;  %v6209_v39 = vld [vmem:[%s5889_s17 + $0x3c] sm:$0xf]  ;;  %v5713_v48 = vld [vmem:[%s7973_s1 + $0x1c8] sm:$0xff]  }
  0x46   : > { %v708_v3 = vsel %vm5932_vm2, %v703_v53, %v707_v34  ;;  %v944_v16 = vshll.u32 %v4556_v61, 16  ;;  %v950_v17 = vshll.u32 %v6181_v62, 16  ;;  %5326 = vmatpush3.bf16.msra.mxu0 %v5707_v0  ;;  %v954_v20 = vshrl.u32 %v6181_v62, 16 }
  0x47   : > { %3375 = vmatprep.mubr.bf16.mxu0 %v4735_v47  ;;  %v427_v5 = vrot.slane %v425_v55, 5  ;;  %v4747_v7 = vcombine.low %v698_v45, %v708_v3  ;;  %v943_v15 = vrot.slane %v941_v63, 4  ;;  %v4764_v21 = vcombine.low %v4556_v61, %v6181_v62  ;;  %5327 = vmatprep.subr.bf16.mxu0 %v5712_v6  ;;  %v4558_v55 = vld [vmem:[%s5889_s17 + $0x18] sm:$0xf]  ;;  %v6237_v61 = vld [vmem:[%s5889_s17 + $0x1c] sm:$0xf] }
  0x48   : > { %5220 = vmatpush3.bf16.msra.mxu1 %v5698_v22  ;;  %3376 = vmatmul.mubr.bf16.gmra.mrb[12].mxu0 %v4719_v41  ;;  %v4540_v22 = vrot.slane %v709_v11, 9  ;;  %v946_v24 = vrot.slane %v944_v16, 5  ;;  %v6193_v25 = vrot.slane %v950_v17, 5  ;;  %v439_v28 = vrot.slane %v438_v19, 4  ;;  %v6218_v41 = vld [vmem:[%s5889_s17 + $0x40] sm:$0xf] }
  0x49   : > { %5221 = vmatprep.subr.bf16.mxu1 %v5700_v26  ;;  %v428_v14 = vor.u32 %v427_v5, %v424_v4  ;;  %3471 = vmatprep.mubr.bf16.mxu1 %v4747_v7  ;;  %v6197_v26 = vrot.slane %v785_v38, 4  ;;  %v956_v31 = vrot.slane %v954_v20, 4  ;;  %v446_v47 = vshrl.u32 %v6209_v39, 16  ;;  %v710_v63 = vld [vmem:[%s5889_s17 + $0xc] sm:$0xe] }
  0x4a   : > { %3472 = vmatmul.mubr.bf16.gmra.mrb[12].mxu1 %v4731_v51  ;;  %v779_v32 = vsel %vm6130_vm5, %v4540_v22, %v778_v29  ;;  %v947_v34 = vor.u32 %v946_v24, %v943_v15  ;;  %5328 = vmatpush3.bf16.msra.mxu0 %v5714_v18  ;;  %v444_v40 = vsel %vm5932_vm2, %v439_v28, %v443_v10  ;;  %v5705_v29 = vld [vmem:[%s7973_s1 + $0x180] sm:$0xff]   ;;  %v455_v53 = vshll.u32 %v6218_v41, 16  ;;  %v6243_v10 = vld [vmem:[%s5889_s17 + $0x48] sm:$0xf]  ;;  %v6246_v11 = vld [vmem:[%s5889_s17 + $0x4c] sm:$0xf] }
  0x4b   : > { %v429_v23 = vrot.slane %v428_v14, 4  ;;  %3512 = vmatprep.mubr.bf16.mxu1 %v4764_v21  ;;  %v4748_v37 = vcombine.low %v779_v32, %v6151_v43  ;;  %v957_v12 = vor.u32 %v956_v31, %v6193_v25  ;;  %v449_v43 = vshll.u32 %v6209_v39, 16  ;;  %v6255_v18 = vld [vmem:[%s5889_s17 + $0x50] sm:$0x1]  ;;  %v5715_v19 = vld [vmem:[%s7973_s1 + $0x188] sm:$0xff]  }
  0x4c   : > { %5222 = vmatpush3.bf16.msra.mxu1 %v5701_v36  ;;  %v4720_v36 = vcombine.low %v6154_v49, %v6157_v52  ;;  %v6225_v45 = vrot.slane %v947_v34, 4  ;;  %v459_v13 = vshrl.u32 %v6218_v41, 16  ;;  %v448_v56 = vrot.slane %v446_v47, 4  ;;  %v6263_v24 = vld [vmem:[%s5889_s17 + $0x24] sm:$0xf] }
  0x4d   : > { %5431 = vmatprep.subr.bf16.mxu1 %v5704_v42  ;;  %v434_v33 = vsel %vm5932_vm2, %v429_v23, %v433_v8  ;;  %v6221_v42 = vld [vmem:[%s5889_s17 + $0x44] sm:$0x1]  ;;  %v6233_v51 = vrot.slane %v957_v12, 4  ;;  %v451_v59 = vrot.slane %v449_v43, 5  ;;  %v457_v0 = vrot.slane %v455_v53, 5  ;;  %v5718_v12 = vld [vmem:[%s7973_s1 + $0x168] sm:$0xff]  }
  0x4e   : > { %v4736_v49 = vcombine.low %v434_v33, %v444_v40  ;;  %v465_v60 = vshll.u32 %v6221_v42, 16  ;;  %v461_v3 = vrot.slane %v459_v13, 4  ;;  %v965_v4 = vshrl.u32 %v4558_v55, 16  ;;  %v6269_v34 = vld [vmem:[%s5889_s17 + $0x28] sm:$0xf]  ;;  %5329 = vmatprep.subr.bf16.mxu0 %v5718_v12 }
  0x4f   : > { %v968_v5 = vshll.u32 %v4558_v55, 16  ;;  %v452_v6 = vor.u32 %v451_v59, %v448_v56  ;;  %v4765_v9 = vcombine.low %v4558_v55, %v6237_v61  ;;  %v4721_v17 = vcombine.low %v6209_v39, %v6218_v41  ;;  %v711_v40 = vld [vmem:[%s5889_s17 + $0x18] sm:$0xe]  ;;  %v4588_v56 = vld [vmem:[%s5889_s17 + $0x14] sm:$0x1] }
  0x50   : > { %3383 = vmatprep.mubr.bf16.mxu0 %v4736_v49  ;;  %v467_v7 = vrot.slane %v465_v60, 5  ;;  %v462_v14 = vor.u32 %v461_v3, %v457_v0  ;;  %v6248_v15 = vrot.slane %v965_v4, 4  ;;  %v4541_v21 = vrot.slane %v710_v63, 9  ;;  %v6298_v4 = vld [vmem:[%s5889_s17 + $0x54] sm:$0xf] }
  0x51   : > { %3384 = vmatmul.mubr.bf16.gmra.mrb[16].mxu0 %v4720_v36  ;;  %v6250_v16 = vrot.slane %v968_v5, 5  ;;  %v453_v20 = vrot.slane %v452_v6, 4  ;;  %v788_v22 = vrot.slane %v5981_v2, 5  ;;  %v470_v23 = vshrl.u32 %v6243_v10, 16  ;;  %v4604_v8 = vld [vmem:[%s5889_s17 + $0xc] sm:$0xe] }
  0x52   : > { %3513 = vmatmul.mubr.bf16.vlgmr.msra.gmra.mrb[16].mxu1 %v4748_v37  ;;  %v463_v28 = vrot.slane %v462_v14, 4  ;;  %v473_v31 = vshll.u32 %v6243_v10, 16  ;;  %v479_v32 = vshll.u32 %v6246_v11, 16  ;;  %v483_v33 = vshrl.u32 %v6246_v11, 16 }
  0x53   : > { %5432 = vmatpush3.bf16.msra.mxu1 %v5705_v29  ;;  %3520 = vmatprep.mubr.bf16.mxu1 %v4765_v9  ;;  %v458_v36 = vsel %vm5932_vm2, %v453_v20, %v457_v0  ;;  %v786_v2 = vsel %vm6130_vm5, %v4541_v21, %v785_v38  ;;  %v789_v37 = vsel %vm6130_vm5, %v6197_v26, %v788_v22  ;;  %v472_v39 = vrot.slane %v470_v23, 4  ;;  %v5719_v26 = vld [vmem:[%s7973_s1 + $0x128] sm:$0xff]   ;;  %v6304_v9 = vld [vmem:[%s5889_s17 + $0x58] sm:$0xf]  ;;  %v6308_v20 = vld [vmem:[%s5889_s17 + $0x5c] sm:$0x1] }
  0x54   : > { %5433 = vmatprep.subr.bf16.mxu1 %v5713_v48  ;;  %v468_v29 = vsel %vm5932_vm2, %v463_v28, %v467_v7  ;;  %v4749_v47 = vcombine.low %v786_v2, %v789_v37  ;;  %v475_v43 = vrot.slane %v473_v31, 5  ;;  %v481_v49 = vrot.slane %v479_v32, 5  ;;  %5330 = vmatpush3.bf16.msra.mxu0 %v5719_v26  ;;  %v6319_v28 = vld [vmem:[%s5889_s17 + $0x34] sm:$0xf]  ;;  %v6335_v26 = vld [vmem:[%s5889_s17 + $0x60] sm:$0xf] }
  0x55   : > { %v4737_v1 = vcombine.low %v458_v36, %v468_v29  ;;  %v485_v53 = vrot.slane %v483_v33, 4  ;;  %v489_v38 = vshll.u32 %v6255_v18, 16  ;;  %v989_v13 = vshrl.u32 %v6263_v24, 16  ;;  %v712_v36 = vld [vmem:[%s5889_s17 + $0x24] sm:$0xe]  ;;  %v5722_v2 = vld [vmem:[%s7973_s1 + $0x1d0] sm:$0xff]  }
  0x56   : > { %v476_v55 = vor.u32 %v475_v43, %v472_v39  ;;  %v992_v48 = vshll.u32 %v6263_v24, 16  ;;  %v4766_v59 = vcombine.low %v6263_v24, %v6269_v34  ;;  %v4722_v63 = vcombine.low %v6243_v10, %v6246_v11  ;;  %v4562_v24 = vld [vmem:[%s5889_s17 + $0x30] sm:$0xf] }
  0x57   : > { %5434 = vmatpush3.bf16.msra.mxu1 %v5715_v19  ;;  %3391 = vmatprep.mubr.bf16.mxu0 %v4737_v1  ;;  %v486_v60 = vor.u32 %v485_v53, %v481_v49  ;;  %v491_v0 = vrot.slane %v489_v38, 5  ;;  %v6295_v3 = vrot.slane %v989_v13, 4  ;;  %v4542_v6 = vrot.slane %v711_v40, 9 }
  0x58   : > { %v477_v5 = vrot.slane %v476_v55, 4  ;;  %v792_v7 = vrot.slane %v6035_v57, 5  ;;  %v795_v19 = vrot.slane %v6038_v58, 5  ;;  %v497_v21 = vshll.u32 %v6298_v4, 16  ;;  %5435 = vmatprep.subr.bf16.mxu1 %v5722_v2  ;;  %v5723_v55 = vld [vmem:[%s7973_s1 + $0x190] sm:$0xff]  }
  0x59   : > { %3392 = vmatmul.mubr.bf16.gmra.mrb[20].mxu0 %v4721_v17  ;;  %v487_v14 = vrot.slane %v486_v60, 4  ;;  %v494_v17 = vshrl.u32 %v6298_v4, 16  ;;  %v503_v23 = vshll.u32 %v6304_v9, 16  ;;  %v507_v33 = vshrl.u32 %v6304_v9, 16 }
  0x5a   : > { %3521 = vmatmul.mubr.bf16.gmra.mrb[20].mxu1 %v4749_v47  ;;  %v482_v22 = vsel %vm5932_vm2, %v477_v5, %v481_v49  ;;  %v793_v10 = vsel %vm6130_vm5, %v4542_v6, %v792_v7  ;;  %v794_v57 = vrot.slane %v792_v7, 4  ;;  %v499_v32 = vrot.slane %v497_v21, 5  ;;  %v6344_v5 = vld [vmem:[%s5889_s17 + $0x64] sm:$0xf] }
  0x5b   : > { %3528 = vmatprep.mubr.bf16.mxu1 %v4766_v59  ;;  %v492_v58 = vsel %vm5932_vm2, %v487_v14, %v491_v0  ;;  %v496_v31 = vrot.slane %v494_v17, 4  ;;  %v505_v40 = vrot.slane %v503_v23, 5  ;;  %v513_v12 = vshll.u32 %v6308_v20, 16  ;;  %v6351_v17 = vld [vmem:[%s5889_s17 + $0x68] sm:$0x1]  ;;  %5436 = vmatpush3.bf16.msra.mxu1 %v5723_v55 }
  0x5c   : > { %v4738_v37 = vcombine.low %v482_v22, %v492_v58  ;;  %v796_v39 = vsel %vm6130_vm5, %v794_v57, %v795_v19  ;;  %v509_v43 = vrot.slane %v507_v33, 4  ;;  %v1013_v49 = vshrl.u32 %v4562_v24, 16  ;;  %v6358_v57 = vld [vmem:[%s5889_s17 + $0x3c] sm:$0xf] }
  0x5d   : > { %v4750_v29 = vcombine.low %v793_v10, %v796_v39  ;;  %v500_v47 = vor.u32 %v499_v32, %v496_v31  ;;  %v6331_v1 = vrot.slane %v992_v48, 5  ;;  %v515_v53 = vrot.slane %v513_v12, 5  ;;  %v713_v31 = vld [vmem:[%s5889_s17 + $0x30] sm:$0xe]  ;;  %v5730_v39 = vld [vmem:[%s7973_s1 + $0x1d8] sm:$0xff]  }
  0x5e   : > { %3399 = vmatprep.mubr.bf16.mxu0 %v4738_v37  ;;  %v1016_v38 = vshll.u32 %v4562_v24, 16  ;;  %v4767_v13 = vcombine.low %v4562_v24, %v6319_v28  ;;  %v510_v60 = vor.u32 %v509_v43, %v505_v40  ;;  %v6340_v0 = vrot.slane %v1013_v49, 4  ;;  %v5727_v32 = vld [vmem:[%s7973_s1 + $0x130] sm:$0xff]   ;;  %5437 = vmatprep.subr.bf16.mxu1 %v5730_v39  ;;  %v714_v39 = vld [vmem:[%s5889_s17 + $0x3c] sm:$0xe] }
  0x5f   : > { %v501_v59 = vrot.slane %v500_v47, 4  ;;  %v4723_v6 = vcombine.low %v6298_v4, %v6304_v9  ;;  %v4543_v7 = vrot.slane %v712_v36, 9  ;;  %v799_v14 = vrot.slane %v6086_v46, 5  ;;  %v6361_v4 = vld [vmem:[%s5889_s17 + $0x40] sm:$0xf]  ;;  %v5726_v46 = vld [vmem:[%s7973_s1 + $0x170] sm:$0xff]  }
  0x60   : > { %v802_v19 = vrot.slane %v6094_v50, 5  ;;  %v511_v22 = vrot.slane %v510_v60, 4  ;;  %v518_v10 = vshrl.u32 %v6335_v26, 16  ;;  %v527_v24 = vshll.u32 %v6344_v5, 16  ;;  %5331 = vmatprep.subr.bf16.mxu0 %v5726_v46 }
  0x61   : > { %3400 = vmatmul.mubr.bf16.gmra.mrb[24].mxu0 %v4722_v63  ;;  %v506_v21 = vsel %vm5932_vm2, %v501_v59, %v505_v40  ;;  %v521_v63 = vshll.u32 %v6335_v26, 16  ;;  %v800_v50 = vsel %vm6130_vm5, %v4543_v7, %v799_v14  ;;  %v801_v23 = vrot.slane %v799_v14, 4  ;;  %v6389_v14 = vld [vmem:[%s5889_s17 + $0x6c] sm:$0xf] }
  0x62   : > { %3529 = vmatmul.mubr.bf16.gmra.mrb[24].mxu1 %v4750_v29  ;;  %v531_v58 = vshrl.u32 %v6344_v5, 16  ;;  %v516_v33 = vsel %vm5932_vm2, %v511_v22, %v515_v53  ;;  %v520_v36 = vrot.slane %v518_v10, 4  ;;  %v537_v37 = vshll.u32 %v6351_v17, 16  ;;  %5332 = vmatpush3.bf16.msra.mxu0 %v5727_v32  ;;  %v6541_v22 = vld [vmem:[%s5889_s17 + $0x6c] sm:$0xf] }
  0x63   : > { %3536 = vmatprep.mubr.bf16.mxu1 %v4767_v13  ;;  %v523_v2 = vrot.slane %v521_v63, 5  ;;  %v4739_v40 = vcombine.low %v506_v21, %v516_v33  ;;  %v803_v12 = vsel %vm6130_vm5, %v801_v23, %v802_v19  ;;  %v529_v29 = vrot.slane %v527_v24, 5  ;;  %v6392_v19 = vld [vmem:[%s5889_s17 + $0x70] sm:$0xf]  ;;  %v5731_v63 = vld [vmem:[%s7973_s1 + $0x198] sm:$0xff]  }
  0x64   : > { %v533_v47 = vrot.slane %v531_v58, 4  ;;  %v6382_v43 = vrot.slane %v1016_v38, 5  ;;  %v4751_v49 = vcombine.low %v800_v50, %v803_v12  ;;  %v1037_v13 = vshrl.u32 %v6358_v57, 16  ;;  %v6405_v24 = vld [vmem:[%s5889_s17 + $0x74] sm:$0x1]  ;;  %5438 = vmatpush3.bf16.msra.mxu1 %v5731_v63 }
  0x65   : > { %v524_v53 = vor.u32 %v523_v2, %v520_v36  ;;  %3407 = vmatprep.mubr.bf16.mxu0 %v4739_v40  ;;  %v539_v59 = vrot.slane %v537_v37, 5  ;;  %v1040_v60 = vshll.u32 %v6358_v57, 16  ;;  %v4768_v7 = vcombine.low %v6358_v57, %v6361_v4  ;;  %v6413_v33 = vld [vmem:[%s5889_s17 + $0x48] sm:$0xf] }
  0x66   : > { %v534_v55 = vor.u32 %v533_v47, %v529_v29  ;;  %v6394_v21 = vrot.slane %v1037_v13, 4  ;;  %v4544_v10 = vrot.slane %v713_v31, 9  ;;  %v4724_v57 = vcombine.low %v6335_v26, %v6344_v5  ;;  %v6416_v26 = vld [vmem:[%s5889_s17 + $0x4c] sm:$0xf] }
  0x67   : > { %v525_v38 = vrot.slane %v524_v53, 4  ;;  %v806_v50 = vrot.slane %v6157_v52, 5  ;;  %v809_v23 = vrot.slane %v6162_v54, 5  ;;  %v542_v31 = vshrl.u32 %v6389_v14, 16  ;;  %v5732_v52 = vld [vmem:[%s7973_s1 + $0x178] sm:$0xff]  }
  0x68   : > { %v535_v46 = vrot.slane %v534_v55, 4  ;;  %v551_v32 = vshll.u32 %v6392_v19, 16  ;;  %v555_v37 = vshrl.u32 %v6392_v19, 16  ;;  %5333 = vmatprep.subr.bf16.mxu0 %v5732_v52  ;;  %v561_v55 = vshll.u32 %v6405_v24, 16 }
  0x69   : > { %3408 = vmatmul.mubr.bf16.gmra.mrb[28].mxu0 %v4723_v6  ;;  %v530_v58 = vsel %vm5932_vm2, %v525_v38, %v529_v29  ;;  %v545_v6 = vshll.u32 %v6389_v14, 16  ;;  %v807_v36 = vsel %vm6130_vm5, %v4544_v10, %v806_v50  ;;  %v808_v2 = vrot.slane %v806_v50, 4  ;;  %v6441_v50 = vld [vmem:[%s5889_s17 + $0x78] sm:$0xf] }
  0x6a   : > { %3537 = vmatmul.mubr.bf16.gmra.mrb[28].mxu1 %v4751_v49  ;;  %v540_v54 = vsel %vm5932_vm2, %v535_v46, %v539_v59  ;;  %v544_v12 = vrot.slane %v542_v31, 4  ;;  %v553_v47 = vrot.slane %v551_v32, 5  ;;  %v5733_v49 = vld [vmem:[%s7973_s1 + $0x138] sm:$0xff]   ;;  %v557_v13 = vrot.slane %v555_v37, 4 }
  0x6b   : > { %3544 = vmatprep.mubr.bf16.mxu1 %v4768_v7  ;;  %v4740_v40 = vcombine.low %v530_v58, %v540_v54  ;;  %v547_v29 = vrot.slane %v545_v6, 5  ;;  %v810_v53 = vsel %vm6130_vm5, %v808_v2, %v809_v23  ;;  %v1061_v59 = vshrl.u32 %v6413_v33, 16  ;;  %v5737_v7 = vld [vmem:[%s7973_s1 + $0x1e0] sm:$0xff]   ;;  %5334 = vmatpush3.bf16.msra.mxu0 %v5733_v49  ;;  %v6447_v32 = vld [vmem:[%s5889_s17 + $0x7c] sm:$0xf] }
  0x6c   : > { %v6437_v38 = vrot.slane %v1040_v60, 5  ;;  %v4752_v10 = vcombine.low %v807_v36, %v810_v53  ;;  %v1064_v46 = vshll.u32 %v6413_v33, 16  ;;  %v558_v23 = vor.u32 %v557_v13, %v553_v47  ;;  %5439 = vmatprep.subr.bf16.mxu1 %v5737_v7  ;;  %v6456_v2 = vld [vmem:[%s7973_s1 + $0x200] sm:$0xff]   ;;  %v4568_v53 = vld [vmem:[%s5889_s17 + $0x54] sm:$0xf] }
  0x6d   : > { %3415 = vmatprep.mubr.bf16.mxu0 %v4740_v40  ;;  %v548_v63 = vor.u32 %v547_v29, %v544_v12  ;;  %v563_v58 = vrot.slane %v561_v55, 5  ;;  %v4769_v6 = vcombine.low %v6413_v33, %v6416_v26  ;;  %v6449_v52 = vrot.slane %v1061_v59, 4  ;;  %v6461_v12 = vld [vmem:[%s5889_s17 + $0x80] sm:$0x1]  ;;  %v6471_v13 = vld [vmem:[%s5889_s17 + $0x58] sm:$0xf]  ;;  %5567 = vmatprep.subr.bf16.mxu0 %v6456_v2 }
  0x6e   : > { %v4725_v54 = vcombine.low %v6389_v14, %v6392_v19  ;;  %v4545_v36 = vrot.slane %v714_v39, 9  ;;  %v559_v33 = vrot.slane %v558_v23, 4  ;;  %v813_v37 = vrot.slane %v6218_v41, 5  ;;  %v5739_v41 = vld [vmem:[%s7973_s1 + $0x1a0] sm:$0xff]   ;;  %v715_v7 = vld [vmem:[%s5889_s17 + $0x48] sm:$0xe] }
  0x6f   : > { %v549_v60 = vrot.slane %v548_v63, 4  ;;  %v816_v40 = vrot.slane %v6221_v42, 5  ;;  %v566_v29 = vshrl.u32 %v6441_v50, 16  ;;  %v569_v39 = vshll.u32 %v6441_v50, 16  ;;  %5440 = vmatpush3.bf16.msra.mxu1 %v5739_v41 }
  0x70   : > { %v575_v49 = vshll.u32 %v6447_v32, 16  ;;  %v564_v42 = vsel %vm5932_vm2, %v559_v33, %v563_v58  ;;  %v815_v55 = vrot.slane %v813_v37, 4  ;;  %v585_v58 = vshll.u32 %v6461_v12, 16 }
  0x71   : > { %3416 = vmatmul.mubr.bf16.gmra.mrb[32].mxu0 %v4724_v57  ;;  %v554_v14 = vsel %vm5932_vm2, %v549_v60, %v553_v47  ;;  %v579_v57 = vshrl.u32 %v6447_v32, 16  ;;  %v814_v47 = vsel %vm6130_vm5, %v4545_v36, %v813_v37  ;;  %v568_v59 = vrot.slane %v566_v29, 4  ;;  %v5742_v60 = vld [vmem:[%s7973_s1 + $0x1e8] sm:$0xff]  }
  0x72   : > { %3545 = vmatmul.mubr.bf16.gmra.mrb[32].mxu1 %v4752_v10  ;;  %v4741_v10 = vcombine.low %v554_v14, %v564_v42  ;;  %v571_v63 = vrot.slane %v569_v39, 5  ;;  %v577_v23 = vrot.slane %v575_v49, 5  ;;  %v817_v31 = vsel %vm6130_vm5, %v815_v55, %v816_v40  ;;  %5441 = vmatprep.subr.bf16.mxu1 %v5742_v60  ;;  %v5744_v39 = vld [vmem:[%s7973_s1 + $0x1a8] sm:$0xff]  }
  0x73   : > { %3552 = vmatprep.mubr.bf16.mxu1 %v4769_v6  ;;  %v581_v6 = vrot.slane %v579_v57, 4  ;;  %v1085_v33 = vshrl.u32 %v4568_v53, 16  ;;  %v1088_v44 = vshll.u32 %v4568_v53, 16  ;;  %v6488_v36 = vrot.slane %v1064_v46, 5  ;;  %v5747_v46 = vld [vmem:[%s7973_s1 + $0x1f0] sm:$0xff]   ;;  %5442 = vmatpush3.bf16.msra.mxu1 %v5744_v39 }
  0x74   : > { %3423 = vmatprep.mubr.bf16.mxu0 %v4741_v10  ;;  %v4753_v37 = vcombine.low %v814_v47, %v817_v31  ;;  %v572_v29 = vor.u32 %v571_v63, %v568_v59  ;;  %v587_v49 = vrot.slane %v585_v58, 5  ;;  %v4770_v41 = vcombine.low %v4568_v53, %v6471_v13  ;;  %v6503_v59 = vld [vmem:[%s5889_s17 + $0x84] sm:$0xf]  ;;  %v6513_v60 = vld [vmem:[%s5889_s17 + $0x8c] sm:$0x1]  ;;  %5443 = vmatprep.subr.bf16.mxu1 %v5747_v46 }
  0x75   : > { %v582_v14 = vor.u32 %v581_v6, %v577_v23  ;;  %v6493_v57 = vrot.slane %v1085_v33, 4  ;;  %v6500_v47 = vrot.slane %v1088_v44, 5  ;;  %v4546_v55 = vrot.slane %v715_v7, 9  ;;  %v6510_v6 = vld [vmem:[%s5889_s17 + $0x88] sm:$0xf] }
  0x76   : > { %v573_v31 = vrot.slane %v572_v29, 4  ;;  %v4726_v10 = vcombine.low %v6441_v50, %v6447_v32  ;;  %v820_v53 = vrot.slane %v6246_v11, 5  ;;  %v823_v63 = vrot.slane %v6255_v18, 5  ;;  %v4570_v29 = vld [vmem:[%s5889_s17 + $0x60] sm:$0xf] }
  0x77   : > { %v583_v42 = vrot.slane %v582_v14, 4  ;;  %v953_v44 = vsel %vm5932_vm2, %v6225_v45, %v6193_v25  ;;  %v590_v11 = vshrl.u32 %v6503_v59, 16  ;;  %v593_v18 = vshll.u32 %v6503_v59, 16 }
  0x78   : > { %v821_v58 = vsel %vm6130_vm5, %v4546_v55, %v820_v53  ;;  %v822_v33 = vrot.slane %v820_v53, 4  ;;  %v603_v39 = vshrl.u32 %v6510_v6, 16  ;;  %v1112_v55 = vshll.u32 %v4570_v29, 16  ;;  %v716_v53 = vld [vmem:[%s5889_s17 + $0x54] sm:$0xe] }
  0x79   : > { %3424 = vmatmul.mubr.bf16.gmra.mrb[36].mxu0 %v4725_v54  ;;  %v578_v54 = vsel %vm5932_vm2, %v573_v31, %v577_v23  ;;  %v588_v50 = vsel %vm5932_vm2, %v583_v42, %v587_v49  ;;  %v592_v14 = vrot.slane %v590_v11, 4  ;;  %v595_v23 = vrot.slane %v593_v18, 5 }
  0x7a   : > { %3553 = vmatmul.mubr.bf16.gmra.mrb[36].mxu1 %v4753_v37  ;;  %v4742_v7 = vcombine.low %v578_v54, %v588_v50  ;;  %v599_v37 = vshll.u32 %v6510_v6, 16  ;;  %v609_v49 = vshll.u32 %v6513_v60, 16  ;;  %v824_v46 = vsel %vm6130_vm5, %v822_v33, %v823_v63  ;;  %v5749_v54 = vld [vmem:[%s7973_s1 + $0x1b0] sm:$0xff]  }
  0x7b   : > { %3560 = vmatprep.mubr.bf16.mxu1 %v4770_v41  ;;  %v6532_v41 = vld [vmem:[%s5889_s17 + $0x64] sm:$0xf]  ;;  %v1109_v42 = vshrl.u32 %v4570_v29, 16  ;;  %v4754_v50 = vcombine.low %v821_v58, %v824_v46  ;;  %v596_v11 = vor.u32 %v595_v23, %v592_v14  ;;  %v605_v18 = vrot.slane %v603_v39, 4  ;;  %5444 = vmatpush3.bf16.msra.mxu1 %v5749_v54  ;;  %v5752_v58 = vld [vmem:[%s7973_s1 + $0x1f8] sm:$0xff]  }
  0x7c   : > { %3431 = vmatprep.mubr.bf16.mxu0 %v4742_v7  ;;  %v601_v31 = vrot.slane %v599_v37, 5  ;;  %v611_v40 = vrot.slane %v609_v49, 5  ;;  %v6544_v7 = vld [vmem:[%s5889_s17 + $0x70] sm:$0xf]  ;;  %v6548_v33 = vrot.slane %v1112_v55, 5  ;;  %v4771_v48 = vcombine.low %v4570_v29, %v6532_v41  ;;  %5445 = vmatprep.subr.bf16.mxu1 %v5752_v58  ;;  %v5754_v58 = vld [vmem:[%s7973_s1 + $0x1b8] sm:$0xff]  }
  0x7d   : > { %v6546_v63 = vrot.slane %v1109_v42, 4  ;;  %v597_v14 = vrot.slane %v596_v11, 4  ;;  %v4547_v39 = vrot.slane %v716_v53, 9  ;;  %v717_v49 = vld [vmem:[%s5889_s17 + $0x60] sm:$0xe]  ;;  %v971_v46 = vor.u32 %v6250_v16, %v6248_v15 }
  0x7e   : > { %v606_v23 = vor.u32 %v605_v18, %v601_v31  ;;  %v827_v42 = vrot.slane %v6304_v9, 5  ;;  %v830_v29 = vrot.slane %v6308_v20, 5  ;;  %v1133_v55 = vshrl.u32 %v6541_v22, 16 }
  0x7f   : > { %v1136_v54 = vshll.u32 %v6541_v22, 16  ;;  %v602_v37 = vsel %vm5932_vm2, %v597_v14, %v601_v31  ;;  %v4727_v53 = vcombine.low %v6503_v59, %v6510_v6  ;;  %v960_v31 = vshll.u32 %v4588_v56, 16  ;;  %5446 = vmatpush3.bf16.msra.mxu1 %v5754_v58 }
  0x80   : > { %v607_v11 = vrot.slane %v606_v23, 4  ;;  %v828_v9 = vsel %vm6130_vm5, %v4547_v39, %v827_v42  ;;  %v6571_v20 = vrot.slane %v1133_v55, 4  ;;  %v4620_v14 = vrot.slane %v4604_v8, 9 }
  0x81   : > { %3432 = vmatmul.mubr.bf16.gmra.mrb[40].mxu0 %v4726_v10  ;;  %v829_v10 = vrot.slane %v827_v42, 4  ;;  %v1390_v59 = vrot.slane %v6181_v62, 5  ;;  %v1393_v42 = vrot.slane %v4588_v56, 5  ;;  %v4548_v55 = vrot.slane %v717_v49, 9  ;;  %v6586_v62 = vld [vmem:[%s5889_s17 + $0x78] sm:$0xf] }
  0x82   : > { %3561 = vmatmul.mubr.bf16.gmra.mrb[40].mxu1 %v4754_v50  ;;  %v4772_v50 = vcombine.low %v6541_v22, %v6544_v7  ;;  %v962_v22 = vrot.slane %v960_v31, 5  ;;  %v837_v56 = vrot.slane %v6351_v17, 5  ;;  %v1157_v49 = vshrl.u32 %v6586_v62, 16 }
  0x83   : > { %3568 = vmatprep.mubr.bf16.mxu1 %v4771_v48  ;;  %v612_v48 = vsel %vm5932_vm2, %v607_v11, %v611_v40  ;;  %v831_v39 = vsel %vm6130_vm5, %v829_v10, %v830_v29  ;;  %v1391_v40 = vsel %vm6130_vm5, %v4620_v14, %v1390_v59  ;;  %v1392_v8 = vrot.slane %v1390_v59, 4  ;;  %v6589_v11 = vld [vmem:[%s5889_s17 + $0x7c] sm:$0xf]  ;;  %v718_v59 = vld [vmem:[%s5889_s17 + $0x6c] sm:$0xe] }
  0x84   : > { %v4743_v23 = vcombine.low %v602_v37, %v612_v48  ;;  %v4755_v18 = vcombine.low %v828_v9, %v831_v39  ;;  %v6591_v37 = vrot.slane %v1136_v54, 5  ;;  %v834_v29 = vrot.slane %v6344_v5, 5  ;;  %v4605_v9 = vld [vmem:[%s5889_s17 + $0x18] sm:$0xe]  ;;  %v4589_v54 = vld [vmem:[%s5889_s17 + $0x20] sm:$0x1] }
  0x85   : > { %v1394_v10 = vsel %vm6130_vm5, %v1392_v8, %v1393_v42  ;;  %v963_v48 = vsel %vm5932_vm2, %v6233_v51, %v962_v22  ;;  %v1160_v31 = vshll.u32 %v6586_v62, 16  ;;  %v1170_v14 = vshrl.u32 %v6589_v11, 16 }
  0x86   : > { %3439 = vmatprep.mubr.bf16.mxu0 %v4743_v23  ;;  %v4796_v5 = vcombine.low %v1391_v40, %v1394_v10  ;;  %v835_v17 = vsel %vm6130_vm5, %v4548_v55, %v834_v29  ;;  %v836_v58 = vrot.slane %v834_v29, 4  ;;  %v4773_v23 = vcombine.low %v6586_v62, %v6589_v11  ;;  %v6622_v40 = vld [vmem:[%s5889_s17 + $0x84] sm:$0xf]  ;;  %v6628_v62 = vld [vmem:[%s5889_s17 + $0x88] sm:$0xf] }
  0x87   : > { %v4780_v51 = vcombine.low %v953_v44, %v963_v48  ;;  %v6615_v39 = vrot.slane %v1157_v49, 4  ;;  %v1400_v55 = vrot.slane %v4589_v54, 5  ;;  %v4549_v22 = vrot.slane %v718_v59, 9 }
  0x88   : > { %v838_v42 = vsel %vm6130_vm5, %v836_v58, %v837_v56  ;;  %v844_v44 = vrot.slane %v6405_v24, 5  ;;  %v974_v49 = vshll.u32 %v6237_v61, 16  ;;  %v7982_v24 = vshrl.u32 %v6237_v61, 16 }
  0x89   : > { %3440 = vmatmul.mubr.bf16.gmra.mrb[44].mxu0 %v4727_v53  ;;  %v4621_v53 = vrot.slane %v4605_v9, 9  ;;  %v4756_v8 = vcombine.low %v835_v17, %v838_v42  ;;  %v984_v48 = vshll.u32 %v4589_v54, 16  ;;  %v1181_v59 = vshrl.u32 %v6622_v40, 16  ;;  %v5743_v17 = vld [vmem:[%s7973_s1 + $0x208] sm:$0xff]  }
  0x8a   : > { %3569 = vmatmul.mubr.bf16.gmra.mrb[44].mxu1 %v4755_v18  ;;  %v1397_v18 = vrot.slane %v6237_v61, 5  ;;  %3673 = vmatprep.mubr.bf16.mxu0 %v4796_v5  ;;  %v980_v10 = vrot.slane %v7982_v24, 4  ;;  %v4590_v5 = vld [vmem:[%s5889_s17 + $0x2c] sm:$0x1]  ;;  %v6647_v58 = vrot.slane %v1160_v31, 5  ;;  %v7983_v24 = vshrl.u32 %v6269_v34, 16 }
  0x8b   : > { %3576 = vmatprep.mubr.bf16.mxu1 %v4772_v50  ;;  %v841_v50 = vrot.slane %v6392_v19, 5  ;;  %v972_v19 = vrot.slane %v971_v46, 4  ;;  %v976_v46 = vrot.slane %v974_v49, 5  ;;  %v986_v42 = vrot.slane %v984_v48, 5 }
  0x8c   : > { %v1398_v25 = vsel %vm6130_vm5, %v4621_v53, %v1397_v18  ;;  %v1399_v45 = vrot.slane %v1397_v18, 4  ;;  %v4606_v53 = vld [vmem:[%s5889_s17 + $0x24] sm:$0xe]  ;;  %v719_v18 = vld [vmem:[%s5889_s17 + $0x78] sm:$0xe]  ;;  %v6654_v54 = vrot.slane %v1181_v59, 4 }
  0x8d   : > { %v6632_v29 = vsel %vm6130_vm5, %v4549_v22, %v841_v50  ;;  %v843_v56 = vrot.slane %v841_v50, 4  ;;  %v977_v31 = vsel %vm5932_vm2, %v972_v19, %v976_v46  ;;  %v981_v22 = vor.u32 %v980_v10, %v976_v46  ;;  %v6677_v10 = vld [vmem:[%s5889_s17 + $0x90] sm:$0xf] }
  0x8e   : > { %v1401_v9 = vsel %vm6130_vm5, %v1399_v45, %v1400_v55  ;;  %v1184_v55 = vshll.u32 %v6622_v40, 16  ;;  %v1194_v50 = vshrl.u32 %v6628_v62, 16  ;;  %v4622_v45 = vrot.slane %v4606_v53, 9 }
  0x8f   : > { %v4797_v15 = vcombine.low %v1398_v25, %v1401_v9  ;;  %v845_v16 = vsel %vm6130_vm5, %v843_v56, %v844_v44  ;;  %v4774_v25 = vcombine.low %v6622_v40, %v6628_v62  ;;  %v1404_v44 = vrot.slane %v6269_v34, 5 }
  0x90   : > { %v4757_v61 = vcombine.low %v6632_v29, %v845_v16  ;;  %v1407_v29 = vrot.slane %v4590_v5, 5  ;;  %v848_v56 = vrot.slane %v6447_v32, 5  ;;  %v851_v19 = vrot.slane %v6461_v12, 5  ;;  %v6680_v12 = vld [vmem:[%s5889_s17 + $0x94] sm:$0xf] }
  0x91   : > { %3674 = vmatmul.mubr.bf16.vlgmr.msra.gmra.mrb[48].mxu0 %v4780_v51  ;;  %v982_v51 = vrot.slane %v981_v22, 4  ;;  %v995_v40 = vor.u32 %v6331_v1, %v6295_v3  ;;  %v1406_v49 = vrot.slane %v1404_v44, 4  ;;  %v998_v9 = vshll.u32 %v6269_v34, 16  ;;  %v4607_v16 = vld [vmem:[%s5889_s17 + $0x30] sm:$0xe] }
  0x92   : > { %3577 = vmatmul.mubr.bf16.gmra.mrb[48].mxu1 %v4756_v8  ;;  %5568 = vmatpush3.bf16.msra.mxu0 %v6456_v2  ;;  %v4550_v8 = vrot.slane %v719_v18, 9  ;;  %v5748_v2 = vld [vmem:[%s7973_s1 + $0x210] sm:$0xff]   ;;  %v1004_v32 = vrot.slane %v7983_v24, 4  ;;  %v850_v48 = vrot.slane %v848_v56, 4  ;;  %v1008_v18 = vshll.u32 %v4590_v5, 16 }
  0x93   : > { %3584 = vmatprep.mubr.bf16.mxu1 %v4773_v23  ;;  %3681 = vmatprep.mubr.bf16.mxu0 %v4797_v15  ;;  %v1405_v23 = vsel %vm6130_vm5, %v4622_v45, %v1404_v44  ;;  %v987_v3 = vsel %vm5932_vm2, %v982_v51, %v986_v42  ;;  %v996_v59 = vrot.slane %v995_v40, 4  ;;  %v4591_v15 = vld [vmem:[%s5889_s17 + $0x38] sm:$0x1]  ;;  %v1408_v34 = vsel %vm6130_vm5, %v1406_v49, %v1407_v29 }
  0x94   : > { %5569 = vmatprep.subr.bf16.mxu0 %v5743_v17  ;;  %v6686_v1 = vsel %vm6130_vm5, %v4550_v8, %v848_v56  ;;  %v4781_v46 = vcombine.low %v977_v31, %v987_v3  ;;  %v1000_v53 = vrot.slane %v998_v9, 5  ;;  %v5753_v42 = vld [vmem:[%s7973_s1 + $0x218] sm:$0xff]   ;;  %v6695_v22 = vrot.slane %v1184_v55, 5  ;;  %v720_v56 = vld [vmem:[%s5889_s17 + $0x84] sm:$0xe] }
  0x95   : > { %v4798_v45 = vcombine.low %v1405_v23, %v1408_v34  ;;  %v852_v44 = vsel %vm6130_vm5, %v850_v48, %v851_v19  ;;  %v1205_v8 = vshrl.u32 %v6677_v10, 16  ;;  %v1010_v51 = vrot.slane %v1008_v18, 5 }
  0x96   : > { %5570 = vmatpush3.bf16.msra.mxu0 %v5743_v17  ;;  %v1005_v31 = vor.u32 %v1004_v32, %v1000_v53  ;;  %v1208_v29 = vshll.u32 %v6677_v10, 16  ;;  %v4758_v5 = vcombine.low %v6686_v1, %v852_v44  ;;  %v1001_v17 = vsel %vm5932_vm2, %v996_v59, %v1000_v53  ;;  %v6727_v59 = vld [vmem:[%s5889_s17 + $0x9c] sm:$0xf] }
  0x97   : > { %5571 = vmatprep.subr.bf16.mxu0 %v5748_v2  ;;  %v6705_v55 = vrot.slane %v1205_v8, 4  ;;  %v4775_v19 = vcombine.low %v6677_v10, %v6680_v12  ;;  %v4623_v23 = vrot.slane %v4607_v16, 9  ;;  %v1411_v49 = vrot.slane %v6319_v28, 5  ;;  %v4592_v16 = vld [vmem:[%s5889_s17 + $0x44] sm:$0x1]  ;;  %v5760_v8 = vld [vmem:[%s7973_s1 + $0x228] sm:$0xff]  }
  0x98   : > { %v1006_v40 = vrot.slane %v1005_v31, 4  ;;  %v1414_v9 = vrot.slane %v4591_v15, 5  ;;  %v855_v24 = vrot.slane %v6510_v6, 5  ;;  %v858_v32 = vrot.slane %v6513_v60, 5  ;;  %v5757_v6 = vld [vmem:[%s7973_s1 + $0x220] sm:$0xff]  }
  0x99   : > { %3682 = vmatmul.mubr.bf16.gmra.mrb[52].mxu0 %v4781_v46  ;;  %v1019_v3 = vor.u32 %v6382_v43, %v6340_v0  ;;  %v1412_v10 = vsel %vm6130_vm5, %v4623_v23, %v1411_v49  ;;  %v1413_v1 = vrot.slane %v1411_v49, 4  ;;  %v1022_v48 = vshll.u32 %v6319_v28, 16  ;;  %v4608_v44 = vld [vmem:[%s5889_s17 + $0x3c] sm:$0xe] }
  0x9a   : > { %3585 = vmatmul.mubr.bf16.gmra.mrb[52].mxu1 %v4757_v61  ;;  %3689 = vmatprep.mubr.bf16.mxu0 %v4798_v45  ;;  %v4551_v61 = vrot.slane %v720_v56, 9  ;;  %v857_v43 = vrot.slane %v855_v24, 4  ;;  %v7984_v53 = vshrl.u32 %v6319_v28, 16  ;;  %v1032_v45 = vshll.u32 %v4591_v15, 16 }
  0x9b   : > { %3592 = vmatprep.mubr.bf16.mxu1 %v4774_v25  ;;  %5572 = vmatpush3.bf16.msra.mxu0 %v5748_v2  ;;  %v1011_v25 = vsel %vm5932_vm2, %v1006_v40, %v1010_v51  ;;  %v1020_v2 = vrot.slane %v1019_v3, 4  ;;  %v1415_v46 = vsel %vm6130_vm5, %v1413_v1, %v1414_v9  ;;  %v1024_v34 = vrot.slane %v1022_v48, 5  ;;  %v721_v40 = vld [vmem:[%s5889_s17 + $0x90] sm:$0xe]  ;;  %v6749_v9 = vld [vmem:[%s5889_s17 + $0xa0] sm:$0xf] }
  0x9c   : > { %5573 = vmatprep.subr.bf16.mxu0 %v5753_v42  ;;  %v4782_v60 = vcombine.low %v1001_v17, %v1011_v25  ;;  %v6724_v0 = vsel %vm6130_vm5, %v4551_v61, %v855_v24  ;;  %v1028_v18 = vrot.slane %v7984_v53, 4  ;;  %v6738_v31 = vrot.slane %v1208_v29, 5 }
  0x9d   : > { %v4799_v51 = vcombine.low %v1412_v10, %v1415_v46  ;;  %v859_v56 = vsel %vm6130_vm5, %v857_v43, %v858_v32  ;;  %v1229_v17 = vshrl.u32 %v6727_v59, 16  ;;  %v1218_v28 = vshrl.u32 %v6680_v12, 16  ;;  %v5776_v10 = vld [vmem:[%s5889_s17 + $0x94] sm:$0xf] }
  0x9e   : > { %v1029_v23 = vor.u32 %v1028_v18, %v1024_v34  ;;  %v1034_v15 = vrot.slane %v1032_v45, 5  ;;  %v4759_v49 = vcombine.low %v6724_v0, %v859_v56  ;;  %v1025_v29 = vsel %vm5932_vm2, %v1020_v2, %v1024_v34  ;;  %v4609_v56 = vld [vmem:[%s5889_s17 + $0x48] sm:$0xe] }
  0x9f   : > { %5574 = vmatpush3.bf16.msra.mxu0 %v5753_v42  ;;  %v6751_v61 = vrot.slane %v1229_v17, 4  ;;  %v1232_v24 = vshll.u32 %v6727_v59, 16  ;;  %v4624_v32 = vrot.slane %v4608_v44, 9  ;;  %v1418_v3 = vrot.slane %v6361_v4, 5 }
  0xa0   : > { %5575 = vmatprep.subr.bf16.mxu0 %v5757_v6  ;;  %v1030_v42 = vrot.slane %v1029_v23, 4  ;;  %v1421_v25 = vrot.slane %v4592_v16, 5  ;;  %v862_v1 = vrot.slane %v5776_v10, 5  ;;  %v1043_v48 = vor.u32 %v6437_v38, %v6394_v21  ;;  %v5763_v21 = vld [vmem:[%s7973_s1 + $0x230] sm:$0xff]  }
  0xa1   : > { %3690 = vmatmul.mubr.bf16.gmra.mrb[56].mxu0 %v4782_v60  ;;  %v1046_v60 = vshll.u32 %v6361_v4, 16  ;;  %v1419_v0 = vsel %vm6130_vm5, %v4624_v32, %v1418_v3  ;;  %v1420_v43 = vrot.slane %v1418_v3, 4  ;;  %v7985_v2 = vshrl.u32 %v6361_v4, 16 }
  0xa2   : > { %3593 = vmatmul.mubr.bf16.gmra.mrb[56].mxu1 %v4758_v5  ;;  %3697 = vmatprep.mubr.bf16.mxu0 %v4799_v51  ;;  %v4552_v5 = vrot.slane %v721_v40, 9  ;;  %v864_v34 = vrot.slane %v862_v1, 4  ;;  %v1044_v53 = vrot.slane %v1043_v48, 4  ;;  %v1056_v44 = vshll.u32 %v4592_v16, 16  ;;  %v6777_v51 = vld [vmem:[%s5889_s17 + $0xa8] sm:$0xf] }
  0xa3   : > { %3600 = vmatprep.mubr.bf16.mxu1 %v4775_v19  ;;  %5576 = vmatpush3.bf16.msra.mxu0 %v5757_v6  ;;  %v1035_v19 = vsel %vm5932_vm2, %v1030_v42, %v1034_v15  ;;  %v1052_v46 = vrot.slane %v7985_v2, 4  ;;  %v4776_v6 = vcombine.low %v6727_v59, %v6749_v9  ;;  %v1422_v18 = vsel %vm6130_vm5, %v1420_v43, %v1421_v25  ;;  %v722_v42 = vld [vmem:[%s5889_s17 + $0x9c] sm:$0xe]  ;;  %v6790_v25 = vld [vmem:[%s5889_s17 + $0xac] sm:$0xf] }
  0xa4   : > { %5577 = vmatprep.subr.bf16.mxu0 %v5760_v8  ;;  %v4783_v38 = vcombine.low %v1025_v29, %v1035_v19  ;;  %v6774_v4 = vsel %vm6130_vm5, %v4552_v5, %v862_v1  ;;  %v1048_v45 = vrot.slane %v1046_v60, 5  ;;  %v6780_v17 = vrot.slane %v1232_v24, 5  ;;  %v4593_v29 = vld [vmem:[%s5889_s17 + $0x50] sm:$0x1]  ;;  %v5777_v43 = vld [vmem:[%s5889_s17 + $0xa0] sm:$0xf] }
  0xa5   : > { %v1242_v40 = vshrl.u32 %v6749_v9, 16  ;;  %v4800_v59 = vcombine.low %v1419_v0, %v1422_v18  ;;  %v7986_v23 = vrot.slane %v5926_v30, 5  ;;  %v1058_v3 = vrot.slane %v1056_v44, 5  ;;  %v5766_v30 = vld [vmem:[%s7973_s1 + $0x238] sm:$0xff]  }
  0xa6   : > { %v1053_v32 = vor.u32 %v1052_v46, %v1048_v45  ;;  %v1253_v16 = vshrl.u32 %v6777_v51, 16  ;;  %v1256_v24 = vshll.u32 %v6777_v51, 16  ;;  %v1266_v10 = vshrl.u32 %v6790_v25, 16  ;;  %v5778_v46 = vld [vmem:[%s5889_s17 + $0xa4] sm:$0x1] }
  0xa7   : > { %v866_v15 = vsel %vm6130_vm5, %v864_v34, %v7986_v23  ;;  %5578 = vmatpush3.bf16.msra.mxu0 %v5760_v8  ;;  %v1049_v8 = vsel %vm5932_vm2, %v1044_v53, %v1048_v45  ;;  %v4625_v1 = vrot.slane %v4609_v56, 9  ;;  %v1425_v60 = vrot.slane %v6416_v26, 5 }
  0xa8   : > { %5579 = vmatprep.subr.bf16.mxu0 %v5763_v21  ;;  %v4760_v5 = vcombine.low %v6774_v4, %v866_v15  ;;  %v1054_v48 = vrot.slane %v1053_v32, 4  ;;  %v1428_v19 = vrot.slane %v4593_v29, 5  ;;  %v4553_v0 = vrot.slane %v722_v42, 9  ;;  %v4610_v42 = vld [vmem:[%s5889_s17 + $0x54] sm:$0xe] }
  0xa9   : > { %3698 = vmatmul.mubr.bf16.gmra.mrb[60].mxu0 %v4783_v38  ;;  %v869_v2 = vrot.slane %v5777_v43, 5  ;;  %v1067_v38 = vor.u32 %v6488_v36, %v6449_v52  ;;  %v1070_v34 = vshll.u32 %v6416_v26, 16  ;;  %v1426_v53 = vsel %vm6130_vm5, %v4625_v1, %v1425_v60  ;;  %v4594_v1 = vld [vmem:[%s5889_s17 + $0x5c] sm:$0x1] }
  0xaa   : > { %3601 = vmatmul.mubr.bf16.gmra.mrb[60].mxu1 %v4759_v49  ;;  %3705 = vmatprep.mubr.bf16.mxu0 %v4800_v59  ;;  %v872_v49 = vrot.slane %v5778_v46, 5  ;;  %v1427_v18 = vrot.slane %v1425_v60, 4  ;;  %v7987_v4 = vshrl.u32 %v6416_v26, 16  ;;  %v4777_v52 = vcombine.low %v6777_v51, %v6790_v25  ;;  %v6820_v26 = vld [vmem:[%s5889_s17 + $0xb4] sm:$0xf] }
  0xab   : > { %3608 = vmatprep.mubr.bf16.mxu1 %v4776_v6  ;;  %5580 = vmatpush3.bf16.msra.mxu0 %v5763_v21  ;;  %v1059_v6 = vsel %vm5932_vm2, %v1054_v48, %v1058_v3  ;;  %v871_v36 = vrot.slane %v869_v2, 4  ;;  %v1068_v56 = vrot.slane %v1067_v38, 4  ;;  %v870_v59 = vsel %vm6130_vm5, %v4553_v0, %v869_v2  ;;  %v723_v48 = vld [vmem:[%s5889_s17 + $0xa8] sm:$0xe]  ;;  %v6832_v0 = vld [vmem:[%s5889_s17 + $0xb8] sm:$0xf] }
  0xac   : > { %v1076_v45 = vrot.slane %v7987_v4, 4  ;;  %5581 = vmatprep.subr.bf16.mxu0 %v5766_v30  ;;  %v4784_v44 = vcombine.low %v1049_v8, %v1059_v6  ;;  %v1429_v21 = vsel %vm6130_vm5, %v1427_v18, %v1428_v19  ;;  %v1072_v23 = vrot.slane %v1070_v34, 5  ;;  %v5779_v6 = vld [vmem:[%s5889_s17 + $0xac] sm:$0xf]  ;;  %v5780_v18 = vld [vmem:[%s5889_s17 + $0xb0] sm:$0x1] }
  0xad   : > { %v1080_v15 = vshll.u32 %v4593_v29, 16  ;;  %v6823_v32 = vrot.slane %v1253_v16, 4  ;;  %v6825_v3 = vrot.slane %v1256_v24, 5  ;;  %v4801_v8 = vcombine.low %v1426_v53, %v1429_v21 }
  0xae   : > { %v873_v51 = vsel %vm6130_vm5, %v871_v36, %v872_v49  ;;  %v1077_v60 = vor.u32 %v1076_v45, %v1072_v23  ;;  %v1277_v29 = vshrl.u32 %v6820_v26, 16  ;;  %v1280_v16 = vshll.u32 %v6820_v26, 16 }
  0xaf   : > { %5582 = vmatpush3.bf16.msra.mxu0 %v5766_v30  ;;  %v1082_v19 = vrot.slane %v1080_v15, 5  ;;  %v4761_v24 = vcombine.low %v870_v59, %v873_v51  ;;  %v1073_v43 = vsel %vm5932_vm2, %v1068_v56, %v1072_v23  ;;  %v1290_v2 = vshrl.u32 %v6832_v0, 16 }
  0xb0   : > { %v4626_v46 = vrot.slane %v4610_v42, 9  ;;  %v1078_v30 = vrot.slane %v1077_v60, 4  ;;  %v1432_v49 = vrot.slane %v6471_v13, 5  ;;  %v1435_v38 = vrot.slane %v4594_v1, 5 }
  0xb1   : > { %3706 = vmatmul.mubr.bf16.gmra.mrb[64].mxu0 %v4784_v44  ;;  %v4554_v34 = vrot.slane %v723_v48, 9  ;;  %v876_v53 = vrot.slane %v5779_v6, 5  ;;  %v1091_v4 = vor.u32 %v6500_v47, %v6493_v57  ;;  %v1094_v45 = vshll.u32 %v6471_v13, 16  ;;  %v6858_v48 = vld [vmem:[%s5889_s17 + $0xc0] sm:$0xf] }
  0xb2   : > { %3609 = vmatmul.mubr.bf16.gmra.mrb[64].mxu1 %v4760_v5  ;;  %3713 = vmatprep.mubr.bf16.mxu0 %v4801_v8  ;;  %v879_v5 = vrot.slane %v5780_v18, 5  ;;  %v1083_v44 = vsel %vm5932_vm2, %v1078_v30, %v1082_v19  ;;  %v1434_v36 = vrot.slane %v1432_v49, 4  ;;  %v7988_v56 = vshrl.u32 %v6471_v13, 16  ;;  %v4611_v13 = vld [vmem:[%s5889_s17 + $0x60] sm:$0xe] }
  0xb3   : > { %3616 = vmatprep.mubr.bf16.mxu1 %v4777_v52  ;;  %v1433_v52 = vsel %vm6130_vm5, %v4626_v46, %v1432_v49  ;;  %v4785_v59 = vcombine.low %v1073_v43, %v1083_v44  ;;  %v4778_v23 = vcombine.low %v6820_v26, %v6832_v0  ;;  %v878_v15 = vrot.slane %v876_v53, 4  ;;  %v4595_v46 = vld [vmem:[%s5889_s17 + $0x68] sm:$0x1]  ;;  %v724_v30 = vld [vmem:[%s5889_s17 + $0xb4] sm:$0xe] }
  0xb4   : > { %v1100_v21 = vrot.slane %v7988_v56, 4  ;;  %v1092_v57 = vrot.slane %v1091_v4, 4  ;;  %v1436_v47 = vsel %vm6130_vm5, %v1434_v36, %v1435_v38  ;;  %v877_v42 = vsel %vm6130_vm5, %v4554_v34, %v876_v53  ;;  %v6870_v6 = vld [vmem:[%s5889_s17 + $0xc4] sm:$0xf]  ;;  %v5781_v36 = vld [vmem:[%s5889_s17 + $0xb8] sm:$0xf] }
  0xb5   : > { %v1096_v8 = vrot.slane %v1094_v45, 5  ;;  %v1104_v51 = vshll.u32 %v4594_v1, 16  ;;  %v6861_v60 = vrot.slane %v1277_v29, 4  ;;  %v6863_v19 = vrot.slane %v1280_v16, 5  ;;  %v6929_v53 = vld [vmem:[%s5889_s17 + $0x80] sm:$0x1] }
  0xb6   : > { %v4802_v26 = vcombine.low %v1433_v52, %v1436_v47  ;;  %v880_v43 = vsel %vm6130_vm5, %v878_v15, %v879_v5  ;;  %v1301_v1 = vshrl.u32 %v6858_v48, 16  ;;  %v1304_v34 = vshll.u32 %v6858_v48, 16  ;;  %v4612_v5 = vld [vmem:[%s5889_s17 + $0x6c] sm:$0xe] }
  0xb7   : > { %v1101_v49 = vor.u32 %v1100_v21, %v1096_v8  ;;  %v1106_v38 = vrot.slane %v1104_v51, 5  ;;  %v4762_v29 = vcombine.low %v877_v42, %v880_v43  ;;  %v1097_v16 = vsel %vm5932_vm2, %v1092_v57, %v1096_v8  ;;  %v6891_v51 = vld [vmem:[%s5889_s17 + $0x74] sm:$0x1] }
  0xb8   : > { %v4627_v18 = vrot.slane %v4611_v13, 9  ;;  %v1439_v45 = vrot.slane %v6532_v41, 5  ;;  %v1442_v44 = vrot.slane %v4595_v46, 5  ;;  %v4555_v52 = vrot.slane %v724_v30, 9 }
  0xb9   : > { %3714 = vmatmul.mubr.bf16.gmra.mrb[68].mxu0 %v4785_v59  ;;  %v1102_v4 = vrot.slane %v1101_v49, 4  ;;  %v883_v56 = vrot.slane %v5781_v36, 5  ;;  %v1115_v59 = vor.u32 %v6548_v33, %v6546_v63  ;;  %v1118_v15 = vshll.u32 %v6532_v41, 16  ;;  %v6905_v36 = vld [vmem:[%s5889_s17 + $0x1c] sm:$0xf] }
  0xba   : > { %3617 = vmatmul.mubr.bf16.gmra.mrb[68].mxu1 %v4761_v24  ;;  %3721 = vmatprep.mubr.bf16.mxu0 %v4802_v26  ;;  %v5782_v24 = vld [vmem:[%s5889_s17 + $0xbc] sm:$0x1]  ;;  %v1440_v57 = vsel %vm6130_vm5, %v4627_v18, %v1439_v45  ;;  %v1441_v47 = vrot.slane %v1439_v45, 4  ;;  %v7989_v42 = vshrl.u32 %v6532_v41, 16  ;;  %v4779_v63 = vcombine.low %v6858_v48, %v6870_v6  ;;  %v6898_v18 = vld [vmem:[%s5889_s17 + $0x18] sm:$0xf] }
  0xbb   : > { %3624 = vmatprep.mubr.bf16.mxu1 %v4778_v23  ;;  %v886_v21 = vrot.slane %v5782_v24, 5  ;;  %v1107_v23 = vsel %vm5932_vm2, %v1102_v4, %v1106_v38  ;;  %v885_v33 = vrot.slane %v883_v56, 4  ;;  %v1116_v26 = vrot.slane %v1115_v59, 4  ;;  %v6908_v24 = vld [vmem:[%s5889_s17 + $0x20] sm:$0x1] }
  0xbc   : > { %v1124_v8 = vrot.slane %v7989_v42, 4  ;;  %v4786_v13 = vcombine.low %v1097_v16, %v1107_v23  ;;  %v1443_v43 = vsel %vm6130_vm5, %v1441_v47, %v1442_v44  ;;  %v1120_v30 = vrot.slane %v1118_v15, 5 }
  0xbd   : > { %v1128_v49 = vshll.u32 %v4595_v46, 16  ;;  %v4628_v38 = vrot.slane %v4612_v5, 9  ;;  %v4803_v41 = vcombine.low %v1440_v57, %v1443_v43  ;;  %v884_v4 = vsel %vm6130_vm5, %v4555_v52, %v883_v56 }
  0xbe   : > { %v1446_v45 = vrot.slane %v6544_v7, 5  ;;  %v1449_v16 = vrot.slane %v6891_v51, 5  ;;  %v887_v44 = vsel %vm6130_vm5, %v885_v33, %v886_v21  ;;  %v1121_v46 = vsel %vm5932_vm2, %v1116_v26, %v1120_v30 }
  0xbf   : > { %v1125_v5 = vor.u32 %v1124_v8, %v1120_v30  ;;  %v1130_v59 = vrot.slane %v1128_v49, 5  ;;  %v1553_v15 = vshrl.u32 %v6898_v18, 16  ;;  %v1556_v23 = vshll.u32 %v6898_v18, 16  ;;  %v4613_v49 = vld [vmem:[%s5889_s17 + $0x78] sm:$0xe] }
  0xc0   : > { %v1447_v52 = vsel %vm6130_vm5, %v4628_v38, %v1446_v45  ;;  %v1448_v56 = vrot.slane %v1446_v45, 4  ;;  %v1562_v21 = vshll.u32 %v6905_v36, 16  ;;  %v1566_v47 = vshrl.u32 %v6905_v36, 16 }
  0xc1   : > { %3722 = vmatmul.mubr.bf16.gmra.mrb[72].mxu0 %v4786_v13  ;;  %v1126_v57 = vrot.slane %v1125_v5, 4  ;;  %v1555_v8 = vrot.slane %v1553_v15, 4  ;;  %v1558_v13 = vrot.slane %v1556_v23, 5  ;;  %v1139_v33 = vor.u32 %v6591_v37, %v6571_v20 }
  0xc2   : > { %3625 = vmatmul.mubr.bf16.gmra.mrb[72].mxu1 %v4762_v29  ;;  %3729 = vmatprep.mubr.bf16.mxu0 %v4803_v41  ;;  %v1572_v29 = vshll.u32 %v6908_v24, 16  ;;  %v1450_v42 = vsel %vm6130_vm5, %v1448_v56, %v1449_v16  ;;  %v4763_v26 = vcombine.low %v884_v4, %v887_v44  ;;  %v1564_v43 = vrot.slane %v1562_v21, 5  ;;  %v6936_v4 = vld [vmem:[%s5889_s17 + $0x24] sm:$0xf] }
  0xc3   : > { %3632 = vmatprep.mubr.bf16.mxu1 %v4779_v63  ;;  %v1131_v63 = vsel %vm5932_vm2, %v1126_v57, %v1130_v59  ;;  %v1568_v30 = vrot.slane %v1566_v47, 4  ;;  %v4804_v41 = vcombine.low %v1447_v52, %v1450_v42  ;;  %v1559_v45 = vor.u32 %v1558_v13, %v1555_v8 }
  0xc4   : > { %v4787_v38 = vcombine.low %v1121_v46, %v1131_v63  ;;  %v1574_v5 = vrot.slane %v1572_v29, 5  ;;  %v1142_v56 = vshll.u32 %v6544_v7, 16  ;;  %v7990_v15 = vshrl.u32 %v6544_v7, 16  ;;  %v6943_v29 = vld [vmem:[%s5889_s17 + $0x28] sm:$0xf] }
  0xc5   : > { %v1569_v16 = vor.u32 %v1568_v30, %v1564_v43  ;;  %v1152_v37 = vshll.u32 %v6891_v51, 16  ;;  %v1560_v44 = vrot.slane %v1559_v45, 4  ;;  %v1140_v59 = vrot.slane %v1139_v33, 4  ;;  %v6953_v63 = vld [vmem:[%s5889_s17 + $0x2c] sm:$0x1] }
  0xc6   : > { %v1148_v20 = vrot.slane %v7990_v15, 4  ;;  %v4629_v23 = vrot.slane %v4613_v49, 9  ;;  %v1453_v46 = vrot.slane %v6589_v11, 5  ;;  %v1144_v57 = vrot.slane %v1142_v56, 5 }
  0xc7   : > { %v1570_v52 = vrot.slane %v1569_v16, 4  ;;  %v4812_v21 = vcombine.low %v6898_v18, %v6905_v36  ;;  %v1456_v47 = vrot.slane %v6929_v53, 5  ;;  %v1565_v7 = vsel %vm5932_vm2, %v1560_v44, %v1564_v43 }
  0xc8   : > { %v1154_v51 = vrot.slane %v1152_v37, 5  ;;  %v1455_v42 = vrot.slane %v1453_v46, 4  ;;  %v1577_v8 = vshrl.u32 %v6936_v4, 16  ;;  %v1149_v33 = vor.u32 %v1148_v20, %v1144_v57 }
  0xc9   : > { %3730 = vmatmul.mubr.bf16.gmra.mrb[76].mxu0 %v4787_v38  ;;  %v1575_v13 = vsel %vm5932_vm2, %v1570_v52, %v1574_v5  ;;  %v1454_v18 = vsel %vm6130_vm5, %v4629_v23, %v1453_v46  ;;  %v1586_v38 = vshll.u32 %v6943_v29, 16  ;;  %v1590_v16 = vshrl.u32 %v6943_v29, 16  ;;  %v4598_v52 = vld [vmem:[%s5889_s17 + $0x8c] sm:$0x1] }
  0xca   : > { %3633 = vmatmul.mubr.bf16.gmra.mrb[76].mxu1 %v4763_v26  ;;  %3737 = vmatprep.mubr.bf16.mxu0 %v4804_v41  ;;  %v1580_v26 = vshll.u32 %v6936_v4, 16  ;;  %v4828_v30 = vcombine.low %v1565_v7, %v1575_v13  ;;  %v1457_v43 = vsel %vm6130_vm5, %v1455_v42, %v1456_v47  ;;  %v1579_v49 = vrot.slane %v1577_v8, 4 }
  0xcb   : > { %v1145_v41 = vsel %vm5932_vm2, %v1140_v59, %v1144_v57  ;;  %v1150_v45 = vrot.slane %v1149_v33, 4  ;;  %v4805_v56 = vcombine.low %v1454_v18, %v1457_v43  ;;  %v1588_v15 = vrot.slane %v1586_v38, 5  ;;  %v4614_v57 = vld [vmem:[%s5889_s17 + $0x84] sm:$0xe] }
  0xcc   : > { %v1582_v5 = vrot.slane %v1580_v26, 5  ;;  %3834 = vmatprep.mubr.bf16.mxu1 %v4828_v30  ;;  %v1596_v20 = vshll.u32 %v6953_v63, 16  ;;  %v1163_v37 = vor.u32 %v6647_v58, %v6615_v39  ;;  %v1592_v46 = vrot.slane %v1590_v16, 4  ;;  %v6974_v58 = vld [vmem:[%s5889_s17 + $0x30] sm:$0xf] }
  0xcd   : > { %v1155_v44 = vsel %vm5932_vm2, %v1150_v45, %v1154_v51  ;;  %v1166_v59 = vshll.u32 %v6589_v11, 16  ;;  %v1172_v8 = vrot.slane %v1170_v14, 4  ;;  %v1176_v39 = vshll.u32 %v6929_v53, 16 }
  0xce   : > { %v1583_v23 = vor.u32 %v1582_v5, %v1579_v49  ;;  %v4788_v47 = vcombine.low %v1145_v41, %v1155_v44  ;;  %v1598_v7 = vrot.slane %v1596_v20, 5  ;;  %v1164_v42 = vrot.slane %v1163_v37, 4  ;;  %v6980_v49 = vld [vmem:[%s5889_s17 + $0x34] sm:$0xf] }
  0xcf   : > { %v1593_v33 = vor.u32 %v1592_v46, %v1588_v15  ;;  %v1168_v18 = vrot.slane %v1166_v59, 5  ;;  %v4813_v51 = vcombine.low %v6936_v4, %v6943_v29  ;;  %v4630_v26 = vrot.slane %v4614_v57, 9 }
  0xd0   : > { %v1584_v13 = vrot.slane %v1583_v23, 4  ;;  %v1460_v30 = vrot.slane %v6628_v62, 5  ;;  %v1463_v43 = vrot.slane %v4598_v52, 5  ;;  %v1601_v45 = vshrl.u32 %v6974_v58, 16 }
  0xd1   : > { %3738 = vmatmul.mubr.bf16.gmra.mrb[80].mxu0 %v4788_v47  ;;  %v1594_v14 = vrot.slane %v1593_v33, 4  ;;  %v1169_v53 = vsel %vm5932_vm2, %v1164_v42, %v1168_v18  ;;  %v1173_v38 = vor.u32 %v1172_v8, %v1168_v18  ;;  %v1610_v20 = vshll.u32 %v6980_v49, 16  ;;  %v7005_v18 = vld [vmem:[%s5889_s17 + $0x98] sm:$0x1] }
  0xd2   : > { %3835 = vmatmul.mubr.bf16.vlgmr.msra.gmra.mrb[80].mxu1 %v4812_v21  ;;  %3745 = vmatprep.mubr.bf16.mxu0 %v4805_v56  ;;  %v1589_v11 = vsel %vm5932_vm2, %v1584_v13, %v1588_v15  ;;  %v1178_v21 = vrot.slane %v1176_v39, 5  ;;  %v1461_v4 = vsel %vm6130_vm5, %v4630_v26, %v1460_v30  ;;  %v1462_v41 = vrot.slane %v1460_v30, 4  ;;  %v6992_v56 = vld [vmem:[%s5889_s17 + $0x38] sm:$0x1]  ;;  %v4615_v39 = vld [vmem:[%s5889_s17 + $0x90] sm:$0xe] }
  0xd3   : > { %v1599_v5 = vsel %vm5932_vm2, %v1594_v14, %v1598_v7  ;;  %v1174_v16 = vrot.slane %v1173_v38, 4  ;;  %v1604_v15 = vshll.u32 %v6974_v58, 16  ;;  %v1603_v23 = vrot.slane %v1601_v45, 4  ;;  %v7012_v14 = vld [vmem:[%s5889_s17 + $0x3c] sm:$0xf] }
  0xd4   : > { %v4829_v37 = vcombine.low %v1589_v11, %v1599_v5  ;;  %v1464_v44 = vsel %vm6130_vm5, %v1462_v41, %v1463_v43  ;;  %v1614_v46 = vshrl.u32 %v6980_v49, 16  ;;  %v1612_v7 = vrot.slane %v1610_v20, 5  ;;  %v7019_v5 = vld [vmem:[%s5889_s17 + $0x40] sm:$0xf]  ;;  %v7027_v20 = vld [vmem:[%s5889_s17 + $0x44] sm:$0x1] }
  0xd5   : > { %v1179_v59 = vsel %vm5932_vm2, %v1174_v16, %v1178_v21  ;;  %v4806_v57 = vcombine.low %v1461_v4, %v1464_v44  ;;  %v1606_v47 = vrot.slane %v1604_v15, 5  ;;  %v1620_v13 = vshll.u32 %v6992_v56, 16 }
  0xd6   : > { %3842 = vmatprep.mubr.bf16.mxu1 %v4829_v37  ;;  %v4789_v42 = vcombine.low %v1169_v53, %v1179_v59  ;;  %v1616_v8 = vrot.slane %v1614_v46, 4  ;;  %v1187_v33 = vor.u32 %v6695_v22, %v6654_v54  ;;  %v1190_v30 = vshll.u32 %v6628_v62, 16 }
  0xd7   : > { %v1607_v26 = vor.u32 %v1606_v47, %v1603_v23  ;;  %v1196_v43 = vrot.slane %v1194_v50, 4  ;;  %v1200_v11 = vshll.u32 %v4598_v52, 16  ;;  %v1622_v38 = vrot.slane %v1620_v13, 5 }
  0xd8   : > { %v1617_v53 = vor.u32 %v1616_v8, %v1612_v7  ;;  %v1188_v21 = vrot.slane %v1187_v33, 4  ;;  %v4814_v54 = vcombine.low %v6974_v58, %v6980_v49  ;;  %v1192_v4 = vrot.slane %v1190_v30, 5 }
  0xd9   : > { %3746 = vmatmul.mubr.bf16.gmra.mrb[84].mxu0 %v4789_v42  ;;  %v1608_v22 = vrot.slane %v1607_v26, 4  ;;  %v1202_v41 = vrot.slane %v1200_v11, 5  ;;  %v4631_v45 = vrot.slane %v4615_v39, 9  ;;  %v1467_v50 = vrot.slane %v6680_v12, 5 }
  0xda   : > { %3843 = vmatmul.mubr.bf16.gmra.mrb[84].mxu1 %v4813_v51  ;;  %3753 = vmatprep.mubr.bf16.mxu0 %v4806_v57  ;;  %v1618_v62 = vrot.slane %v1617_v53, 4  ;;  %v1470_v52 = vrot.slane %v7005_v18, 5  ;;  %v1625_v51 = vshrl.u32 %v7012_v14, 16  ;;  %v1193_v58 = vsel %vm5932_vm2, %v1188_v21, %v1192_v4  ;;  %v4616_v53 = vld [vmem:[%s5889_s17 + $0x9c] sm:$0xe] }
  0xdb   : > { %v1613_v16 = vsel %vm5932_vm2, %v1608_v22, %v1612_v7  ;;  %v1197_v15 = vor.u32 %v1196_v43, %v1192_v4  ;;  %v1628_v37 = vshll.u32 %v7012_v14, 16  ;;  %v1468_v23 = vsel %vm6130_vm5, %v4631_v45, %v1467_v50  ;;  %v7045_v45 = vld [vmem:[%s5889_s17 + $0xa4] sm:$0x1] }
  0xdc   : > { %v1623_v44 = vsel %vm5932_vm2, %v1618_v62, %v1622_v38  ;;  %v1469_v46 = vrot.slane %v1467_v50, 4  ;;  %v1627_v59 = vrot.slane %v1625_v51, 4  ;;  %v1634_v42 = vshll.u32 %v7019_v5, 16  ;;  %v7052_v50 = vld [vmem:[%s5889_s17 + $0x48] sm:$0xf] }
  0xdd   : > { %v4830_v57 = vcombine.low %v1613_v16, %v1623_v44  ;;  %v1198_v47 = vrot.slane %v1197_v15, 4  ;;  %v1630_v7 = vrot.slane %v1628_v37, 5  ;;  %v1638_v13 = vshrl.u32 %v7019_v5, 16 }
  0xde   : > { %v1471_v8 = vsel %vm6130_vm5, %v1469_v46, %v1470_v52  ;;  %v1644_v33 = vshll.u32 %v7027_v20, 16  ;;  %v1211_v39 = vor.u32 %v6738_v31, %v6705_v55  ;;  %v1636_v11 = vrot.slane %v1634_v42, 5 }
  0xdf   : > { %3850 = vmatprep.mubr.bf16.mxu1 %v4830_v57  ;;  %v1203_v26 = vsel %vm5932_vm2, %v1198_v47, %v1202_v41  ;;  %v4807_v30 = vcombine.low %v1468_v23, %v1471_v8  ;;  %v1631_v43 = vor.u32 %v1630_v7, %v1627_v59  ;;  %v1640_v21 = vrot.slane %v1638_v13, 4  ;;  %v7069_v57 = vld [vmem:[%s5889_s17 + $0x50] sm:$0x1] }
  0xe0   : > { %v4790_v38 = vcombine.low %v1193_v58, %v1203_v26  ;;  %v1646_v22 = vrot.slane %v1644_v33, 5  ;;  %v1212_v4 = vrot.slane %v1211_v39, 4  ;;  %v1214_v55 = vshll.u32 %v6680_v12, 16  ;;  %v7058_v58 = vld [vmem:[%s5889_s17 + $0x4c] sm:$0xf] }
  0xe1   : > { %v1632_v62 = vrot.slane %v1631_v43, 4  ;;  %v1220_v31 = vrot.slane %v1218_v28, 4  ;;  %v1224_v41 = vshll.u32 %v7005_v18, 16  ;;  %v1641_v52 = vor.u32 %v1640_v21, %v1636_v11 }
  0xe2   : > { %3851 = vmatmul.mubr.bf16.gmra.mrb[88].mxu1 %v4814_v54  ;;  %3754 = vmatmul.mubr.bf16.gmra.mrb[88].mxu0 %v4790_v38  ;;  %v4815_v54 = vcombine.low %v7012_v14, %v7019_v5  ;;  %v4632_v51 = vrot.slane %v4616_v53, 9  ;;  %v1474_v16 = vrot.slane %v6749_v9, 5  ;;  %v1216_v28 = vrot.slane %v1214_v55, 5 }
  0xe3   : > { %3761 = vmatprep.mubr.bf16.mxu0 %v4807_v30  ;;  %v1637_v12 = vsel %vm5932_vm2, %v1632_v62, %v1636_v11  ;;  %v1226_v15 = vrot.slane %v1224_v41, 5  ;;  %v1477_v18 = vrot.slane %v7045_v45, 5  ;;  %v1642_v37 = vrot.slane %v1641_v52, 4  ;;  %v4617_v41 = vld [vmem:[%s5889_s17 + $0xa8] sm:$0xe] }
  0xe4   : > { %v1475_v44 = vsel %vm6130_vm5, %v4632_v51, %v1474_v16  ;;  %v1476_v23 = vrot.slane %v1474_v16, 4  ;;  %v1649_v14 = vshrl.u32 %v7052_v50, 16  ;;  %v1217_v46 = vsel %vm5932_vm2, %v1212_v4, %v1216_v28 }
  0xe5   : > { %v1221_v59 = vor.u32 %v1220_v31, %v1216_v28  ;;  %v1652_v47 = vshll.u32 %v7052_v50, 16  ;;  %v1658_v7 = vshll.u32 %v7058_v58, 16  ;;  %v1647_v42 = vsel %vm5932_vm2, %v1642_v37, %v1646_v22  ;;  %v4601_v31 = vld [vmem:[%s5889_s17 + $0xb0] sm:$0x1] }
  0xe6   : > { %v1478_v8 = vsel %vm6130_vm5, %v1476_v23, %v1477_v18  ;;  %v1651_v13 = vrot.slane %v1649_v14, 4  ;;  %v1662_v33 = vshrl.u32 %v7058_v58, 16  ;;  %v4831_v39 = vcombine.low %v1637_v12, %v1647_v42  ;;  %v7092_v18 = vld [vmem:[%s5889_s17 + $0x54] sm:$0xf] }
  0xe7   : > { %v1222_v26 = vrot.slane %v1221_v59, 4  ;;  %v4808_v30 = vcombine.low %v1475_v44, %v1478_v8  ;;  %v1654_v43 = vrot.slane %v1652_v47, 5  ;;  %v1660_v11 = vrot.slane %v1658_v7, 5 }
  0xe8   : > { %v1664_v53 = vrot.slane %v1662_v33, 4  ;;  %v1668_v38 = vshll.u32 %v7069_v57, 16  ;;  %v1235_v21 = vor.u32 %v6780_v17, %v6751_v61  ;;  %3858 = vmatprep.mubr.bf16.mxu1 %v4831_v39  ;;  %v1238_v62 = vshll.u32 %v6749_v9, 16 }
  0xe9   : > { %v1227_v22 = vsel %vm5932_vm2, %v1222_v26, %v1226_v15  ;;  %v1655_v4 = vor.u32 %v1654_v43, %v1651_v13  ;;  %v1244_v55 = vrot.slane %v1242_v40, 4  ;;  %v1248_v28 = vshll.u32 %v7045_v45, 16 }
  0xea   : > { %v4791_v52 = vcombine.low %v1217_v46, %v1227_v22  ;;  %3859 = vmatmul.mubr.bf16.gmra.mrb[92].mxu1 %v4815_v54  ;;  %v1665_v51 = vor.u32 %v1664_v53, %v1660_v11  ;;  %v1670_v16 = vrot.slane %v1668_v38, 5  ;;  %v1236_v12 = vrot.slane %v1235_v21, 4  ;;  %v7096_v54 = vld [vmem:[%s5889_s17 + $0x58] sm:$0xf] }
  0xeb   : > { %v1656_v61 = vrot.slane %v1655_v4, 4  ;;  %v1240_v17 = vrot.slane %v1238_v62, 5  ;;  %v4816_v15 = vcombine.low %v7052_v50, %v7058_v58  ;;  %v4633_v40 = vrot.slane %v4617_v41, 9  ;;  %v7103_v50 = vld [vmem:[%s5889_s17 + $0x5c] sm:$0x1] }
  0xec   : > { %3762 = vmatmul.mubr.bf16.gmra.mrb[92].mxu0 %v4791_v52  ;;  %v1666_v9 = vrot.slane %v1665_v51, 4  ;;  %v1481_v37 = vrot.slane %v6790_v25, 5  ;;  %v1484_v44 = vrot.slane %v4601_v31, 5  ;;  %v1250_v46 = vrot.slane %v1248_v28, 5  ;;  %v4618_v4 = vld [vmem:[%s5889_s17 + $0xb4] sm:$0xe] }
  0xed   : > { %3769 = vmatprep.mubr.bf16.mxu0 %v4808_v30  ;;  %v1661_v23 = vsel %vm5932_vm2, %v1656_v61, %v1660_v11  ;;  %v1241_v45 = vsel %vm5932_vm2, %v1236_v12, %v1240_v17  ;;  %v1245_v14 = vor.u32 %v1244_v55, %v1240_v17  ;;  %v1673_v42 = vshrl.u32 %v7092_v18, 16  ;;  %v7122_v51 = vld [vmem:[%s5889_s17 + $0xbc] sm:$0x1]  ;;  %v7128_v28 = vld [vmem:[%s5889_s17 + $0x60] sm:$0xf] }
  0xee   : > { %v1671_v59 = vsel %vm5932_vm2, %v1666_v9, %v1670_v16  ;;  %v1482_v47 = vsel %vm6130_vm5, %v4633_v40, %v1481_v37  ;;  %v1483_v7 = vrot.slane %v1481_v37, 4  ;;  %v1676_v33 = vshll.u32 %v7092_v18, 16 }
  0xef   : > { %v4832_v8 = vcombine.low %v1661_v23, %v1671_v59  ;;  %v1246_v13 = vrot.slane %v1245_v14, 4  ;;  %v1682_v39 = vshll.u32 %v7096_v54, 16  ;;  %v1675_v30 = vrot.slane %v1673_v42, 4 }
  0xf0   : > { %v1485_v26 = vsel %vm6130_vm5, %v1483_v7, %v1484_v44  ;;  %v1686_v43 = vshrl.u32 %v7096_v54, 16  ;;  %v1692_v11 = vshll.u32 %v7103_v50, 16  ;;  %v1678_v21 = vrot.slane %v1676_v33, 5  ;;  %v7146_v7 = vld [vmem:[%s5889_s17 + $0x68] sm:$0x1] }
  0xf1   : > { %3866 = vmatprep.mubr.bf16.mxu1 %v4832_v8  ;;  %v1251_v53 = vsel %vm5932_vm2, %v1246_v13, %v1250_v46  ;;  %v4809_v38 = vcombine.low %v1482_v47, %v1485_v26  ;;  %v1684_v22 = vrot.slane %v1682_v39, 5  ;;  %v1259_v52 = vor.u32 %v6825_v3, %v6823_v32 }
  0xf2   : > { %v4792_v62 = vcombine.low %v1241_v45, %v1251_v53  ;;  %3867 = vmatmul.mubr.bf16.gmra.mrb[96].mxu1 %v4816_v15  ;;  %v1688_v55 = vrot.slane %v1686_v43, 4  ;;  %v1694_v41 = vrot.slane %v1692_v11, 5  ;;  %v1679_v16 = vor.u32 %v1678_v21, %v1675_v30 }
  0xf3   : > { %v1262_v12 = vshll.u32 %v6790_v25, 16  ;;  %v1268_v61 = vrot.slane %v1266_v10, 4  ;;  %v1272_v17 = vshll.u32 %v4601_v31, 16  ;;  %v1260_v15 = vrot.slane %v1259_v52, 4  ;;  %v7135_v31 = vld [vmem:[%s5889_s17 + $0x64] sm:$0xf] }
  0xf4   : > { %3770 = vmatmul.mubr.bf16.gmra.mrb[96].mxu0 %v4792_v62  ;;  %v1689_v9 = vor.u32 %v1688_v55, %v1684_v22  ;;  %v4817_v40 = vcombine.low %v7092_v18, %v7096_v54  ;;  %v4634_v32 = vrot.slane %v4618_v4, 9  ;;  %v1680_v3 = vrot.slane %v1679_v16, 4 }
  0xf5   : > { %3777 = vmatprep.mubr.bf16.mxu0 %v4809_v38  ;;  %v1264_v37 = vrot.slane %v1262_v12, 5  ;;  %v1274_v44 = vrot.slane %v1272_v17, 5  ;;  %v1488_v23 = vrot.slane %v6832_v0, 5  ;;  %v1491_v10 = vrot.slane %v7122_v51, 5 }
  0xf6   : > { %v1690_v25 = vrot.slane %v1689_v9, 4  ;;  %v1697_v45 = vshrl.u32 %v7128_v28, 16  ;;  %v1700_v14 = vshll.u32 %v7128_v28, 16  ;;  %v1685_v18 = vsel %vm5932_vm2, %v1680_v3, %v1684_v22  ;;  %v4619_v3 = vld [vmem:[%s5889_s17 + $0xc0] sm:$0xe] }
  0xf7   : > { %v1265_v46 = vsel %vm5932_vm2, %v1260_v15, %v1264_v37  ;;  %v1269_v59 = vor.u32 %v1268_v61, %v1264_v37  ;;  %v1489_v47 = vsel %vm6130_vm5, %v4634_v32, %v1488_v23  ;;  %v1490_v8 = vrot.slane %v1488_v23, 4 }
  0xf8   : > { %v1695_v42 = vsel %vm5932_vm2, %v1690_v25, %v1694_v41  ;;  %v1699_v13 = vrot.slane %v1697_v45, 4  ;;  %v1702_v33 = vrot.slane %v1700_v14, 5  ;;  %v1706_v30 = vshll.u32 %v7135_v31, 16 }
  0xf9   : > { %v4833_v39 = vcombine.low %v1685_v18, %v1695_v42  ;;  %v1270_v26 = vrot.slane %v1269_v59, 4  ;;  %v1710_v43 = vshrl.u32 %v7135_v31, 16  ;;  %v1492_v11 = vsel %vm6130_vm5, %v1490_v8, %v1491_v10  ;;  %v7180_v42 = vld [vmem:[%s5889_s17 + $0x6c] sm:$0xf]  ;;  %v7183_v8 = vld [vmem:[%s5889_s17 + $0x70] sm:$0xf] }
  0xfa   : > { %v1703_v53 = vor.u32 %v1702_v33, %v1699_v13  ;;  %v1716_v38 = vshll.u32 %v7146_v7, 16  ;;  %v1283_v21 = vor.u32 %v6863_v19, %v6861_v60  ;;  %v4810_v55 = vcombine.low %v1489_v47, %v1492_v11 }
  0xfb   : > { %3874 = vmatprep.mubr.bf16.mxu1 %v4833_v39  ;;  %v1275_v62 = vsel %vm5932_vm2, %v1270_v26, %v1274_v44  ;;  %v1708_v41 = vrot.slane %v1706_v30, 5  ;;  %v1712_v52 = vrot.slane %v1710_v43, 4  ;;  %v1286_v19 = vshll.u32 %v6832_v0, 16  ;;  %v7190_v30 = vld [vmem:[%s5889_s17 + $0x74] sm:$0x1] }
  0xfc   : > { %v4793_v61 = vcombine.low %v1265_v46, %v1275_v62  ;;  %3875 = vmatmul.mubr.bf16.gmra.mrb[100].mxu1 %v4817_v40  ;;  %v1704_v17 = vrot.slane %v1703_v53, 4  ;;  %v1718_v9 = vrot.slane %v1716_v38, 5  ;;  %v1292_v37 = vrot.slane %v1290_v2, 4  ;;  %v4603_v46 = vld [vmem:[%s5889_s17 + $0xc8] sm:$0x1] }
  0xfd   : > { %v1713_v60 = vor.u32 %v1712_v52, %v1708_v41  ;;  %v1296_v44 = vshll.u32 %v7122_v51, 16  ;;  %v1303_v40 = vrot.slane %v1301_v1, 4  ;;  %v1284_v10 = vrot.slane %v1283_v21, 4 }
  0xfe   : > { %3778 = vmatmul.mubr.bf16.gmra.mrb[100].mxu0 %v4793_v61  ;;  %v1709_v0 = vsel %vm5932_vm2, %v1704_v17, %v1708_v41  ;;  %v1288_v51 = vrot.slane %v1286_v19, 5  ;;  %v1306_v59 = vrot.slane %v1304_v34, 5  ;;  %v4635_v47 = vrot.slane %v4619_v3, 9 }
  0xff   : > { %3785 = vmatprep.mubr.bf16.mxu0 %v4810_v55  ;;  %v1714_v2 = vrot.slane %v1713_v60, 4  ;;  %v1298_v39 = vrot.slane %v1296_v44, 5  ;;  %v4818_v26 = vcombine.low %v7128_v28, %v7135_v31  ;;  %v1495_v34 = vrot.slane %v6870_v6, 5 }
 0x100   : > { %v1293_v33 = vor.u32 %v1292_v37, %v1288_v51  ;;  %v1289_v48 = vsel %vm5932_vm2, %v1284_v10, %v1288_v51  ;;  %v1498_v11 = vrot.slane %v4603_v46, 5  ;;  %v1721_v21 = vshrl.u32 %v7180_v42, 16 }
 0x101   : > { %v1719_v13 = vsel %vm5932_vm2, %v1714_v2, %v1718_v9  ;;  %v1496_v28 = vsel %vm6130_vm5, %v4635_v47, %v1495_v34  ;;  %v1497_v55 = vrot.slane %v1495_v34, 4  ;;  %v1734_v41 = vshrl.u32 %v7183_v8, 16 }
 0x102   : > { %v5111_v22 = vpop.f32.mrb[0].mxu0  ;;  %v5183_v4 = vpop.f32.mrb[0].mxu1  ;;  %v4834_v43 = vcombine.low %v1709_v0, %v1719_v13  ;;  %v1294_v38 = vrot.slane %v1293_v33, 4  ;;  %v1740_v52 = vshll.u32 %v7190_v30, 16  ;;  %v1723_v61 = vrot.slane %v1721_v21, 4 }
 0x103   : > { %v5112_v16 = vpop.f32.mrb[1].mxu0  ;;  %v5184_v12 = vpop.f32.mrb[1].mxu1  ;;  %v1499_v60 = vsel %vm6130_vm5, %v1497_v55, %v1498_v11  ;;  %v1736_v19 = vrot.slane %v1734_v41, 4  ;;  %v1310_v10 = vshll.u32 %v6870_v6, 16  ;;  %v7991_v47 = vshrl.u32 %v6870_v6, 16 }
 0x104   : > { %v5114_v15 = vpop.f32.mrb[2].mxu0  ;;  %v5186_v32 = vpop.f32.mrb[2].mxu1  ;;  %v7166_v45 = vadd.f32 %v5112_v16, %v5111_v22  ;;  %v7168_v14 = vadd.f32 %v5184_v12, %v5183_v4  ;;  %v1724_v22 = vshll.u32 %v7180_v42, 16  ;;  %v1730_v4 = vshll.u32 %v7183_v8, 16  ;;  %3882 = vmatprep.mubr.bf16.mxu1 %v4834_v43  ;;  %v4684_v41 = vld [vmem:[%s5889_s17 + $0x18] sm:$0xe] }
 0x105   : > { %v5115_v23 = vpop.f32.mrb[3].mxu0  ;;  %v5187_v25 = vpop.f32.mrb[3].mxu1  ;;  %v1299_v12 = vsel %vm5932_vm2, %v1294_v38, %v1298_v39  ;;  %3883 = vmatmul.mubr.bf16.gmra.mrb[104].mxu1 %v4818_v26  ;;  %v4811_v44 = vcombine.low %v1496_v28, %v1499_v60  ;;  %v1742_v51 = vrot.slane %v1740_v52, 5  ;;  %v1316_v13 = vrot.slane %v7991_v47, 4  ;;  %v7216_v38 = vld [vmem:[%s5889_s17 + $0x78] sm:$0xf] }
 0x106   : > { %v7172_v18 = vadd.f32 %v5115_v23, %v5114_v15  ;;  %v7177_v1 = vadd.f32 %v5187_v25, %v5186_v32  ;;  %v1726_v17 = vrot.slane %v1724_v22, 5  ;;  %v1732_v9 = vrot.slane %v1730_v4, 5  ;;  %v7221_v22 = vld [vmem:[%s5889_s17 + $0x7c] sm:$0xf]  ;;  %v7224_v4 = vld [vmem:[%s5889_s17 + $0x80] sm:$0x1] }
 0x107   : > { %v4794_v3 = vcombine.low %v1289_v48, %v1299_v12  ;;  %v1307_v25 = vor.u32 %v1306_v59, %v1303_v40  ;;  %v1320_v33 = vshll.u32 %v4603_v46, 16  ;;  %v1312_v48 = vrot.slane %v1310_v10, 5 }
 0x108   : > { %v1727_v23 = vor.u32 %v1726_v17, %v1723_v61  ;;  %v1737_v2 = vor.u32 %v1736_v19, %v1732_v9  ;;  %v4819_v28 = vcombine.low %v7180_v42, %v7183_v8  ;;  %v1745_v12 = vshrl.u32 %v7216_v38, 16 }
 0x109   : > { %3786 = vmatmul.mubr.bf16.gmra.mrb[104].mxu0 %v4794_v3  ;;  %v1308_v43 = vrot.slane %v1307_v25, 4  ;;  %v1317_v21 = vor.u32 %v1316_v13, %v1312_v48  ;;  %v1322_v46 = vrot.slane %v1320_v33, 5  ;;  %v1748_v61 = vshll.u32 %v7216_v38, 16 }
 0x10a   : > { %v5117_v53 = vpop.f32.mrb[4].mxu0  ;;  %v5189_v15 = vpop.f32.mrb[4].mxu1  ;;  %3793 = vmatprep.mubr.bf16.mxu0 %v4811_v44  ;;  %v1728_v26 = vrot.slane %v1727_v23, 4  ;;  %v1738_v59 = vrot.slane %v1737_v2, 4  ;;  %v1754_v17 = vshll.u32 %v7221_v22, 16  ;;  %v1747_v3 = vrot.slane %v1745_v12, 4 }
 0x10b   : > { %v5118_v62 = vpop.f32.mrb[5].mxu0  ;;  %v5190_v37 = vpop.f32.mrb[5].mxu1  ;;  %v1750_v60 = vrot.slane %v1748_v61, 5  ;;  %v4700_v19 = vrot.slane %v4684_v41, 9  ;;  %v2012_v23 = vrot.slane %v6953_v63, 5  ;;  %v2002_v13 = vrot.slane %v6905_v36, 5 }
 0x10c   : > { %v5120_v16 = vpop.f32.mrb[6].mxu0  ;;  %v5192_v0 = vpop.f32.mrb[6].mxu1  ;;  %v7209_v40 = vadd.f32 %v5118_v62, %v5117_v53  ;;  %v7211_v34 = vadd.f32 %v5190_v37, %v5189_v15  ;;  %v1733_v6 = vsel %vm5932_vm2, %v1728_v26, %v1732_v9  ;;  %v1743_v53 = vsel %vm5932_vm2, %v1738_v59, %v1742_v51  ;;  %v4685_v37 = vld [vmem:[%s5889_s17 + $0x24] sm:$0xe] }
 0x10d   : > { %v5121_v32 = vpop.f32.mrb[7].mxu0  ;;  %v5193_v39 = vpop.f32.mrb[7].mxu1  ;;  %v1313_v62 = vsel %vm5932_vm2, %v1308_v43, %v1312_v48  ;;  %v4835_v52 = vcombine.low %v1733_v6, %v1743_v53  ;;  %v1758_v9 = vshrl.u32 %v7221_v22, 16  ;;  %v1764_v15 = vshll.u32 %v7224_v4, 16 }
 0x10e   : > { %v7213_v11 = vadd.f32 %v5121_v32, %v5120_v16  ;;  %v7232_v55 = vadd.f32 %v5193_v39, %v5192_v0  ;;  %v1318_v16 = vrot.slane %v1317_v21, 4  ;;  %v1756_v10 = vrot.slane %v1754_v17, 5 }
 0x10f   : > { %3890 = vmatprep.mubr.bf16.mxu1 %v4835_v52  ;;  %v1760_v0 = vrot.slane %v1758_v9, 4  ;;  %v1751_v51 = vor.u32 %v1750_v60, %v1747_v3  ;;  %v1766_v47 = vrot.slane %v1764_v15, 5  ;;  %v2005_v33 = vrot.slane %v6908_v24, 5  ;;  %v7256_v52 = vld [vmem:[%s5889_s17 + $0x84] sm:$0xf] }
 0x110   : > { %7992 = vst [vmem:[#allocation2_spill] sm:$0xff] %v7232_v55  ;;  %v1323_v42 = vsel %vm5932_vm2, %v1318_v16, %v1322_v46  ;;  %3891 = vmatmul.mubr.bf16.gmra.mrb[108].mxu1 %v4819_v28  ;;  %v4701_v48 = vrot.slane %v4685_v37, 9  ;;  %v2009_v59 = vrot.slane %v6943_v29, 5  ;;  %v2003_v46 = vsel %vm6130_vm5, %v4700_v19, %v2002_v13  ;;  %v7267_v9 = vld [vmem:[%s5889_s17 + $0x88] sm:$0xf] }
 0x111   : > { %v4795_v25 = vcombine.low %v1313_v62, %v1323_v42  ;;  %v1761_v43 = vor.u32 %v1760_v0, %v1756_v10  ;;  %v1752_v21 = vrot.slane %v1751_v51, 4  ;;  %v2004_v53 = vrot.slane %v2002_v13, 4  ;;  %v7276_v60 = vld [vmem:[%s5889_s17 + $0x8c] sm:$0x1]  ;;  %v4686_v19 = vld [vmem:[%s5889_s17 + $0x30] sm:$0xe] }
 0x112   : > { %v5123_v32 = vpop.f32.mrb[8].mxu0  ;;  %v5195_v39 = vpop.f32.mrb[8].mxu1  ;;  %v2010_v28 = vsel %vm6130_vm5, %v4701_v48, %v2009_v59  ;;  %v2011_v41 = vrot.slane %v2009_v59, 4  ;;  %v4820_v61 = vcombine.low %v7216_v38, %v7221_v22  ;;  %v1769_v38 = vshrl.u32 %v7256_v52, 16  ;;  %v4687_v51 = vld [vmem:[%s5889_s17 + $0x3c] sm:$0xe] }
 0x113   : > { %v5124_v44 = vpop.f32.mrb[9].mxu0  ;;  %3794 = vmatmul.mubr.bf16.gmra.mrb[108].mxu0 %v4795_v25  ;;  %v5196_v6 = vpop.f32.mrb[9].mxu1  ;;  %v1762_v62 = vrot.slane %v1761_v43, 4  ;;  %v1757_v16 = vsel %vm5932_vm2, %v1752_v21, %v1756_v10  ;;  %v2006_v12 = vsel %vm6130_vm5, %v2004_v53, %v2005_v33  ;;  %v1772_v10 = vshll.u32 %v7256_v52, 16 }
 0x114   : > { %v5126_v2 = vpop.f32.mrb[10].mxu0  ;;  %v7247_v63 = vadd.f32 %v5124_v44, %v5123_v32  ;;  %v7251_v36 = vadd.f32 %v5196_v6, %v5195_v39  ;;  %v5198_v24 = vpop.f32.mrb[10].mxu1  ;;  %v4844_v32 = vcombine.low %v2003_v46, %v2006_v12  ;;  %v2013_v42 = vsel %vm6130_vm5, %v2011_v41, %v2012_v23 }
 0x115   : > { %v5127_v26 = vpop.f32.mrb[11].mxu0  ;;  %v5199_v29 = vpop.f32.mrb[11].mxu1  ;;  %v1767_v15 = vsel %vm5932_vm2, %v1762_v62, %v1766_v47  ;;  %v4845_v44 = vcombine.low %v2010_v28, %v2013_v42  ;;  %v1778_v0 = vshll.u32 %v7267_v9, 16  ;;  %v1771_v23 = vrot.slane %v1769_v38, 4  ;;  %v7298_v42 = vld [vmem:[%s5889_s17 + $0x90] sm:$0xf] }
 0x116   : > { %7993 = vst [vmem:[#allocation3_spill] sm:$0xff] %v7251_v36  ;;  %v7264_v17 = vadd.f32 %v5127_v26, %v5126_v2  ;;  %v7273_v3 = vadd.f32 %v5199_v29, %v5198_v24  ;;  %v4836_v37 = vcombine.low %v1757_v16, %v1767_v15  ;;  %5583 = vmatprep.mubr.bf16.mxu0 %v4844_v32  ;;  %v1782_v2 = vshrl.u32 %v7267_v9, 16 }
 0x117   : > { %v1788_v13 = vshll.u32 %v7276_v60, 16  ;;  %v4702_v33 = vrot.slane %v4686_v19, 9  ;;  %v2016_v39 = vrot.slane %v6980_v49, 5  ;;  %v1774_v43 = vrot.slane %v1772_v10, 5  ;;  %v7303_v19 = vld [vmem:[%s7975_s3] ss:$0 sm:$0xff] }
 0x118   : > { %7994 = vst [vmem:[#allocation4_spill] sm:$0xff] %v7273_v3  ;;  %3898 = vmatprep.mubr.bf16.mxu1 %v4836_v37  ;;  %v1780_v48 = vrot.slane %v1778_v0, 5  ;;  %v1784_v59 = vrot.slane %v1782_v2, 4  ;;  %v2019_v6 = vrot.slane %v6992_v56, 5  ;;  %v4703_v29 = vrot.slane %v4687_v51, 9 }
 0x119   : > { %3899 = vmatmul.mubr.bf16.gmra.mrb[112].mxu1 %v4820_v61  ;;  %v1790_v46 = vrot.slane %v1788_v13, 5  ;;  %v2017_v53 = vsel %vm6130_vm5, %v4702_v33, %v2016_v39  ;;  %v2018_v24 = vrot.slane %v2016_v39, 4  ;;  %v1775_v28 = vor.u32 %v1774_v43, %v1771_v23  ;;  %v7312_v2 = vld [vmem:[%s5889_s17 + $0x94] sm:$0xf]  ;;  %v7321_v13 = vld [vmem:[%s5889_s17 + $0x98] sm:$0x1] }
 0x11a   : > { %v1785_v41 = vor.u32 %v1784_v59, %v1780_v48  ;;  %v2023_v49 = vrot.slane %v7019_v5, 5  ;;  %v2026_v56 = vrot.slane %v7027_v20, 5  ;;  %v4821_v20 = vcombine.low %v7256_v52, %v7267_v9  ;;  %v4688_v33 = vld [vmem:[%s5889_s17 + $0x48] sm:$0xe] }
 0x11b   : > { %v5129_v25 = vpop.f32.mrb[12].mxu0  ;;  %5584 = vmatmul.mubr.bf16.vlgmr.msra.gmra.mrb[112].mxu0 %v4845_v44  ;;  %v2020_v12 = vsel %vm6130_vm5, %v2018_v24, %v2019_v6  ;;  %v1776_v5 = vrot.slane %v1775_v28, 4  ;;  %v1793_v52 = vshrl.u32 %v7298_v42, 16  ;;  %v3354_v39 = vadd.f32 %v7166_v45, %v7303_v19 }
 0x11c   : > { %v5130_v47 = vpop.f32.mrb[13].mxu0  ;;  %v1786_v37 = vrot.slane %v1785_v41, 4  ;;  %v4846_v44 = vcombine.low %v2017_v53, %v2020_v12  ;;  %v2025_v10 = vrot.slane %v2023_v49, 4  ;;  %v3357_v59 = vadd.f32 %v7172_v18, %v7303_v19  ;;  %v4689_v53 = vld [vmem:[%s5889_s17 + $0x54] sm:$0xe] }
 0x11d   : > { %v5132_v26 = vpop.f32.mrb[14].mxu0  ;;  %v5201_v62 = vpop.f32.mrb[12].mxu1  ;;  %v7293_v61 = vadd.f32 %v5130_v47, %v5129_v25  ;;  %v2024_v25 = vsel %vm6130_vm5, %v4703_v29, %v2023_v49  ;;  %v1781_v51 = vsel %vm5932_vm2, %v1776_v5, %v1780_v48  ;;  %v1796_v48 = vshll.u32 %v7298_v42, 16 }
 0x11e   : > { %v5133_v21 = vpop.f32.mrb[15].mxu0  ;;  %v5202_v16 = vpop.f32.mrb[13].mxu1  ;;  %v1791_v47 = vsel %vm5932_vm2, %v1786_v37, %v1790_v46  ;;  %5587 = vmatprep.mubr.bf16.mxu0 %v4846_v44  ;;  %v2027_v43 = vsel %vm6130_vm5, %v2025_v10, %v2026_v56  ;;  %v1802_v46 = vshll.u32 %v7312_v2, 16  ;;  %v1806_v28 = vshrl.u32 %v7312_v2, 16 }
 0x11f   : > { %v7295_v15 = vadd.f32 %v5202_v16, %v5201_v62  ;;  %v5204_v32 = vpop.f32.mrb[14].mxu1  ;;  %v7309_v0 = vadd.f32 %v5133_v21, %v5132_v26  ;;  %v4837_v26 = vcombine.low %v1781_v51, %v1791_v47  ;;  %v4847_v6 = vcombine.low %v2024_v25, %v2027_v43 }
 0x120   : > { %v5205_v38 = vpop.f32.mrb[15].mxu1  ;;  %v1795_v21 = vrot.slane %v1793_v52, 4  ;;  %v1798_v62 = vrot.slane %v1796_v48, 5  ;;  %v1812_v45 = vshll.u32 %v7321_v13, 16  ;;  %v4704_v41 = vrot.slane %v4688_v33, 9 }
 0x121   : > { %7995 = vst [vmem:[#allocation5_spill] sm:$0xff] %v7295_v15  ;;  %v7318_v23 = vadd.f32 %v5205_v38, %v5204_v32  ;;  %3906 = vmatprep.mubr.bf16.mxu1 %v4837_v26  ;;  %v7338_v16 = vadd.f32 %v7209_v40, %v7303_v19  ;;  %v1804_v18 = vrot.slane %v1802_v46, 5  ;;  %v2030_v12 = vrot.slane %v7058_v58, 5 }
 0x122   : > { %3907 = vmatmul.mubr.bf16.gmra.mrb[116].mxu1 %v4821_v20  ;;  %v2033_v56 = vrot.slane %v7069_v57, 5  ;;  %v1799_v37 = vor.u32 %v1798_v62, %v1795_v21  ;;  %v1808_v44 = vrot.slane %v1806_v28, 4  ;;  %v1814_v38 = vrot.slane %v1812_v45, 5  ;;  %v7364_v28 = vld [vmem:[%s5889_s17 + $0xa0] sm:$0xf] }
 0x123   : > { %7996 = vst [vmem:[#allocation6_spill] sm:$0xff] %v7318_v23  ;;  %5588 = vmatmul.mubr.bf16.gmra.mrb[116].mxu0 %v4847_v6  ;;  %v4705_v25 = vrot.slane %v4689_v53, 9  ;;  %v2031_v40 = vsel %vm6130_vm5, %v4704_v41, %v2030_v12  ;;  %v2032_v47 = vrot.slane %v2030_v12, 4  ;;  %v2037_v20 = vrot.slane %v7096_v54, 5  ;;  %v7355_v54 = vld [vmem:[%s5889_s17 + $0x9c] sm:$0xf] }
 0x124   : > { %v5135_v24 = vpop.f32.mrb[16].mxu0  ;;  %v2040_v58 = vrot.slane %v7103_v50, 5  ;;  %v1800_v57 = vrot.slane %v1799_v37, 4  ;;  %v1809_v33 = vor.u32 %v1808_v44, %v1804_v18  ;;  %v7359_v50 = vadd.f32 %v7213_v11, %v7303_v19  ;;  %v7373_v12 = vld [vmem:[%s5889_s17 + $0xa4] sm:$0x1] }
 0x125   : > { %v5223_v29 = vpop.f32.mrb[16].mxu1  ;;  %v5136_v49 = vpop.f32.mrb[17].mxu0  ;;  %v2034_v48 = vsel %vm6130_vm5, %v2032_v47, %v2033_v56  ;;  %v2038_v6 = vsel %vm6130_vm5, %v4705_v25, %v2037_v20  ;;  %v2039_v21 = vrot.slane %v2037_v20, 4  ;;  %v4822_v45 = vcombine.low %v7298_v42, %v7312_v2  ;;  %v4690_v11 = vld [vmem:[%s5889_s17 + $0x60] sm:$0xe] }
 0x126   : > { %v5224_v32 = vpop.f32.mrb[17].mxu1  ;;  %v5138_v5 = vpop.f32.mrb[18].mxu0  ;;  %v7346_v26 = vadd.f32 %v5136_v49, %v5135_v24  ;;  %v1805_v53 = vsel %vm5932_vm2, %v1800_v57, %v1804_v18  ;;  %v1810_v24 = vrot.slane %v1809_v33, 4  ;;  %v4848_v62 = vcombine.low %v2031_v40, %v2034_v48 }
 0x127   : > { %v5226_v10 = vpop.f32.mrb[18].mxu1  ;;  %v5139_v51 = vpop.f32.mrb[19].mxu0  ;;  %v5225_v43 = vadd.f32 %v5224_v32, %v5223_v29  ;;  %v2041_v41 = vsel %vm6130_vm5, %v2039_v21, %v2040_v58  ;;  %v1817_v32 = vshrl.u32 %v7355_v54, 16  ;;  %v1836_v58 = vshll.u32 %v7373_v12, 16 }
 0x128   : > { %v5227_v52 = vpop.f32.mrb[19].mxu1  ;;  %v7352_v46 = vadd.f32 %v5139_v51, %v5138_v5  ;;  %v1815_v18 = vsel %vm5932_vm2, %v1810_v24, %v1814_v38  ;;  %5591 = vmatprep.mubr.bf16.mxu0 %v4848_v62  ;;  %v4849_v56 = vcombine.low %v2038_v6, %v2041_v41  ;;  %v1820_v5 = vshll.u32 %v7355_v54, 16  ;;  %v4691_v51 = vld [vmem:[%s5889_s17 + $0x6c] sm:$0xe] }
 0x129   : > { %v7370_v29 = vadd.f32 %v5225_v43, %v3354_v39  ;;  %v5228_v49 = vadd.f32 %v5227_v52, %v5226_v10  ;;  %v4838_v44 = vcombine.low %v1805_v53, %v1815_v18  ;;  %v1826_v39 = vshll.u32 %v7364_v28, 16 }
 0x12a   : > { %v1830_v10 = vshrl.u32 %v7364_v28, 16  ;;  %v1819_v38 = vrot.slane %v1817_v32, 4  ;;  %v1822_v20 = vrot.slane %v1820_v5, 5  ;;  %v4706_v52 = vrot.slane %v4690_v11, 9 }
 0x12b   : > { %v7380_v25 = vadd.f32 %v5228_v49, %v3357_v59  ;;  %5592 = vmatmul.mubr.bf16.gmra.mrb[120].mxu0 %v4849_v56  ;;  %3914 = vmatprep.mubr.bf16.mxu1 %v4838_v44  ;;  %v1828_v43 = vrot.slane %v1826_v39, 5  ;;  %v2044_v59 = vrot.slane %v7135_v31, 5  ;;  %v2047_v6 = vrot.slane %v7146_v7, 5 }
 0x12c   : > { %v5141_v42 = vpop.f32.mrb[20].mxu0  ;;  %v1832_v48 = vrot.slane %v1830_v10, 4  ;;  %v7390_v24 = vadd.f32 %v7247_v63, %v7303_v19  ;;  %3915 = vmatmul.mubr.bf16.gmra.mrb[120].mxu1 %v4822_v45  ;;  %v1823_v62 = vor.u32 %v1822_v20, %v1819_v38  ;;  %v1838_v41 = vrot.slane %v1836_v58, 5 }
 0x12d   : > { %v5229_v37 = vpop.f32.mrb[20].mxu1  ;;  %v5142_v40 = vpop.f32.mrb[21].mxu0  ;;  %v4707_v49 = vrot.slane %v4691_v51, 9  ;;  %v2045_v18 = vsel %vm6130_vm5, %v4706_v52, %v2044_v59  ;;  %v2046_v56 = vrot.slane %v2044_v59, 4  ;;  %v2051_v31 = vrot.slane %v7183_v8, 5 }
 0x12e   : > { %v5230_v47 = vpop.f32.mrb[21].mxu1  ;;  %v5144_v57 = vpop.f32.mrb[22].mxu0  ;;  %v1833_v11 = vor.u32 %v1832_v48, %v1828_v43  ;;  %v1824_v7 = vrot.slane %v1823_v62, 4  ;;  %v2054_v32 = vrot.slane %v7190_v30, 5  ;;  %v7396_v5 = vadd.f32 %v5142_v40, %v5141_v42  ;;  %v7403_v51 = vld [vmem:[%s5889_s17 + $0xa8] sm:$0xf] }
 0x12f   : > { %v5232_v33 = vpop.f32.mrb[22].mxu1  ;;  %v5145_v21 = vpop.f32.mrb[23].mxu0  ;;  %v5231_v63 = vadd.f32 %v5230_v47, %v5229_v37  ;;  %v2048_v45 = vsel %vm6130_vm5, %v2046_v56, %v2047_v6  ;;  %v2052_v39 = vsel %vm6130_vm5, %v4707_v49, %v2051_v31  ;;  %v2053_v10 = vrot.slane %v2051_v31, 4  ;;  %v7413_v37 = vld [vmem:[%s5889_s17 + $0xac] sm:$0xf] }
 0x130   : > { %v5233_v53 = vpop.f32.mrb[23].mxu1  ;;  %v1834_v44 = vrot.slane %v1833_v11, 4  ;;  %v1829_v8 = vsel %vm5932_vm2, %v1824_v7, %v1828_v43  ;;  %v4850_v38 = vcombine.low %v2045_v18, %v2048_v45  ;;  %v4823_v30 = vcombine.low %v7355_v54, %v7364_v28  ;;  %v7422_v48 = vld [vmem:[%s5889_s17 + $0xb0] sm:$0x1]  ;;  %v4692_v54 = vld [vmem:[%s5889_s17 + $0x78] sm:$0xe] }
 0x131   : > { %v7410_v42 = vadd.f32 %v5231_v63, %v7338_v16  ;;  %v2055_v58 = vsel %vm6130_vm5, %v2053_v10, %v2054_v32  ;;  %v7419_v52 = vadd.f32 %v5145_v21, %v5144_v57  ;;  %v5234_v43 = vadd.f32 %v5233_v53, %v5232_v33  ;;  %v4693_v56 = vld [vmem:[%s5889_s17 + $0x84] sm:$0xe] }
 0x132   : > { %v1839_v20 = vsel %vm5932_vm2, %v1834_v44, %v1838_v41  ;;  %5595 = vmatprep.mubr.bf16.mxu0 %v4850_v38  ;;  %v4851_v62 = vcombine.low %v2052_v39, %v2055_v58  ;;  %v1841_v49 = vshrl.u32 %v7403_v51, 16  ;;  %v1844_v11 = vshll.u32 %v7403_v51, 16 }
 0x133   : > { %v4839_v6 = vcombine.low %v1829_v8, %v1839_v20  ;;  %v3373_v57 = vadd.f32 %v7264_v17, %v7303_v19  ;;  %v7430_v33 = vadd.f32 %v5234_v43, %v7359_v50  ;;  %v1850_v21 = vshll.u32 %v7413_v37, 16 }
 0x134   : > { %v5147_v40 = vpop.f32.mrb[24].mxu0  ;;  %v1854_v53 = vshrl.u32 %v7413_v37, 16  ;;  %5596 = vmatmul.mubr.bf16.gmra.mrb[124].mxu0 %v4851_v62  ;;  %v1843_v32 = vrot.slane %v1841_v49, 4  ;;  %v1846_v63 = vrot.slane %v1844_v11, 5  ;;  %v1860_v44 = vshll.u32 %v7422_v48, 16 }
 0x135   : > { %v5235_v47 = vpop.f32.mrb[24].mxu1  ;;  %v5148_v59 = vpop.f32.mrb[25].mxu0  ;;  %3922 = vmatprep.mubr.bf16.mxu1 %v4839_v6  ;;  %v4708_v45 = vrot.slane %v4692_v54, 9  ;;  %v1852_v39 = vrot.slane %v1850_v21, 5  ;;  %v2058_v50 = vrot.slane %v7221_v22, 5  ;;  %v2061_v10 = vrot.slane %v7224_v4, 5 }
 0x136   : > { %v5236_v16 = vpop.f32.mrb[25].mxu1  ;;  %v5150_v41 = vpop.f32.mrb[26].mxu0  ;;  %3923 = vmatmul.mubr.bf16.gmra.mrb[124].mxu1 %v4823_v30  ;;  %v1856_v17 = vrot.slane %v1854_v53, 4  ;;  %v7440_v8 = vadd.f32 %v7293_v61, %v7303_v19  ;;  %v1847_v38 = vor.u32 %v1846_v63, %v1843_v32  ;;  %v1862_v20 = vrot.slane %v1860_v44, 5  ;;  %v7463_v44 = vld [vmem:[%s5889_s17 + $0xb8] sm:$0xf] }
 0x137   : > { %v5238_v18 = vpop.f32.mrb[26].mxu1  ;;  %v5151_v31 = vpop.f32.mrb[27].mxu0  ;;  %v4709_v58 = vrot.slane %v4693_v56, 9  ;;  %v2059_v6 = vsel %vm6130_vm5, %v4708_v45, %v2058_v50  ;;  %v2060_v54 = vrot.slane %v2058_v50, 4  ;;  %v2065_v30 = vrot.slane %v7267_v9, 5 }
 0x138   : > { %v5239_v7 = vpop.f32.mrb[27].mxu1  ;;  %v1857_v43 = vor.u32 %v1856_v17, %v1852_v39  ;;  %v1848_v62 = vrot.slane %v1847_v38, 4  ;;  %v2068_v22 = vrot.slane %v7276_v60, 5  ;;  %v7446_v4 = vadd.f32 %v5148_v59, %v5147_v40  ;;  %v7453_v9 = vld [vmem:[%s5889_s17 + $0xb4] sm:$0xf] }
 0x139   : > { %v5237_v49 = vadd.f32 %v5236_v16, %v5235_v47  ;;  %v2062_v53 = vsel %vm6130_vm5, %v2060_v54, %v2061_v10  ;;  %v2066_v56 = vsel %vm6130_vm5, %v4709_v58, %v2065_v30  ;;  %v2067_v32 = vrot.slane %v2065_v30, 4 }
 0x13a   : > { %v1858_v21 = vrot.slane %v1857_v43, 4  ;;  %v1853_v40 = vsel %vm5932_vm2, %v1848_v62, %v1852_v39  ;;  %v4852_v47 = vcombine.low %v2059_v6, %v2062_v53  ;;  %v4824_v59 = vcombine.low %v7403_v51, %v7413_v37  ;;  %v7476_v51 = vld [vmem:[%s5889_s17 + $0xbc] sm:$0x1] }
 0x13b   : > { %v7460_v16 = vadd.f32 %v5237_v49, %v7390_v24  ;;  %v2069_v10 = vsel %vm6130_vm5, %v2067_v32, %v2068_v22  ;;  %v7473_v39 = vadd.f32 %v5151_v31, %v5150_v41  ;;  %v5240_v38 = vadd.f32 %v5239_v7, %v5238_v18  ;;  %v4694_v24 = vld [vmem:[%s5889_s17 + $0x90] sm:$0xe]  ;;  %v4695_v31 = vld [vmem:[%s5889_s17 + $0x9c] sm:$0xe] }
 0x13c   : > { %v5153_v61 = vpop.f32.mrb[28].mxu0  ;;  %v1863_v50 = vsel %vm5932_vm2, %v1858_v21, %v1862_v20  ;;  %5599 = vmatprep.mubr.bf16.mxu0 %v4852_v47  ;;  %v4853_v54 = vcombine.low %v2066_v56, %v2069_v10  ;;  %v1865_v30 = vshrl.u32 %v7453_v9, 16  ;;  %v1868_v62 = vshll.u32 %v7453_v9, 16 }
 0x13d   : > { %v5241_v11 = vpop.f32.mrb[28].mxu1  ;;  %v5154_v63 = vpop.f32.mrb[29].mxu0  ;;  %v4840_v6 = vcombine.low %v1853_v40, %v1863_v50  ;;  %v3381_v20 = vadd.f32 %v7309_v0, %v7303_v19  ;;  %v7483_v22 = vadd.f32 %v5240_v38, %v3373_v57  ;;  %v1874_v41 = vshll.u32 %v7463_v44, 16 }
 0x13e   : > { %v5242_v60 = vpop.f32.mrb[29].mxu1  ;;  %v7465_v45 = vpop.f32.mrb[30].mxu0  ;;  %v1878_v18 = vshrl.u32 %v7463_v44, 16  ;;  %5600 = vmatmul.mubr.bf16.gmra.mrb[128].mxu0 %v4853_v54  ;;  %v1867_v7 = vrot.slane %v1865_v30, 4  ;;  %v1870_v49 = vrot.slane %v1868_v62, 5  ;;  %v1884_v21 = vshll.u32 %v7476_v51, 16 }
 0x13f   : > { %v7467_v17 = vpop.f32.mrb[30].mxu1  ;;  %v5157_v58 = vpop.f32.mrb[31].mxu0  ;;  %3930 = vmatprep.mubr.bf16.mxu1 %v4840_v6  ;;  %v4710_v53 = vrot.slane %v4694_v24, 9  ;;  %v1876_v56 = vrot.slane %v1874_v41, 5  ;;  %v2072_v40 = vrot.slane %v7312_v2, 5  ;;  %v2075_v0 = vrot.slane %v7321_v13, 5 }
 0x140   : > { %v5245_v43 = vpop.f32.mrb[31].mxu1  ;;  %3931 = vmatmul.mubr.bf16.gmra.mrb[128].mxu1 %v4824_v59  ;;  %v1880_v32 = vrot.slane %v1878_v18, 4  ;;  %v7493_v57 = vadd.f32 %v7346_v26, %v7303_v19  ;;  %v1871_v47 = vor.u32 %v1870_v49, %v1867_v7  ;;  %v1886_v50 = vrot.slane %v1884_v21, 5 }
 0x141   : > { %v4711_v10 = vrot.slane %v4695_v31, 9  ;;  %v2073_v59 = vsel %vm6130_vm5, %v4710_v53, %v2072_v40  ;;  %v2074_v24 = vrot.slane %v2072_v40, 4  ;;  %v2079_v2 = vrot.slane %v7364_v28, 5 }
 0x142   : > { %v1881_v54 = vor.u32 %v1880_v32, %v1876_v56  ;;  %v1872_v26 = vrot.slane %v1871_v47, 4  ;;  %v2082_v62 = vrot.slane %v7373_v12, 5  ;;  %v7507_v41 = vadd.f32 %v5154_v63, %v5153_v61  ;;  %v7518_v32 = vld [vmem:[%s5889_s17 + $0xc0] sm:$0xf] }
 0x143   : > { %v5243_v18 = vadd.f32 %v5242_v60, %v5241_v11  ;;  %v2076_v28 = vsel %vm6130_vm5, %v2074_v24, %v2075_v0  ;;  %v2080_v21 = vsel %vm6130_vm5, %v4711_v10, %v2079_v2  ;;  %v2081_v53 = vrot.slane %v2079_v2, 4  ;;  %v7532_v0 = vld [vmem:[%s5889_s17 + $0xc4] sm:$0xf] }
 0x144   : > { %v7495_v38 = vpop.f32.mrb[32].mxu0  ;;  %v1882_v49 = vrot.slane %v1881_v54, 4  ;;  %v1877_v11 = vsel %vm5932_vm2, %v1872_v26, %v1876_v56  ;;  %v4854_v63 = vcombine.low %v2073_v59, %v2076_v28  ;;  %v4825_v60 = vcombine.low %v7453_v9, %v7463_v44  ;;  %v7543_v59 = vld [vmem:[%s5889_s17 + $0xc8] sm:$0x1]  ;;  %v4696_v9 = vld [vmem:[%s5889_s17 + $0xa8] sm:$0xe] }
 0x145   : > { %v7497_v6 = vpop.f32.mrb[32].mxu1  ;;  %v7502_v13 = vpop.f32.mrb[33].mxu0  ;;  %v7529_v40 = vadd.f32 %v5243_v18, %v7440_v8  ;;  %v2083_v10 = vsel %vm6130_vm5, %v2081_v53, %v2082_v62  ;;  %v7539_v54 = vadd.f32 %v5157_v58, %v7465_v45  ;;  %v5246_v56 = vadd.f32 %v5245_v43, %v7467_v17  ;;  %v4697_v17 = vld [vmem:[%s5889_s17 + $0xb4] sm:$0xe] }
 0x146   : > { %v7504_v30 = vpop.f32.mrb[33].mxu1  ;;  %v7509_v31 = vpop.f32.mrb[34].mxu0  ;;  %v1887_v47 = vsel %vm5932_vm2, %v1882_v49, %v1886_v50  ;;  %5603 = vmatprep.mubr.bf16.mxu0 %v4854_v63  ;;  %v4855_v8 = vcombine.low %v2080_v21, %v2083_v10  ;;  %v1889_v2 = vshrl.u32 %v7518_v32, 16  ;;  %v1892_v26 = vshll.u32 %v7518_v32, 16 }
 0x147   : > { %v7511_v7 = vpop.f32.mrb[34].mxu1  ;;  %v7520_v12 = vpop.f32.mrb[35].mxu0  ;;  %v4841_v24 = vcombine.low %v1877_v11, %v1887_v47  ;;  %v3389_v50 = vadd.f32 %v7352_v46, %v7303_v19  ;;  %v7550_v18 = vadd.f32 %v5246_v56, %v3381_v20  ;;  %v1898_v45 = vshll.u32 %v7532_v0, 16 }
 0x148   : > { %v7522_v61 = vpop.f32.mrb[35].mxu1  ;;  %v1902_v58 = vshrl.u32 %v7532_v0, 16  ;;  %5604 = vmatmul.mubr.bf16.gmra.mrb[132].mxu0 %v4855_v8  ;;  %v1891_v43 = vrot.slane %v1889_v2, 4  ;;  %v1894_v62 = vrot.slane %v1892_v26, 5  ;;  %v1908_v49 = vshll.u32 %v7543_v59, 16 }
 0x149   : > { %3938 = vmatprep.mubr.bf16.mxu1 %v4841_v24  ;;  %v4712_v28 = vrot.slane %v4696_v9, 9  ;;  %v1900_v46 = vrot.slane %v1898_v45, 5  ;;  %v2086_v11 = vrot.slane %v7413_v37, 5  ;;  %v2089_v63 = vrot.slane %v7422_v48, 5 }
 0x14a   : > { %3939 = vmatmul.mubr.bf16.gmra.mrb[132].mxu1 %v4825_v60  ;;  %v1904_v20 = vrot.slane %v1902_v58, 4  ;;  %v7568_v56 = vadd.f32 %v7396_v5, %v7303_v19  ;;  %v1895_v9 = vor.u32 %v1894_v62, %v1891_v43  ;;  %v1910_v24 = vrot.slane %v1908_v49, 5 }
 0x14b   : > { %v4713_v8 = vrot.slane %v4697_v17, 9  ;;  %v2087_v37 = vsel %vm6130_vm5, %v4712_v28, %v2086_v11  ;;  %v2088_v48 = vrot.slane %v2086_v11, 4  ;;  %v2093_v45 = vrot.slane %v7463_v44, 5 }
 0x14c   : > { %v7556_v21 = vpop.f32.mrb[36].mxu0  ;;  %v1905_v26 = vor.u32 %v1904_v20, %v1900_v46  ;;  %v1896_v43 = vrot.slane %v1895_v9, 4  ;;  %v2096_v17 = vrot.slane %v7476_v51, 5  ;;  %v7584_v62 = vadd.f32 %v7502_v13, %v7495_v38  ;;  %v7593_v9 = vld [vmem:[%s5889_s17 + $0xcc] sm:$0xf] }
 0x14d   : > { %v7558_v53 = vpop.f32.mrb[36].mxu1  ;;  %v7562_v47 = vpop.f32.mrb[37].mxu0  ;;  %v5249_v49 = vadd.f32 %v7504_v30, %v7497_v6  ;;  %v2090_v44 = vsel %vm6130_vm5, %v2088_v48, %v2089_v63  ;;  %v2094_v20 = vsel %vm6130_vm5, %v4713_v8, %v2093_v45  ;;  %v2095_v11 = vrot.slane %v2093_v45, 4  ;;  %v7603_v30 = vld [vmem:[%s5889_s17 + $0xd0] sm:$0xf] }
 0x14e   : > { %v7564_v10 = vpop.f32.mrb[37].mxu1  ;;  %v7570_v2 = vpop.f32.mrb[38].mxu0  ;;  %v1906_v28 = vrot.slane %v1905_v26, 4  ;;  %v1901_v51 = vsel %vm5932_vm2, %v1896_v43, %v1900_v46  ;;  %v4856_v38 = vcombine.low %v2087_v37, %v2090_v44  ;;  %v4826_v13 = vcombine.low %v7518_v32, %v7532_v0  ;;  %v4683_v32 = vld [vmem:[%s5889_s17 + $0xd4] sm:$0x1] }
 0x14f   : > { %v7572_v60 = vpop.f32.mrb[38].mxu1  ;;  %v7577_v58 = vpop.f32.mrb[39].mxu0  ;;  %v7600_v6 = vadd.f32 %v5249_v49, %v7493_v57  ;;  %v2097_v8 = vsel %vm6130_vm5, %v2095_v11, %v2096_v17  ;;  %v7611_v26 = vadd.f32 %v7520_v12, %v7509_v31  ;;  %v5252_v46 = vadd.f32 %v7522_v61, %v7511_v7  ;;  %v4698_v37 = vld [vmem:[%s5889_s17 + $0xc0] sm:$0xe]  ;;  %v4699_v12 = vld [vmem:[%s5889_s17 + $0xcc] sm:$0xe] }
 0x150   : > { %v7579_v5 = vpop.f32.mrb[39].mxu1  ;;  %v1911_v63 = vsel %vm5932_vm2, %v1906_v28, %v1910_v24  ;;  %5607 = vmatprep.mubr.bf16.mxu0 %v4856_v38  ;;  %v4857_v48 = vcombine.low %v2094_v20, %v2097_v8  ;;  %v1913_v45 = vshrl.u32 %v7593_v9, 16  ;;  %v1916_v24 = vshll.u32 %v7593_v9, 16 }
 0x151   : > { %v4842_v57 = vcombine.low %v1901_v51, %v1911_v63  ;;  %v3397_v17 = vadd.f32 %v7419_v52, %v7303_v19  ;;  %v7621_v28 = vadd.f32 %v5252_v46, %v3389_v50  ;;  %v1922_v31 = vshll.u32 %v7603_v30, 16 }
 0x152   : > { %v1926_v7 = vshrl.u32 %v7603_v30, 16  ;;  %5608 = vmatmul.mubr.bf16.gmra.mrb[136].mxu0 %v4857_v48  ;;  %v1915_v20 = vrot.slane %v1913_v45, 4  ;;  %v1918_v11 = vrot.slane %v1916_v24, 5  ;;  %v1932_v51 = vshll.u32 %v4683_v32, 16 }
 0x153   : > { %3946 = vmatprep.mubr.bf16.mxu1 %v4842_v57  ;;  %v4714_v38 = vrot.slane %v4698_v37, 9  ;;  %v1924_v23 = vrot.slane %v1922_v31, 5  ;;  %v2100_v50 = vrot.slane %v7532_v0, 5  ;;  %v2103_v46 = vrot.slane %v7543_v59, 5 }
 0x154   : > { %v5171_v43 = vpop.f32.mrb[40].mxu0  ;;  %3947 = vmatmul.mubr.bf16.gmra.mrb[136].mxu1 %v4826_v13  ;;  %v1928_v52 = vrot.slane %v1926_v7, 4  ;;  %v3402_v36 = vadd.f32 %v7446_v4, %v7303_v19  ;;  %v1919_v57 = vor.u32 %v1918_v11, %v1915_v20  ;;  %v1934_v48 = vrot.slane %v1932_v51, 5 }
 0x155   : > { %v5259_v49 = vpop.f32.mrb[40].mxu1  ;;  %v5172_v61 = vpop.f32.mrb[41].mxu0  ;;  %v4715_v45 = vrot.slane %v4699_v12, 9  ;;  %v2101_v37 = vsel %vm6130_vm5, %v4714_v38, %v2100_v50  ;;  %v2102_v55 = vrot.slane %v2100_v50, 4  ;;  %v2107_v13 = vrot.slane %v7603_v30, 5 }
 0x156   : > { %v5260_v44 = vpop.f32.mrb[41].mxu1  ;;  %v5174_v63 = vpop.f32.mrb[42].mxu0  ;;  %v1929_v24 = vor.u32 %v1928_v52, %v1924_v23  ;;  %v1920_v31 = vrot.slane %v1919_v57, 4  ;;  %v2110_v7 = vrot.slane %v4683_v32, 5  ;;  %v7635_v0 = vadd.f32 %v7562_v47, %v7556_v21 }
 0x157   : > { %v5262_v8 = vpop.f32.mrb[42].mxu1  ;;  %v5175_v15 = vpop.f32.mrb[43].mxu0  ;;  %v5255_v59 = vadd.f32 %v7564_v10, %v7558_v53  ;;  %v2104_v12 = vsel %vm6130_vm5, %v2102_v55, %v2103_v46  ;;  %v2108_v20 = vsel %vm6130_vm5, %v4715_v45, %v2107_v13  ;;  %v2109_v11 = vrot.slane %v2107_v13, 4 }
 0x158   : > { %v5263_v3 = vpop.f32.mrb[43].mxu1  ;;  %v1930_v4 = vrot.slane %v1929_v24, 4  ;;  %v1925_v51 = vsel %vm5932_vm2, %v1920_v31, %v1924_v23  ;;  %v4858_v38 = vcombine.low %v2101_v37, %v2104_v12  ;;  %v4827_v32 = vcombine.low %v7593_v9, %v7603_v30 }
 0x159   : > { %v7648_v21 = vadd.f32 %v5255_v59, %v7568_v56  ;;  %v2111_v55 = vsel %vm6130_vm5, %v2109_v11, %v2110_v7  ;;  %v5170_v52 = vadd.f32 %v7577_v58, %v7570_v2  ;;  %v5258_v23 = vadd.f32 %v7579_v5, %v7572_v60 }
 0x15a   : > { %v1935_v10 = vsel %vm5932_vm2, %v1930_v4, %v1934_v48  ;;  %5611 = vmatprep.mubr.bf16.mxu0 %v4858_v38  ;;  %v4859_v56 = vcombine.low %v2108_v20, %v2111_v55  ;;  %v7658_v30 = vadd.f32 %v5172_v61, %v5171_v43  ;;  %v5261_v57 = vadd.f32 %v5260_v44, %v5259_v49 }
 0x15b   : > { %v4843_v9 = vcombine.low %v1925_v51, %v1935_v10  ;;  %v3405_v27 = vadd.f32 %v7473_v39, %v7303_v19  ;;  %v7662_v48 = vadd.f32 %v5258_v23, %v3397_v17  ;;  %v5176_v24 = vadd.f32 %v5175_v15, %v5174_v63 }
 0x15c   : > { %v5177_v47 = vpop.f32.mrb[44].mxu0  ;;  %v5264_v2 = vadd.f32 %v5263_v3, %v5262_v8  ;;  %5612 = vmatmul.mubr.bf16.gmra.mrb[140].mxu0 %v4859_v56  ;;  %v7664_v60 = vadd.f32 %v5261_v57, %v3402_v36  ;;  %v3410_v43 = vadd.f32 %v7507_v41, %v7303_v19  ;;  %v3413_v3 = vadd.f32 %v7539_v54, %v7303_v19 }
 0x15d   : > { %v5265_v53 = vpop.f32.mrb[44].mxu1  ;;  %v5178_v50 = vpop.f32.mrb[45].mxu0  ;;  %3954 = vmatprep.mubr.bf16.mxu1 %v4843_v9  ;;  %v3418_v41 = vadd.f32 %v7584_v62, %v7303_v19  ;;  %v3421_v12 = vadd.f32 %v7611_v26, %v7303_v19  ;;  %v3426_v26 = vadd.f32 %v7635_v0, %v7303_v19 }
 0x15e   : > { %v5266_v46 = vpop.f32.mrb[45].mxu1  ;;  %v5180_v45 = vpop.f32.mrb[46].mxu0  ;;  %v7666_v5 = vadd.f32 %v5178_v50, %v5177_v47  ;;  %3955 = vmatmul.mubr.bf16.gmra.mrb[140].mxu1 %v4827_v32  ;;  %v7670_v49 = vadd.f32 %v5264_v2, %v3405_v27 }
 0x15f   : > { %v5268_v35 = vpop.f32.mrb[46].mxu1  ;;  %v5181_v58 = vpop.f32.mrb[47].mxu0  ;;  %v5267_v61 = vadd.f32 %v5266_v46, %v5265_v53 }
 0x160   : > { %v5269_v37 = vpop.f32.mrb[47].mxu1  ;;  %v7672_v39 = vadd.f32 %v5181_v58, %v5180_v45 }
 0x161   : > { %v5270_v15 = vadd.f32 %v5269_v37, %v5268_v35  ;;  %v7676_v17 = vadd.f32 %v5267_v61, %v3410_v43 }
 0x163   : > { %v7678_v44 = vadd.f32 %v5270_v15, %v3413_v3 }
 0x164   : > { %v5335_v63 = vpop.f32.mrb[48].mxu0 }
 0x165   : > { %v5271_v36 = vpop.f32.mrb[48].mxu1  ;;  %v5336_v13 = vpop.f32.mrb[49].mxu0 }
 0x166   : > { %v5272_v8 = vpop.f32.mrb[49].mxu1  ;;  %v5337_v7 = vadd.f32 %v5336_v13, %v5335_v63  ;;  %v5338_v4 = vpop.f32.mrb[50].mxu0 }
 0x167   : > { %v5273_v31 = vadd.f32 %v5272_v8, %v5271_v36  ;;  %v5274_v59 = vpop.f32.mrb[50].mxu1  ;;  %v5339_v20 = vpop.f32.mrb[51].mxu0 }
 0x168   : > { %v5275_v54 = vpop.f32.mrb[51].mxu1  ;;  %v7687_v51 = vadd.f32 %v5337_v7, %v7370_v29  ;;  %v5340_v32 = vadd.f32 %v5339_v20, %v5338_v4  ;;  %v3429_v29 = vadd.f32 %v5170_v52, %v7303_v19  ;;  %v3434_v52 = vadd.f32 %v7658_v30, %v7303_v19 }
 0x169   : > { %v7684_v11 = vadd.f32 %v5273_v31, %v3418_v41  ;;  %v5276_v38 = vadd.f32 %v5275_v54, %v5274_v59 }
 0x16a   : > { %v7692_v62 = vadd.f32 %v5340_v32, %v7380_v25 }
 0x16b   : > { %v7689_v47 = vadd.f32 %v5276_v38, %v3421_v12 }
 0x16c   : > { %v5341_v10 = vpop.f32.mrb[52].mxu0 }
 0x16d   : > { %v5277_v53 = vpop.f32.mrb[52].mxu1  ;;  %v5342_v23 = vpop.f32.mrb[53].mxu0 }
 0x16e   : > { %v5278_v55 = vpop.f32.mrb[53].mxu1  ;;  %v5343_v46 = vadd.f32 %v5342_v23, %v5341_v10  ;;  %v5344_v56 = vpop.f32.mrb[54].mxu0 }
 0x16f   : > { %v5279_v50 = vadd.f32 %v5278_v55, %v5277_v53  ;;  %v5280_v9 = vpop.f32.mrb[54].mxu1  ;;  %v5345_v45 = vpop.f32.mrb[55].mxu0 }
 0x170   : > { %v5281_v57 = vpop.f32.mrb[55].mxu1  ;;  %v7700_v25 = vadd.f32 %v5343_v46, %v7410_v42  ;;  %v5346_v2 = vadd.f32 %v5345_v45, %v5344_v56  ;;  %v3437_v42 = vadd.f32 %v5176_v24, %v7303_v19  ;;  %v3442_v24 = vadd.f32 %v7666_v5, %v7303_v19 }
 0x171   : > { %v7697_v35 = vadd.f32 %v5279_v50, %v3426_v26  ;;  %v5282_v27 = vadd.f32 %v5281_v57, %v5280_v9 }
 0x172   : > { %v7705_v37 = vadd.f32 %v5346_v2, %v7430_v33 }
 0x173   : > { %v7702_v58 = vadd.f32 %v5282_v27, %v3429_v29 }
 0x174   : > { %v5347_v43 = vpop.f32.mrb[56].mxu0 }
 0x175   : > { %v5283_v0 = vpop.f32.mrb[56].mxu1  ;;  %v5348_v3 = vpop.f32.mrb[57].mxu0 }
 0x176   : > { %v5284_v61 = vpop.f32.mrb[57].mxu1  ;;  %v5349_v36 = vadd.f32 %v5348_v3, %v5347_v43  ;;  %v5350_v8 = vpop.f32.mrb[58].mxu0 }
 0x177   : > { %v5285_v15 = vadd.f32 %v5284_v61, %v5283_v0  ;;  %v5286_v63 = vpop.f32.mrb[58].mxu1  ;;  %v5351_v41 = vpop.f32.mrb[59].mxu0 }
 0x178   : > { %v5287_v13 = vpop.f32.mrb[59].mxu1  ;;  %v7713_v33 = vadd.f32 %v5349_v36, %v7460_v16  ;;  %v5352_v59 = vadd.f32 %v5351_v41, %v5350_v8  ;;  %v3445_v16 = vadd.f32 %v7672_v39, %v7303_v19  ;;  %v3450_v39 = vadd.f32 %v7168_v14, %v7303_v19 }
 0x179   : > { %v7710_v31 = vadd.f32 %v5285_v15, %v3434_v52  ;;  %v5288_v7 = vadd.f32 %v5287_v13, %v5286_v63 }
 0x17a   : > { %v7718_v12 = vadd.f32 %v5352_v59, %v7483_v22 }
 0x17b   : > { %v7715_v4 = vadd.f32 %v5288_v7, %v3437_v42 }
 0x17c   : > { %v5353_v54 = vpop.f32.mrb[60].mxu0 }
 0x17d   : > { %v5289_v30 = vpop.f32.mrb[60].mxu1  ;;  %v5354_v38 = vpop.f32.mrb[61].mxu0 }
 0x17e   : > { %v5290_v20 = vpop.f32.mrb[61].mxu1  ;;  %v5355_v53 = vadd.f32 %v5354_v38, %v5353_v54  ;;  %v5356_v55 = vpop.f32.mrb[62].mxu0 }
 0x17f   : > { %v5291_v32 = vadd.f32 %v5290_v20, %v5289_v30  ;;  %v5292_v10 = vpop.f32.mrb[62].mxu1  ;;  %v5357_v26 = vpop.f32.mrb[63].mxu0 }
 0x180   : > { %v5293_v23 = vpop.f32.mrb[63].mxu1  ;;  %v7727_v22 = vadd.f32 %v5355_v53, %v7529_v40  ;;  %v5358_v9 = vadd.f32 %v5357_v26, %v5356_v55  ;;  %v3453_v40 = vadd.f32 %v7177_v1, %v7303_v19  ;;  %v3458_v1 = vadd.f32 %v7211_v34, %v7303_v19 }
 0x181   : > { %v7724_v50 = vadd.f32 %v5291_v32, %v3442_v24  ;;  %v5294_v46 = vadd.f32 %v5293_v23, %v5292_v10 }
 0x182   : > { %v7732_v5 = vadd.f32 %v5358_v9, %v7550_v18 }
 0x183   : > { %v7729_v56 = vadd.f32 %v5294_v46, %v3445_v16 }
 0x184   : > { %v5359_v57 = vpop.f32.mrb[64].mxu0 }
 0x185   : > { %v5295_v29 = vpop.f32.mrb[64].mxu1  ;;  %v5360_v27 = vpop.f32.mrb[65].mxu0 }
 0x186   : > { %v5296_v45 = vpop.f32.mrb[65].mxu1  ;;  %v5361_v0 = vadd.f32 %v5360_v27, %v5359_v57  ;;  %v5362_v61 = vpop.f32.mrb[66].mxu0 }
 0x187   : > { %v5297_v2 = vadd.f32 %v5296_v45, %v5295_v29  ;;  %v5298_v43 = vpop.f32.mrb[66].mxu1  ;;  %v5363_v52 = vpop.f32.mrb[67].mxu0  ;;  %v7998_v29 = vld [vmem:[#allocation3_spill] sm:$0xff] }
 0x188   : > { %v5299_v3 = vpop.f32.mrb[67].mxu1  ;;  %v7741_v18 = vadd.f32 %v5361_v0, %v7600_v6  ;;  %v5364_v63 = vadd.f32 %v5363_v52, %v5362_v61  ;;  %v7997_v6 = vld [vmem:[#allocation2_spill] sm:$0xff]  ;;  %v3466_v57 = vadd.f32 %v7998_v29, %v7303_v19 }
 0x189   : > { %v7738_v15 = vadd.f32 %v5297_v2, %v3450_v39  ;;  %v5300_v36 = vadd.f32 %v5299_v3, %v5298_v43  ;;  %v3461_v38 = vadd.f32 %v7997_v6, %v7303_v19  ;;  %v8001_v6 = vld [vmem:[#allocation6_spill] sm:$0xff] }
 0x18a   : > { %v7746_v14 = vadd.f32 %v5364_v63, %v7621_v28 }
 0x18b   : > { %v7743_v8 = vadd.f32 %v5300_v36, %v3453_v40 }
 0x18c   : > { %v5365_v13 = vpop.f32.mrb[68].mxu0 }
 0x18d   : > { %v5301_v42 = vpop.f32.mrb[68].mxu1  ;;  %v5366_v7 = vpop.f32.mrb[69].mxu0 }
 0x18e   : > { %v5302_v41 = vpop.f32.mrb[69].mxu1  ;;  %v5367_v30 = vadd.f32 %v5366_v7, %v5365_v13  ;;  %v5368_v20 = vpop.f32.mrb[70].mxu0 }
 0x18f   : > { %v5303_v59 = vadd.f32 %v5302_v41, %v5301_v42  ;;  %v5304_v54 = vpop.f32.mrb[70].mxu1  ;;  %v5369_v32 = vpop.f32.mrb[71].mxu0 }
 0x190   : > { %v5305_v24 = vpop.f32.mrb[71].mxu1  ;;  %v7755_v28 = vadd.f32 %v5367_v30, %v7648_v21  ;;  %v5370_v55 = vadd.f32 %v5369_v32, %v5368_v20  ;;  %v7999_v21 = vld [vmem:[#allocation4_spill] sm:$0xff] }
 0x191   : > { %v7752_v53 = vadd.f32 %v5303_v59, %v3458_v1  ;;  %v5306_v10 = vadd.f32 %v5305_v24, %v5304_v54  ;;  %v3469_v0 = vadd.f32 %v7999_v21, %v7303_v19  ;;  %v5783_v19 = vld [vmem:[%s7975_s3] ss:$0 sm:$0xff]  ;;  %v8000_v1 = vld [vmem:[#allocation5_spill] sm:$0xff] }
 0x192   : > { %v7760_v34 = vadd.f32 %v5370_v55, %v7662_v48  ;;  %v3474_v59 = vadd.f32 %v5783_v19, %v8000_v1 }
 0x193   : > { %v7757_v16 = vadd.f32 %v5306_v10, %v3461_v38  ;;  %v3477_v38 = vadd.f32 %v5783_v19, %v8001_v6 }
 0x194   : > { %v5371_v26 = vpop.f32.mrb[72].mxu0 }
 0x195   : > { %v5307_v23 = vpop.f32.mrb[72].mxu1  ;;  %v5372_v9 = vpop.f32.mrb[73].mxu0 }
 0x196   : > { %v5308_v46 = vpop.f32.mrb[73].mxu1  ;;  %v5373_v27 = vadd.f32 %v5372_v9, %v5371_v26  ;;  %v5374_v2 = vpop.f32.mrb[74].mxu0 }
 0x197   : > { %v5309_v45 = vadd.f32 %v5308_v46, %v5307_v23  ;;  %v5310_v39 = vpop.f32.mrb[74].mxu1  ;;  %v5375_v61 = vpop.f32.mrb[75].mxu0 }
 0x198   : > { %v5311_v43 = vpop.f32.mrb[75].mxu1  ;;  %v7769_v48 = vadd.f32 %v5373_v27, %v7664_v60  ;;  %v5376_v52 = vadd.f32 %v5375_v61, %v5374_v2 }
 0x199   : > { %v7766_v40 = vadd.f32 %v5309_v45, %v3466_v57  ;;  %v5312_v3 = vadd.f32 %v5311_v43, %v5310_v39 }
 0x19a   : > { %v7774_v63 = vadd.f32 %v5376_v52, %v7670_v49 }
 0x19b   : > { %v7771_v36 = vadd.f32 %v5312_v3, %v3469_v0 }
 0x19c   : > { %v5377_v13 = vpop.f32.mrb[76].mxu0 }
 0x19d   : > { %v5313_v42 = vpop.f32.mrb[76].mxu1  ;;  %v5378_v7 = vpop.f32.mrb[77].mxu0 }
 0x19e   : > { %v5314_v41 = vpop.f32.mrb[77].mxu1  ;;  %v5379_v60 = vadd.f32 %v5378_v7, %v5377_v13  ;;  %v5380_v20 = vpop.f32.mrb[78].mxu0 }
 0x19f   : > { %v5315_v30 = vadd.f32 %v5314_v41, %v5313_v42  ;;  %v5316_v54 = vpop.f32.mrb[78].mxu1  ;;  %v5381_v32 = vpop.f32.mrb[79].mxu0 }
 0x1a0   : > { %v5317_v24 = vpop.f32.mrb[79].mxu1  ;;  %v7784_v10 = vadd.f32 %v5379_v60, %v7676_v17  ;;  %v5382_v23 = vadd.f32 %v5381_v32, %v5380_v20 }
 0x1a1   : > { %v7781_v49 = vadd.f32 %v5315_v30, %v3474_v59  ;;  %v5318_v55 = vadd.f32 %v5317_v24, %v5316_v54 }
 0x1a2   : > { %v7789_v46 = vadd.f32 %v5382_v23, %v7678_v44 }
 0x1a3   : > { %v7786_v26 = vadd.f32 %v5318_v55, %v3477_v38 }
 0x1a4   : > { %v5383_v9 = vpop.f32.mrb[80].mxu0 }
 0x1a5   : > { %v5447_v29 = vpop.f32.mrb[80].mxu1  ;;  %v5384_v57 = vpop.f32.mrb[81].mxu0 }
 0x1a6   : > { %v5448_v45 = vpop.f32.mrb[81].mxu1  ;;  %v5385_v27 = vadd.f32 %v5384_v57, %v5383_v9  ;;  %v5386_v2 = vpop.f32.mrb[82].mxu0 }
 0x1a7   : > { %v5449_v39 = vadd.f32 %v5448_v45, %v5447_v29  ;;  %v5450_v21 = vpop.f32.mrb[82].mxu1  ;;  %v5387_v0 = vpop.f32.mrb[83].mxu0 }
 0x1a8   : > { %v5451_v43 = vpop.f32.mrb[83].mxu1  ;;  %v7792_v17 = vadd.f32 %v5385_v27, %v7684_v11  ;;  %v5388_v61 = vadd.f32 %v5387_v0, %v5386_v2 }
 0x1a9   : > { %v5452_v3 = vadd.f32 %v5451_v43, %v5450_v21  ;;  %v7795_v52 = vadd.f32 %v5449_v39, %v7687_v51 }
 0x1aa   : > { %v7798_v44 = vadd.f32 %v5388_v61, %v7689_v47 }
 0x1ab   : > { %v7801_v42 = vadd.f32 %v5452_v3, %v7692_v62 }
 0x1ac   : > { %v5389_v13 = vpop.f32.mrb[84].mxu0 }
 0x1ad   : > { %v5453_v41 = vpop.f32.mrb[84].mxu1  ;;  %v5390_v7 = vpop.f32.mrb[85].mxu0 }
 0x1ae   : > { %v5454_v19 = vpop.f32.mrb[85].mxu1  ;;  %v5391_v1 = vadd.f32 %v5390_v7, %v5389_v13  ;;  %v5392_v30 = vpop.f32.mrb[86].mxu0 }
 0x1af   : > { %v5455_v59 = vadd.f32 %v5454_v19, %v5453_v41  ;;  %v5456_v11 = vpop.f32.mrb[86].mxu1  ;;  %v5393_v60 = vpop.f32.mrb[87].mxu0 }
 0x1b0   : > { %v5457_v54 = vpop.f32.mrb[87].mxu1  ;;  %v7804_v20 = vadd.f32 %v5391_v1, %v7697_v35  ;;  %v5394_v51 = vadd.f32 %v5393_v60, %v5392_v30 }
 0x1b1   : > { %v5458_v6 = vadd.f32 %v5457_v54, %v5456_v11  ;;  %v7807_v47 = vadd.f32 %v5455_v59, %v7700_v25 }
 0x1b2   : > { %v7810_v62 = vadd.f32 %v5394_v51, %v7702_v58 }
 0x1b3   : > { %v7813_v38 = vadd.f32 %v5458_v6, %v7705_v37 }
 0x1b5   : > { %v5459_v24 = vpop.f32.mrb[88].mxu1  ;;  %v5395_v55 = vpop.f32.mrb[88].mxu0 }
 0x1b6   : > { %v5460_v32 = vpop.f32.mrb[89].mxu1  ;;  %v5396_v29 = vpop.f32.mrb[89].mxu0 }
 0x1b7   : > { %v5461_v23 = vadd.f32 %v5460_v32, %v5459_v24  ;;  %v5462_v9 = vpop.f32.mrb[90].mxu1  ;;  %v5397_v35 = vadd.f32 %v5396_v29, %v5395_v55  ;;  %v5398_v45 = vpop.f32.mrb[90].mxu0 }
 0x1b8   : > { %v5463_v57 = vpop.f32.mrb[91].mxu1  ;;  %v5399_v25 = vpop.f32.mrb[91].mxu0 }
 0x1b9   : > { %v5464_v27 = vadd.f32 %v5463_v57, %v5462_v9  ;;  %v7816_v39 = vadd.f32 %v5461_v23, %v7713_v33  ;;  %v7819_v58 = vadd.f32 %v5397_v35, %v7710_v31  ;;  %v5400_v2 = vadd.f32 %v5399_v25, %v5398_v45 }
 0x1bb   : > { %v7822_v37 = vadd.f32 %v5464_v27, %v7718_v12  ;;  %v7825_v21 = vadd.f32 %v5400_v2, %v7715_v4 }
 0x1bd   : > { %v5465_v0 = vpop.f32.mrb[92].mxu1 }
 0x1be   : > { %v5466_v43 = vpop.f32.mrb[93].mxu1 }
 0x1bf   : > { %v5401_v61 = vpop.f32.mrb[92].mxu0  ;;  %v5467_v3 = vadd.f32 %v5466_v43, %v5465_v0  ;;  %v5468_v13 = vpop.f32.mrb[94].mxu1 }
 0x1c0   : > { %v5402_v41 = vpop.f32.mrb[93].mxu0  ;;  %v5469_v7 = vpop.f32.mrb[95].mxu1 }
 0x1c1   : > { %v5403_v33 = vadd.f32 %v5402_v41, %v5401_v61  ;;  %v5404_v19 = vpop.f32.mrb[94].mxu0  ;;  %v5470_v1 = vadd.f32 %v5469_v7, %v5468_v13  ;;  %v7828_v31 = vadd.f32 %v5467_v3, %v7727_v22 }
 0x1c2   : > { %v5405_v59 = vpop.f32.mrb[95].mxu0 }
 0x1c3   : > { %v7831_v12 = vadd.f32 %v5403_v33, %v7724_v50  ;;  %v5406_v30 = vadd.f32 %v5405_v59, %v5404_v19  ;;  %v7834_v4 = vadd.f32 %v5470_v1, %v7732_v5 }
 0x1c5   : > { %v7837_v11 = vadd.f32 %v5406_v30, %v7729_v56  ;;  %v5471_v60 = vpop.f32.mrb[96].mxu1 }
 0x1c6   : > { %v5472_v54 = vpop.f32.mrb[97].mxu1 }
 0x1c7   : > { %v5407_v51 = vpop.f32.mrb[96].mxu0  ;;  %v5473_v6 = vadd.f32 %v5472_v54, %v5471_v60  ;;  %v5474_v24 = vpop.f32.mrb[98].mxu1 }
 0x1c8   : > { %v5408_v32 = vpop.f32.mrb[97].mxu0  ;;  %v5475_v55 = vpop.f32.mrb[99].mxu1 }
 0x1c9   : > { %v5409_v22 = vadd.f32 %v5408_v32, %v5407_v51  ;;  %v5410_v23 = vpop.f32.mrb[98].mxu0  ;;  %v5476_v9 = vadd.f32 %v5475_v55, %v5474_v24  ;;  %v7840_v50 = vadd.f32 %v5473_v6, %v7741_v18 }
 0x1ca   : > { %v5411_v29 = vpop.f32.mrb[99].mxu0 }
 0x1cb   : > { %v7843_v5 = vadd.f32 %v5409_v22, %v7738_v15  ;;  %v5412_v57 = vadd.f32 %v5411_v29, %v5410_v23  ;;  %v7846_v56 = vadd.f32 %v5476_v9, %v7746_v14 }
 0x1cd   : > { %v7849_v35 = vadd.f32 %v5412_v57, %v7743_v8 }
 0x1cf   : > { %v5477_v45 = vpop.f32.mrb[100].mxu1 }
 0x1d0   : > { %v5478_v27 = vpop.f32.mrb[101].mxu1 }
 0x1d1   : > { %v5413_v25 = vpop.f32.mrb[100].mxu0  ;;  %v5479_v2 = vadd.f32 %v5478_v27, %v5477_v45  ;;  %v5480_v0 = vpop.f32.mrb[102].mxu1 }
 0x1d2   : > { %v5414_v43 = vpop.f32.mrb[101].mxu0  ;;  %v5481_v61 = vpop.f32.mrb[103].mxu1 }
 0x1d3   : > { %v5415_v18 = vadd.f32 %v5414_v43, %v5413_v25  ;;  %v5416_v3 = vpop.f32.mrb[102].mxu0  ;;  %v5482_v13 = vadd.f32 %v5481_v61, %v5480_v0  ;;  %v7852_v15 = vadd.f32 %v5479_v2, %v7755_v28 }
 0x1d4   : > { %v5417_v41 = vpop.f32.mrb[103].mxu0 }
 0x1d5   : > { %v7855_v14 = vadd.f32 %v5415_v18, %v7752_v53  ;;  %v5418_v7 = vadd.f32 %v5417_v41, %v5416_v3  ;;  %v7858_v8 = vadd.f32 %v5482_v13, %v7760_v34 }
 0x1d7   : > { %v7861_v33 = vadd.f32 %v5418_v7, %v7757_v16 }
 0x1d8   : > { %v5483_v19 = vpop.f32.mrb[104].mxu1 }
 0x1d9   : > { %v5484_v1 = vpop.f32.mrb[105].mxu1 }
 0x1da   : > { %v5485_v59 = vadd.f32 %v5484_v1, %v5483_v19  ;;  %v5486_v30 = vpop.f32.mrb[106].mxu1 }
 0x1db   : > { %v5487_v54 = vpop.f32.mrb[107].mxu1 }
 0x1dc   : > { %v5419_v60 = vpop.f32.mrb[104].mxu0  ;;  %v5488_v28 = vadd.f32 %v5487_v54, %v5486_v30  ;;  %v7864_v6 = vadd.f32 %v5485_v59, %v7769_v48 }
 0x1dd   : > { %v5420_v51 = vpop.f32.mrb[105].mxu0 }
 0x1de   : > { %v5421_v53 = vadd.f32 %v5420_v51, %v5419_v60  ;;  %v5422_v24 = vpop.f32.mrb[106].mxu0  ;;  %v7867_v34 = vadd.f32 %v5488_v28, %v7774_v63 }
 0x1df   : > { %v5423_v32 = vpop.f32.mrb[107].mxu0 }
 0x1e0   : > { %v7870_v16 = vadd.f32 %v5421_v53, %v7766_v40  ;;  %v5424_v55 = vadd.f32 %v5423_v32, %v5422_v24 }
 0x1e2   : > { %v7873_v22 = vadd.f32 %v5424_v55, %v7771_v36 }
 0x1e3   : > { %v5489_v23 = vpop.f32.mrb[108].mxu1 }
 0x1e4   : > { %v5490_v9 = vpop.f32.mrb[109].mxu1 }
 0x1e5   : > { %v5491_v57 = vadd.f32 %v5490_v9, %v5489_v23  ;;  %v5492_v45 = vpop.f32.mrb[110].mxu1 }
 0x1e6   : > { %v5425_v29 = vpop.f32.mrb[108].mxu0  ;;  %v5493_v27 = vpop.f32.mrb[111].mxu1 }
 0x1e7   : > { %v5426_v48 = vpop.f32.mrb[109].mxu0  ;;  %v5494_v0 = vadd.f32 %v5493_v27, %v5492_v45  ;;  %v7876_v63 = vadd.f32 %v5491_v57, %v7784_v10 }
 0x1e8   : > { %v5427_v25 = vadd.f32 %v5426_v48, %v5425_v29  ;;  %v5428_v2 = vpop.f32.mrb[110].mxu0 }
 0x1e9   : > { %v5429_v40 = vpop.f32.mrb[111].mxu0  ;;  %v7882_v61 = vadd.f32 %v5494_v0, %v7789_v46 }
 0x1ea   : > { %v7879_v43 = vadd.f32 %v5427_v25, %v7781_v49  ;;  %v5430_v36 = vadd.f32 %v5429_v40, %v5428_v2 }
 0x1ec   : > { %v7885_v18 = vadd.f32 %v5430_v36, %v7786_v26  ;;  %v5495_v3 = vpop.f32.mrb[112].mxu1 }
 0x1ed   : > { %v5496_v7 = vpop.f32.mrb[113].mxu1 }
 0x1ee   : > { %v5585_v13 = vpop.f32.mrb[112].mxu0  ;;  %v5497_v10 = vadd.f32 %v5496_v7, %v5495_v3  ;;  %v5498_v59 = vpop.f32.mrb[114].mxu1 }
 0x1ef   : > { %v4006_v41 = vadd.f32 %v5585_v13, %v7807_v47  ;;  %v3997_v19 = vpop.f32.mrb[113].mxu0  ;;  %v5499_v60 = vpop.f32.mrb[115].mxu1 }
 0x1f0   : > { %v3998_v1 = vadd.f32 %v3997_v19, %v7795_v52  ;;  %v5586_v49 = vpop.f32.mrb[114].mxu0  ;;  %v5500_v26 = vadd.f32 %v5499_v60, %v5498_v59  ;;  %v7898_v54 = vadd.f32 %v5497_v10, %v7792_v17 }
 0x1f1   : > { %v4009_v30 = vadd.f32 %v5586_v49, %v7813_v38  ;;  %v4000_v46 = vpop.f32.mrb[115].mxu0  ;;  %v4323_v32 = vmul.f32 %v4006_v41, %v4006_v41 }
 0x1f2   : > { %v4001_v47 = vadd.f32 %v4000_v46, %v7801_v42  ;;  %v4321_v52 = vmul.f32 %v3998_v1, %v3998_v1  ;;  %v7901_v24 = vadd.f32 %v5500_v26, %v7798_v44 }
 0x1f3   : > { %v5008_v51 = vpack.c.bf16 %v4009_v30, %v4006_v41  ;;  %v4324_v9 = vmul.f32 %v4009_v30, %v4009_v30 }
 0x1f4   : > { %v5003_v28 = vpack.c.bf16 %v4001_v47, %v3998_v1  ;;  %v4284_v53 = vadd.f32 %v4001_v47, %v3998_v1  ;;  %v4322_v38 = vmul.f32 %v4001_v47, %v4001_v47 }
 0x1f5   : > { %5080 = vst [vmem:[%s7894_s27 + $0x8] sm:$0xff] %v5008_v51   ;;  %v5501_v57 = vpop.f32.mrb[116].mxu1 }
 0x1f6   : > { %5004 = vst [vmem:[%s7894_s27] sm:$0xff] %v5003_v28   ;;  %v4285_v55 = vadd.f32 %v4284_v53, %v4006_v41  ;;  %v4353_v23 = vadd.f32 %v4322_v38, %v4321_v52  ;;  %v5589_v42 = vpop.f32.mrb[116].mxu0  ;;  %v5502_v48 = vpop.f32.mrb[117].mxu1 }
 0x1f7   : > { %v4022_v17 = vadd.f32 %v5589_v42, %v7828_v31  ;;  %v4013_v27 = vpop.f32.mrb[117].mxu0  ;;  %v5503_v25 = vadd.f32 %v5502_v48, %v5501_v57  ;;  %v5504_v44 = vpop.f32.mrb[118].mxu1 }
 0x1f8   : > { %v4354_v29 = vadd.f32 %v4353_v23, %v4323_v32  ;;  %v4286_v45 = vadd.f32 %v4285_v55, %v4009_v30  ;;  %v4014_v2 = vadd.f32 %v4013_v27, %v7816_v39  ;;  %v5590_v40 = vpop.f32.mrb[118].mxu0  ;;  %v5505_v3 = vpop.f32.mrb[119].mxu1 }
 0x1f9   : > { %v4025_v36 = vadd.f32 %v5590_v40, %v7834_v4  ;;  %v4016_v13 = vpop.f32.mrb[119].mxu0  ;;  %v5506_v19 = vadd.f32 %v5505_v3, %v5504_v44  ;;  %v7910_v1 = vadd.f32 %v5503_v25, %v7804_v20  ;;  %v4327_v4 = vmul.f32 %v4022_v17, %v4022_v17 }
 0x1fa   : > { %v4355_v0 = vadd.f32 %v4354_v29, %v4324_v9  ;;  %v4287_v41 = vadd.f32 %v4286_v45, %v4014_v2  ;;  %v4325_v7 = vmul.f32 %v4014_v2, %v4014_v2  ;;  %v4017_v10 = vadd.f32 %v4016_v13, %v7822_v37 }
 0x1fb   : > { %v5018_v31 = vpack.c.bf16 %v4025_v36, %v4022_v17  ;;  %v7914_v60 = vadd.f32 %v5506_v19, %v7810_v62  ;;  %v4328_v52 = vmul.f32 %v4025_v36, %v4025_v36 }
 0x1fc   : > { %v4356_v59 = vadd.f32 %v4355_v0, %v4325_v7  ;;  %v5013_v39 = vpack.c.bf16 %v4017_v10, %v4014_v2  ;;  %v4288_v49 = vadd.f32 %v4287_v41, %v4017_v10  ;;  %v4326_v30 = vmul.f32 %v4017_v10, %v4017_v10 }
 0x1fd   : > { %5082 = vst [vmem:[%s7894_s27 + $0x18] sm:$0xff] %v5018_v31  }
 0x1fe   : > { %5081 = vst [vmem:[%s7894_s27 + $0x10] sm:$0xff] %v5013_v39   ;;  %v4289_v46 = vadd.f32 %v4288_v49, %v4022_v17  ;;  %v4357_v26 = vadd.f32 %v4356_v59, %v4326_v30  ;;  %v5593_v47 = vpop.f32.mrb[120].mxu0 }
 0x1ff   : > { %v4038_v37 = vadd.f32 %v5593_v47, %v7852_v15  ;;  %v4029_v28 = vpop.f32.mrb[121].mxu0  ;;  %v5507_v53 = vpop.f32.mrb[120].mxu1 }
 0x200   : > { %v4358_v51 = vadd.f32 %v4357_v26, %v4327_v4  ;;  %v4290_v20 = vadd.f32 %v4289_v46, %v4025_v36  ;;  %v4030_v38 = vadd.f32 %v4029_v28, %v7840_v50  ;;  %v5594_v32 = vpop.f32.mrb[122].mxu0  ;;  %v5508_v55 = vpop.f32.mrb[121].mxu1 }
 0x201   : > { %v4041_v62 = vadd.f32 %v5594_v32, %v7858_v8  ;;  %v4032_v9 = vpop.f32.mrb[123].mxu0  ;;  %v5509_v29 = vadd.f32 %v5508_v55, %v5507_v53  ;;  %v5510_v45 = vpop.f32.mrb[122].mxu1  ;;  %v4331_v36 = vmul.f32 %v4038_v37, %v4038_v37 }
 0x202   : > { %v4359_v23 = vadd.f32 %v4358_v51, %v4328_v52  ;;  %v4291_v57 = vadd.f32 %v4290_v20, %v4030_v38  ;;  %v4329_v42 = vmul.f32 %v4030_v38, %v4030_v38  ;;  %v4033_v17 = vadd.f32 %v4032_v9, %v7846_v56  ;;  %v5511_v48 = vpop.f32.mrb[123].mxu1 }
 0x203   : > { %v5028_v15 = vpack.c.bf16 %v4041_v62, %v4038_v37  ;;  %v5512_v25 = vadd.f32 %v5511_v48, %v5510_v45  ;;  %v7923_v44 = vadd.f32 %v5509_v29, %v7819_v58  ;;  %v4332_v41 = vmul.f32 %v4041_v62, %v4041_v62 }
 0x204   : > { %v4360_v27 = vadd.f32 %v4359_v23, %v4329_v42  ;;  %v5023_v2 = vpack.c.bf16 %v4033_v17, %v4030_v38  ;;  %v4292_v50 = vadd.f32 %v4291_v57, %v4033_v17  ;;  %v4330_v0 = vmul.f32 %v4033_v17, %v4033_v17 }
 0x205   : > { %5084 = vst [vmem:[%s7894_s27 + $0x28] sm:$0xff] %v5028_v15   ;;  %v7927_v40 = vadd.f32 %v5512_v25, %v7825_v21 }
 0x206   : > { %5083 = vst [vmem:[%s7894_s27 + $0x20] sm:$0xff] %v5023_v2   ;;  %v4293_v8 = vadd.f32 %v4292_v50, %v4038_v37  ;;  %v4361_v3 = vadd.f32 %v4360_v27, %v4330_v0 }
 0x207   : > { %v5597_v13 = vpop.f32.mrb[124].mxu0 }
 0x208   : > { %v4294_v56 = vadd.f32 %v4293_v8, %v4041_v62  ;;  %v4362_v7 = vadd.f32 %v4361_v3, %v4331_v36  ;;  %v4054_v10 = vadd.f32 %v5597_v13, %v7876_v63  ;;  %v4045_v31 = vpop.f32.mrb[125].mxu0 }
 0x209   : > { %v5513_v19 = vpop.f32.mrb[124].mxu1  ;;  %v4046_v39 = vadd.f32 %v4045_v31, %v7864_v6  ;;  %v5598_v58 = vpop.f32.mrb[126].mxu0 }
 0x20a   : > { %v5514_v59 = vpop.f32.mrb[125].mxu1  ;;  %v4363_v30 = vadd.f32 %v4362_v7, %v4332_v41  ;;  %v4057_v21 = vadd.f32 %v5598_v58, %v7882_v61  ;;  %v4048_v46 = vpop.f32.mrb[127].mxu0  ;;  %v4335_v55 = vmul.f32 %v4054_v10, %v4054_v10 }
 0x20b   : > { %v5515_v49 = vadd.f32 %v5514_v59, %v5513_v19  ;;  %v5516_v4 = vpop.f32.mrb[126].mxu1  ;;  %v4295_v26 = vadd.f32 %v4294_v56, %v4046_v39  ;;  %v4333_v47 = vmul.f32 %v4046_v39, %v4046_v39  ;;  %v4049_v51 = vadd.f32 %v4048_v46, %v7867_v34 }
 0x20c   : > { %v5517_v52 = vpop.f32.mrb[127].mxu1  ;;  %v5038_v37 = vpack.c.bf16 %v4057_v21, %v4054_v10  ;;  %v4336_v62 = vmul.f32 %v4057_v21, %v4057_v21 }
 0x20d   : > { %v5518_v63 = vadd.f32 %v5517_v52, %v5516_v4  ;;  %v3925_v28 = vadd.f32 %v5515_v49, %v7831_v12  ;;  %v4364_v20 = vadd.f32 %v4363_v30, %v4333_v47  ;;  %v5033_v6 = vpack.c.bf16 %v4049_v51, %v4046_v39 }
 0x20e   : > { %v4296_v53 = vadd.f32 %v4295_v26, %v4049_v51  ;;  %v4334_v38 = vmul.f32 %v4049_v51, %v4049_v51  ;;  %5086 = vst [vmem:[%s7894_s27 + $0x38] sm:$0xff] %v5038_v37  }
 0x20f   : > { %v3928_v32 = vadd.f32 %v5518_v63, %v7837_v11  ;;  %5085 = vst [vmem:[%s7894_s27 + $0x30] sm:$0xff] %v5033_v6  }
 0x210   : > { %v4297_v61 = vadd.f32 %v4296_v53, %v4054_v10  ;;  %v4365_v23 = vadd.f32 %v4364_v20, %v4334_v38 }
 0x211   : > { %v5601_v29 = vpop.f32.mrb[128].mxu0 }
 0x212   : > { %v4366_v9 = vadd.f32 %v4365_v23, %v4335_v55  ;;  %v4298_v57 = vadd.f32 %v4297_v61, %v4057_v21  ;;  %v4070_v42 = vadd.f32 %v5601_v29, %v7910_v1  ;;  %v4061_v45 = vpop.f32.mrb[129].mxu0 }
 0x213   : > { %v5519_v34 = vpop.f32.mrb[128].mxu1  ;;  %v4062_v17 = vadd.f32 %v4061_v45, %v7898_v54  ;;  %v5602_v48 = vpop.f32.mrb[130].mxu0 }
 0x214   : > { %v5520_v12 = vpop.f32.mrb[129].mxu1  ;;  %v4367_v15 = vadd.f32 %v4366_v9, %v4336_v62  ;;  %v4073_v25 = vadd.f32 %v5602_v48, %v7914_v60  ;;  %v4064_v2 = vpop.f32.mrb[131].mxu0  ;;  %v4339_v10 = vmul.f32 %v4070_v42, %v4070_v42 }
 0x215   : > { %v5521_v27 = vadd.f32 %v5520_v12, %v5519_v34  ;;  %v5522_v11 = vpop.f32.mrb[130].mxu1  ;;  %v4299_v50 = vadd.f32 %v4298_v57, %v4062_v17  ;;  %v4337_v0 = vmul.f32 %v4062_v17, %v4062_v17  ;;  %v4065_v36 = vadd.f32 %v4064_v2, %v7901_v24 }
 0x216   : > { %v5523_v8 = vpop.f32.mrb[131].mxu1  ;;  %v5048_v3 = vpack.c.bf16 %v4073_v25, %v4070_v42  ;;  %v4340_v59 = vmul.f32 %v4073_v25, %v4073_v25 }
 0x217   : > { %v5524_v1 = vadd.f32 %v5523_v8, %v5522_v11  ;;  %v3933_v13 = vadd.f32 %v5521_v27, %v7843_v5  ;;  %v4368_v56 = vadd.f32 %v4367_v15, %v4337_v0  ;;  %v5043_v54 = vpack.c.bf16 %v4065_v36, %v4062_v17 }
 0x218   : > { %v4300_v41 = vadd.f32 %v4299_v50, %v4065_v36  ;;  %v4338_v7 = vmul.f32 %v4065_v36, %v4065_v36  ;;  %5088 = vst [vmem:[%s7894_s27 + $0x48] sm:$0xff] %v5048_v3  }
 0x219   : > { %v3936_v19 = vadd.f32 %v5524_v1, %v7849_v35  ;;  %5087 = vst [vmem:[%s7894_s27 + $0x40] sm:$0xff] %v5043_v54  }
 0x21a   : > { %v4301_v60 = vadd.f32 %v4300_v41, %v4070_v42  ;;  %v4369_v31 = vadd.f32 %v4368_v56, %v4338_v7 }
 0x21b   : > { %v5605_v58 = vpop.f32.mrb[132].mxu0 }
 0x21c   : > { %v4370_v39 = vadd.f32 %v4369_v31, %v4339_v10  ;;  %v4302_v49 = vadd.f32 %v4301_v60, %v4073_v25  ;;  %v4086_v30 = vadd.f32 %v5605_v58, %v3925_v28  ;;  %v4077_v4 = vpop.f32.mrb[133].mxu0 }
 0x21d   : > { %v5525_v24 = vpop.f32.mrb[132].mxu1  ;;  %v4078_v5 = vadd.f32 %v4077_v4, %v7923_v44  ;;  %v5606_v26 = vpop.f32.mrb[134].mxu0 }
 0x21e   : > { %v5526_v21 = vpop.f32.mrb[133].mxu1  ;;  %v4371_v46 = vadd.f32 %v4370_v39, %v4340_v59  ;;  %v4089_v35 = vadd.f32 %v5606_v26, %v3928_v32  ;;  %v4080_v51 = vpop.f32.mrb[135].mxu0  ;;  %v4343_v9 = vmul.f32 %v4086_v30, %v4086_v30 }
 0x21f   : > { %v5527_v47 = vadd.f32 %v5526_v21, %v5525_v24  ;;  %v5528_v52 = vpop.f32.mrb[134].mxu1  ;;  %v4303_v37 = vadd.f32 %v4302_v49, %v4078_v5  ;;  %v4341_v63 = vmul.f32 %v4078_v5, %v4078_v5  ;;  %v4081_v6 = vadd.f32 %v4080_v51, %v7927_v40 }
 0x220   : > { %v5529_v20 = vpop.f32.mrb[135].mxu1  ;;  %v5058_v53 = vpack.c.bf16 %v4089_v35, %v4086_v30  ;;  %v4344_v57 = vmul.f32 %v4089_v35, %v4089_v35 }
 0x221   : > { %v5530_v38 = vadd.f32 %v5529_v20, %v5528_v52  ;;  %v3941_v28 = vadd.f32 %v5527_v47, %v7855_v14  ;;  %v4372_v55 = vadd.f32 %v4371_v46, %v4341_v63  ;;  %v5053_v61 = vpack.c.bf16 %v4081_v6, %v4078_v5 }
 0x222   : > { %v4304_v44 = vadd.f32 %v4303_v37, %v4081_v6  ;;  %v4342_v23 = vmul.f32 %v4081_v6, %v4081_v6  ;;  %5090 = vst [vmem:[%s7894_s27 + $0x58] sm:$0xff] %v5058_v53  }
 0x223   : > { %v3944_v62 = vadd.f32 %v5530_v38, %v7861_v33  ;;  %5089 = vst [vmem:[%s7894_s27 + $0x50] sm:$0xff] %v5053_v61  }
 0x224   : > { %v4305_v32 = vadd.f32 %v4304_v44, %v4086_v30  ;;  %v4373_v29 = vadd.f32 %v4372_v55, %v4342_v23 }
 0x225   : > { %v5609_v42 = vpop.f32.mrb[136].mxu0 }
 0x226   : > { %v4374_v34 = vadd.f32 %v4373_v29, %v4343_v9  ;;  %v4306_v45 = vadd.f32 %v4305_v32, %v4089_v35  ;;  %v4102_v12 = vadd.f32 %v5609_v42, %v3941_v28  ;;  %v4093_v17 = vpop.f32.mrb[137].mxu0 }
 0x227   : > { %v5531_v40 = vpop.f32.mrb[136].mxu1  ;;  %v4094_v14 = vadd.f32 %v4093_v17, %v3933_v13  ;;  %v5610_v27 = vpop.f32.mrb[138].mxu0 }
 0x228   : > { %v5532_v15 = vpop.f32.mrb[137].mxu1  ;;  %v4375_v48 = vadd.f32 %v4374_v34, %v4344_v57  ;;  %v4105_v2 = vadd.f32 %v5610_v27, %v3944_v62  ;;  %v4096_v33 = vpop.f32.mrb[139].mxu0  ;;  %v4347_v60 = vmul.f32 %v4102_v12, %v4102_v12 }
 0x229   : > { %v5533_v11 = vadd.f32 %v5532_v15, %v5531_v40  ;;  %v5534_v25 = vpop.f32.mrb[138].mxu1  ;;  %v4307_v50 = vadd.f32 %v4306_v45, %v4094_v14  ;;  %v4345_v0 = vmul.f32 %v4094_v14, %v4094_v14  ;;  %v4097_v36 = vadd.f32 %v4096_v33, %v3936_v19 }
 0x22a   : > { %v5535_v8 = vpop.f32.mrb[139].mxu1  ;;  %v5068_v3 = vpack.c.bf16 %v4105_v2, %v4102_v12  ;;  %v4348_v39 = vmul.f32 %v4105_v2, %v4105_v2 }
 0x22b   : > { %v5536_v1 = vadd.f32 %v5535_v8, %v5534_v25  ;;  %v3949_v56 = vadd.f32 %v5533_v11, %v7870_v16  ;;  %v4376_v54 = vadd.f32 %v4375_v48, %v4345_v0  ;;  %v5063_v41 = vpack.c.bf16 %v4097_v36, %v4094_v14 }
 0x22c   : > { %v4308_v7 = vadd.f32 %v4307_v50, %v4097_v36  ;;  %v4346_v13 = vmul.f32 %v4097_v36, %v4097_v36  ;;  %5092 = vst [vmem:[%s7894_s27 + $0x68] sm:$0xff] %v5068_v3  }
 0x22d   : > { %v3952_v10 = vadd.f32 %v5536_v1, %v7873_v22  ;;  %5091 = vst [vmem:[%s7894_s27 + $0x60] sm:$0xff] %v5063_v41  }
 0x22e   : > { %v4309_v31 = vadd.f32 %v4308_v7, %v4102_v12  ;;  %v4377_v59 = vadd.f32 %v4376_v54, %v4346_v13 }
 0x22f   : > { %v5613_v49 = vpop.f32.mrb[140].mxu0 }
 0x230   : > { %v4378_v58 = vadd.f32 %v4377_v59, %v4347_v60  ;;  %v4310_v24 = vadd.f32 %v4309_v31, %v4105_v2  ;;  %v4109_v30 = vpop.f32.mrb[141].mxu0 }
 0x231   : > { %v5537_v19 = vpop.f32.mrb[140].mxu1  ;;  %v4110_v21 = vadd.f32 %v4109_v30, %v3949_v56  ;;  %v5614_v5 = vpop.f32.mrb[142].mxu0 }
 0x232   : > { %v5538_v4 = vpop.f32.mrb[141].mxu1  ;;  %v4379_v16 = vadd.f32 %v4378_v58, %v4348_v39  ;;  %v4112_v47 = vpop.f32.mrb[143].mxu0 }
 0x233   : > { %v5539_v46 = vadd.f32 %v5538_v4, %v5537_v19  ;;  %v5540_v26 = vpop.f32.mrb[142].mxu1  ;;  %v4311_v52 = vadd.f32 %v4310_v24, %v4110_v21  ;;  %v4349_v22 = vmul.f32 %v4110_v21, %v4110_v21  ;;  %v4113_v51 = vadd.f32 %v4112_v47, %v3952_v10 }
 0x234   : > { %v5541_v35 = vpop.f32.mrb[143].mxu1 }
 0x235   : > { %v3957_v37 = vadd.f32 %v5539_v46, %v7879_v43  ;;  %v5542_v63 = vadd.f32 %v5541_v35, %v5540_v26  ;;  %v4380_v20 = vadd.f32 %v4379_v16, %v4349_v22  ;;  %v5073_v6 = vpack.c.bf16 %v4113_v51, %v4110_v21 }
 0x236   : > { %v4312_v53 = vadd.f32 %v4311_v52, %v4113_v51  ;;  %v4350_v38 = vmul.f32 %v4113_v51, %v4113_v51 }
 0x237   : > { %v4118_v28 = vadd.f32 %v5613_v49, %v3957_v37  ;;  %v3960_v55 = vadd.f32 %v5542_v63, %v7885_v18  ;;  %5093 = vst [vmem:[%s7894_s27 + $0x70] sm:$0xff] %v5073_v6  }
 0x238   : > { %v4381_v61 = vadd.f32 %v4380_v20, %v4350_v38 }
 0x239   : > { %v4351_v44 = vmul.f32 %v4118_v28, %v4118_v28  ;;  %v4121_v23 = vadd.f32 %v5614_v5, %v3960_v55  ;;  %v4313_v62 = vadd.f32 %v4312_v53, %v4118_v28 }
 0x23b   : > { %v5078_v9 = vpack.c.bf16 %v4121_v23, %v4118_v28  ;;  %v4352_v32 = vmul.f32 %v4121_v23, %v4121_v23  ;;  %v4314_v29 = vadd.f32 %v4313_v62, %v4121_v23  ;;  %v4382_v57 = vadd.f32 %v4381_v61, %v4351_v44 }
 0x23d   : > { %5094 = vst [vmem:[%s7894_s27 + $0x78] sm:$0xff] %v5078_v9   ;;  %v4315_v43 = vrot.slane %v4314_v29, 4  ;;  %v4383_v34 = vadd.f32 %v4382_v57, %v4352_v32 }
 0x23f   : > { %v4316_v42 = vadd.f32 %v4315_v43, %v4314_v29  ;;  %v4384_v45 = vrot.slane %v4383_v34, 4 }
 0x241   : > { %v4317_v40 = vrot.slane %v4316_v42, 2  ;;  %v4385_v12 = vadd.f32 %v4384_v45, %v4383_v34 }
 0x243   : > { %v4318_v17 = vadd.f32 %v4317_v40, %v4316_v42  ;;  %v4386_v15 = vrot.slane %v4385_v12, 2 }
 0x245   : > { %v4319_v18 = vrot.slane %v4318_v17, 1  ;;  %v4387_v14 = vadd.f32 %v4386_v15, %v4385_v12 }
 0x247   : > { %v4388_v48 = vrot.slane %v4387_v14, 1  ;;  %v4320_v27 = vadd.f32 %v4319_v18, %v4318_v17 }
 0x249   : > { %v4389_v11 = vadd.f32 %v4388_v48, %v4387_v14 }
 0x24b   : > { %v4391_v25 = vsel %vm4390_vm6, %v4320_v27, %v4389_v11 }
 0x24c   : > { %4392 = vst [vmem:[%s268_s6] sm:$0x3] %v4391_v25 }
 0x24d PF: > { %s16_s20 = sadd.s32 1, %s5806_s20   ;;  %s8002_s18 = smov %s5802_s19 }
 0x24e   : > { %p13_p5 = scmp.ge.s32.totalorder %s16_s20, 4   ;;  %s8003_s19 = smov %s8005_s2 }
 0x250   :  { %15 = sbr.rel (!%p13_p5) target bundleno = 2 (0x2), region = 81 }

</bundles_post_ra>
